<compile_context>
chip_gen: v7x
topology: tpu7x:2x2x1
jax: 0.10.0
libtpu: 0.0.40
codegen_flags: <defaults>
</compile_context>

<pallas_src>
import jax
import jax.numpy as jnp
from jax import lax
from jax.experimental import pallas as pl
from jax.experimental.pallas import tpu as pltpu

LANE = 128


def _fill_reflect_pad(pad_ref, img_bf16, H, W):
    """Write img (H, W, Cpad) bf16 into pad_ref (H+2, W+2, Cpad) with 1-px reflection pad."""
    pad_ref[1:H + 1, 1:W + 1, :] = img_bf16
    # top / bottom rows: pad row 0 <- img row 1, pad row H+1 <- img row H-2
    pad_ref[0:1, 1:W + 1, :] = img_bf16[1:2, :, :]
    pad_ref[H + 1:H + 2, 1:W + 1, :] = img_bf16[H - 2:H - 1, :, :]
    # left / right columns, read back from pad_ref so the corners reflect correctly
    pad_ref[:, 0:1, :] = pad_ref[:, 2:3, :]
    pad_ref[:, W + 1:W + 2, :] = pad_ref[:, W - 1:W, :]


def _fill_im2col(col_ref, pad_ref, H, W, Cpad):
    """Fill col_ref (H, W, 9*Cpad) bf16 with the 9 shifted taps of pad_ref (H+2, W+2, Cpad).

    Each tap occupies its own Cpad-wide (multiple-of-128) lane slot, so every store here is
    a full, aligned, unmasked lane write.  No cast: both refs are bf16.
    """
    for tap in range(9):
        dy, dx = divmod(tap, 3)
        col_ref[:, :, tap * Cpad:(tap + 1) * Cpad] = pad_ref[dy:dy + H, dx:dx + W, :]


def residual_block_kernel(x_ref, w1_ref, b1_ref, w2_ref, b2_ref, out_ref,
                          pad_sc, col_sc):
    # x_ref : (1, H, W, Cpad) f32 (channels zero-padded host-side)
    # w*_ref: (9*Cpad, Cpad) bf16 (zero rows/cols in padded positions)
    # b*_ref: (1, Cpad) f32 (zero in padded positions)
    # out_ref: (1, H*W, Cpad) f32 (lane-dense output slab)
    # pad_sc: (H+2, W+2, Cpad) bf16    col_sc: (H, W, 9*Cpad) bf16
    _, H, W, Cpad = x_ref.shape
    Kpad = col_sc.shape[2]

    # ---- conv1: reflect-pad -> im2col -> one MXU matmul -> bias -> ReLU ------------------
    # Single f32->bf16 cast pass for the whole image (padded lanes are already zero).
    _fill_reflect_pad(pad_sc, x_ref[0].astype(jnp.bfloat16), H, W)
    _fill_im2col(col_sc, pad_sc, H, W, Cpad)
    col = col_sc[...].reshape(H * W, Kpad)                       # bf16, lane-dense K
    h1 = jnp.dot(col, w1_ref[...], preferred_element_type=jnp.float32)
    h1 = jnp.maximum(h1 + b1_ref[0], 0.0)                        # (H*W, Cpad) f32; pad lanes stay 0

    # ---- conv2 on h1 (h1 never leaves VMEM) -----------------------------------------------
    _fill_reflect_pad(pad_sc, h1.astype(jnp.bfloat16).reshape(H, W, Cpad), H, W)
    _fill_im2col(col_sc, pad_sc, H, W, Cpad)
    col = col_sc[...].reshape(H * W, Kpad)
    h2 = jnp.dot(col, w2_ref[...], preferred_element_type=jnp.float32)

    # ---- bias + f32 residual + ReLU, stored as a full-width lane-dense slab ---------------
    res = x_ref[0].reshape(H * W, Cpad)                          # f32 residual read
    out_ref[0] = jnp.maximum(h2 + b2_ref[0] + res, 0.0)


def _pack_conv_weight(w, c_slot, c_out_pad):
    """(9, Cin, Cout) tap-major conv weights -> (9*c_slot, c_out_pad) bf16 matrix.

    Each tap gets its own c_slot-wide (lane-aligned) row block; padded rows/cols are zero.
    """
    taps, cin, cout = w.shape
    wm = jnp.zeros((taps * c_slot, c_out_pad), jnp.float32)
    for tap in range(taps):
        wm = wm.at[tap * c_slot:tap * c_slot + cin, :cout].set(w[tap])
    return wm.astype(jnp.bfloat16)


def residual_block(x_nchw, params):
    """ResidualBlock forward. x_nchw: (B, C, H, W) float32 -> (B, C, H, W) float32."""
    w1, b1, w2, b2 = params
    x = jnp.transpose(x_nchw, (0, 2, 3, 1)).astype(jnp.float32)      # NCHW -> NHWC
    B, H, W, C = x.shape
    assert w1.shape[1] == w1.shape[2] == w2.shape[1] == w2.shape[2] == C, \
        "residual add requires in_channels == out_channels"
    assert H >= 2 and W >= 2, "reflection padding requires H, W >= 2"

    cpad = pl.cdiv(C, LANE) * LANE          # lane-aligned per-tap slot / output width
    kpad = 9 * cpad                         # contraction dim (lane-dense by construction)

    # Zero-pad channels host-side so every in-kernel load/store is full lane width and the
    # padded lanes of every scratch are written with exact zeros (no in-kernel memset).
    xp = x if cpad == C else jnp.pad(x, ((0, 0), (0, 0), (0, 0), (0, cpad - C)))
    w1m = _pack_conv_weight(w1, cpad, cpad)
    w2m = _pack_conv_weight(w2, cpad, cpad)
    b1p = jnp.pad(b1.astype(jnp.float32), ((0, 0), (0, cpad - C)))
    b2p = jnp.pad(b2.astype(jnp.float32), ((0, 0), (0, cpad - C)))

    out2d = pl.pallas_call(
        residual_block_kernel,
        out_shape=jax.ShapeDtypeStruct((B, H * W, cpad), jnp.float32),
        grid_spec=pltpu.PrefetchScalarGridSpec(
            num_scalar_prefetch=0,
            grid=(B,),
            in_specs=[
                pl.BlockSpec((1, H, W, cpad), lambda b: (b, 0, 0, 0)),   # x (conv1 input + f32 residual)
                pl.BlockSpec((kpad, cpad), lambda b: (0, 0)),            # w1 (resident, bf16)
                pl.BlockSpec((1, cpad), lambda b: (0, 0)),               # b1
                pl.BlockSpec((kpad, cpad), lambda b: (0, 0)),            # w2 (resident, bf16)
                pl.BlockSpec((1, cpad), lambda b: (0, 0)),               # b2
            ],
            out_specs=pl.BlockSpec((1, H * W, cpad), lambda b: (b, 0, 0)),
            scratch_shapes=[
                pltpu.VMEM((H + 2, W + 2, cpad), jnp.bfloat16),   # reflection-pad scratch (bf16)
                pltpu.VMEM((H, W, kpad), jnp.bfloat16),           # im2col scratch, per-tap 128-lane slots
            ],
        ),
        compiler_params=pltpu.CompilerParams(
            # Batch steps are independent -> shard across v7x's 2 TensorCores.
            dimension_semantics=("parallel",),
            # Per-step footprint at the test shape is ~2 MiB double-buffered; 32 MiB is a
            # safe scoped budget on v5e/v6e (128 MiB) and v7x (64 MiB).
            vmem_limit_bytes=32 * 1024 * 1024,
        ),
    )(xp, w1m, b1p, w2m, b2p)

    out = out2d[:, :, :C].reshape(B, H, W, C)                    # drop padded lanes (free slice)
    return jnp.transpose(out, (0, 3, 1, 2))                      # NHWC -> NCHW


def init_params(key, in_channels, out_channels):
    """Deterministic synthetic weights. Conv weights: (9, Cin, Cout), tap = dy*3 + dx.
    Bias: (1, Cout)."""
    k1, k2, k3, k4 = jax.random.split(key, 4)
    w1 = jax.random.normal(k1, (9, in_channels, out_channels), jnp.float32) * 0.1
    b1 = jax.random.normal(k2, (1, out_channels), jnp.float32) * 0.1
    w2 = jax.random.normal(k3, (9, out_channels, out_channels), jnp.float32) * 0.1
    b2 = jax.random.normal(k4, (1, out_channels), jnp.float32) * 0.1
    return w1, b1, w2, b2


def _reference(x_nchw, params):
    """Pure-JAX reference with matching numerics (bf16 conv operands, f32 accumulation)."""
    w1, b1, w2, b2 = params

    def conv(x_nhwc, w, b):
        xpad = jnp.pad(x_nhwc, ((0, 0), (1, 1), (1, 1), (0, 0)), mode="reflect")
        w_hwio = w.reshape(3, 3, w.shape[1], w.shape[2])
        y = lax.conv_general_dilated(
            xpad.astype(jnp.bfloat16), w_hwio.astype(jnp.bfloat16),
            window_strides=(1, 1), padding="VALID",
            dimension_numbers=("NHWC", "HWIO", "NHWC"),
            preferred_element_type=jnp.float32)
        return y + b[0]

    x = jnp.transpose(x_nchw, (0, 2, 3, 1)).astype(jnp.float32)
    h1 = jnp.maximum(conv(x, w1, b1), 0.0)
    out = jnp.maximum(conv(h1, w2, b2) + x, 0.0)
    return jnp.transpose(out, (0, 3, 1, 2))


if __name__ == "__main__":
    key = jax.random.PRNGKey(0)
    kx, kp = jax.random.split(key)

    B, C, H, W = 2, 4, 16, 16   # residual add requires in_channels == out_channels
    x = jax.random.normal(kx, (B, C, H, W), jnp.float32)
    params = init_params(kp, C, C)

    out = jax.block_until_ready(residual_block(x, params))
    ref = jax.block_until_ready(_reference(x, params))

    assert out.shape == (B, C, H, W)
    # bf16 matmul operands on both sides -> only reassociation-level differences.
    assert jnp.allclose(out, ref, atol=5e-3, rtol=5e-3), "mismatch vs JAX reference"

    print("KERNEL_OK")
</pallas_src>

<mosaic_0001>
module attributes {stable_mosaic.version = 11 : i64} {
  func.func @residual_block_kernel(%arg0: i32, %arg1: memref<1x16x16x128xf32, #tpu.memory_space<vmem>>, %arg2: memref<1152x128xbf16, #tpu.memory_space<vmem>>, %arg3: memref<1x128xf32, #tpu.memory_space<vmem>>, %arg4: memref<1152x128xbf16, #tpu.memory_space<vmem>>, %arg5: memref<1x128xf32, #tpu.memory_space<vmem>>, %arg6: memref<1x256x128xf32, #tpu.memory_space<vmem>>, %arg7: memref<18x18x128xbf16, #tpu.memory_space<vmem>>, %arg8: memref<16x16x1152xbf16, #tpu.memory_space<vmem>>) attributes {dimension_semantics = [#tpu.dimension_semantics<parallel>], iteration_bounds = array<i64: 2>, scalar_prefetch = 0 : i64, scratch_operands = 2 : i64, tpu.core_type = #tpu.core_type<tc>, window_params = [{transform_indices = @transform_0, window_bounds = array<i64: 1, 16, 16, 128>}, {pipeline_mode = #tpu.pipeline_mode<synchronous>, transform_indices = @transform_1, window_bounds = array<i64: 1152, 128>}, {pipeline_mode = #tpu.pipeline_mode<synchronous>, transform_indices = @transform_2, window_bounds = array<i64: 1, 128>}, {pipeline_mode = #tpu.pipeline_mode<synchronous>, transform_indices = @transform_3, window_bounds = array<i64: 1152, 128>}, {pipeline_mode = #tpu.pipeline_mode<synchronous>, transform_indices = @transform_4, window_bounds = array<i64: 1, 128>}, {transform_indices = @transform_5, window_bounds = array<i64: 1, 256, 128>}]} {
    %c0 = arith.constant 0 : index
    %c0_0 = arith.constant 0 : index
    %c0_1 = arith.constant 0 : index
    %c0_2 = arith.constant 0 : index
    %0 = vector.load %arg1[%c0, %c0_0, %c0_1, %c0_2] : memref<1x16x16x128xf32, #tpu.memory_space<vmem>>, vector<1x16x16x128xf32>
    %1 = vector.shape_cast %0 : vector<1x16x16x128xf32> to vector<16x16x128xf32>
    %2 = arith.truncf %1 : vector<16x16x128xf32> to vector<16x16x128xbf16>
    %c1 = arith.constant 1 : index
    %c1_3 = arith.constant 1 : index
    %c0_4 = arith.constant 0 : index
    %3 = vector.load %arg7[%c1, %c1_3, %c0_4] : memref<18x18x128xbf16, #tpu.memory_space<vmem>>, vector<16x16x128xbf16>
    tpu.vector_store %arg7[%c1, %c1_3, %c0_4], %2 {strides = array<i32>} : memref<18x18x128xbf16, #tpu.memory_space<vmem>>, vector<16x16x128xbf16>,
    %4 = vector.extract_strided_slice %2 {offsets = [1, 0, 0], sizes = [1, 16, 128], strides = [1, 1, 1]} : vector<16x16x128xbf16> to vector<1x16x128xbf16>
    %c0_5 = arith.constant 0 : index
    %c1_6 = arith.constant 1 : index
    %c0_7 = arith.constant 0 : index
    %5 = vector.load %arg7[%c0_5, %c1_6, %c0_7] : memref<18x18x128xbf16, #tpu.memory_space<vmem>>, vector<1x16x128xbf16>
    tpu.vector_store %arg7[%c0_5, %c1_6, %c0_7], %4 {strides = array<i32>} : memref<18x18x128xbf16, #tpu.memory_space<vmem>>, vector<1x16x128xbf16>,
    %6 = vector.extract_strided_slice %2 {offsets = [14, 0, 0], sizes = [1, 16, 128], strides = [1, 1, 1]} : vector<16x16x128xbf16> to vector<1x16x128xbf16>
    %c17 = arith.constant 17 : index
    %c1_8 = arith.constant 1 : index
    %c0_9 = arith.constant 0 : index
    %7 = vector.load %arg7[%c17, %c1_8, %c0_9] : memref<18x18x128xbf16, #tpu.memory_space<vmem>>, vector<1x16x128xbf16>
    tpu.vector_store %arg7[%c17, %c1_8, %c0_9], %6 {strides = array<i32>} : memref<18x18x128xbf16, #tpu.memory_space<vmem>>, vector<1x16x128xbf16>,
    %c0_10 = arith.constant 0 : index
    %c2 = arith.constant 2 : index
    %c0_11 = arith.constant 0 : index
    %8 = vector.load %arg7[%c0_10, %c2, %c0_11] : memref<18x18x128xbf16, #tpu.memory_space<vmem>>, vector<18x1x128xbf16>
    %c0_12 = arith.constant 0 : index
    %c0_13 = arith.constant 0 : index
    %c0_14 = arith.constant 0 : index
    %9 = vector.load %arg7[%c0_12, %c0_13, %c0_14] : memref<18x18x128xbf16, #tpu.memory_space<vmem>>, vector<18x1x128xbf16>
    tpu.vector_store %arg7[%c0_12, %c0_13, %c0_14], %8 {strides = array<i32>} : memref<18x18x128xbf16, #tpu.memory_space<vmem>>, vector<18x1x128xbf16>,
    %c0_15 = arith.constant 0 : index
    %c15 = arith.constant 15 : index
    %c0_16 = arith.constant 0 : index
    %10 = vector.load %arg7[%c0_15, %c15, %c0_16] : memref<18x18x128xbf16, #tpu.memory_space<vmem>>, vector<18x1x128xbf16>
    %c0_17 = arith.constant 0 : index
    %c17_18 = arith.constant 17 : index
    %c0_19 = arith.constant 0 : index
    %11 = vector.load %arg7[%c0_17, %c17_18, %c0_19] : memref<18x18x128xbf16, #tpu.memory_space<vmem>>, vector<18x1x128xbf16>
    tpu.vector_store %arg7[%c0_17, %c17_18, %c0_19], %10 {strides = array<i32>} : memref<18x18x128xbf16, #tpu.memory_space<vmem>>, vector<18x1x128xbf16>,
    %c0_20 = arith.constant 0 : index
    %c0_21 = arith.constant 0 : index
    %c0_22 = arith.constant 0 : index
    %12 = vector.load %arg7[%c0_20, %c0_21, %c0_22] : memref<18x18x128xbf16, #tpu.memory_space<vmem>>, vector<16x16x128xbf16>
    %c0_23 = arith.constant 0 : index
    %c0_24 = arith.constant 0 : index
    %c0_25 = arith.constant 0 : index
    %13 = vector.load %arg8[%c0_23, %c0_24, %c0_25] : memref<16x16x1152xbf16, #tpu.memory_space<vmem>>, vector<16x16x128xbf16>
    tpu.vector_store %arg8[%c0_23, %c0_24, %c0_25], %12 {strides = array<i32>} : memref<16x16x1152xbf16, #tpu.memory_space<vmem>>, vector<16x16x128xbf16>,
    %c0_26 = arith.constant 0 : index
    %c1_27 = arith.constant 1 : index
    %c0_28 = arith.constant 0 : index
    %14 = vector.load %arg7[%c0_26, %c1_27, %c0_28] : memref<18x18x128xbf16, #tpu.memory_space<vmem>>, vector<16x16x128xbf16>
    %c0_29 = arith.constant 0 : index
    %c0_30 = arith.constant 0 : index
    %c128 = arith.constant 128 : index
    %15 = vector.load %arg8[%c0_29, %c0_30, %c128] : memref<16x16x1152xbf16, #tpu.memory_space<vmem>>, vector<16x16x128xbf16>
    tpu.vector_store %arg8[%c0_29, %c0_30, %c128], %14 {strides = array<i32>} : memref<16x16x1152xbf16, #tpu.memory_space<vmem>>, vector<16x16x128xbf16>,
    %c0_31 = arith.constant 0 : index
    %c2_32 = arith.constant 2 : index
    %c0_33 = arith.constant 0 : index
    %16 = vector.load %arg7[%c0_31, %c2_32, %c0_33] : memref<18x18x128xbf16, #tpu.memory_space<vmem>>, vector<16x16x128xbf16>
    %c0_34 = arith.constant 0 : index
    %c0_35 = arith.constant 0 : index
    %c256 = arith.constant 256 : index
    %17 = vector.load %arg8[%c0_34, %c0_35, %c256] : memref<16x16x1152xbf16, #tpu.memory_space<vmem>>, vector<16x16x128xbf16>
    tpu.vector_store %arg8[%c0_34, %c0_35, %c256], %16 {strides = array<i32>} : memref<16x16x1152xbf16, #tpu.memory_space<vmem>>, vector<16x16x128xbf16>,
    %c1_36 = arith.constant 1 : index
    %c0_37 = arith.constant 0 : index
    %c0_38 = arith.constant 0 : index
    %18 = vector.load %arg7[%c1_36, %c0_37, %c0_38] : memref<18x18x128xbf16, #tpu.memory_space<vmem>>, vector<16x16x128xbf16>
    %c0_39 = arith.constant 0 : index
    %c0_40 = arith.constant 0 : index
    %c384 = arith.constant 384 : index
    %19 = vector.load %arg8[%c0_39, %c0_40, %c384] : memref<16x16x1152xbf16, #tpu.memory_space<vmem>>, vector<16x16x128xbf16>
    tpu.vector_store %arg8[%c0_39, %c0_40, %c384], %18 {strides = array<i32>} : memref<16x16x1152xbf16, #tpu.memory_space<vmem>>, vector<16x16x128xbf16>,
    %c1_41 = arith.constant 1 : index
    %c1_42 = arith.constant 1 : index
    %c0_43 = arith.constant 0 : index
    %20 = vector.load %arg7[%c1_41, %c1_42, %c0_43] : memref<18x18x128xbf16, #tpu.memory_space<vmem>>, vector<16x16x128xbf16>
    %c0_44 = arith.constant 0 : index
    %c0_45 = arith.constant 0 : index
    %c512 = arith.constant 512 : index
    %21 = vector.load %arg8[%c0_44, %c0_45, %c512] : memref<16x16x1152xbf16, #tpu.memory_space<vmem>>, vector<16x16x128xbf16>
    tpu.vector_store %arg8[%c0_44, %c0_45, %c512], %20 {strides = array<i32>} : memref<16x16x1152xbf16, #tpu.memory_space<vmem>>, vector<16x16x128xbf16>,
    %c1_46 = arith.constant 1 : index
    %c2_47 = arith.constant 2 : index
    %c0_48 = arith.constant 0 : index
    %22 = vector.load %arg7[%c1_46, %c2_47, %c0_48] : memref<18x18x128xbf16, #tpu.memory_space<vmem>>, vector<16x16x128xbf16>
    %c0_49 = arith.constant 0 : index
    %c0_50 = arith.constant 0 : index
    %c640 = arith.constant 640 : index
    %23 = vector.load %arg8[%c0_49, %c0_50, %c640] : memref<16x16x1152xbf16, #tpu.memory_space<vmem>>, vector<16x16x128xbf16>
    tpu.vector_store %arg8[%c0_49, %c0_50, %c640], %22 {strides = array<i32>} : memref<16x16x1152xbf16, #tpu.memory_space<vmem>>, vector<16x16x128xbf16>,
    %c2_51 = arith.constant 2 : index
    %c0_52 = arith.constant 0 : index
    %c0_53 = arith.constant 0 : index
    %24 = vector.load %arg7[%c2_51, %c0_52, %c0_53] : memref<18x18x128xbf16, #tpu.memory_space<vmem>>, vector<16x16x128xbf16>
    %c0_54 = arith.constant 0 : index
    %c0_55 = arith.constant 0 : index
    %c768 = arith.constant 768 : index
    %25 = vector.load %arg8[%c0_54, %c0_55, %c768] : memref<16x16x1152xbf16, #tpu.memory_space<vmem>>, vector<16x16x128xbf16>
    tpu.vector_store %arg8[%c0_54, %c0_55, %c768], %24 {strides = array<i32>} : memref<16x16x1152xbf16, #tpu.memory_space<vmem>>, vector<16x16x128xbf16>,
    %c2_56 = arith.constant 2 : index
    %c1_57 = arith.constant 1 : index
    %c0_58 = arith.constant 0 : index
    %26 = vector.load %arg7[%c2_56, %c1_57, %c0_58] : memref<18x18x128xbf16, #tpu.memory_space<vmem>>, vector<16x16x128xbf16>
    %c0_59 = arith.constant 0 : index
    %c0_60 = arith.constant 0 : index
    %c896 = arith.constant 896 : index
    %27 = vector.load %arg8[%c0_59, %c0_60, %c896] : memref<16x16x1152xbf16, #tpu.memory_space<vmem>>, vector<16x16x128xbf16>
    tpu.vector_store %arg8[%c0_59, %c0_60, %c896], %26 {strides = array<i32>} : memref<16x16x1152xbf16, #tpu.memory_space<vmem>>, vector<16x16x128xbf16>,
    %c2_61 = arith.constant 2 : index
    %c2_62 = arith.constant 2 : index
    %c0_63 = arith.constant 0 : index
    %28 = vector.load %arg7[%c2_61, %c2_62, %c0_63] : memref<18x18x128xbf16, #tpu.memory_space<vmem>>, vector<16x16x128xbf16>
    %c0_64 = arith.constant 0 : index
    %c0_65 = arith.constant 0 : index
    %c1024 = arith.constant 1024 : index
    %29 = vector.load %arg8[%c0_64, %c0_65, %c1024] : memref<16x16x1152xbf16, #tpu.memory_space<vmem>>, vector<16x16x128xbf16>
    tpu.vector_store %arg8[%c0_64, %c0_65, %c1024], %28 {strides = array<i32>} : memref<16x16x1152xbf16, #tpu.memory_space<vmem>>, vector<16x16x128xbf16>,
    %c0_66 = arith.constant 0 : index
    %c0_67 = arith.constant 0 : index
    %c0_68 = arith.constant 0 : index
    %30 = vector.load %arg8[%c0_66, %c0_67, %c0_68] : memref<16x16x1152xbf16, #tpu.memory_space<vmem>>, vector<16x16x1152xbf16>
    %31 = vector.shape_cast %30 : vector<16x16x1152xbf16> to vector<256x1152xbf16>
    %c0_69 = arith.constant 0 : index
    %c0_70 = arith.constant 0 : index
    %32 = vector.load %arg2[%c0_69, %c0_70] : memref<1152x128xbf16, #tpu.memory_space<vmem>>, vector<1152x128xbf16>
    %cst = arith.constant dense<0.000000e+00> : vector<256x128xf32>
    %33 = tpu.matmul %31, %32, %cst {dimension_numbers = #tpu.dot_dimension_numbers<[1], [0], [0], [1], [0, 0, 1, 1], [], []>} : vector<256x1152xbf16>, vector<1152x128xbf16>, vector<256x128xf32> -> vector<256x128xf32>
    %c0_71 = arith.constant 0 : index
    %c0_72 = arith.constant 0 : index
    %34 = vector.load %arg3[%c0_71, %c0_72] : memref<1x128xf32, #tpu.memory_space<vmem>>, vector<1x128xf32>
    %35 = vector.shape_cast %34 : vector<1x128xf32> to vector<128xf32>
    %36 = vector.shape_cast %35 : vector<128xf32> to vector<1x128xf32>
    %37 = vector.broadcast %36 : vector<1x128xf32> to vector<256x128xf32>
    %38 = arith.addf %33, %37 : vector<256x128xf32>
    %cst_73 = arith.constant 0.000000e+00 : f32
    %39 = vector.broadcast %cst_73 : f32 to vector<256x128xf32>
    %40 = arith.maximumf %38, %39 : vector<256x128xf32>
    %41 = arith.truncf %40 : vector<256x128xf32> to vector<256x128xbf16>
    %42 = vector.shape_cast %41 : vector<256x128xbf16> to vector<16x16x128xbf16>
    %c1_74 = arith.constant 1 : index
    %c1_75 = arith.constant 1 : index
    %c0_76 = arith.constant 0 : index
    %43 = vector.load %arg7[%c1_74, %c1_75, %c0_76] : memref<18x18x128xbf16, #tpu.memory_space<vmem>>, vector<16x16x128xbf16>
    tpu.vector_store %arg7[%c1_74, %c1_75, %c0_76], %42 {strides = array<i32>} : memref<18x18x128xbf16, #tpu.memory_space<vmem>>, vector<16x16x128xbf16>,
    %44 = vector.extract_strided_slice %42 {offsets = [1, 0, 0], sizes = [1, 16, 128], strides = [1, 1, 1]} : vector<16x16x128xbf16> to vector<1x16x128xbf16>
    %c0_77 = arith.constant 0 : index
    %c1_78 = arith.constant 1 : index
    %c0_79 = arith.constant 0 : index
    %45 = vector.load %arg7[%c0_77, %c1_78, %c0_79] : memref<18x18x128xbf16, #tpu.memory_space<vmem>>, vector<1x16x128xbf16>
    tpu.vector_store %arg7[%c0_77, %c1_78, %c0_79], %44 {strides = array<i32>} : memref<18x18x128xbf16, #tpu.memory_space<vmem>>, vector<1x16x128xbf16>,
    %46 = vector.extract_strided_slice %42 {offsets = [14, 0, 0], sizes = [1, 16, 128], strides = [1, 1, 1]} : vector<16x16x128xbf16> to vector<1x16x128xbf16>
    %c17_80 = arith.constant 17 : index
    %c1_81 = arith.constant 1 : index
    %c0_82 = arith.constant 0 : index
    %47 = vector.load %arg7[%c17_80, %c1_81, %c0_82] : memref<18x18x128xbf16, #tpu.memory_space<vmem>>, vector<1x16x128xbf16>
    tpu.vector_store %arg7[%c17_80, %c1_81, %c0_82], %46 {strides = array<i32>} : memref<18x18x128xbf16, #tpu.memory_space<vmem>>, vector<1x16x128xbf16>,
    %c0_83 = arith.constant 0 : index
    %c2_84 = arith.constant 2 : index
    %c0_85 = arith.constant 0 : index
    %48 = vector.load %arg7[%c0_83, %c2_84, %c0_85] : memref<18x18x128xbf16, #tpu.memory_space<vmem>>, vector<18x1x128xbf16>
    %c0_86 = arith.constant 0 : index
    %c0_87 = arith.constant 0 : index
    %c0_88 = arith.constant 0 : index
    %49 = vector.load %arg7[%c0_86, %c0_87, %c0_88] : memref<18x18x128xbf16, #tpu.memory_space<vmem>>, vector<18x1x128xbf16>
    tpu.vector_store %arg7[%c0_86, %c0_87, %c0_88], %48 {strides = array<i32>} : memref<18x18x128xbf16, #tpu.memory_space<vmem>>, vector<18x1x128xbf16>,
    %c0_89 = arith.constant 0 : index
    %c15_90 = arith.constant 15 : index
    %c0_91 = arith.constant 0 : index
    %50 = vector.load %arg7[%c0_89, %c15_90, %c0_91] : memref<18x18x128xbf16, #tpu.memory_space<vmem>>, vector<18x1x128xbf16>
    %c0_92 = arith.constant 0 : index
    %c17_93 = arith.constant 17 : index
    %c0_94 = arith.constant 0 : index
    %51 = vector.load %arg7[%c0_92, %c17_93, %c0_94] : memref<18x18x128xbf16, #tpu.memory_space<vmem>>, vector<18x1x128xbf16>
    tpu.vector_store %arg7[%c0_92, %c17_93, %c0_94], %50 {strides = array<i32>} : memref<18x18x128xbf16, #tpu.memory_space<vmem>>, vector<18x1x128xbf16>,
    %c0_95 = arith.constant 0 : index
    %c0_96 = arith.constant 0 : index
    %c0_97 = arith.constant 0 : index
    %52 = vector.load %arg7[%c0_95, %c0_96, %c0_97] : memref<18x18x128xbf16, #tpu.memory_space<vmem>>, vector<16x16x128xbf16>
    %c0_98 = arith.constant 0 : index
    %c0_99 = arith.constant 0 : index
    %c0_100 = arith.constant 0 : index
    %53 = vector.load %arg8[%c0_98, %c0_99, %c0_100] : memref<16x16x1152xbf16, #tpu.memory_space<vmem>>, vector<16x16x128xbf16>
    tpu.vector_store %arg8[%c0_98, %c0_99, %c0_100], %52 {strides = array<i32>} : memref<16x16x1152xbf16, #tpu.memory_space<vmem>>, vector<16x16x128xbf16>,
    %c0_101 = arith.constant 0 : index
    %c1_102 = arith.constant 1 : index
    %c0_103 = arith.constant 0 : index
    %54 = vector.load %arg7[%c0_101, %c1_102, %c0_103] : memref<18x18x128xbf16, #tpu.memory_space<vmem>>, vector<16x16x128xbf16>
    %c0_104 = arith.constant 0 : index
    %c0_105 = arith.constant 0 : index
    %c128_106 = arith.constant 128 : index
    %55 = vector.load %arg8[%c0_104, %c0_105, %c128_106] : memref<16x16x1152xbf16, #tpu.memory_space<vmem>>, vector<16x16x128xbf16>
    tpu.vector_store %arg8[%c0_104, %c0_105, %c128_106], %54 {strides = array<i32>} : memref<16x16x1152xbf16, #tpu.memory_space<vmem>>, vector<16x16x128xbf16>,
    %c0_107 = arith.constant 0 : index
    %c2_108 = arith.constant 2 : index
    %c0_109 = arith.constant 0 : index
    %56 = vector.load %arg7[%c0_107, %c2_108, %c0_109] : memref<18x18x128xbf16, #tpu.memory_space<vmem>>, vector<16x16x128xbf16>
    %c0_110 = arith.constant 0 : index
    %c0_111 = arith.constant 0 : index
    %c256_112 = arith.constant 256 : index
    %57 = vector.load %arg8[%c0_110, %c0_111, %c256_112] : memref<16x16x1152xbf16, #tpu.memory_space<vmem>>, vector<16x16x128xbf16>
    tpu.vector_store %arg8[%c0_110, %c0_111, %c256_112], %56 {strides = array<i32>} : memref<16x16x1152xbf16, #tpu.memory_space<vmem>>, vector<16x16x128xbf16>,
    %c1_113 = arith.constant 1 : index
    %c0_114 = arith.constant 0 : index
    %c0_115 = arith.constant 0 : index
    %58 = vector.load %arg7[%c1_113, %c0_114, %c0_115] : memref<18x18x128xbf16, #tpu.memory_space<vmem>>, vector<16x16x128xbf16>
    %c0_116 = arith.constant 0 : index
    %c0_117 = arith.constant 0 : index
    %c384_118 = arith.constant 384 : index
    %59 = vector.load %arg8[%c0_116, %c0_117, %c384_118] : memref<16x16x1152xbf16, #tpu.memory_space<vmem>>, vector<16x16x128xbf16>
    tpu.vector_store %arg8[%c0_116, %c0_117, %c384_118], %58 {strides = array<i32>} : memref<16x16x1152xbf16, #tpu.memory_space<vmem>>, vector<16x16x128xbf16>,
    %c1_119 = arith.constant 1 : index
    %c1_120 = arith.constant 1 : index
    %c0_121 = arith.constant 0 : index
    %60 = vector.load %arg7[%c1_119, %c1_120, %c0_121] : memref<18x18x128xbf16, #tpu.memory_space<vmem>>, vector<16x16x128xbf16>
    %c0_122 = arith.constant 0 : index
    %c0_123 = arith.constant 0 : index
    %c512_124 = arith.constant 512 : index
    %61 = vector.load %arg8[%c0_122, %c0_123, %c512_124] : memref<16x16x1152xbf16, #tpu.memory_space<vmem>>, vector<16x16x128xbf16>
    tpu.vector_store %arg8[%c0_122, %c0_123, %c512_124], %60 {strides = array<i32>} : memref<16x16x1152xbf16, #tpu.memory_space<vmem>>, vector<16x16x128xbf16>,
    %c1_125 = arith.constant 1 : index
    %c2_126 = arith.constant 2 : index
    %c0_127 = arith.constant 0 : index
    %62 = vector.load %arg7[%c1_125, %c2_126, %c0_127] : memref<18x18x128xbf16, #tpu.memory_space<vmem>>, vector<16x16x128xbf16>
    %c0_128 = arith.constant 0 : index
    %c0_129 = arith.constant 0 : index
    %c640_130 = arith.constant 640 : index
    %63 = vector.load %arg8[%c0_128, %c0_129, %c640_130] : memref<16x16x1152xbf16, #tpu.memory_space<vmem>>, vector<16x16x128xbf16>
    tpu.vector_store %arg8[%c0_128, %c0_129, %c640_130], %62 {strides = array<i32>} : memref<16x16x1152xbf16, #tpu.memory_space<vmem>>, vector<16x16x128xbf16>,
    %c2_131 = arith.constant 2 : index
    %c0_132 = arith.constant 0 : index
    %c0_133 = arith.constant 0 : index
    %64 = vector.load %arg7[%c2_131, %c0_132, %c0_133] : memref<18x18x128xbf16, #tpu.memory_space<vmem>>, vector<16x16x128xbf16>
    %c0_134 = arith.constant 0 : index
    %c0_135 = arith.constant 0 : index
    %c768_136 = arith.constant 768 : index
    %65 = vector.load %arg8[%c0_134, %c0_135, %c768_136] : memref<16x16x1152xbf16, #tpu.memory_space<vmem>>, vector<16x16x128xbf16>
    tpu.vector_store %arg8[%c0_134, %c0_135, %c768_136], %64 {strides = array<i32>} : memref<16x16x1152xbf16, #tpu.memory_space<vmem>>, vector<16x16x128xbf16>,
    %c2_137 = arith.constant 2 : index
    %c1_138 = arith.constant 1 : index
    %c0_139 = arith.constant 0 : index
    %66 = vector.load %arg7[%c2_137, %c1_138, %c0_139] : memref<18x18x128xbf16, #tpu.memory_space<vmem>>, vector<16x16x128xbf16>
    %c0_140 = arith.constant 0 : index
    %c0_141 = arith.constant 0 : index
    %c896_142 = arith.constant 896 : index
    %67 = vector.load %arg8[%c0_140, %c0_141, %c896_142] : memref<16x16x1152xbf16, #tpu.memory_space<vmem>>, vector<16x16x128xbf16>
    tpu.vector_store %arg8[%c0_140, %c0_141, %c896_142], %66 {strides = array<i32>} : memref<16x16x1152xbf16, #tpu.memory_space<vmem>>, vector<16x16x128xbf16>,
    %c2_143 = arith.constant 2 : index
    %c2_144 = arith.constant 2 : index
    %c0_145 = arith.constant 0 : index
    %68 = vector.load %arg7[%c2_143, %c2_144, %c0_145] : memref<18x18x128xbf16, #tpu.memory_space<vmem>>, vector<16x16x128xbf16>
    %c0_146 = arith.constant 0 : index
    %c0_147 = arith.constant 0 : index
    %c1024_148 = arith.constant 1024 : index
    %69 = vector.load %arg8[%c0_146, %c0_147, %c1024_148] : memref<16x16x1152xbf16, #tpu.memory_space<vmem>>, vector<16x16x128xbf16>
    tpu.vector_store %arg8[%c0_146, %c0_147, %c1024_148], %68 {strides = array<i32>} : memref<16x16x1152xbf16, #tpu.memory_space<vmem>>, vector<16x16x128xbf16>,
    %c0_149 = arith.constant 0 : index
    %c0_150 = arith.constant 0 : index
    %c0_151 = arith.constant 0 : index
    %70 = vector.load %arg8[%c0_149, %c0_150, %c0_151] : memref<16x16x1152xbf16, #tpu.memory_space<vmem>>, vector<16x16x1152xbf16>
    %71 = vector.shape_cast %70 : vector<16x16x1152xbf16> to vector<256x1152xbf16>
    %c0_152 = arith.constant 0 : index
    %c0_153 = arith.constant 0 : index
    %72 = vector.load %arg4[%c0_152, %c0_153] : memref<1152x128xbf16, #tpu.memory_space<vmem>>, vector<1152x128xbf16>
    %cst_154 = arith.constant dense<0.000000e+00> : vector<256x128xf32>
    %73 = tpu.matmul %71, %72, %cst_154 {dimension_numbers = #tpu.dot_dimension_numbers<[1], [0], [0], [1], [0, 0, 1, 1], [], []>} : vector<256x1152xbf16>, vector<1152x128xbf16>, vector<256x128xf32> -> vector<256x128xf32>
    %c0_155 = arith.constant 0 : index
    %c0_156 = arith.constant 0 : index
    %c0_157 = arith.constant 0 : index
    %c0_158 = arith.constant 0 : index
    %74 = vector.load %arg1[%c0_155, %c0_156, %c0_157, %c0_158] : memref<1x16x16x128xf32, #tpu.memory_space<vmem>>, vector<1x16x16x128xf32>
    %75 = vector.shape_cast %74 : vector<1x16x16x128xf32> to vector<16x16x128xf32>
    %76 = vector.shape_cast %75 : vector<16x16x128xf32> to vector<256x128xf32>
    %c0_159 = arith.constant 0 : index
    %c0_160 = arith.constant 0 : index
    %77 = vector.load %arg5[%c0_159, %c0_160] : memref<1x128xf32, #tpu.memory_space<vmem>>, vector<1x128xf32>
    %78 = vector.shape_cast %77 : vector<1x128xf32> to vector<128xf32>
    %79 = vector.shape_cast %78 : vector<128xf32> to vector<1x128xf32>
    %80 = vector.broadcast %79 : vector<1x128xf32> to vector<256x128xf32>
    %81 = arith.addf %73, %80 : vector<256x128xf32>
    %82 = arith.addf %81, %76 : vector<256x128xf32>
    %cst_161 = arith.constant 0.000000e+00 : f32
    %83 = vector.broadcast %cst_161 : f32 to vector<256x128xf32>
    %84 = arith.maximumf %82, %83 : vector<256x128xf32>
    %c0_162 = arith.constant 0 : index
    %c0_163 = arith.constant 0 : index
    %c0_164 = arith.constant 0 : index
    %85 = vector.load %arg6[%c0_162, %c0_163, %c0_164] : memref<1x256x128xf32, #tpu.memory_space<vmem>>, vector<1x256x128xf32>
    %86 = vector.shape_cast %85 : vector<1x256x128xf32> to vector<256x128xf32>
    %87 = vector.shape_cast %84 : vector<256x128xf32> to vector<1x256x128xf32>
    tpu.vector_store %arg6[%c0_162, %c0_163, %c0_164], %87 {strides = array<i32>} : memref<1x256x128xf32, #tpu.memory_space<vmem>>, vector<1x256x128xf32>,
    return
  }
  func.func @transform_0(%arg0: i32) -> (i32, i32, i32, i32) {
    %c0_i32 = arith.constant 0 : i32
    %c0_i32_0 = arith.constant 0 : i32
    %c0_i32_1 = arith.constant 0 : i32
    %c0_i32_2 = arith.constant 0 : i32
    return %arg0, %c0_i32, %c0_i32_0, %c0_i32_1 : i32, i32, i32, i32
  }
  func.func @transform_1(%arg0: i32) -> (i32, i32) {
    %c0_i32 = arith.constant 0 : i32
    %c0_i32_0 = arith.constant 0 : i32
    %c0_i32_1 = arith.constant 0 : i32
    return %c0_i32, %c0_i32_0 : i32, i32
  }
  func.func @transform_2(%arg0: i32) -> (i32, i32) {
    %c0_i32 = arith.constant 0 : i32
    %c0_i32_0 = arith.constant 0 : i32
    %c0_i32_1 = arith.constant 0 : i32
    return %c0_i32, %c0_i32_0 : i32, i32
  }
  func.func @transform_3(%arg0: i32) -> (i32, i32) {
    %c0_i32 = arith.constant 0 : i32
    %c0_i32_0 = arith.constant 0 : i32
    %c0_i32_1 = arith.constant 0 : i32
    return %c0_i32, %c0_i32_0 : i32, i32
  }
  func.func @transform_4(%arg0: i32) -> (i32, i32) {
    %c0_i32 = arith.constant 0 : i32
    %c0_i32_0 = arith.constant 0 : i32
    %c0_i32_1 = arith.constant 0 : i32
    return %c0_i32, %c0_i32_0 : i32, i32
  }
  func.func @transform_5(%arg0: i32) -> (i32, i32, i32) {
    %c0_i32 = arith.constant 0 : i32
    %c0_i32_0 = arith.constant 0 : i32
    %c0_i32_1 = arith.constant 0 : i32
    return %arg0, %c0_i32, %c0_i32_0 : i32, i32, i32
  }
}

</mosaic_0001>

<bundles_post_ra>
// kernel: tpu_custom_call.1
= control target key start
LH: loop header
LB: loop body
LE: loop exit
PB: predicated region body
PF: predicated region fallthrough
CT: control target
= control target key end

     0   :  { %10 = vsyncpa [#allocation5], 0  ;;  %s14521_s0 = inlined_call_operand.hbm [shape: f32[2,16,16,128], index: 0, kind: input, shape index: {}]   ;;  %s14522_s1 = inlined_call_operand.hbm [shape: bf16[1152,128], index: 1, kind: input, shape index: {}]   ;;  %s14523_s2 = inlined_call_operand.vmem [shape: f32[1,128], index: 2, kind: input, shape index: {}]   ;;  %s14524_s3 = inlined_call_operand.hbm [shape: bf16[1152,128], index: 3, kind: input, shape index: {}]   ;;  %s14525_s4 = inlined_call_operand.vmem [shape: f32[1,128], index: 4, kind: input, shape index: {}]   ;;  %s14526_s5 = inlined_call_operand.hbm [shape: f32[2,256,128], index: 5, kind: output, shape index: {}]  }
   0x1   :  { %12 = vsyncpa [#allocation5 + $0x1], 0 }
   0x2   :  { %13 = vsyncpa [#allocation8], 0 }
   0x3   :  { %14 = vsyncpa [#allocation6], 0 }
   0x4   :  { %16 = vsyncpa [#allocation6 + $0x1], 0  ;;  %s12892_s18 = smov 0   ;;  %s12894_s19 = smov 0  }
   0x5   :  { %s12896_s20 = smov 0   ;;  %s12898_s21 = smov 0  }
   0x6 LB: > { %s12913_s22 = sadd.s32 4294967295, %s12850_s21   ;;  %s10109_s23 = sadd.s32 4294967294, %s12850_s21   ;;  %s12850_s21 = sphi %s12898_s21, %s14554_s21   ;;  %s12846_s20 = sphi %s12896_s20, %s14553_s20   ;;  %s12842_s19 = sphi %s12894_s19, %s14552_s19   ;;  %s12838_s18 = sphi %s12892_s18, %s14551_s18  }
   0x7   : > { %p42_p0 = scmp.ne.s32.totalorder %s12842_s19, %s12838_s18  ;;  %p14527_p1 = scmp.eq.s32.totalorder %s12913_s22, 0 }
   0x8   : > { %p156_p3 = scmp.eq.s32.totalorder %s10109_s23, 1  ;;  %p10110_p5 = scmp.ge.s32.totalorder %s12850_s21, 1 }
   0x9   : > { %p12922_p4 = por %p14527_p1, %p42_p0  ;;  %p163_p7 = scmp.lt.s32.totalorder %s12850_s21, 3 }
   0xa   : > { %p12927_p6 = por %p156_p3, %p42_p0  ;;  %s12852_s27 = smov [#allocation7]  }
   0xb   : > { %s14530_s24 = scalar_select %p12922_p4, 1, 0 }
   0xc   : > { %s14531_s25 = scalar_select %p12927_p6, 1, 0 }
   0xd   : > { %p12932_p8 = pnand %p10110_p5, %p163_p7  ;;  %s175_s28 = sshll.u32 %s12852_s27, 4  ;;  %s12936_s28 = int_to_ptr.vmem [resolvable:$true] %s175_s28 }
   0xe   : > { %s12853_s30 = smov [#allocation9]   ;;  %s12694_s9 = scalar_lea.hbm %s14522_s1, 9216 }
   0xf   : > { %p12007_p9 = pneg %p12932_p8  ;;  %s191_s6 = sshll.u32 %s12853_s30, 4  ;;  %s12947_s6 = int_to_ptr.vmem [resolvable:$true] %s191_s6 }
  0x10   : > { %p12695_p12 = scmp.ne.s32.totalorder %s14522_s1, %s12694_s9  ;;  %p12701_p5 = scmp.lt.u32.totalorder %s12694_s9, %s14522_s1 }
  0x11   : > { %p12943_p11 = pnand %p12007_p9, %p14527_p1 }
  0x13   : > { %p12696_p13 = pneg %p12943_p11 }
  0x15   : > { %p12697_p0 = pnand %p12696_p13, %p12695_p12 }
  0x17   : > { %p12698_p3 = pneg %p12697_p0 }
  0x19   : > { %p12703_p7 = pnand %p12701_p5, %p12698_p3 }
  0x1b   : > { %12706 = shalt.err (!%p12703_p7)
}
  0x1c   : > { %s12707_s14 = scalar_lea.vmem %s12936_s28, 9216  ;;  %p12715_p2 = scmp.lt.s32.totalorder %s12936_s28, %s12936_s28 }
  0x1d   : > { %p12708_p9 = scmp.ne.s32.totalorder %s12936_s28, %s12707_s14  ;;  %p12716_p12 = scmp.lt.s32.totalorder %s12707_s14, %s12707_s14 }
  0x1f   : > { %p12710_p10 = pnand %p12708_p9, %p12696_p13  ;;  %p12717_p0 = por %p12716_p12, %p12715_p2 }
  0x21   : > { %p12711_p1 = pneg %p12710_p10 }
  0x23   : > { %p12718_p6 = pnand %p12717_p0, %p12711_p1 }
  0x25   : > { %12721 = shalt.err (!%p12718_p6)
}
  0x26   : > { %s12854_s15 = smov 64   ;;  %s12855_s16 = smov 4  }
  0x27   : > { %12010 = dma.hbm_to_vmem [thread:$0]  (!%p12943_p11), %s14522_s1, 9216, %s12936_s28, [#allocation8], %s12854_s15, %s12854_s15, %s12855_s16  }
  0x28   : > { %s12722_s7 = scalar_lea.hbm %s14524_s3, 9216 }
  0x29   : > { %p12723_p2 = scmp.ne.s32.totalorder %s14524_s3, %s12722_s7  ;;  %p12729_p10 = scmp.lt.u32.totalorder %s12722_s7, %s14524_s3 }
  0x2b   : > { %p12725_p1 = pnand %p12723_p2, %p12696_p13 }
  0x2d   : > { %p12726_p6 = pneg %p12725_p1 }
  0x2f   : > { %p12731_p3 = pnand %p12729_p10, %p12726_p6 }
  0x31   : > { %12734 = shalt.err (!%p12731_p3)
}
  0x32   : > { %s12735_s28 = scalar_lea.vmem %s12947_s6, 9216  ;;  %p12743_p12 = scmp.lt.s32.totalorder %s12947_s6, %s12947_s6 }
  0x33   : > { %p12736_p5 = scmp.ne.s32.totalorder %s12947_s6, %s12735_s28  ;;  %p12744_p0 = scmp.lt.s32.totalorder %s12735_s28, %s12735_s28 }
  0x35   : > { %p12738_p7 = pnand %p12736_p5, %p12696_p13  ;;  %p12745_p2 = por %p12744_p0, %p12743_p12 }
  0x37   : > { %p12739_p9 = pneg %p12738_p7 }
  0x39   : > { %p12746_p1 = pnand %p12745_p2, %p12739_p9 }
  0x3b   : > { %12749 = shalt.err (!%p12746_p1)
}
  0x3c   : > { %12013 = dma.hbm_to_vmem [thread:$0]  (!%p12943_p11), %s14524_s3, 9216, %s12947_s6, [#allocation8], %s12854_s15, %s12854_s15, %s12855_s16  }
  0x3d   : > { %s13002_s14 = sadd.s32 1, %s12850_s21   ;;  %s29_s29 = sadd.s32 1, %s12846_s20 }
  0x3e   : > { %s26_s17 = ssub.s32 %s12850_s21, %s13002_s14  ;;  %p36_p13 = scmp.ne.s32.totalorder %s12846_s20, %s12842_s19 }
  0x3f   : > { %p27_p6 = scmp.eq.s32.totalorder %s26_s17, 0  ;;  %p37_p10 = scmp.eq.s32.totalorder %s12850_s21, 0 }
  0x40   : > { %p14534_p3 = scmp.eq.s32.totalorder %s12913_s22, 1  ;;  %p12024_p7 = scmp.lt.s32.totalorder %s12850_s21, 2 }
  0x41   : > { %s13018_s27 = scalar_select %p27_p6, %s12846_s20, %s29_s29  }
  0x42   : > { %p13012_p5 = por %p14534_p3, %p36_p13  ;;  %p38_p9 = por %p37_p10, %p36_p13 }
  0x43   : > { %s208_s30 = sand.u32 1, %s12846_s20   ;;  %s10889_s6 = sshll.u32 %s12850_s21, 12 }
  0x44   : > { %s14535_s23 = scalar_select %p13012_p5, 1, 0 }
  0x45   : > { %s10114_s7 = sshll.u32 %s208_s30, 8  ;;  %s13025_s8 = scalar_lea.hbm %s14521_s0, %s10889_s6 }
  0x46   : > { %s212_s9 = scalar_lea.vmem [#allocation4], %s10114_s7  ;;  %p13029_p11 = pnand %p12024_p7, %p38_p9 }
  0x47   : > { %s219_s10 = sshll.u32 %s212_s9, 4  ;;  %s13033_s28 = scalar_lea.sflag [#allocation5], %s208_s30  ;;  %s13027_s10 = int_to_ptr.vmem [resolvable:$true] %s219_s10 }
  0x48   : > { %s12750_s12 = scalar_lea.hbm %s13025_s8, 4096  ;;  %p12752_p0 = pneg %p13029_p11 }
  0x49   : > { %p12751_p12 = scmp.ne.s32.totalorder %s13025_s8, %s12750_s12  ;;  %s12755_s17 = scalar_lea.hbm %s14521_s0, 8192 }
  0x4a   : > { %p12756_p13 = scmp.lt.u32.totalorder %s13025_s8, %s14521_s0  ;;  %p12757_p6 = scmp.lt.u32.totalorder %s12755_s17, %s12750_s12 }
  0x4b   : > { %p12753_p2 = pnand %p12752_p0, %p12751_p12  ;;  %p12759_p3 = scmp.lt.u32.totalorder %s12750_s12, %s13025_s8 }
  0x4c   : > { %p12758_p10 = por %p12757_p6, %p12756_p13 }
  0x4d   : > { %p12754_p1 = pneg %p12753_p2 }
  0x4e   : > { %p12760_p7 = por %p12759_p3, %p12758_p10 }
  0x50   : > { %p12761_p9 = pnand %p12760_p7, %p12754_p1 }
  0x52   : > { %12764 = shalt.err (!%p12761_p9)
}
  0x53   : > { %s12765_s30 = scalar_lea.vmem %s13027_s10, 4096  ;;  %s12856_s15 = smov [#allocation4]  }
  0x54   : > { %p12766_p12 = scmp.ne.s32.totalorder %s13027_s10, %s12765_s30  ;;  %s12770_s16 = sshll.u32 %s12856_s15, 4  ;;  %s12771_s16 = int_to_ptr.vmem [resolvable:$false] %s12770_s16 }
  0x55   : > { %s12772_s9 = scalar_lea.vmem %s12771_s16, 8192  ;;  %p12773_p4 = scmp.lt.s32.totalorder %s13027_s10, %s12771_s16 }
  0x56   : > { %p12768_p2 = pnand %p12766_p12, %p12752_p0  ;;  %p12774_p13 = scmp.lt.s32.totalorder %s12772_s9, %s12765_s30 }
  0x58   : > { %p12769_p5 = pneg %p12768_p2  ;;  %p12775_p6 = por %p12774_p13, %p12773_p4 }
  0x5a   : > { %p12776_p10 = pnand %p12775_p6, %p12769_p5 }
  0x5c   : > { %12779 = shalt.err (!%p12776_p10)
}
  0x5d   : > { %s12857_s12 = smov 128   ;;  %s12858_s13 = smov 8  }
  0x5e   : > { %12017 = dma.hbm_to_vmem [thread:$0]  (!%p13029_p11), %s13025_s8, 4096, %s13027_s10, %s13033_s28, %s12857_s12, %s12857_s12, %s12858_s13  }
  0x5f   : > { %231 = sbr.rel (%p12932_p8) target bundleno = 1281 (0x501), region = 40  ;;  %s13064_s29 = sand.u32 (!%p12932_p8), 1, %s12842_s19  }
  0x60   : > { %s10118_s17 = sshll.u32 (!%p12932_p8), %s13064_s29, 8  ;;  %s234_s7 = scalar_lea.sflag (!%p12932_p8), [#allocation5], %s13064_s29 }
  0x61   : > { %s13070_s6 = scalar_lea.vmem (!%p12932_p8), [#allocation4], %s10118_s17  ;;  %p14537_p4 = scmp.ne.s32.totalorder (!%p12932_p8), %s14530_s24, 0 }
  0x66   : > { %12825 = dma.done.wait (%p14537_p4), %s234_s7, 4096  }
  0x67   : > { %12827 = vsyncadd (%p14537_p4), %s234_s7, 4294963200  ;;  %p14538_p5 = scmp.eq.s32.totalorder %s12913_s22, 0 }
  0x69   : > { %12829 = dma.done.wait (%p14538_p5), [#allocation8], 18432   ;;  %p14539_p8 = pmov %p14538_p5 }
  0x6a   : > { %v12068_v0 = vld [vmem:[#allocation7 + $0x40] sm:$0xff]   ;;  %v12071_v3 = vld [vmem:[#allocation7 + $0x48] sm:$0xff]   ;;  %v12075_v7 = vld [vmem:[#allocation7 + $0x50] sm:$0xff]   ;;  %vm401_vm0 = vsmask.f32 256  ;;  %vm725_vm2 = vcmask 1043456  }
  0x6b   : > { %12831 = vsyncadd (%p14539_p8), [#allocation8], 4294948864  ;;  %v12069_v1 = vld [vmem:[#allocation7] sm:$0xff]   ;;  %10955 = vmatprep.subr.bf16.mxu0 %v12068_v0  ;;  %v12073_v5 = vld [vmem:[#allocation7 + $0x8] sm:$0xff]   ;;  %vm402_vm1 = vsmask.f32 4368 }
  0x6c   : > { %v12070_v2 = vld [vmem:[#allocation7 + $0xc0] sm:$0xff]   ;;  %10956 = vmatpush3.bf16.msra.mxu0 %v12069_v1  ;;  %v12074_v6 = vld [vmem:[#allocation7 + $0xc8] sm:$0xff]   ;;  %v12077_v9 = vld [vmem:[#allocation7 + $0x10] sm:$0xff]   ;;  %vm726_vm3 = vsmask.f32 7938  ;;  %vm732_vm5 = vcmask 1040384  }
  0x6d   : > { %11067 = vmatprep.subr.bf16.mxu1 %v12070_v2  ;;  %v12072_v4 = vld [vmem:[#allocation7 + $0x80] sm:$0xff]   ;;  %10957 = vmatprep.subr.bf16.mxu0 %v12071_v3  ;;  %v12076_v8 = vld [vmem:[#allocation7 + $0x88] sm:$0xff]   ;;  %v12078_v10 = vld [vmem:[#allocation7 + $0xd0] sm:$0xff]   ;;  %vm1867_vm9 = vcmask 1046528   ;;  %vm1466_vm10 = vsmask.f32 7424 }
  0x6e   : > { %11068 = vmatpush3.bf16.msra.mxu1 %v12072_v4  ;;  %v12079_v11 = vld [vmem:[#allocation7 + $0x58] sm:$0xff]   ;;  %v12080_v12 = vld [vmem:[#allocation7 + $0x90] sm:$0xff]   ;;  %v12083_v15 = vld [vmem:[#allocation7 + $0x60] sm:$0xff]   ;;  %s14380_s16 = scalar_lea.vmem [#allocation10], %s10118_s17  ;;  %s10954_s9 = sshll.u32 %s12913_s22, 12 }
  0x6f   : > { %11069 = vmatprep.subr.bf16.mxu1 %v12074_v6  ;;  %v12081_v13 = vld [vmem:[#allocation7 + $0x18] sm:$0xff]   ;;  %v12085_v17 = vld [vmem:[#allocation7 + $0x20] sm:$0xff]   ;;  %v12087_v19 = vld [vmem:[#allocation7 + $0x68] sm:$0xff]   ;;  %s10017_s12 = sshll.u32 %s14380_s16, 4  ;;  %s14472_s7 = scalar_lea.hbm %s14526_s5, %s10954_s9  ;;  %s14474_s12 = int_to_ptr.vmem [resolvable:$true] %s10017_s12 }
  0x70   : > { %10958 = vmatpush3.bf16.msra.mxu0 %v12073_v5  ;;  %v12082_v14 = vld [vmem:[#allocation7 + $0xd8] sm:$0xff]   ;;  %v12086_v18 = vld [vmem:[#allocation7 + $0xe0] sm:$0xff]   ;;  %v12089_v21 = vld [vmem:[#allocation7 + $0x28] sm:$0xff]   ;;  %s10004_s22 = scalar_lea.sflag [#allocation6], %s13064_s29  ;;  %p14548_p0 = scmp.ne.s32.totalorder %s14535_s23, 0 }
  0x71   : > { %10959 = vmatprep.subr.bf16.mxu0 %v12075_v7  ;;  %v12084_v16 = vld [vmem:[#allocation7 + $0x98] sm:$0xff]   ;;  %v12088_v20 = vld [vmem:[#allocation7 + $0xa0] sm:$0xff]   ;;  %v12090_v22 = vld [vmem:[#allocation7 + $0xe8] sm:$0xff]   ;;  %s12859_s24 = smov [#allocation10]  }
  0x72   : > { %11070 = vmatpush3.bf16.msra.mxu1 %v12076_v8  ;;  %v12091_v23 = vld [vmem:[#allocation7 + $0x70] sm:$0xff]   ;;  %v12092_v24 = vld [vmem:[#allocation7 + $0xa8] sm:$0xff]   ;;  %v12095_v27 = vld [vmem:[#allocation7 + $0x78] sm:$0xff]   ;;  %s12784_s26 = sshll.u32 %s12859_s24, 4  ;;  %s12785_s26 = int_to_ptr.vmem [resolvable:$false] %s12784_s26 }
  0x73   : > { %11071 = vmatprep.subr.bf16.mxu1 %v12078_v10  ;;  %v12093_v25 = vld [vmem:[#allocation7 + $0x30] sm:$0xff]   ;;  %v12097_v29 = vld [vmem:[#allocation7 + $0x38] sm:$0xff]   ;;  %vm13084_vm4 = vmor %vm401_vm0, %vm402_vm1  ;;  %s12786_s8 = scalar_lea.vmem %s12785_s26, 8192  ;;  %p12787_p7 = scmp.lt.s32.totalorder %s14474_s12, %s12785_s26 }
  0x74   : > { %10960 = vmatpush3.bf16.msra.mxu0 %v12077_v9  ;;  %v12094_v26 = vld [vmem:[#allocation7 + $0xf0] sm:$0xff]   ;;  %v12098_v30 = vld [vmem:[#allocation7 + $0xf8] sm:$0xff]   ;;  %vm13089_vm6 = vmand %vm725_vm2, %vm726_vm3 }
  0x75   : > { %10961 = vmatprep.subr.bf16.mxu0 %v12079_v11  ;;  %v12096_v28 = vld [vmem:[#allocation7 + $0xb0] sm:$0xff]   ;;  %v276_v32 = vld [vmem:[%s13070_s6 + $0x18] sm:$0xff]  ;;  %v12102_v42 = vld [vmem:[#allocation7 + $0x140] sm:$0xff]  }
  0x76   : > { %11072 = vmatpush3.bf16.msra.mxu1 %v12080_v12  ;;  %v275_v31 = vld [vmem:[%s13070_s6 + $0x10] sm:$0xff]  ;;  %v10893_v34 = vpack.c.bf16 %v276_v32, %v276_v32  ;;  %v12101_v36 = vld [vmem:[#allocation7 + $0xb8] sm:$0xff]   ;;  %v273_v43 = vld [vmem:[%s13070_s6] sm:$0xff] }
  0x77   : > { %11073 = vmatprep.subr.bf16.mxu1 %v12082_v14  ;;  %v10892_v33 = vpack.c.bf16 %v275_v31, %v275_v31  ;;  %vm13096_vm7 = vmand %vm732_vm5, %vm401_vm0  ;;  %v842_v47 = vld [vmem:[#allocation2] sm:$0xf]  ;;  %v10890_v49 = vpack.c.bf16 %v273_v43, %v273_v43  ;;  %v846_v50 = vld [vmem:[#allocation2 + $0x8] sm:$0x1] }
  0x78   : > { %10962 = vmatpush3.bf16.msra.mxu0 %v12081_v13  ;;  %v430_v39 = vshrl.u32 %v10893_v34, 16  ;;  %v433_v40 = vshll.u32 %v10893_v34, 16  ;;  %v274_v48 = vld [vmem:[%s13070_s6 + $0x8] sm:$0xff]  ;;  %v737_v52 = vld [vmem:[#allocation2 + $0x18] sm:$0xf]  ;;  %vm13122_vm8 = vmand %vm732_vm5, %vm726_vm3 }
  0x79   : > { %10963 = vmatprep.subr.bf16.mxu0 %v12083_v15  ;;  %v422_v37 = vshrl.u32 %v10892_v33, 16  ;;  %v425_v38 = vshll.u32 %v10892_v33, 16  ;;  %v10891_v51 = vpack.c.bf16 %v274_v48, %v274_v48  ;;  %v741_v53 = vld [vmem:[#allocation2 + $0x20] sm:$0x1]  ;;  %v405_v58 = vshrl.u32 %v10890_v49, 16  ;;  %v277_v2 = vld [vmem:[%s13070_s6 + $0x20] sm:$0xff] }
  0x7a   : > { %11074 = vmatpush3.bf16.msra.mxu1 %v12084_v16  ;;  %v432_v45 = vrot.slane %v430_v39, 7  ;;  %v408_v59 = vshll.u32 %v10890_v49, 16  ;;  %v278_v6 = vld [vmem:[%s13070_s6 + $0x28] sm:$0xff]  ;;  %v10894_v7 = vpack.c.bf16 %v277_v2, %v277_v2  ;;  %v728_v8 = vld [vmem:[#allocation2 + $0xc] sm:$0xf]  ;;  %v280_v32 = vld [vmem:[%s13070_s6 + $0x38] sm:$0xff] }
  0x7b   : > { %11075 = vmatprep.subr.bf16.mxu1 %v12086_v18  ;;  %v424_v44 = vrot.slane %v422_v37, 7  ;;  %v413_v60 = vshrl.u32 %v10891_v51, 16  ;;  %v416_v61 = vshll.u32 %v10891_v51, 16  ;;  %v407_v3 = vrot.slane %v405_v58, 7  ;;  %v734_v9 = vld [vmem:[#allocation2 + $0x14] sm:$0x1] }
  0x7c   : > { %10964 = vmatpush3.bf16.msra.mxu0 %v12085_v17  ;;  %v435_v56 = vor.u32 %v433_v40, %v432_v45  ;;  %v437_v57 = vrot.slane %v432_v45, 4  ;;  %v10895_v10 = vpack.c.bf16 %v278_v6, %v278_v6  ;;  %v439_v15 = vshrl.u32 %v10894_v7, 16  ;;  %v279_v18 = vld [vmem:[%s13070_s6 + $0x30] sm:$0xff] }
  0x7d   : > { %10965 = vmatprep.subr.bf16.mxu0 %v12087_v19  ;;  %v427_v54 = vor.u32 %v425_v38, %v424_v44  ;;  %v428_v55 = vrot.slane %v424_v44, 4  ;;  %v415_v4 = vrot.slane %v413_v60, 7  ;;  %v410_v11 = vor.u32 %v408_v59, %v407_v3  ;;  %v748_v60 = vld [vmem:[#allocation2 + $0x2c] sm:$0x1] }
  0x7e   : > { %11076 = vmatpush3.bf16.msra.mxu1 %v12088_v20  ;;  %v847_v0 = vsel %vm13096_vm7, %v437_v57, %v846_v50  ;;  %v742_v5 = vsel %vm13096_vm7, %v437_v57, %v741_v53  ;;  %v411_v12 = vrot.slane %v407_v3, 4  ;;  %v442_v16 = vshll.u32 %v10894_v7, 16 }
  0x7f   : > { %11077 = vmatprep.subr.bf16.mxu1 %v12090_v22  ;;  %v436_v62 = vsel %vm13084_vm4, %v428_v55, %v435_v56  ;;  %v843_v63 = vsel %vm13089_vm6, %v427_v54, %v842_v47  ;;  %v738_v1 = vsel %vm13089_vm6, %v427_v54, %v737_v52  ;;  %848 = vst [vmem:[#allocation2 + $0x8] sm:$0x1] %v847_v0  ;;  %743 = vst [vmem:[#allocation2 + $0x20] sm:$0x1] %v742_v5 }
  0x80   : > { %10966 = vmatpush3.bf16.msra.mxu0 %v12089_v21  ;;  %844 = vst [vmem:[#allocation2] sm:$0xf] %v843_v63  ;;  %845 = vst [vmem:[#allocation2 + $0x4] sm:$0xf] %v436_v62  ;;  %v418_v13 = vor.u32 %v416_v61, %v415_v4  ;;  %v420_v14 = vrot.slane %v415_v4, 4  ;;  %v447_v17 = vshrl.u32 %v10895_v10, 16  ;;  %v729_v20 = vsel %vm13089_vm6, %v410_v11, %v728_v8 }
  0x81   : > { %10967 = vmatprep.subr.bf16.mxu0 %v12091_v23  ;;  %740 = vst [vmem:[#allocation2 + $0x1c] sm:$0xf] %v436_v62  ;;  %739 = vst [vmem:[#allocation2 + $0x18] sm:$0xf] %v738_v1  ;;  %v441_v22 = vrot.slane %v439_v15, 7  ;;  %v13136_v51 = vpack.c.bf16 %v280_v32, %v280_v32 }
  0x82   : > { %11078 = vmatpush3.bf16.msra.mxu1 %v12092_v24  ;;  %v419_v19 = vsel %vm13084_vm4, %v411_v12, %v418_v13  ;;  %v735_v21 = vsel %vm13096_vm7, %v420_v14, %v734_v9  ;;  %730 = vst [vmem:[#allocation2 + $0xc] sm:$0xf] %v729_v20  ;;  %v449_v23 = vrot.slane %v447_v17, 7  ;;  %v450_v24 = vshll.u32 %v10895_v10, 16  ;;  %v751_v17 = vld [vmem:[#allocation2 + $0x30] sm:$0xf] }
  0x83   : > { %11079 = vmatprep.subr.bf16.mxu1 %v12094_v26  ;;  %731 = vst [vmem:[#allocation2 + $0x10] sm:$0xf] %v419_v19  ;;  %736 = vst [vmem:[#allocation2 + $0x14] sm:$0x1] %v735_v21  ;;  %v744_v26 = vld [vmem:[#allocation2 + $0x24] sm:$0xf]  ;;  %v444_v31 = vor.u32 %v442_v16, %v441_v22 }
  0x84   : > { %10968 = vmatpush3.bf16.msra.mxu0 %v12093_v25  ;;  %v452_v37 = vor.u32 %v450_v24, %v449_v23  ;;  %v445_v48 = vrot.slane %v441_v22, 4  ;;  %v454_v2 = vrot.slane %v449_v23, 4  ;;  %v464_v5 = vshrl.u32 %v13136_v51, 16  ;;  %v12104_v24 = vld [vmem:[#allocation7 + $0x100] sm:$0xff]  }
  0x85   : > { %10969 = vmatprep.subr.bf16.mxu0 %v12095_v27  ;;  %v13126_v27 = vpack.c.bf16 %v279_v18, %v279_v18  ;;  %v745_v38 = vsel %vm13089_vm6, %v444_v31, %v744_v26 }
  0x86   : > { %11080 = vmatpush3.bf16.msra.mxu1 %v12096_v28  ;;  %746 = vst [vmem:[#allocation2 + $0x24] sm:$0xf] %v745_v38  ;;  %v453_v56 = vsel %vm13084_vm4, %v445_v48, %v452_v37  ;;  %v1098_v0 = vld [vmem:[#allocation2 + $0x20] sm:$0x1]  ;;  %v749_v10 = vsel %vm13096_vm7, %v454_v2, %v748_v60  ;;  %v467_v37 = vshll.u32 %v13136_v51, 16  ;;  %v12132_v2 = vld [vmem:[#allocation7 + $0x110] sm:$0xff]  }
  0x87   : > { %11081 = vmatprep.subr.bf16.mxu1 %v12098_v30  ;;  %v857_v28 = vld [vmem:[#allocation2] sm:$0x2]  ;;  %v1001_v30 = vld [vmem:[#allocation2 + $0x4] sm:$0x8]  ;;  %v456_v44 = vshrl.u32 %v13126_v27, 16  ;;  %v459_v57 = vshll.u32 %v13126_v27, 16 }
  0x88   : > { %10970 = vmatpush3.bf16.msra.mxu0 %v12097_v29  ;;  %v947_v29 = vld [vmem:[#allocation2] sm:$0x1]  ;;  %v10154_v33 = vrot.slane %v857_v28, 9  ;;  %v10172_v34 = vrot.slane %v1001_v30, 11  ;;  %v953_v43 = vld [vmem:[#allocation2 + $0x18] sm:$0x1] }
  0x89   : > { %11179 = vmatprep.subr.bf16.mxu0 %v12102_v42  ;;  %v859_v42 = vld [vmem:[#allocation2 + $0x18] sm:$0x2]  ;;  %v1003_v47 = vld [vmem:[#allocation2 + $0x1c] sm:$0x8]  ;;  %v858_v49 = vld [vmem:[#allocation2 + $0xc] sm:$0x2] }
  0x8a   : > { %11082 = vmatpush3.bf16.msra.mxu1 %v12101_v36  ;;  %v1092_v36 = vld [vmem:[#allocation2 + $0x8] sm:$0x1]  ;;  %v948_v39 = vsel %vm13096_vm7, %v10154_v33, %v947_v29  ;;  %v10156_v45 = vrot.slane %v859_v42, 9  ;;  %v950_v50 = vld [vmem:[#allocation2 + $0xc] sm:$0x1]  ;;  %v10155_v52 = vrot.slane %v858_v49, 9 }
  0x8b   : > { %v1093_v40 = vsel %vm13122_vm8, %v10172_v34, %v1092_v36  ;;  %949 = vst [vmem:[#allocation2] sm:$0x1] %v948_v39  ;;  %v1002_v53 = vld [vmem:[#allocation2 + $0x10] sm:$0x8]  ;;  %v1095_v54 = vld [vmem:[#allocation2 + $0x14] sm:$0x1] }
  0x8c   : > { %1094 = vst [vmem:[#allocation2 + $0x8] sm:$0x1] %v1093_v40  ;;  %v954_v55 = vsel %vm13096_vm7, %v10156_v45, %v953_v43  ;;  %v10173_v58 = vrot.slane %v1002_v53, 11  ;;  %v10174_v59 = vrot.slane %v1003_v47, 11  ;;  %747 = vst [vmem:[#allocation2 + $0x28] sm:$0xf] %v453_v56  ;;  %v951_v61 = vsel %vm13096_vm7, %v10155_v52, %v950_v50 }
  0x8d   : > { %955 = vst [vmem:[#allocation2 + $0x18] sm:$0x1] %v954_v55  ;;  %v12106_v62 = vld [vmem:[#allocation2] sm:$0xfe]   ;;  %952 = vst [vmem:[#allocation2 + $0xc] sm:$0x1] %v951_v61 }
  0x8e   : > { %v1096_v63 = vsel %vm13122_vm8, %v10173_v58, %v1095_v54  ;;  %v1099_v1 = vsel %vm13122_vm8, %v10174_v59, %v1098_v0  ;;  %v860_v3 = vld [vmem:[#allocation2 + $0x24] sm:$0x2]  ;;  %v956_v4 = vld [vmem:[#allocation2 + $0x24] sm:$0x1]  ;;  %v1868_v9 = vrot.slane %v12106_v62, 1  ;;  %v13154_v22 = vrot.slane %v456_v44, 7 }
  0x8f   : > { %1097 = vst [vmem:[#allocation2 + $0x14] sm:$0x1] %v1096_v63  ;;  %1100 = vst [vmem:[#allocation2 + $0x20] sm:$0x1] %v1099_v1  ;;  %v10157_v7 = vrot.slane %v860_v3, 9  ;;  %v12116_v30 = vld [vmem:[#allocation7 + $0x148] sm:$0xff]  }
  0x90   : > { %v12112_v13 = vld [vmem:[#allocation2 + $0xc] sm:$0xfe]   ;;  %750 = vst [vmem:[#allocation2 + $0x2c] sm:$0x1] %v749_v10  ;;  %v461_v31 = vor.u32 %v459_v57, %v13154_v22  ;;  %v281_v43 = vld [vmem:[%s13070_s6 + $0x40] sm:$0xff]  ;;  %v12118_v49 = vld [vmem:[#allocation7 + $0x108] sm:$0xff]  }
  0x91   : > { %v957_v14 = vsel %vm13096_vm7, %v10157_v7, %v956_v4  ;;  %v1871_v40 = vrot.slane %v12112_v13, 1  ;;  %v12130_v53 = vld [vmem:[#allocation7 + $0x150] sm:$0xff]   ;;  %v282_v57 = vld [vmem:[%s13070_s6 + $0x48] sm:$0xff]  ;;  %v12120_v63 = vld [vmem:[#allocation2 + $0x18] sm:$0xfe]   ;;  %v10898_v3 = vpack.c.bf16 %v281_v43, %v281_v43 }
  0x92   : > { %v12099_v6 = vld [vmem:[#allocation2] sm:$0xff]   ;;  %958 = vst [vmem:[#allocation2 + $0x24] sm:$0x1] %v957_v14  ;;  %v752_v42 = vsel %vm13089_vm6, %v461_v31, %v751_v17  ;;  %v10899_v17 = vpack.c.bf16 %v282_v57, %v282_v57  ;;  %v758_v31 = vld [vmem:[#allocation2 + $0x3c] sm:$0xf]  ;;  %v12144_v43 = vld [vmem:[#allocation7 + $0x158] sm:$0xff]  }
  0x93   : > { %v12100_v8 = vld [vmem:[#allocation2 + $0x8] ss:$0 sps:$4 sm:$0x11]   ;;  %v1468_v11 = vshrl.u32 %v12099_v6, 16  ;;  %v1470_v12 = vshll.u32 %v12099_v6, 16  ;;  %v12103_v19 = vld [vmem:[#allocation2] sm:$0xff]  }
  0x94   : > { %v1475_v15 = vshll.u32 %v12100_v8, 16  ;;  %v12107_v16 = vld [vmem:[#allocation2 + $0x8] ss:$0 sps:$4 sm:$0x11]   ;;  %v12111_v20 = vld [vmem:[#allocation2 + $0x18] sm:$0xff]   ;;  %v12105_v26 = vld [vmem:[#allocation2 + $0xc] sm:$0xff]  }
  0x95   : > { %v1472_v18 = vrot.slane %v1470_v12, 1  ;;  %v12114_v21 = vld [vmem:[#allocation2 + $0x18] sm:$0xff]   ;;  %v1869_v27 = vrot.slane %v12107_v16, 1  ;;  %v12108_v28 = vld [vmem:[#allocation2 + $0xc] sm:$0xff]   ;;  %4469 = vmatprep.mubr.bf16.mxu1 %v12105_v26  ;;  %753 = vst [vmem:[#allocation2 + $0x30] sm:$0xf] %v752_v42 }
  0x96   : > { %v1477_v23 = vrot.slane %v1475_v15, 1  ;;  %v12109_v33 = vld [vmem:[#allocation2 + $0x14] ss:$0 sps:$4 sm:$0x11]   ;;  %v1480_v34 = vshrl.u32 %v12108_v28, 16  ;;  %v1482_v36 = vshll.u32 %v12108_v28, 16 }
  0x97   : > { %v1473_v29 = vor.u32 %v1472_v18, %v1468_v11  ;;  %v1870_v32 = vsel %vm1867_vm9, %v1868_v9, %v1869_v27  ;;  %v12113_v39 = vld [vmem:[#allocation2 + $0x14] ss:$0 sps:$4 sm:$0x11]   ;;  %v1487_v45 = vshll.u32 %v12109_v33, 16  ;;  %v1492_v47 = vshrl.u32 %v12114_v21, 16  ;;  %v12110_v4 = vld [vmem:[#allocation2 + $0xc] sm:$0xff]  }
  0x98   : > { %4470 = vmatmul.mubr.bf16.vlgmr.msra.gmra.mrb[0].mxu1 %v1870_v32  ;;  %v1484_v44 = vrot.slane %v1482_v36, 1  ;;  %v1494_v48 = vshll.u32 %v12114_v21, 16  ;;  %v1872_v50 = vrot.slane %v12113_v39, 1  ;;  %v12115_v52 = vld [vmem:[#allocation2 + $0x20] ss:$0 sps:$4 sm:$0x11]  }
  0x99   : > { %v1478_v38 = vsel %vm1466_vm10, %v1473_v29, %v1477_v23  ;;  %4477 = vmatprep.mubr.bf16.mxu1 %v12111_v20  ;;  %v1489_v55 = vrot.slane %v1487_v45, 1  ;;  %v1499_v58 = vshll.u32 %v12115_v52, 16  ;;  %v12119_v59 = vld [vmem:[#allocation2 + $0x24] sm:$0xff]   ;;  %v12121_v0 = vld [vmem:[#allocation2 + $0x20] ss:$0 sps:$4 sm:$0x11]  }
  0x9a   : > { %4308 = vmatprep.mubr.bf16.mxu0 %v1478_v38  ;;  %v1485_v54 = vor.u32 %v1484_v44, %v1480_v34  ;;  %v1496_v56 = vrot.slane %v1494_v48, 1  ;;  %v1873_v61 = vsel %vm1867_vm9, %v1871_v40, %v1872_v50  ;;  %v13166_v1 = vld [vmem:[#allocation2 + $0x24] sm:$0xff]   ;;  %v1101_v8 = vld [vmem:[#allocation2 + $0x2c] sm:$0x1]  ;;  %v1874_v9 = vrot.slane %v12120_v63, 1  ;;  %v12117_v38 = vld [vmem:[#allocation2 + $0x18] sm:$0xff]  }
  0x9b   : > { %4309 = vmatmul.mubr.bf16.vlgmr.msra.gmra.mrb[0].mxu0 %v12103_v19  ;;  %v1501_v6 = vrot.slane %v1499_v58, 1  ;;  %v1004_v7 = vld [vmem:[#allocation2 + $0x28] sm:$0x8]  ;;  %v1875_v10 = vrot.slane %v12121_v0, 1  ;;  %v1506_v14 = vshll.u32 %v13166_v1, 16  ;;  %v462_v15 = vrot.slane %v13154_v22, 4 }
  0x9c   : > { %11180 = vmatpush3.bf16.msra.mxu0 %v12104_v24  ;;  %v1490_v60 = vsel %vm1466_vm10, %v1485_v54, %v1489_v55  ;;  %v1497_v62 = vor.u32 %v1496_v56, %v1492_v47  ;;  %v10175_v11 = vrot.slane %v1004_v7, 11  ;;  %v283_v12 = vld [vmem:[%s13070_s6 + $0x50] sm:$0xff]  ;;  %v755_v16 = vld [vmem:[#allocation2 + $0x38] sm:$0x1]  ;;  %v466_v19 = vrot.slane %v464_v5, 7  ;;  %v284_v42 = vld [vmem:[%s13070_s6 + $0x58] sm:$0xff] }
  0x9d   : > { %11181 = vmatprep.subr.bf16.mxu0 %v12116_v30  ;;  %4316 = vmatprep.mubr.bf16.mxu0 %v1490_v60  ;;  %v861_v20 = vld [vmem:[#allocation2 + $0x30] sm:$0x2]  ;;  %v473_v21 = vshrl.u32 %v10898_v3, 16  ;;  %v1504_v23 = vshrl.u32 %v13166_v1, 16  ;;  %v959_v26 = vld [vmem:[#allocation2 + $0x30] sm:$0x1]  ;;  %v10900_v27 = vpack.c.bf16 %v283_v12, %v283_v12  ;;  %v1876_v22 = vsel %vm1867_vm9, %v1874_v9, %v1875_v10 }
  0x9e   : > { %v1502_v13 = vsel %vm1466_vm10, %v1497_v62, %v1501_v6  ;;  %v1102_v18 = vsel %vm13122_vm8, %v10175_v11, %v1101_v8  ;;  %v10158_v24 = vrot.slane %v861_v20, 9  ;;  %v469_v28 = vor.u32 %v467_v37, %v466_v19  ;;  %v12126_v30 = vld [vmem:[#allocation2 + $0x24] sm:$0xfe]   ;;  %v762_v48 = vld [vmem:[#allocation2 + $0x44] sm:$0x1]  ;;  %v12146_v58 = vld [vmem:[#allocation7 + $0x118] sm:$0xff]  }
  0x9f   : > { %1103 = vst [vmem:[#allocation2 + $0x2c] sm:$0x1] %v1102_v18  ;;  %v471_v29 = vrot.slane %v466_v19, 4  ;;  %v475_v5 = vrot.slane %v473_v21, 7  ;;  %v1508_v32 = vrot.slane %v1506_v14, 1  ;;  %v476_v34 = vshll.u32 %v10898_v3, 16 }
  0xa0   : > { %11182 = vmatpush3.bf16.msra.mxu0 %v12118_v49  ;;  %4478 = vmatmul.mubr.bf16.gmra.mrb[4].mxu1 %v1873_v61  ;;  %v960_v33 = vsel %vm13096_vm7, %v10158_v24, %v959_v26  ;;  %v481_v36 = vshrl.u32 %v10899_v17, 16  ;;  %v470_v39 = vsel %vm13084_vm4, %v462_v15, %v469_v28  ;;  %v1877_v40 = vrot.slane %v12126_v30, 1  ;;  %v765_v57 = vld [vmem:[#allocation2 + $0x48] sm:$0xf]  ;;  %v769_v9 = vld [vmem:[#allocation2 + $0x50] sm:$0x1] }
  0xa1   : > { %11183 = vmatprep.subr.bf16.mxu0 %v12130_v53  ;;  %4485 = vmatprep.mubr.bf16.mxu1 %v12119_v59  ;;  %961 = vst [vmem:[#allocation2 + $0x30] sm:$0x1] %v960_v33  ;;  %v756_v51 = vsel %vm13096_vm7, %v471_v29, %v755_v16  ;;  %v479_v37 = vrot.slane %v475_v5, 4  ;;  %754 = vst [vmem:[#allocation2 + $0x34] sm:$0xf] %v470_v39  ;;  %v478_v44 = vor.u32 %v476_v34, %v475_v5  ;;  %v285_v59 = vld [vmem:[%s13070_s6 + $0x60] sm:$0xff] }
  0xa2   : > { %757 = vst [vmem:[#allocation2 + $0x38] sm:$0x1] %v756_v51  ;;  %v483_v45 = vrot.slane %v481_v36, 7  ;;  %v484_v47 = vshll.u32 %v10899_v17, 16  ;;  %v10901_v49 = vpack.c.bf16 %v284_v42, %v284_v42  ;;  %v490_v50 = vshrl.u32 %v10900_v27, 16  ;;  %v12124_v10 = vld [vmem:[#allocation2 + $0x24] sm:$0xff]  }
  0xa3   : > { %4317 = vmatmul.mubr.bf16.gmra.mrb[4].mxu0 %v12110_v4  ;;  %v493_v52 = vshll.u32 %v10900_v27, 16  ;;  %v759_v55 = vsel %vm13089_vm6, %v478_v44, %v758_v31  ;;  %v1509_v61 = vor.u32 %v1508_v32, %v1504_v23  ;;  %v10902_v3 = vpack.c.bf16 %v285_v59, %v285_v59  ;;  %v286_v27 = vld [vmem:[%s13070_s6 + $0x68] sm:$0xff]  ;;  %v772_v39 = vld [vmem:[#allocation2 + $0x54] sm:$0xf] }
  0xa4   : > { %4324 = vmatprep.mubr.bf16.mxu0 %v1502_v13  ;;  %11184 = vmatpush3.bf16.msra.mxu0 %v12132_v2  ;;  %v486_v53 = vor.u32 %v484_v47, %v483_v45  ;;  %v488_v54 = vrot.slane %v483_v45, 4  ;;  %v498_v56 = vshrl.u32 %v10901_v49, 16  ;;  %760 = vst [vmem:[#allocation2 + $0x3c] sm:$0xf] %v759_v55  ;;  %v492_v62 = vrot.slane %v490_v50, 7 }
  0xa5   : > { %11185 = vmatprep.subr.bf16.mxu0 %v12144_v43  ;;  %v501_v8 = vshll.u32 %v10901_v49, 16  ;;  %v10903_v36 = vpack.c.bf16 %v286_v27, %v286_v27 }
  0xa6   : > { %v12123_v60 = vld [vmem:[#allocation2 + $0x2c] ss:$0 sps:$4 sm:$0x11]   ;;  %v487_v0 = vsel %vm13084_vm4, %v479_v37, %v486_v53  ;;  %v763_v1 = vsel %vm13096_vm7, %v488_v54, %v762_v48  ;;  %v500_v2 = vrot.slane %v498_v56, 7  ;;  %v495_v6 = vor.u32 %v493_v52, %v492_v62 }
  0xa7   : > { %v12127_v63 = vld [vmem:[#allocation2 + $0x2c] ss:$0 sps:$4 sm:$0x11]   ;;  %v1511_v4 = vshll.u32 %v12123_v60, 16  ;;  %761 = vst [vmem:[#allocation2 + $0x40] sm:$0xf] %v487_v0 }
  0xa8   : > { %4486 = vmatmul.mubr.bf16.gmra.mrb[8].mxu1 %v1876_v22  ;;  %764 = vst [vmem:[#allocation2 + $0x44] sm:$0x1] %v763_v1  ;;  %v496_v7 = vrot.slane %v492_v62, 4  ;;  %11186 = vmatpush3.bf16.msra.mxu0 %v12146_v58  ;;  %v1878_v11 = vrot.slane %v12127_v63, 1  ;;  %v505_v12 = vrot.slane %v500_v2, 4  ;;  %v12125_v14 = vld [vmem:[#allocation2 + $0x30] sm:$0xff]   ;;  %v503_v16 = vor.u32 %v501_v8, %v500_v2 }
  0xa9   : > { %v1513_v13 = vrot.slane %v1511_v4, 1  ;;  %v1005_v15 = vld [vmem:[#allocation2 + $0x34] sm:$0x8]  ;;  %v766_v17 = vsel %vm13089_vm6, %v495_v6, %v765_v57  ;;  %v1104_v20 = vld [vmem:[#allocation2 + $0x38] sm:$0x1]  ;;  %4493 = vmatprep.mubr.bf16.mxu1 %v12125_v14  ;;  %v507_v22 = vshrl.u32 %v10902_v3, 16 }
  0xaa   : > { %v1879_v18 = vsel %vm1867_vm9, %v1877_v40, %v1878_v11  ;;  %v10176_v19 = vrot.slane %v1005_v15, 11  ;;  %v12128_v21 = vld [vmem:[#allocation2 + $0x30] sm:$0xff]   ;;  %767 = vst [vmem:[#allocation2 + $0x48] sm:$0xf] %v766_v17  ;;  %v770_v23 = vsel %vm13096_vm7, %v505_v12, %v769_v9  ;;  %v504_v26 = vsel %vm13084_vm4, %v496_v7, %v503_v16 }
  0xab   : > { %4325 = vmatmul.mubr.bf16.gmra.mrb[8].mxu0 %v12117_v38  ;;  %v1514_v24 = vsel %vm1466_vm10, %v1509_v61, %v1513_v13  ;;  %771 = vst [vmem:[#allocation2 + $0x50] sm:$0x1] %v770_v23  ;;  %v1518_v29 = vshll.u32 %v12128_v21, 16  ;;  %v862_v30 = vld [vmem:[#allocation2 + $0x3c] sm:$0x2]  ;;  %v509_v33 = vrot.slane %v507_v22, 7 }
  0xac   : > { %4332 = vmatprep.mubr.bf16.mxu0 %v1514_v24  ;;  %v1105_v28 = vsel %vm13122_vm8, %v10176_v19, %v1104_v20  ;;  %v962_v5 = vld [vmem:[#allocation2 + $0x3c] sm:$0x1]  ;;  %768 = vst [vmem:[#allocation2 + $0x4c] sm:$0xf] %v504_v26  ;;  %v10159_v31 = vrot.slane %v862_v30, 9  ;;  %v510_v38 = vshll.u32 %v10902_v3, 16 }
  0xad   : > { %1106 = vst [vmem:[#allocation2 + $0x38] sm:$0x1] %v1105_v28  ;;  %v12134_v32 = vld [vmem:[#allocation2 + $0x30] sm:$0xfe]   ;;  %v1516_v40 = vshrl.u32 %v12128_v21, 16  ;;  %v1520_v44 = vrot.slane %v1518_v29, 1 }
  0xae   : > { %v1006_v34 = vld [vmem:[#allocation2 + $0x40] sm:$0x8]  ;;  %v963_v51 = vsel %vm13096_vm7, %v10159_v31, %v962_v5  ;;  %v512_v43 = vor.u32 %v510_v38, %v509_v33  ;;  %v1880_v45 = vrot.slane %v12134_v32, 1  ;;  %v515_v54 = vshrl.u32 %v10903_v36, 16  ;;  %v287_v3 = vld [vmem:[%s13070_s6 + $0x70] sm:$0xff]  ;;  %v12131_v9 = vld [vmem:[#allocation2 + $0x30] sm:$0xff]  }
  0xaf   : > { %v10177_v37 = vrot.slane %v1006_v34, 11  ;;  %v1107_v42 = vld [vmem:[#allocation2 + $0x44] sm:$0x1]  ;;  %964 = vst [vmem:[#allocation2 + $0x3c] sm:$0x1] %v963_v51  ;;  %v513_v56 = vrot.slane %v509_v33, 4  ;;  %v1521_v0 = vor.u32 %v1520_v44, %v1516_v40  ;;  %v10904_v16 = vpack.c.bf16 %v287_v3, %v287_v3 }
  0xb0   : > { %4494 = vmatmul.mubr.bf16.gmra.mrb[12].mxu1 %v1879_v18  ;;  %v12140_v52 = vld [vmem:[#allocation2 + $0x3c] sm:$0xfe]   ;;  %v518_v57 = vshll.u32 %v10903_v36, 16  ;;  %v773_v58 = vsel %vm13089_vm6, %v512_v43, %v772_v39  ;;  %v13213_v63 = vrot.slane %v515_v54, 7  ;;  %v288_v24 = vld [vmem:[%s13070_s6 + $0x78] sm:$0xff] }
  0xb1   : > { %v1108_v47 = vsel %vm13122_vm8, %v10177_v37, %v1107_v42  ;;  %v863_v48 = vld [vmem:[#allocation2 + $0x48] sm:$0x2]  ;;  %v965_v49 = vld [vmem:[#allocation2 + $0x48] sm:$0x1]  ;;  %774 = vst [vmem:[#allocation2 + $0x54] sm:$0xf] %v773_v58  ;;  %v10905_v43 = vpack.c.bf16 %v288_v24, %v288_v24 }
  0xb2   : > { %1109 = vst [vmem:[#allocation2 + $0x44] sm:$0x1] %v1108_v47  ;;  %v10160_v50 = vrot.slane %v863_v48, 9  ;;  %v1110_v53 = vld [vmem:[#allocation2 + $0x50] sm:$0x1]  ;;  %v520_v7 = vor.u32 %v518_v57, %v13213_v63  ;;  %v1883_v11 = vrot.slane %v12140_v52, 1 }
  0xb3   : > { %4333 = vmatmul.mubr.bf16.gmra.mrb[12].mxu0 %v12124_v10  ;;  %v1007_v55 = vld [vmem:[#allocation2 + $0x4c] sm:$0x8]  ;;  %v522_v15 = vrot.slane %v13213_v63, 4  ;;  %v524_v30 = vshrl.u32 %v10904_v16, 16  ;;  %v776_v48 = vld [vmem:[#allocation2 + $0x5c] sm:$0x1] }
  0xb4   : > { %v12129_v59 = vld [vmem:[#allocation2 + $0x38] ss:$0 sps:$4 sm:$0x11]   ;;  %v966_v60 = vsel %vm13096_vm7, %v10160_v50, %v965_v49  ;;  %v10178_v61 = vrot.slane %v1007_v55, 11  ;;  %v521_v14 = vsel %vm13084_vm4, %v513_v56, %v520_v7  ;;  %v12148_v42 = vld [vmem:[#allocation2 + $0x48] sm:$0xfe]  }
  0xb5   : > { %v12135_v62 = vld [vmem:[#allocation2 + $0x38] ss:$0 sps:$4 sm:$0x11]   ;;  %967 = vst [vmem:[#allocation2 + $0x48] sm:$0x1] %v966_v60  ;;  %v1523_v1 = vshll.u32 %v12129_v59, 16  ;;  %v777_v54 = vsel %vm13096_vm7, %v522_v15, %v776_v48 }
  0xb6   : > { %v1111_v2 = vsel %vm13122_vm8, %v10178_v61, %v1110_v53  ;;  %v12133_v4 = vld [vmem:[#allocation2 + $0x3c] sm:$0xff]   ;;  %v1881_v6 = vrot.slane %v12135_v62, 1  ;;  %775 = vst [vmem:[#allocation2 + $0x58] sm:$0xf] %v521_v14  ;;  %v526_v49 = vrot.slane %v524_v30, 7  ;;  %v1886_v52 = vrot.slane %v12148_v42, 1 }
  0xb7   : > { %1112 = vst [vmem:[#allocation2 + $0x50] sm:$0x1] %v1111_v2  ;;  %v1525_v8 = vrot.slane %v1523_v1, 1  ;;  %v12136_v10 = vld [vmem:[#allocation2 + $0x3c] sm:$0xff]   ;;  %4501 = vmatprep.mubr.bf16.mxu1 %v12133_v4  ;;  %778 = vst [vmem:[#allocation2 + $0x5c] sm:$0x1] %v777_v54 }
  0xb8   : > { %v1882_v12 = vsel %vm1867_vm9, %v1880_v45, %v1881_v6  ;;  %v1528_v18 = vshrl.u32 %v12136_v10, 16  ;;  %v1530_v19 = vshll.u32 %v12136_v10, 16  ;;  %v864_v23 = vld [vmem:[#allocation2 + $0x54] sm:$0x2]  ;;  %v968_v38 = vld [vmem:[#allocation2 + $0x54] sm:$0x1] }
  0xb9   : > { %v12137_v13 = vld [vmem:[#allocation2 + $0x44] ss:$0 sps:$4 sm:$0x11]   ;;  %v1526_v17 = vsel %vm1466_vm10, %v1521_v0, %v1525_v8  ;;  %4502 = vmatmul.mubr.bf16.gmra.mrb[16].mxu1 %v1882_v12  ;;  %v10161_v32 = vrot.slane %v864_v23, 9  ;;  %v12138_v40 = vld [vmem:[#allocation2 + $0x3c] sm:$0xff]   ;;  %v527_v56 = vshll.u32 %v10904_v16, 16 }
  0xba   : > { %4340 = vmatprep.mubr.bf16.mxu0 %v1526_v17  ;;  %v1535_v20 = vshll.u32 %v12137_v13, 16  ;;  %v12141_v21 = vld [vmem:[#allocation2 + $0x44] ss:$0 sps:$4 sm:$0x11]   ;;  %v1532_v26 = vrot.slane %v1530_v19, 1  ;;  %v530_v57 = vrot.slane %v526_v49, 4 }
  0xbb   : > { %4341 = vmatmul.mubr.bf16.gmra.mrb[16].mxu0 %v12131_v9  ;;  %v1884_v28 = vrot.slane %v12141_v21, 1  ;;  %v969_v37 = vsel %vm13096_vm7, %v10161_v32, %v968_v38  ;;  %v532_v58 = vshrl.u32 %v10905_v43, 16  ;;  %v535_v59 = vshll.u32 %v10905_v43, 16  ;;  %v779_v61 = vld [vmem:[#allocation2 + $0x60] sm:$0xf]  ;;  %v12158_v3 = vld [vmem:[#allocation7 + $0x160] sm:$0xff]  }
  0xbc   : > { %v12139_v27 = vld [vmem:[#allocation2 + $0x48] sm:$0xff]   ;;  %v1537_v22 = vrot.slane %v1535_v20, 1  ;;  %v1533_v5 = vor.u32 %v1532_v26, %v1528_v18  ;;  %970 = vst [vmem:[#allocation2 + $0x54] sm:$0x1] %v969_v37  ;;  %v529_v63 = vor.u32 %v527_v56, %v526_v49  ;;  %v12160_v6 = vld [vmem:[#allocation7 + $0x120] sm:$0xff]   ;;  %11187 = vmatprep.subr.bf16.mxu0 %v12158_v3  ;;  %v290_v16 = vld [vmem:[%s13070_s6 + $0x88] sm:$0xff] }
  0xbd   : > { %v12142_v29 = vld [vmem:[#allocation2 + $0x48] sm:$0xff]   ;;  %4509 = vmatprep.mubr.bf16.mxu1 %v12139_v27  ;;  %v1885_v33 = vsel %vm1867_vm9, %v1883_v11, %v1884_v28  ;;  %v1008_v55 = vld [vmem:[#allocation2 + $0x58] sm:$0x8]  ;;  %v534_v0 = vrot.slane %v532_v58, 7  ;;  %11188 = vmatpush3.bf16.msra.mxu0 %v12160_v6  ;;  %v10907_v20 = vpack.c.bf16 %v290_v16, %v290_v16  ;;  %v797_v16 = vld [vmem:[#allocation2 + $0x80] sm:$0x1] }
  0xbe   : > { %v12143_v31 = vld [vmem:[#allocation2 + $0x50] ss:$0 sps:$4 sm:$0x11]   ;;  %v1540_v34 = vshrl.u32 %v12142_v29, 16  ;;  %v1542_v36 = vshll.u32 %v12142_v29, 16  ;;  %v1538_v39 = vsel %vm1466_vm10, %v1533_v5, %v1537_v22  ;;  %v12145_v62 = vld [vmem:[#allocation2 + $0x48] sm:$0xff]   ;;  %v780_v11 = vsel %vm13089_vm6, %v529_v63, %v779_v61 }
  0xbf   : > { %v1547_v51 = vshll.u32 %v12143_v31, 16  ;;  %4348 = vmatprep.mubr.bf16.mxu0 %v1538_v39  ;;  %v12149_v45 = vld [vmem:[#allocation2 + $0x50] ss:$0 sps:$4 sm:$0x11]   ;;  %v13232_v1 = vld [vmem:[#allocation2 + $0x54] sm:$0xfe]   ;;  %v537_v9 = vor.u32 %v535_v59, %v534_v0 }
  0xc0   : > { %v1544_v44 = vrot.slane %v1542_v36, 1  ;;  %v1887_v53 = vrot.slane %v12149_v45, 1  ;;  %v783_v2 = vld [vmem:[#allocation2 + $0x68] sm:$0x1]  ;;  %v10179_v4 = vrot.slane %v1008_v55, 11  ;;  %v539_v10 = vrot.slane %v534_v0, 4 }
  0xc1   : > { %4510 = vmatmul.mubr.bf16.gmra.mrb[20].mxu1 %v1885_v33  ;;  %v1549_v47 = vrot.slane %v1547_v51, 1  ;;  %781 = vst [vmem:[#allocation2 + $0x60] sm:$0xf] %v780_v11  ;;  %v538_v13 = vsel %vm13084_vm4, %v530_v57, %v537_v9  ;;  %v289_v15 = vld [vmem:[%s13070_s6 + $0x80] sm:$0xff]  ;;  %v1889_v23 = vrot.slane %v13232_v1, 1  ;;  %v549_v22 = vshrl.u32 %v10907_v20, 16 }
  0xc2   : > { %v1545_v50 = vor.u32 %v1544_v44, %v1540_v34  ;;  %v1888_v8 = vsel %vm1867_vm9, %v1886_v52, %v1887_v53  ;;  %v784_v14 = vsel %vm13096_vm7, %v539_v10, %v783_v2  ;;  %v1113_v17 = vld [vmem:[#allocation2 + $0x5c] sm:$0x1]  ;;  %782 = vst [vmem:[#allocation2 + $0x64] sm:$0xf] %v538_v13  ;;  %v10906_v19 = vpack.c.bf16 %v289_v15, %v289_v15  ;;  %v291_v28 = vld [vmem:[%s13070_s6 + $0x90] sm:$0xff]  ;;  %v292_v5 = vld [vmem:[%s13070_s6 + $0x98] sm:$0xff] }
  0xc3   : > { %4349 = vmatmul.mubr.bf16.gmra.mrb[20].mxu0 %v12138_v40  ;;  %v12147_v7 = vld [vmem:[#allocation2 + $0x54] sm:$0xff]   ;;  %785 = vst [vmem:[#allocation2 + $0x68] sm:$0x1] %v784_v14  ;;  %v1114_v21 = vsel %vm13122_vm8, %v10179_v4, %v1113_v17  ;;  %v552_v30 = vshll.u32 %v10907_v20, 16  ;;  %v12172_v31 = vld [vmem:[#allocation7 + $0x168] sm:$0xff]   ;;  %v551_v33 = vrot.slane %v549_v22, 7  ;;  %v10908_v40 = vpack.c.bf16 %v291_v28, %v291_v28 }
  0xc4   : > { %v1550_v60 = vsel %vm1466_vm10, %v1545_v50, %v1549_v47  ;;  %v12150_v12 = vld [vmem:[#allocation2 + $0x54] sm:$0xff]   ;;  %4517 = vmatprep.mubr.bf16.mxu1 %v12147_v7  ;;  %1115 = vst [vmem:[#allocation2 + $0x5c] sm:$0x1] %v1114_v21  ;;  %v541_v26 = vshrl.u32 %v10906_v19, 16  ;;  %v544_v27 = vshll.u32 %v10906_v19, 16  ;;  %11189 = vmatprep.subr.bf16.mxu0 %v12172_v31  ;;  %v12174_v44 = vld [vmem:[#allocation7 + $0x128] sm:$0xff]   ;;  %v10909_v49 = vpack.c.bf16 %v292_v5, %v292_v5 }
  0xc5   : > { %4356 = vmatprep.mubr.bf16.mxu0 %v1550_v60  ;;  %v1554_v18 = vshll.u32 %v12150_v12, 16  ;;  %v1552_v24 = vshrl.u32 %v12150_v12, 16  ;;  %v786_v34 = vld [vmem:[#allocation2 + $0x6c] sm:$0xf]  ;;  %v790_v39 = vld [vmem:[#allocation2 + $0x74] sm:$0x1]  ;;  %v554_v43 = vor.u32 %v552_v30, %v551_v33  ;;  %11190 = vmatpush3.bf16.msra.mxu0 %v12174_v44 }
  0xc6   : > { %v543_v32 = vrot.slane %v541_v26, 7  ;;  %v293_v45 = vld [vmem:[%s13070_s6 + $0xa0] sm:$0xff]  ;;  %v556_v55 = vrot.slane %v551_v33, 4  ;;  %v558_v58 = vshrl.u32 %v10908_v40, 16  ;;  %v566_v6 = vshrl.u32 %v10909_v49, 16  ;;  %v12186_v26 = vld [vmem:[#allocation7 + $0x170] sm:$0xff]  }
  0xc7   : > { %v1556_v29 = vrot.slane %v1554_v18, 1  ;;  %v10910_v50 = vpack.c.bf16 %v293_v45, %v293_v45  ;;  %v793_v3 = vld [vmem:[#allocation2 + $0x78] sm:$0xf]  ;;  %v569_v7 = vshll.u32 %v10909_v49, 16  ;;  %v295_v33 = vld [vmem:[%s13070_s6 + $0xb0] sm:$0xff]  ;;  %11191 = vmatprep.subr.bf16.mxu0 %v12186_v26 }
  0xc8   : > { %v865_v36 = vld [vmem:[#allocation2 + $0x60] sm:$0x2]  ;;  %v971_v38 = vld [vmem:[#allocation2 + $0x60] sm:$0x1]  ;;  %v546_v37 = vor.u32 %v544_v27, %v543_v32  ;;  %v547_v42 = vrot.slane %v543_v32, 4  ;;  %v791_v61 = vsel %vm13096_vm7, %v556_v55, %v790_v39  ;;  %v560_v2 = vrot.slane %v558_v58, 7 }
  0xc9   : > { %4518 = vmatmul.mubr.bf16.gmra.mrb[24].mxu1 %v1888_v8  ;;  %v10162_v51 = vrot.slane %v865_v36, 9  ;;  %v1009_v47 = vld [vmem:[#allocation2 + $0x64] sm:$0x8]  ;;  %v1557_v63 = vor.u32 %v1556_v29, %v1552_v24  ;;  %792 = vst [vmem:[#allocation2 + $0x74] sm:$0x1] %v791_v61  ;;  %v575_v9 = vshrl.u32 %v10910_v50, 16  ;;  %v10912_v49 = vpack.c.bf16 %v295_v33, %v295_v33 }
  0xca   : > { %v1116_v48 = vld [vmem:[#allocation2 + $0x68] sm:$0x1]  ;;  %v10180_v53 = vrot.slane %v1009_v47, 11  ;;  %v555_v54 = vsel %vm13084_vm4, %v547_v42, %v554_v43  ;;  %v787_v57 = vsel %vm13089_vm6, %v546_v37, %v786_v34  ;;  %v294_v8 = vld [vmem:[%s13070_s6 + $0xa8] sm:$0xff]  ;;  %v12152_v11 = vld [vmem:[#allocation2 + $0x54] sm:$0xff]   ;;  %v564_v14 = vrot.slane %v560_v2, 4 }
  0xcb   : > { %4357 = vmatmul.mubr.bf16.gmra.mrb[24].mxu0 %v12145_v62  ;;  %v972_v52 = vsel %vm13096_vm7, %v10162_v51, %v971_v38  ;;  %v12151_v56 = vld [vmem:[#allocation2 + $0x5c] ss:$0 sps:$4 sm:$0x11]   ;;  %789 = vst [vmem:[#allocation2 + $0x70] sm:$0xf] %v555_v54  ;;  %v561_v62 = vshll.u32 %v10908_v40, 16  ;;  %v10911_v17 = vpack.c.bf16 %v294_v8, %v294_v8 }
  0xcc   : > { %973 = vst [vmem:[#allocation2 + $0x60] sm:$0x1] %v972_v52  ;;  %v12155_v59 = vld [vmem:[#allocation2 + $0x5c] ss:$0 sps:$4 sm:$0x11]   ;;  %v1117_v60 = vsel %vm13122_vm8, %v10180_v53, %v1116_v48  ;;  %v1559_v0 = vshll.u32 %v12151_v56, 16 }
  0xcd   : > { %788 = vst [vmem:[#allocation2 + $0x6c] sm:$0xf] %v787_v57  ;;  %1118 = vst [vmem:[#allocation2 + $0x68] sm:$0x1] %v1117_v60  ;;  %v1890_v4 = vrot.slane %v12155_v59, 1  ;;  %v563_v13 = vor.u32 %v561_v62, %v560_v2  ;;  %v568_v15 = vrot.slane %v566_v6, 7 }
  0xce   : > { %v1561_v10 = vrot.slane %v1559_v0, 1  ;;  %v13260_v12 = vld [vmem:[#allocation2 + $0x60] sm:$0xfe]   ;;  %v13262_v18 = vrot.slane %v575_v9, 7  ;;  %v578_v21 = vshll.u32 %v10910_v50, 16  ;;  %v583_v32 = vshrl.u32 %v10911_v17, 16 }
  0xcf   : > { %v794_v20 = vsel %vm13089_vm6, %v563_v13, %v793_v3  ;;  %v800_v24 = vld [vmem:[#allocation2 + $0x84] sm:$0xf]  ;;  %v1891_v22 = vsel %vm1867_vm9, %v1889_v23, %v1890_v4  ;;  %v571_v28 = vor.u32 %v569_v7, %v568_v15  ;;  %v573_v29 = vrot.slane %v568_v15, 4  ;;  %v804_v55 = vld [vmem:[#allocation2 + $0x8c] sm:$0x1]  ;;  %v296_v4 = vld [vmem:[%s13070_s6 + $0xb8] sm:$0xff] }
  0xd0   : > { %v1562_v19 = vsel %vm1466_vm10, %v1557_v63, %v1561_v10  ;;  %795 = vst [vmem:[#allocation2 + $0x78] sm:$0xf] %v794_v20  ;;  %v1892_v5 = vrot.slane %v13260_v12, 1  ;;  %v580_v31 = vor.u32 %v578_v21, %v13262_v18  ;;  %v586_v23 = vshll.u32 %v10911_v17, 16  ;;  %v1119_v54 = vld [vmem:[#allocation2 + $0x74] sm:$0x1] }
  0xd1   : > { %4364 = vmatprep.mubr.bf16.mxu0 %v1562_v19  ;;  %v572_v36 = vsel %vm13084_vm4, %v564_v14, %v571_v28  ;;  %v798_v1 = vsel %vm13096_vm7, %v573_v29, %v797_v16  ;;  %v581_v58 = vrot.slane %v13262_v18, 4  ;;  %v585_v59 = vrot.slane %v583_v32, 7  ;;  %v12188_v7 = vld [vmem:[#allocation7 + $0x130] sm:$0xff]   ;;  %v807_v29 = vld [vmem:[#allocation2 + $0x90] sm:$0xf] }
  0xd2   : > { %796 = vst [vmem:[#allocation2 + $0x7c] sm:$0xf] %v572_v36  ;;  %799 = vst [vmem:[#allocation2 + $0x80] sm:$0x1] %v798_v1  ;;  %v801_v37 = vsel %vm13089_vm6, %v580_v31, %v800_v24  ;;  %v1010_v48 = vld [vmem:[#allocation2 + $0x70] sm:$0x8]  ;;  %v10913_v17 = vpack.c.bf16 %v296_v4, %v296_v4  ;;  %11192 = vmatpush3.bf16.msra.mxu0 %v12188_v7 }
  0xd3   : > { %v12153_v27 = vld [vmem:[#allocation2 + $0x60] sm:$0xff]   ;;  %4365 = vmatmul.mubr.bf16.gmra.mrb[28].mxu0 %v12152_v11  ;;  %802 = vst [vmem:[#allocation2 + $0x84] sm:$0xf] %v801_v37  ;;  %v10181_v53 = vrot.slane %v1010_v48, 11  ;;  %v588_v2 = vor.u32 %v586_v23, %v585_v59  ;;  %v590_v3 = vrot.slane %v585_v59, 4  ;;  %v592_v6 = vshrl.u32 %v10912_v49, 16 }
  0xd4   : > { %v12156_v30 = vld [vmem:[#allocation2 + $0x60] sm:$0xff]   ;;  %4525 = vmatprep.mubr.bf16.mxu1 %v12153_v27  ;;  %v12157_v34 = vld [vmem:[#allocation2 + $0x68] ss:$0 sps:$4 sm:$0x11]   ;;  %v866_v40 = vld [vmem:[#allocation2 + $0x6c] sm:$0x2] }
  0xd5   : > { %4526 = vmatmul.mubr.bf16.gmra.mrb[28].mxu1 %v1891_v22  ;;  %v1564_v38 = vshrl.u32 %v12156_v30, 16  ;;  %v1566_v39 = vshll.u32 %v12156_v30, 16  ;;  %v974_v51 = vld [vmem:[#allocation2 + $0x6c] sm:$0x1]  ;;  %v1571_v42 = vshll.u32 %v12157_v34, 16  ;;  %v10163_v43 = vrot.slane %v866_v40, 9 }
  0xd6   : > { %v12159_v45 = vld [vmem:[#allocation2 + $0x60] sm:$0xff]   ;;  %v12163_v47 = vld [vmem:[#allocation2 + $0x68] ss:$0 sps:$4 sm:$0x11]   ;;  %v1120_v61 = vsel %vm13122_vm8, %v10181_v53, %v1119_v54  ;;  %v589_v13 = vsel %vm13084_vm4, %v581_v58, %v588_v2  ;;  %v805_v14 = vsel %vm13096_vm7, %v590_v3, %v804_v55  ;;  %v12168_v18 = vld [vmem:[#allocation2 + $0x6c] sm:$0xfe]  }
  0xd7   : > { %v1568_v44 = vrot.slane %v1566_v39, 1  ;;  %v1573_v50 = vrot.slane %v1571_v42, 1  ;;  %v975_v52 = vsel %vm13096_vm7, %v10163_v43, %v974_v51  ;;  %v867_v57 = vld [vmem:[#allocation2 + $0x78] sm:$0x2]  ;;  %v1893_v60 = vrot.slane %v12163_v47, 1 }
  0xd8   : > { %976 = vst [vmem:[#allocation2 + $0x6c] sm:$0x1] %v975_v52  ;;  %v10164_v62 = vrot.slane %v867_v57, 9  ;;  %v977_v63 = vld [vmem:[#allocation2 + $0x78] sm:$0x1]  ;;  %v594_v21 = vrot.slane %v592_v6, 7 }
  0xd9   : > { %v1569_v56 = vor.u32 %v1568_v44, %v1564_v38  ;;  %1121 = vst [vmem:[#allocation2 + $0x74] sm:$0x1] %v1120_v61  ;;  %v1011_v9 = vld [vmem:[#allocation2 + $0x7c] sm:$0x8]  ;;  %v1122_v10 = vld [vmem:[#allocation2 + $0x80] sm:$0x1]  ;;  %v1894_v26 = vsel %vm1867_vm9, %v1892_v5, %v1893_v60 }
  0xda   : > { %v978_v8 = vsel %vm13096_vm7, %v10164_v62, %v977_v63  ;;  %v10182_v11 = vrot.slane %v1011_v9, 11  ;;  %803 = vst [vmem:[#allocation2 + $0x88] sm:$0xf] %v589_v13  ;;  %v868_v15 = vld [vmem:[#allocation2 + $0x84] sm:$0x2]  ;;  %v595_v27 = vshll.u32 %v10912_v49, 16 }
  0xdb   : > { %v1574_v0 = vsel %vm1466_vm10, %v1569_v56, %v1573_v50  ;;  %979 = vst [vmem:[#allocation2 + $0x78] sm:$0x1] %v978_v8  ;;  %v980_v16 = vld [vmem:[#allocation2 + $0x84] sm:$0x1]  ;;  %806 = vst [vmem:[#allocation2 + $0x8c] sm:$0x1] %v805_v14 }
  0xdc   : > { %4372 = vmatprep.mubr.bf16.mxu0 %v1574_v0  ;;  %v1123_v19 = vsel %vm13122_vm8, %v10182_v11, %v1122_v10  ;;  %v10165_v20 = vrot.slane %v868_v15, 9  ;;  %v597_v31 = vor.u32 %v595_v27, %v594_v21  ;;  %v600_v32 = vshrl.u32 %v10913_v17, 16  ;;  %v12176_v43 = vld [vmem:[#allocation2 + $0x78] sm:$0xfe]   ;;  %v811_v2 = vld [vmem:[#allocation2 + $0x98] sm:$0x1] }
  0xdd   : > { %4373 = vmatmul.mubr.bf16.gmra.mrb[32].mxu0 %v12159_v45  ;;  %1124 = vst [vmem:[#allocation2 + $0x80] sm:$0x1] %v1123_v19  ;;  %v1895_v36 = vrot.slane %v12168_v18, 1  ;;  %v603_v1 = vshll.u32 %v10913_v17, 16  ;;  %v598_v37 = vrot.slane %v594_v21, 4  ;;  %v297_v49 = vld [vmem:[%s13070_s6 + $0xc0] sm:$0xff] }
  0xde   : > { %v981_v28 = vsel %vm13096_vm7, %v10165_v20, %v980_v16  ;;  %v808_v23 = vsel %vm13089_vm6, %v597_v31, %v807_v29  ;;  %v602_v44 = vrot.slane %v600_v32, 7  ;;  %v1898_v7 = vrot.slane %v12176_v43, 1  ;;  %v12193_v32 = vld [vmem:[#allocation7 + $0x180] sm:$0xff]  }
  0xdf   : > { %v12161_v24 = vld [vmem:[#allocation2 + $0x6c] sm:$0xff]   ;;  %982 = vst [vmem:[#allocation2 + $0x84] sm:$0x1] %v981_v28  ;;  %809 = vst [vmem:[#allocation2 + $0x90] sm:$0xf] %v808_v23  ;;  %v10914_v9 = vpack.c.bf16 %v297_v49, %v297_v49 }
  0xe0   : > { %v12164_v22 = vld [vmem:[#allocation2 + $0x6c] sm:$0xff]   ;;  %4533 = vmatprep.mubr.bf16.mxu1 %v12161_v24  ;;  %v12165_v30 = vld [vmem:[#allocation2 + $0x74] ss:$0 sps:$4 sm:$0x11]   ;;  %v605_v54 = vor.u32 %v603_v1, %v602_v44  ;;  %v607_v11 = vrot.slane %v602_v44, 4 }
  0xe1   : > { %4534 = vmatmul.mubr.bf16.gmra.mrb[32].mxu1 %v1894_v26  ;;  %v1576_v33 = vshrl.u32 %v12164_v22, 16  ;;  %v1578_v34 = vshll.u32 %v12164_v22, 16  ;;  %v1583_v12 = vshll.u32 %v12165_v30, 16  ;;  %v12166_v39 = vld [vmem:[#allocation2 + $0x6c] sm:$0xff]   ;;  %v1012_v53 = vld [vmem:[#allocation2 + $0x88] sm:$0x8] }
  0xe2   : > { %v12167_v5 = vld [vmem:[#allocation2 + $0x78] sm:$0xff]   ;;  %v12169_v40 = vld [vmem:[#allocation2 + $0x74] ss:$0 sps:$4 sm:$0x11]   ;;  %v10183_v59 = vrot.slane %v1012_v53, 11  ;;  %v606_v0 = vsel %vm13084_vm4, %v598_v37, %v605_v54  ;;  %v812_v19 = vsel %vm13096_vm7, %v607_v11, %v811_v2  ;;  %v298_v26 = vld [vmem:[%s13070_s6 + $0xc8] sm:$0xff] }
  0xe3   : > { %v1580_v38 = vrot.slane %v1578_v34, 1  ;;  %v12170_v51 = vld [vmem:[#allocation2 + $0x78] sm:$0xff]   ;;  %v1585_v42 = vrot.slane %v1583_v12, 1  ;;  %4541 = vmatprep.mubr.bf16.mxu1 %v12167_v5  ;;  %v1896_v47 = vrot.slane %v12169_v40, 1  ;;  %v1125_v63 = vld [vmem:[#allocation2 + $0x8c] sm:$0x1]  ;;  %v10915_v30 = vpack.c.bf16 %v298_v26, %v298_v26 }
  0xe4   : > { %v12171_v48 = vld [vmem:[#allocation2 + $0x80] ss:$0 sps:$4 sm:$0x11]   ;;  %v1588_v50 = vshrl.u32 %v12170_v51, 16  ;;  %v1590_v52 = vshll.u32 %v12170_v51, 16  ;;  %v1126_v4 = vsel %vm13122_vm8, %v10183_v59, %v1125_v63  ;;  %v12173_v16 = vld [vmem:[#allocation2 + $0x78] sm:$0xff]  }
  0xe5   : > { %v1581_v45 = vor.u32 %v1580_v38, %v1576_v33  ;;  %v1897_v56 = vsel %vm1867_vm9, %v1895_v36, %v1896_v47  ;;  %v1595_v57 = vshll.u32 %v12171_v48, 16  ;;  %v12177_v62 = vld [vmem:[#allocation2 + $0x80] ss:$0 sps:$4 sm:$0x11]   ;;  %810 = vst [vmem:[#allocation2 + $0x94] sm:$0xf] %v606_v0 }
  0xe6   : > { %v12175_v58 = vld [vmem:[#allocation2 + $0x84] sm:$0xff]   ;;  %v1592_v61 = vrot.slane %v1590_v52, 1  ;;  %v1899_v8 = vrot.slane %v12177_v62, 1  ;;  %1127 = vst [vmem:[#allocation2 + $0x8c] sm:$0x1] %v1126_v4  ;;  %v609_v27 = vshrl.u32 %v10914_v9, 16 }
  0xe7   : > { %v1586_v55 = vsel %vm1466_vm10, %v1581_v45, %v1585_v42  ;;  %v12178_v60 = vld [vmem:[#allocation2 + $0x84] sm:$0xff]   ;;  %v1597_v3 = vrot.slane %v1595_v57, 1  ;;  %v869_v13 = vld [vmem:[#allocation2 + $0x90] sm:$0x2]  ;;  %v983_v14 = vld [vmem:[#allocation2 + $0x90] sm:$0x1] }
  0xe8   : > { %4380 = vmatprep.mubr.bf16.mxu0 %v1586_v55  ;;  %v1593_v6 = vor.u32 %v1592_v61, %v1588_v50  ;;  %v1602_v10 = vshll.u32 %v12178_v60, 16  ;;  %v10166_v17 = vrot.slane %v869_v13, 9  ;;  %v12182_v18 = vld [vmem:[#allocation2 + $0x84] sm:$0xfe]   ;;  %v1900_v20 = vsel %vm1867_vm9, %v1898_v7, %v1899_v8  ;;  %813 = vst [vmem:[#allocation2 + $0x98] sm:$0x1] %v812_v19 }
  0xe9   : > { %4381 = vmatmul.mubr.bf16.gmra.mrb[36].mxu0 %v12166_v39  ;;  %4542 = vmatmul.mubr.bf16.gmra.mrb[36].mxu1 %v1897_v56  ;;  %v1600_v21 = vshrl.u32 %v12178_v60, 16  ;;  %v12192_v22 = vld [vmem:[#allocation7 + $0x1c0] sm:$0xff]   ;;  %v1901_v29 = vrot.slane %v12182_v18, 1  ;;  %v612_v31 = vshll.u32 %v10914_v9, 16  ;;  %v611_v5 = vrot.slane %v609_v27, 7  ;;  %v12194_v51 = vld [vmem:[#allocation7 + $0x1c8] sm:$0xff]  }
  0xea   : > { %4549 = vmatprep.mubr.bf16.mxu1 %v12175_v58  ;;  %v1598_v15 = vsel %vm1466_vm10, %v1593_v6, %v1597_v3  ;;  %v984_v24 = vsel %vm13096_vm7, %v10166_v17, %v983_v14  ;;  %v1604_v28 = vrot.slane %v1602_v10, 1  ;;  %11291 = vmatprep.subr.bf16.mxu1 %v12192_v22  ;;  %v814_v1 = vld [vmem:[#allocation2 + $0x9c] sm:$0xf]  ;;  %v617_v39 = vshrl.u32 %v10915_v30, 16  ;;  %v12180_v37 = vld [vmem:[#allocation2 + $0x84] sm:$0xff]   ;;  %v300_v3 = vld [vmem:[%s13070_s6 + $0xd8] sm:$0xff] }
  0xeb   : > { %4388 = vmatprep.mubr.bf16.mxu0 %v1598_v15  ;;  %985 = vst [vmem:[#allocation2 + $0x90] sm:$0x1] %v984_v24  ;;  %11292 = vmatpush3.bf16.msra.mxu1 %v12193_v32  ;;  %v620_v40 = vshll.u32 %v10915_v30, 16  ;;  %v614_v43 = vor.u32 %v612_v31, %v611_v5  ;;  %v615_v44 = vrot.slane %v611_v5, 4  ;;  %v818_v60 = vld [vmem:[#allocation2 + $0xa4] sm:$0x1]  ;;  %v10917_v13 = vpack.c.bf16 %v300_v3, %v300_v3 }
  0xec   : > { %v1013_v33 = vld [vmem:[#allocation2 + $0x94] sm:$0x8]  ;;  %v1605_v23 = vor.u32 %v1604_v28, %v1600_v21  ;;  %v619_v48 = vrot.slane %v617_v39, 7  ;;  %11293 = vmatprep.subr.bf16.mxu1 %v12194_v51  ;;  %v12197_v63 = vld [vmem:[#allocation7 + $0x188] sm:$0xff]   ;;  %v299_v0 = vld [vmem:[%s13070_s6 + $0xd0] sm:$0xff] }
  0xed   : > { %v12179_v34 = vld [vmem:[#allocation2 + $0x8c] ss:$0 sps:$4 sm:$0x11]   ;;  %v10184_v36 = vrot.slane %v1013_v33, 11  ;;  %v815_v53 = vsel %vm13089_vm6, %v614_v43, %v814_v1  ;;  %v10916_v4 = vpack.c.bf16 %v299_v0, %v299_v0  ;;  %v12190_v8 = vld [vmem:[#allocation2 + $0x90] sm:$0xfe]  }
  0xee   : > { %v12183_v12 = vld [vmem:[#allocation2 + $0x8c] ss:$0 sps:$4 sm:$0x11]   ;;  %v1607_v38 = vshll.u32 %v12179_v34, 16  ;;  %v622_v56 = vor.u32 %v620_v40, %v619_v48  ;;  %v624_v57 = vrot.slane %v619_v48, 4  ;;  %v634_v30 = vshrl.u32 %v10917_v13, 16 }
  0xef   : > { %v1902_v42 = vrot.slane %v12183_v12, 1  ;;  %v1128_v47 = vld [vmem:[#allocation2 + $0x98] sm:$0x1]  ;;  %816 = vst [vmem:[#allocation2 + $0x9c] sm:$0xf] %v815_v53  ;;  %11294 = vmatpush3.bf16.msra.mxu1 %v12197_v63  ;;  %v12202_v6 = vld [vmem:[#allocation7 + $0x1d0] sm:$0xff]  }
  0xf0   : > { %v1609_v45 = vrot.slane %v1607_v38, 1  ;;  %v1129_v52 = vsel %vm13122_vm8, %v10184_v36, %v1128_v47  ;;  %v623_v59 = vsel %vm13084_vm4, %v615_v44, %v622_v56  ;;  %v819_v62 = vsel %vm13096_vm7, %v624_v57, %v818_v60  ;;  %11295 = vmatprep.subr.bf16.mxu1 %v12202_v6  ;;  %v821_v27 = vld [vmem:[#allocation2 + $0xa8] sm:$0xf]  ;;  %v12204_v5 = vld [vmem:[#allocation7 + $0x1d8] sm:$0xff]   ;;  %v301_v47 = vld [vmem:[%s13070_s6 + $0xe0] sm:$0xff] }
  0xf1   : > { %4389 = vmatmul.mubr.bf16.gmra.mrb[40].mxu0 %v12173_v16  ;;  %4550 = vmatmul.mubr.bf16.gmra.mrb[40].mxu1 %v1900_v20  ;;  %v1903_v50 = vsel %vm1867_vm9, %v1901_v29, %v1902_v42  ;;  %1130 = vst [vmem:[#allocation2 + $0x98] sm:$0x1] %v1129_v52  ;;  %817 = vst [vmem:[#allocation2 + $0xa0] sm:$0xf] %v623_v59  ;;  %v626_v9 = vshrl.u32 %v10916_v4, 16  ;;  %v12203_v22 = vld [vmem:[#allocation7 + $0x190] sm:$0xff]   ;;  %v10918_v52 = vpack.c.bf16 %v301_v47, %v301_v47 }
  0xf2   : > { %v12181_v49 = vld [vmem:[#allocation2 + $0x90] sm:$0xff]   ;;  %v1610_v54 = vsel %vm1466_vm10, %v1605_v23, %v1609_v45  ;;  %820 = vst [vmem:[#allocation2 + $0xa4] sm:$0x1] %v819_v62  ;;  %v629_v29 = vshll.u32 %v10916_v4, 16  ;;  %v637_v31 = vshll.u32 %v10917_v13, 16  ;;  %v1904_v33 = vrot.slane %v12190_v8, 1 }
  0xf3   : > { %v12184_v55 = vld [vmem:[#allocation2 + $0x90] sm:$0xff]   ;;  %4396 = vmatprep.mubr.bf16.mxu0 %v1610_v54  ;;  %4557 = vmatprep.mubr.bf16.mxu1 %v12181_v49  ;;  %v628_v18 = vrot.slane %v626_v9, 7  ;;  %v636_v12 = vrot.slane %v634_v30, 7  ;;  %v302_v48 = vld [vmem:[%s13070_s6 + $0xe8] sm:$0xff]  ;;  %v643_v56 = vshrl.u32 %v10918_v52, 16  ;;  %v646_v59 = vshll.u32 %v10918_v52, 16 }
  0xf4   : > { %v1614_v58 = vshll.u32 %v12184_v55, 16  ;;  %v1612_v61 = vshrl.u32 %v12184_v55, 16  ;;  %v12187_v21 = vld [vmem:[#allocation2 + $0x90] sm:$0xff]   ;;  %11296 = vmatpush3.bf16.msra.mxu1 %v12203_v22  ;;  %v10919_v53 = vpack.c.bf16 %v302_v48, %v302_v48  ;;  %v12215_v22 = vld [vmem:[#allocation7 + $0x1a0] sm:$0xff]  }
  0xf5   : > { %v632_v36 = vrot.slane %v628_v18, 4  ;;  %v631_v1 = vor.u32 %v629_v29, %v628_v18  ;;  %v825_v38 = vld [vmem:[#allocation2 + $0xb0] sm:$0x1]  ;;  %v639_v40 = vor.u32 %v637_v31, %v636_v12  ;;  %v641_v51 = vrot.slane %v636_v12, 4  ;;  %11297 = vmatprep.subr.bf16.mxu1 %v12204_v5  ;;  %v828_v13 = vld [vmem:[#allocation2 + $0xb4] sm:$0xf] }
  0xf6   : > { %v1616_v2 = vrot.slane %v1614_v58, 1  ;;  %v870_v10 = vld [vmem:[#allocation2 + $0x9c] sm:$0x2]  ;;  %v986_v11 = vld [vmem:[#allocation2 + $0x9c] sm:$0x1]  ;;  %v12207_v39 = vld [vmem:[#allocation7 + $0x178] sm:$0xff]  }
  0xf7   : > { %v10167_v16 = vrot.slane %v870_v10, 9  ;;  %v12208_v42 = vld [vmem:[#allocation7 + $0x198] sm:$0xff]   ;;  %11193 = vmatprep.subr.bf16.mxu0 %v12207_v39  ;;  %v640_v43 = vsel %vm13084_vm4, %v632_v36, %v639_v40  ;;  %v826_v44 = vsel %vm13096_vm7, %v641_v51, %v825_v38  ;;  %v651_v60 = vshrl.u32 %v10919_v53, 16  ;;  %v303_v12 = vld [vmem:[%s13070_s6 + $0xf0] sm:$0xff] }
  0xf8   : > { %v12185_v7 = vld [vmem:[#allocation2 + $0x98] ss:$0 sps:$4 sm:$0x11]   ;;  %v1617_v14 = vor.u32 %v1616_v2, %v1612_v61  ;;  %v1014_v19 = vld [vmem:[#allocation2 + $0xa0] sm:$0x8]  ;;  %11298 = vmatpush3.bf16.msra.mxu1 %v12208_v42  ;;  %v12210_v45 = vld [vmem:[#allocation7 + $0x138] sm:$0xff]  }
  0xf9   : > { %4397 = vmatmul.mubr.bf16.gmra.mrb[44].mxu0 %v12180_v37  ;;  %4558 = vmatmul.mubr.bf16.gmra.mrb[44].mxu1 %v1903_v50  ;;  %v1619_v15 = vshll.u32 %v12185_v7, 16  ;;  %v12191_v17 = vld [vmem:[#allocation2 + $0x98] ss:$0 sps:$4 sm:$0x11]   ;;  %v987_v24 = vsel %vm13096_vm7, %v10167_v16, %v986_v11  ;;  %v10185_v26 = vrot.slane %v1014_v19, 11  ;;  %v822_v37 = vsel %vm13089_vm6, %v631_v1, %v821_v27  ;;  %v12219_v1 = vld [vmem:[#allocation7 + $0x1a8] sm:$0xff]  }
  0xfa   : > { %988 = vst [vmem:[#allocation2 + $0x9c] sm:$0x1] %v987_v24  ;;  %v1131_v28 = vld [vmem:[#allocation2 + $0xa4] sm:$0x1]  ;;  %v1905_v23 = vrot.slane %v12191_v17, 1  ;;  %11194 = vmatpush3.bf16.msra.mxu0 %v12210_v45  ;;  %v645_v63 = vrot.slane %v643_v56, 7 }
  0xfb   : > { %v1621_v20 = vrot.slane %v1619_v15, 1  ;;  %v1132_v34 = vsel %vm13122_vm8, %v10185_v26, %v1131_v28  ;;  %823 = vst [vmem:[#allocation2 + $0xa8] sm:$0xf] %v822_v37  ;;  %824 = vst [vmem:[#allocation2 + $0xac] sm:$0xf] %v640_v43  ;;  %v654_v0 = vshll.u32 %v10919_v53, 16 }
  0xfc   : > { %1133 = vst [vmem:[#allocation2 + $0xa4] sm:$0x1] %v1132_v34  ;;  %v1906_v50 = vsel %vm1867_vm9, %v1904_v33, %v1905_v23  ;;  %827 = vst [vmem:[#allocation2 + $0xb0] sm:$0x1] %v826_v44  ;;  %v12200_v62 = vld [vmem:[#allocation2 + $0x9c] sm:$0xfe]   ;;  %v13343_v11 = vor.u32 %v646_v59, %v645_v63  ;;  %v10920_v23 = vpack.c.bf16 %v303_v12, %v303_v12 }
  0xfd   : > { %v1622_v32 = vsel %vm1466_vm10, %v1617_v14, %v1621_v20  ;;  %v13341_v6 = vrot.slane %v651_v60, 7  ;;  %v12214_v14 = vld [vmem:[#allocation7 + $0x1e0] sm:$0xff]   ;;  %v1907_v28 = vrot.slane %v12200_v62, 1  ;;  %v12216_v33 = vld [vmem:[#allocation7 + $0x1e8] sm:$0xff]   ;;  %v304_v5 = vld [vmem:[%s13070_s6 + $0xf8] sm:$0xff] }
  0xfe   : > { %4404 = vmatprep.mubr.bf16.mxu0 %v1622_v32  ;;  %11299 = vmatprep.subr.bf16.mxu1 %v12214_v14  ;;  %v829_v27 = vsel %vm13089_vm6, %v13343_v11, %v828_v13  ;;  %v832_v34 = vld [vmem:[#allocation2 + $0xbc] sm:$0x1]  ;;  %v10921_v38 = vpack.c.bf16 %v304_v5, %v304_v5  ;;  %v12224_v39 = vld [vmem:[#allocation7 + $0x1f0] sm:$0xff]   ;;  %v660_v43 = vshrl.u32 %v10920_v23, 16  ;;  %v663_v44 = vshll.u32 %v10920_v23, 16 }
  0xff   : > { %v656_v18 = vor.u32 %v654_v0, %v13341_v6  ;;  %v658_v26 = vrot.slane %v13341_v6, 4  ;;  %830 = vst [vmem:[#allocation2 + $0xb4] sm:$0xf] %v829_v27  ;;  %11300 = vmatpush3.bf16.msra.mxu1 %v12215_v22  ;;  %v835_v62 = vld [vmem:[#allocation2 + $0xc0] sm:$0xf] }
 0x100   : > { %11301 = vmatprep.subr.bf16.mxu1 %v12216_v33  ;;  %v668_v47 = vshrl.u32 %v10921_v38, 16  ;;  %v12227_v27 = vld [vmem:[#allocation2 + $0xc] sm:$0xfe]   ;;  %v12228_v22 = vld [vmem:[#allocation2 + $0x14] ss:$0 sps:$4 sm:$0x11]  }
 0x101   : > { %4405 = vmatmul.mubr.bf16.gmra.mrb[48].mxu0 %v12187_v21  ;;  %v12189_v49 = vld [vmem:[#allocation2 + $0x9c] sm:$0xff]   ;;  %v649_v21 = vrot.slane %v645_v63, 4  ;;  %v833_v36 = vsel %vm13096_vm7, %v658_v26, %v832_v34 }
 0x102   : > { %v12195_v54 = vld [vmem:[#allocation2 + $0x9c] sm:$0xff]   ;;  %4565 = vmatprep.mubr.bf16.mxu1 %v12189_v49  ;;  %v871_v3 = vld [vmem:[#allocation2 + $0xa8] sm:$0x2]  ;;  %v989_v4 = vld [vmem:[#allocation2 + $0xa8] sm:$0x1] }
 0x103   : > { %v12196_v55 = vld [vmem:[#allocation2 + $0xa4] ss:$0 sps:$4 sm:$0x11]   ;;  %4566 = vmatmul.mubr.bf16.gmra.mrb[48].mxu1 %v1906_v50  ;;  %v1624_v57 = vshrl.u32 %v12195_v54, 16  ;;  %v1626_v58 = vshll.u32 %v12195_v54, 16  ;;  %v12198_v8 = vld [vmem:[#allocation2 + $0x9c] sm:$0xff]   ;;  %v657_v30 = vsel %vm13084_vm4, %v649_v21, %v656_v18 }
 0x104   : > { %v1631_v61 = vshll.u32 %v12196_v55, 16  ;;  %v10168_v9 = vrot.slane %v871_v3, 9  ;;  %v12201_v10 = vld [vmem:[#allocation2 + $0xa4] ss:$0 sps:$4 sm:$0x11]   ;;  %11302 = vmatpush3.bf16.msra.mxu1 %v12219_v1  ;;  %v13369_v3 = vrot.slane %v668_v47, 7 }
 0x105   : > { %v1628_v2 = vrot.slane %v1626_v58, 1  ;;  %v1015_v16 = vld [vmem:[#allocation2 + $0xac] sm:$0x8]  ;;  %v1134_v17 = vld [vmem:[#allocation2 + $0xb0] sm:$0x1]  ;;  %v1908_v32 = vrot.slane %v12201_v10, 1  ;;  %11303 = vmatprep.subr.bf16.mxu1 %v12224_v39 }
 0x106   : > { %v1633_v7 = vrot.slane %v1631_v61, 1  ;;  %v990_v19 = vsel %vm13096_vm7, %v10168_v9, %v989_v4  ;;  %v10186_v20 = vrot.slane %v1015_v16, 11  ;;  %831 = vst [vmem:[#allocation2 + $0xb8] sm:$0xf] %v657_v30  ;;  %853 = vst [vmem:[#allocation2 + $0xd0] sm:$0xf] %v657_v30 }
 0x107   : > { %v1629_v15 = vor.u32 %v1628_v2, %v1624_v57  ;;  %991 = vst [vmem:[#allocation2 + $0xa8] sm:$0x1] %v990_v19  ;;  %v13357_v31 = vld [vmem:[#allocation2 + $0xa8] sm:$0xfe]   ;;  %834 = vst [vmem:[#allocation2 + $0xbc] sm:$0x1] %v833_v36  ;;  %v1909_v51 = vsel %vm1867_vm9, %v1907_v28, %v1908_v32 }
 0x108   : > { %v1135_v29 = vsel %vm13122_vm8, %v10186_v20, %v1134_v17  ;;  %v1910_v42 = vrot.slane %v13357_v31, 1  ;;  %v872_v50 = vld [vmem:[#allocation2 + $0xb4] sm:$0x2]  ;;  %v992_v52 = vld [vmem:[#allocation2 + $0xb4] sm:$0x1]  ;;  %v662_v2 = vrot.slane %v660_v43, 7 }
 0x109   : > { %v1634_v24 = vsel %vm1466_vm10, %v1629_v15, %v1633_v7  ;;  %1136 = vst [vmem:[#allocation2 + $0xb0] sm:$0x1] %v1135_v29  ;;  %v10169_v54 = vrot.slane %v872_v50, 9  ;;  %v12225_v4 = vld [vmem:[#allocation7 + $0x1b0] sm:$0xff]   ;;  %v12226_v9 = vld [vmem:[#allocation7 + $0x1f8] sm:$0xff]   ;;  %v13377_v19 = vld [vmem:[#allocation7 + $0x200] sm:$0xff]  }
 0x10a   : > { %4412 = vmatprep.mubr.bf16.mxu0 %v1634_v24  ;;  %v665_v13 = vor.u32 %v663_v44, %v662_v2  ;;  %v666_v14 = vrot.slane %v662_v2, 4  ;;  %11304 = vmatpush3.bf16.msra.mxu1 %v12225_v4  ;;  %v12229_v16 = vld [vmem:[#allocation7 + $0x1b8] sm:$0xff]   ;;  %v2668_v32 = vrot.slane %v12227_v27, 1  ;;  %v12233_v1 = vld [vmem:[#allocation2 + $0x18] sm:$0xff]   ;;  %v2669_v43 = vrot.slane %v12228_v22, 1 }
 0x10b   : > { %4413 = vmatmul.mubr.bf16.gmra.mrb[52].mxu0 %v12198_v8  ;;  %v993_v59 = vsel %vm13096_vm7, %v10169_v54, %v992_v52  ;;  %v671_v8 = vshll.u32 %v10921_v38, 16  ;;  %11305 = vmatprep.subr.bf16.mxu1 %v12226_v9  ;;  %v12231_v21 = vld [vmem:[#allocation2 + $0xc] sm:$0xff]   ;;  %v3070_v47 = vshrl.u32 %v12233_v1, 16  ;;  %v12232_v50 = vld [vmem:[#allocation2 + $0x14] ss:$0 sps:$4 sm:$0x11]  }
 0x10c   : > { %994 = vst [vmem:[#allocation2 + $0xb4] sm:$0x1] %v993_v59  ;;  %v836_v20 = vsel %vm13089_vm6, %v665_v13, %v835_v62  ;;  %11899 = vmatprep.subr.bf16.mxu0 %v13377_v19  ;;  %v2269_v33 = vshrl.u32 %v12231_v21, 16  ;;  %v2271_v34 = vshll.u32 %v12231_v21, 16  ;;  %v3072_v52 = vshll.u32 %v12233_v1, 16  ;;  %v12238_v2 = vld [vmem:[#allocation2 + $0x18] sm:$0xff]  }
 0x10d   : > { %v1016_v57 = vld [vmem:[#allocation2 + $0xb8] sm:$0x8]  ;;  %v673_v18 = vor.u32 %v671_v8, %v13369_v3  ;;  %837 = vst [vmem:[#allocation2 + $0xc0] sm:$0xf] %v836_v20  ;;  %v2670_v54 = vsel %vm1867_vm9, %v2668_v32, %v2669_v43  ;;  %v2283_v13 = vshll.u32 %v12238_v2, 16 }
 0x10e   : > { %v12199_v40 = vld [vmem:[#allocation2 + $0xa8] sm:$0xff]   ;;  %v10187_v60 = vrot.slane %v1016_v57, 11  ;;  %v1137_v61 = vld [vmem:[#allocation2 + $0xbc] sm:$0x1]  ;;  %v13374_v15 = vld [vmem:[#allocation2 + $0xb4] sm:$0xfe]   ;;  %11306 = vmatpush3.bf16.msra.mxu1 %v12229_v16 }
 0x10f   : > { %v12205_v37 = vld [vmem:[#allocation2 + $0xa8] sm:$0xff]   ;;  %4573 = vmatprep.mubr.bf16.mxu1 %v12199_v40  ;;  %v674_v24 = vsel %vm13084_vm4, %v666_v14, %v673_v18  ;;  %v1913_v30 = vrot.slane %v13374_v15, 1  ;;  %v12234_v57 = vld [vmem:[#allocation2 + $0x20] ss:$0 sps:$4 sm:$0x11]   ;;  %v2285_v20 = vrot.slane %v2283_v13, 1 }
 0x110   : > { %v12206_v45 = vld [vmem:[#allocation2 + $0xb0] ss:$0 sps:$4 sm:$0x11]   ;;  %4574 = vmatmul.mubr.bf16.gmra.mrb[52].mxu1 %v1909_v51  ;;  %v1636_v48 = vshrl.u32 %v12205_v37, 16  ;;  %v1638_v49 = vshll.u32 %v12205_v37, 16  ;;  %v12209_v0 = vld [vmem:[#allocation2 + $0xa8] sm:$0xff]   ;;  %v1138_v7 = vsel %vm13122_vm8, %v10187_v60, %v1137_v61 }
 0x111   : > { %v1643_v53 = vshll.u32 %v12206_v45, 16  ;;  %v12213_v56 = vld [vmem:[#allocation2 + $0xb0] ss:$0 sps:$4 sm:$0x11]   ;;  %1139 = vst [vmem:[#allocation2 + $0xbc] sm:$0x1] %v1138_v7 }
 0x112   : > { %v1640_v55 = vrot.slane %v1638_v49, 1  ;;  %v1911_v17 = vrot.slane %v12213_v56, 1  ;;  %838 = vst [vmem:[#allocation2 + $0xc4] sm:$0xf] %v674_v24  ;;  %v2273_v45 = vrot.slane %v2271_v34, 1  ;;  %v2276_v56 = vshll.u32 %v12232_v50, 16 }
 0x113   : > { %v1645_v58 = vrot.slane %v1643_v53, 1  ;;  %v12211_v28 = vld [vmem:[#allocation2 + $0xb4] sm:$0xff]   ;;  %v3077_v61 = vshll.u32 %v12234_v57, 16  ;;  %v12240_v7 = vld [vmem:[#allocation2 + $0x24] sm:$0xff]  }
 0x114   : > { %v1641_v63 = vor.u32 %v1640_v55, %v1636_v48  ;;  %v1912_v29 = vsel %vm1867_vm9, %v1910_v42, %v1911_v17  ;;  %v12217_v31 = vld [vmem:[#allocation2 + $0xb4] sm:$0xff]   ;;  %4581 = vmatprep.mubr.bf16.mxu1 %v12211_v28  ;;  %v873_v51 = vld [vmem:[#allocation2 + $0xc0] sm:$0x2]  ;;  %v995_v37 = vld [vmem:[#allocation2 + $0xc0] sm:$0x1]  ;;  %v2274_v59 = vor.u32 %v2273_v45, %v2269_v33  ;;  %v2278_v60 = vrot.slane %v2276_v56, 1 }
 0x115   : > { %v1648_v12 = vshrl.u32 %v12217_v31, 16  ;;  %v1650_v5 = vshll.u32 %v12217_v31, 16  ;;  %v12220_v40 = vld [vmem:[#allocation2 + $0xb4] sm:$0xff]   ;;  %v10170_v44 = vrot.slane %v873_v51, 9  ;;  %v3079_v4 = vrot.slane %v3077_v61, 1 }
 0x116   : > { %v1646_v10 = vsel %vm1466_vm10, %v1641_v63, %v1645_v58  ;;  %v3074_v58 = vrot.slane %v3072_v52, 1  ;;  %v12236_v63 = vld [vmem:[#allocation2 + $0x18] sm:$0xfe]   ;;  %v2279_v16 = vsel %vm1466_vm10, %v2274_v59, %v2278_v60  ;;  %v12239_v17 = vld [vmem:[#allocation2 + $0x20] ss:$0 sps:$4 sm:$0x11]  }
 0x117   : > { %4420 = vmatprep.mubr.bf16.mxu0 %v1646_v10  ;;  %v1652_v39 = vrot.slane %v1650_v5, 1  ;;  %v996_v49 = vsel %vm13096_vm7, %v10170_v44, %v995_v37  ;;  %v2671_v8 = vrot.slane %v12236_v63, 1  ;;  %v2281_v10 = vshrl.u32 %v12238_v2, 16  ;;  %v12241_v27 = vld [vmem:[#allocation2 + $0x2c] ss:$0 sps:$4 sm:$0x11]  }
 0x118   : > { %4421 = vmatmul.mubr.bf16.gmra.mrb[56].mxu0 %v12209_v0  ;;  %v12218_v36 = vld [vmem:[#allocation2 + $0xbc] ss:$0 sps:$4 sm:$0x11]   ;;  %4582 = vmatmul.mubr.bf16.gmra.mrb[56].mxu1 %v1912_v29  ;;  %997 = vst [vmem:[#allocation2 + $0xc0] sm:$0x1] %v996_v49  ;;  %v3075_v62 = vor.u32 %v3074_v58, %v3070_v47  ;;  %v2288_v24 = vshll.u32 %v12239_v17, 16 }
 0x119   : > { %v1655_v23 = vshll.u32 %v12218_v36, 16  ;;  %v12223_v38 = vld [vmem:[#allocation2 + $0xbc] ss:$0 sps:$4 sm:$0x11]   ;;  %v1653_v48 = vor.u32 %v1652_v39, %v1648_v12  ;;  %v3082_v22 = vshrl.u32 %v12240_v7, 16  ;;  %v3084_v28 = vshll.u32 %v12240_v7, 16 }
 0x11a   : > { %v1914_v55 = vrot.slane %v12223_v38, 1  ;;  %v12237_v0 = vld [vmem:[#allocation2 + $0x20] ss:$0 sps:$4 sm:$0x11]   ;;  %v3080_v18 = vsel %vm1466_vm10, %v3075_v62, %v3079_v4  ;;  %v2286_v29 = vor.u32 %v2285_v20, %v2281_v10  ;;  %v3089_v31 = vshll.u32 %v12241_v27, 16  ;;  %v12235_v32 = vld [vmem:[#allocation2 + $0x18] sm:$0xff]  }
 0x11b   : > { %v1657_v42 = vrot.slane %v1655_v23, 1  ;;  %v2672_v9 = vrot.slane %v12237_v0, 1  ;;  %v3086_v33 = vrot.slane %v3084_v28, 1  ;;  %v12243_v34 = vld [vmem:[#allocation2 + $0x24] sm:$0xfe]   ;;  %v12253_v52 = vld [vmem:[#allocation2 + $0x30] sm:$0xff]  }
 0x11c   : > { %v1915_v15 = vsel %vm1867_vm9, %v1913_v30, %v1914_v55  ;;  %v2290_v30 = vrot.slane %v2288_v24, 1  ;;  %v12245_v36 = vld [vmem:[#allocation7 + $0x208] sm:$0xff]   ;;  %v3091_v1 = vrot.slane %v3089_v31, 1  ;;  %v12244_v12 = vld [vmem:[#allocation2 + $0x2c] ss:$0 sps:$4 sm:$0x11]  }
 0x11d   : > { %v1658_v53 = vsel %vm1466_vm10, %v1653_v48, %v1657_v42  ;;  %v2673_v21 = vsel %vm1867_vm9, %v2671_v8, %v2672_v9  ;;  %v3087_v5 = vor.u32 %v3086_v33, %v3082_v22  ;;  %v2674_v23 = vrot.slane %v12243_v34, 1  ;;  %v12246_v38 = vld [vmem:[#allocation2 + $0x24] sm:$0xff]   ;;  %v12247_v37 = vld [vmem:[#allocation2 + $0x2c] ss:$0 sps:$4 sm:$0x11]   ;;  %v12255_v10 = vld [vmem:[#allocation2 + $0x3c] sm:$0xff]  }
 0x11e   : > { %4428 = vmatprep.mubr.bf16.mxu0 %v1658_v53  ;;  %v2291_v39 = vsel %vm1466_vm10, %v2286_v29, %v2290_v30  ;;  %v2293_v43 = vshrl.u32 %v12246_v38, 16  ;;  %v2295_v42 = vshll.u32 %v12246_v38, 16  ;;  %v2300_v47 = vshll.u32 %v12247_v37, 16  ;;  %v12249_v48 = vld [vmem:[#allocation2 + $0x38] ss:$0 sps:$4 sm:$0x11]  }
 0x11f   : > { %v12221_v14 = vld [vmem:[#allocation2 + $0xc0] sm:$0xff]   ;;  %v3092_v51 = vsel %vm1466_vm10, %v3087_v5, %v3091_v1  ;;  %v3101_v56 = vshll.u32 %v12249_v48, 16  ;;  %v12251_v58 = vld [vmem:[#allocation2 + $0x30] sm:$0xfe]   ;;  %v2305_v59 = vshrl.u32 %v12253_v52, 16  ;;  %v2307_v2 = vshll.u32 %v12253_v52, 16 }
 0x120   : > { %4429 = vmatmul.mubr.bf16.gmra.mrb[60].mxu0 %v12220_v40  ;;  %4589 = vmatprep.mubr.bf16.mxu1 %v12221_v14  ;;  %v2675_v40 = vrot.slane %v12244_v12, 1  ;;  %v2297_v45 = vrot.slane %v2295_v42, 1  ;;  %v12242_v53 = vld [vmem:[#allocation2 + $0x24] sm:$0xff]   ;;  %v2302_v55 = vrot.slane %v2300_v47, 1  ;;  %v2677_v0 = vrot.slane %v12251_v58, 1  ;;  %v12261_v29 = vld [vmem:[#allocation2 + $0x3c] sm:$0xff]  }
 0x121   : > { %4630 = vmatprep.mubr.bf16.mxu0 %v2670_v54  ;;  %4590 = vmatmul.mubr.bf16.gmra.mrb[60].mxu1 %v1915_v15  ;;  %v3103_v60 = vrot.slane %v3101_v56, 1  ;;  %v12252_v61 = vld [vmem:[#allocation2 + $0x38] ss:$0 sps:$4 sm:$0x11]   ;;  %v2309_v9 = vrot.slane %v2307_v2, 1  ;;  %v3106_v17 = vshrl.u32 %v12255_v10, 16 }
 0x122   : > { %4791 = vmatprep.mubr.bf16.mxu1 %v3080_v18  ;;  %v2676_v44 = vsel %vm1867_vm9, %v2674_v23, %v2675_v40  ;;  %v2298_v54 = vor.u32 %v2297_v45, %v2293_v43  ;;  %v2678_v4 = vrot.slane %v12252_v61, 1  ;;  %v12254_v7 = vld [vmem:[#allocation2 + $0x38] ss:$0 sps:$4 sm:$0x11]   ;;  %v3108_v18 = vshll.u32 %v12255_v10, 16  ;;  %v12260_v20 = vld [vmem:[#allocation7 + $0x210] sm:$0xff]  }
 0x123   : > { %v2312_v14 = vshll.u32 %v12254_v7, 16  ;;  %v12256_v15 = vld [vmem:[#allocation2 + $0x44] ss:$0 sps:$4 sm:$0x11]   ;;  %v12258_v28 = vld [vmem:[#allocation2 + $0x3c] sm:$0xfe]  }
 0x124   : > { %v2303_v62 = vsel %vm1466_vm10, %v2298_v54, %v2302_v55  ;;  %v2679_v13 = vsel %vm1867_vm9, %v2677_v0, %v2678_v4  ;;  %v3113_v27 = vshll.u32 %v12256_v15, 16  ;;  %v3110_v22 = vrot.slane %v3108_v18, 1  ;;  %v12259_v31 = vld [vmem:[#allocation2 + $0x44] ss:$0 sps:$4 sm:$0x11]   ;;  %v12263_v38 = vld [vmem:[#allocation2 + $0x48] sm:$0xff]  }
 0x125   : > { %v2314_v24 = vrot.slane %v2312_v14, 1  ;;  %v2680_v34 = vrot.slane %v12258_v28, 1  ;;  %v2681_v1 = vrot.slane %v12259_v31, 1  ;;  %v2319_v12 = vshll.u32 %v12261_v29, 16  ;;  %v12257_v42 = vld [vmem:[#allocation2 + $0x3c] sm:$0xff]  }
 0x126   : > { %v3115_v30 = vrot.slane %v3113_v27, 1  ;;  %v3111_v33 = vor.u32 %v3110_v22, %v3106_v17  ;;  %v12262_v23 = vld [vmem:[#allocation2 + $0x44] ss:$0 sps:$4 sm:$0x11]   ;;  %v3118_v37 = vshrl.u32 %v12263_v38, 16  ;;  %v3120_v43 = vshll.u32 %v12263_v38, 16 }
 0x127   : > { %v2321_v40 = vrot.slane %v2319_v12, 1  ;;  %v12267_v55 = vld [vmem:[#allocation2 + $0x50] ss:$0 sps:$4 sm:$0x11]   ;;  %v12273_v17 = vld [vmem:[#allocation2 + $0x54] sm:$0xfe]  }
 0x128   : > { %4631 = vmatmul.mubr.bf16.vlgmr.msra.gmra.mrb[64].mxu0 %v2279_v16  ;;  %v2310_v16 = vor.u32 %v2309_v9, %v2305_v59  ;;  %v3116_v5 = vsel %vm1466_vm10, %v3111_v33, %v3115_v30  ;;  %v3122_v47 = vrot.slane %v3120_v43, 1  ;;  %v2684_v59 = vrot.slane %v12267_v55, 1  ;;  %v12271_v4 = vld [vmem:[#allocation2 + $0x5c] ss:$0 sps:$4 sm:$0x11]   ;;  %v12265_v9 = vld [vmem:[#allocation2 + $0x48] sm:$0xff]  }
 0x129   : > { %11900 = vmatpush3.bf16.msra.mxu0 %v13377_v19  ;;  %4638 = vmatprep.mubr.bf16.mxu0 %v2673_v21  ;;  %v12248_v19 = vld [vmem:[#allocation2 + $0x30] sm:$0xff]   ;;  %v2686_v27 = vrot.slane %v12273_v17, 1  ;;  %v12277_v30 = vld [vmem:[#allocation2 + $0x5c] ss:$0 sps:$4 sm:$0x11]  }
 0x12a   : > { %11901 = vmatprep.subr.bf16.mxu0 %v12245_v36  ;;  %4792 = vmatmul.mubr.bf16.vlgmr.msra.gmra.mrb[64].mxu1 %v12235_v32  ;;  %v3094_v49 = vshrl.u32 %v12248_v19, 16  ;;  %v3096_v50 = vshll.u32 %v12248_v19, 16  ;;  %v12250_v21 = vld [vmem:[#allocation2 + $0x30] sm:$0xff]   ;;  %v2315_v32 = vsel %vm1466_vm10, %v2310_v16, %v2314_v24  ;;  %v2324_v19 = vshll.u32 %v12262_v23, 16  ;;  %v12281_v43 = vld [vmem:[#allocation2 + $0x60] sm:$0xfe]  }
 0x12b   : > { %4799 = vmatprep.mubr.bf16.mxu1 %v3092_v51  ;;  %v12264_v51 = vld [vmem:[#allocation2 + $0x50] ss:$0 sps:$4 sm:$0x11]   ;;  %v3137_v16 = vshll.u32 %v12271_v4, 16  ;;  %v12276_v22 = vld [vmem:[#allocation2 + $0x54] sm:$0xff]  }
 0x12c   : > { %v3098_v57 = vrot.slane %v3096_v50, 1  ;;  %v2326_v45 = vrot.slane %v2324_v19, 1  ;;  %v3125_v48 = vshll.u32 %v12264_v51, 16  ;;  %v12266_v50 = vld [vmem:[#allocation2 + $0x48] sm:$0xfe]   ;;  %v2341_v31 = vshrl.u32 %v12276_v22, 16 }
 0x12d   : > { %11902 = vmatpush3.bf16.msra.mxu0 %v12245_v36  ;;  %v2317_v36 = vshrl.u32 %v12261_v29, 16  ;;  %v2683_v56 = vrot.slane %v12266_v50, 1  ;;  %v12274_v24 = vld [vmem:[#allocation2 + $0x5c] ss:$0 sps:$4 sm:$0x11]   ;;  %v12283_v51 = vld [vmem:[#allocation2 + $0x60] sm:$0xff]  }
 0x12e   : > { %v3099_v63 = vor.u32 %v3098_v57, %v3094_v49  ;;  %11903 = vmatprep.subr.bf16.mxu0 %v12260_v20  ;;  %v12268_v49 = vld [vmem:[#allocation2 + $0x48] sm:$0xff]   ;;  %v3127_v54 = vrot.slane %v3125_v48, 1  ;;  %v12269_v57 = vld [vmem:[#allocation2 + $0x50] ss:$0 sps:$4 sm:$0x11]   ;;  %v2687_v29 = vrot.slane %v12274_v24, 1 }
 0x12f   : > { %v2331_v61 = vshll.u32 %v12268_v49, 16  ;;  %v2685_v0 = vsel %vm1867_vm9, %v2683_v56, %v2684_v59  ;;  %v12279_v12 = vld [vmem:[#allocation2 + $0x68] ss:$0 sps:$4 sm:$0x11]   ;;  %v12280_v59 = vld [vmem:[#allocation2 + $0x60] sm:$0xff]  }
 0x130   : > { %4639 = vmatmul.mubr.bf16.gmra.mrb[68].mxu0 %v2291_v39  ;;  %v3104_v8 = vsel %vm1466_vm10, %v3099_v63, %v3103_v60  ;;  %v2682_v39 = vsel %vm1867_vm9, %v2680_v34, %v2681_v1  ;;  %v2329_v60 = vshrl.u32 %v12268_v49, 16  ;;  %v2336_v63 = vshll.u32 %v12269_v57, 16 }
 0x131   : > { %4646 = vmatprep.mubr.bf16.mxu0 %v2676_v44  ;;  %11904 = vmatpush3.bf16.msra.mxu0 %v12260_v20  ;;  %v2322_v44 = vor.u32 %v2321_v40, %v2317_v36  ;;  %v2333_v2 = vrot.slane %v2331_v61, 1  ;;  %v2688_v33 = vsel %vm1867_vm9, %v2686_v27, %v2687_v29  ;;  %v2348_v34 = vshll.u32 %v12277_v30, 16  ;;  %v12278_v36 = vld [vmem:[#allocation2 + $0x60] sm:$0xff]   ;;  %v12286_v61 = vld [vmem:[#allocation2 + $0x74] ss:$0 sps:$4 sm:$0x11]  }
 0x132   : > { %4800 = vmatmul.mubr.bf16.gmra.mrb[68].mxu1 %v12242_v53  ;;  %v3123_v53 = vor.u32 %v3122_v47, %v3118_v37  ;;  %v2338_v10 = vrot.slane %v2336_v63, 1  ;;  %v3142_v38 = vshrl.u32 %v12278_v36, 16  ;;  %v3149_v19 = vshll.u32 %v12279_v12, 16  ;;  %v12290_v63 = vld [vmem:[#allocation7 + $0x220] sm:$0xff]   ;;  %v12287_v30 = vld [vmem:[#allocation2 + $0x6c] sm:$0xff]  }
 0x133   : > { %4807 = vmatprep.mubr.bf16.mxu1 %v3104_v8  ;;  %v2327_v52 = vsel %vm1466_vm10, %v2322_v44, %v2326_v45  ;;  %v2334_v14 = vor.u32 %v2333_v2, %v2329_v60  ;;  %v2350_v23 = vrot.slane %v2348_v34, 1  ;;  %v2353_v47 = vshrl.u32 %v12283_v51, 16  ;;  %v12293_v27 = vld [vmem:[#allocation2 + $0x78] sm:$0xff]   ;;  %v12294_v29 = vld [vmem:[#allocation2 + $0x80] ss:$0 sps:$4 sm:$0x11]  }
 0x134   : > { %v3128_v58 = vsel %vm1466_vm10, %v3123_v53, %v3127_v54  ;;  %v3151_v45 = vrot.slane %v3149_v19, 1  ;;  %v2689_v49 = vrot.slane %v12281_v43, 1  ;;  %v12285_v53 = vld [vmem:[#allocation2 + $0x6c] sm:$0xff]   ;;  %v12284_v54 = vld [vmem:[#allocation2 + $0x68] ss:$0 sps:$4 sm:$0x11]  }
 0x135   : > { %v2339_v18 = vsel %vm1466_vm10, %v2334_v14, %v2338_v10  ;;  %v2360_v60 = vshll.u32 %v12284_v54, 16  ;;  %v12299_v43 = vld [vmem:[#allocation2 + $0x80] ss:$0 sps:$4 sm:$0x11]  }
 0x137   : > { %v2362_v2 = vrot.slane %v2360_v60, 1  ;;  %v12305_v60 = vld [vmem:[#allocation7 + $0x228] sm:$0xff]  }
 0x138   : > { %4647 = vmatmul.mubr.bf16.gmra.mrb[72].mxu0 %v2303_v62  ;;  %v12270_v62 = vld [vmem:[#allocation2 + $0x54] sm:$0xff]  }
 0x139   : > { %4654 = vmatprep.mubr.bf16.mxu0 %v2679_v13  ;;  %v3130_v7 = vshrl.u32 %v12270_v62, 16  ;;  %v3132_v8 = vshll.u32 %v12270_v62, 16  ;;  %v12275_v13 = vld [vmem:[#allocation7 + $0x218] sm:$0xff]   ;;  %v3156_v62 = vshll.u32 %v12285_v53, 16 }
 0x13a   : > { %4808 = vmatmul.mubr.bf16.gmra.mrb[72].mxu1 %v12250_v21  ;;  %11905 = vmatprep.subr.bf16.mxu0 %v12275_v13  ;;  %v3139_v21 = vrot.slane %v3137_v16, 1 }
 0x13b   : > { %4815 = vmatprep.mubr.bf16.mxu1 %v3116_v5  ;;  %v3134_v15 = vrot.slane %v3132_v8, 1  ;;  %11906 = vmatpush3.bf16.msra.mxu0 %v12275_v13  ;;  %v12272_v5 = vld [vmem:[#allocation2 + $0x54] sm:$0xff]   ;;  %v3158_v4 = vrot.slane %v3156_v62, 1  ;;  %v12291_v8 = vld [vmem:[#allocation2 + $0x6c] sm:$0xff]   ;;  %v12303_v62 = vld [vmem:[#allocation2 + $0x84] sm:$0xfe]  }
 0x13c   : > { %11907 = vmatprep.subr.bf16.mxu0 %v12290_v63  ;;  %v2365_v17 = vshrl.u32 %v12291_v8, 16  ;;  %v2367_v24 = vshll.u32 %v12291_v8, 16 }
 0x13d   : > { %v3135_v20 = vor.u32 %v3134_v15, %v3130_v7  ;;  %v3161_v7 = vshll.u32 %v12286_v61, 16  ;;  %v12289_v15 = vld [vmem:[#allocation2 + $0x74] ss:$0 sps:$4 sm:$0x11]  }
 0x13f   : > { %v3140_v28 = vsel %vm1466_vm10, %v3135_v20, %v3139_v21  ;;  %11908 = vmatpush3.bf16.msra.mxu0 %v12290_v63  ;;  %v3163_v14 = vrot.slane %v3161_v7, 1  ;;  %v2693_v20 = vrot.slane %v12289_v15, 1  ;;  %v12292_v21 = vld [vmem:[#allocation2 + $0x74] ss:$0 sps:$4 sm:$0x11]  }
 0x140   : > { %4655 = vmatmul.mubr.bf16.gmra.mrb[76].mxu0 %v2315_v32  ;;  %v2343_v32 = vshll.u32 %v12276_v22, 16  ;;  %v12304_v63 = vld [vmem:[#allocation2 + $0x8c] ss:$0 sps:$4 sm:$0x11]   ;;  %11909 = vmatprep.subr.bf16.mxu0 %v12305_v60  ;;  %v12308_v15 = vld [vmem:[#allocation2 + $0x90] sm:$0xff]  }
 0x141   : > { %4662 = vmatprep.mubr.bf16.mxu0 %v2682_v39  ;;  %v3144_v39 = vshll.u32 %v12278_v36, 16  ;;  %v3173_v36 = vshll.u32 %v12294_v29, 16  ;;  %v2699_v7 = vrot.slane %v12304_v63, 1  ;;  %v12316_v63 = vld [vmem:[#allocation2 + $0xa4] ss:$0 sps:$4 sm:$0x11]  }
 0x142   : > { %4816 = vmatmul.mubr.bf16.gmra.mrb[76].mxu1 %v12257_v42  ;;  %v2345_v1 = vrot.slane %v2343_v32, 1  ;;  %v12282_v42 = vld [vmem:[#allocation2 + $0x68] ss:$0 sps:$4 sm:$0x11]   ;;  %v3166_v32 = vshrl.u32 %v12293_v27, 16 }
 0x143   : > { %4823 = vmatprep.mubr.bf16.mxu1 %v3128_v58  ;;  %v3146_v37 = vrot.slane %v3144_v39, 1  ;;  %v2690_v50 = vrot.slane %v12282_v42, 1  ;;  %v3154_v58 = vshrl.u32 %v12285_v53, 16  ;;  %v12297_v39 = vld [vmem:[#allocation2 + $0x80] ss:$0 sps:$4 sm:$0x11]   ;;  %11910 = vmatpush3.bf16.msra.mxu0 %v12305_v60 }
 0x144   : > { %v2346_v40 = vor.u32 %v2345_v1, %v2341_v31  ;;  %v2369_v31 = vrot.slane %v2367_v24, 1  ;;  %v3190_v24 = vshrl.u32 %v12308_v15, 16 }
 0x145   : > { %v3147_v48 = vor.u32 %v3146_v37, %v3142_v38  ;;  %v2691_v56 = vsel %vm1867_vm9, %v2689_v49, %v2690_v50  ;;  %v3159_v13 = vor.u32 %v3158_v4, %v3154_v58  ;;  %v12296_v38 = vld [vmem:[#allocation2 + $0x78] sm:$0xfe]   ;;  %v2696_v37 = vrot.slane %v12297_v39, 1  ;;  %v12301_v50 = vld [vmem:[#allocation2 + $0x8c] ss:$0 sps:$4 sm:$0x11]  }
 0x146   : > { %v2351_v44 = vsel %vm1466_vm10, %v2346_v40, %v2350_v23  ;;  %v2370_v1 = vor.u32 %v2369_v31, %v2365_v17  ;;  %v3175_v23 = vrot.slane %v3173_v36, 1  ;;  %v2384_v49 = vshll.u32 %v12299_v43, 16 }
 0x147   : > { %v3152_v55 = vsel %vm1466_vm10, %v3147_v48, %v3151_v45  ;;  %v2698_v4 = vrot.slane %v12303_v62, 1 }
 0x148   : > { %4663 = vmatmul.mubr.bf16.gmra.mrb[80].mxu0 %v2327_v52  ;;  %v2355_v52 = vshll.u32 %v12283_v51, 16  ;;  %v2695_v51 = vrot.slane %v12296_v38, 1  ;;  %v12315_v38 = vld [vmem:[#allocation2 + $0x9c] sm:$0xff]  }
 0x149   : > { %4670 = vmatprep.mubr.bf16.mxu0 %v2685_v0 }
 0x14a   : > { %4824 = vmatmul.mubr.bf16.gmra.mrb[80].mxu1 %v12265_v9  ;;  %v2357_v57 = vrot.slane %v2355_v52, 1  ;;  %v12288_v9 = vld [vmem:[#allocation2 + $0x6c] sm:$0xfe]   ;;  %v2697_v48 = vsel %vm1867_vm9, %v2695_v51, %v2696_v37  ;;  %v12295_v52 = vld [vmem:[#allocation2 + $0x78] sm:$0xff]  }
 0x14b   : > { %4831 = vmatprep.mubr.bf16.mxu1 %v3140_v28  ;;  %v2692_v16 = vrot.slane %v12288_v9, 1  ;;  %v2372_v28 = vshll.u32 %v12292_v21, 16  ;;  %v12306_v9 = vld [vmem:[#allocation2 + $0x84] sm:$0xff]   ;;  %v12309_v21 = vld [vmem:[#allocation2 + $0x98] ss:$0 sps:$4 sm:$0x11]  }
 0x14c   : > { %v2358_v0 = vor.u32 %v2357_v57, %v2353_v47  ;;  %v12300_v47 = vld [vmem:[#allocation2 + $0x84] sm:$0xff]   ;;  %v3185_v57 = vshll.u32 %v12301_v50, 16  ;;  %v2389_v17 = vshrl.u32 %v12306_v9, 16  ;;  %v3197_v29 = vshll.u32 %v12309_v21, 16  ;;  %v12311_v37 = vld [vmem:[#allocation2 + $0x90] sm:$0xfe]  }
 0x14d   : > { %v2694_v22 = vsel %vm1867_vm9, %v2692_v16, %v2693_v20  ;;  %v2374_v34 = vrot.slane %v2372_v28, 1  ;;  %v3178_v54 = vshrl.u32 %v12300_v47, 16  ;;  %v2701_v50 = vrot.slane %v12311_v37, 1 }
 0x14e   : > { %v2363_v10 = vsel %vm1466_vm10, %v2358_v0, %v2362_v2  ;;  %v3187_v61 = vrot.slane %v3185_v57, 1 }
 0x14f   : > { %v2375_v40 = vsel %vm1466_vm10, %v2370_v1, %v2374_v34  ;;  %v12313_v34 = vld [vmem:[#allocation2 + $0x90] sm:$0xff]   ;;  %v3199_v1 = vrot.slane %v3197_v29, 1  ;;  %v12321_v29 = vld [vmem:[#allocation2 + $0x9c] sm:$0xff]  }
 0x150   : > { %4671 = vmatmul.mubr.bf16.gmra.mrb[84].mxu0 %v2339_v18  ;;  %v3164_v18 = vsel %vm1466_vm10, %v3159_v13, %v3163_v14  ;;  %v12302_v13 = vld [vmem:[#allocation2 + $0x84] sm:$0xff]   ;;  %v2700_v14 = vsel %vm1867_vm9, %v2698_v4, %v2699_v7  ;;  %v2403_v57 = vshll.u32 %v12313_v34, 16  ;;  %v2415_v37 = vshll.u32 %v12321_v29, 16 }
 0x151   : > { %4678 = vmatprep.mubr.bf16.mxu0 %v2688_v33  ;;  %v3168_v33 = vshll.u32 %v12293_v27, 16  ;;  %v3192_v27 = vshll.u32 %v12308_v15, 16  ;;  %v12320_v15 = vld [vmem:[#allocation7 + $0x230] sm:$0xff]  }
 0x152   : > { %4832 = vmatmul.mubr.bf16.gmra.mrb[84].mxu1 %v12272_v5  ;;  %v12298_v5 = vld [vmem:[#allocation2 + $0x78] sm:$0xff]   ;;  %11911 = vmatprep.subr.bf16.mxu0 %v12320_v15 }
 0x153   : > { %4839 = vmatprep.mubr.bf16.mxu1 %v3152_v55  ;;  %v3170_v12 = vrot.slane %v3168_v33, 1  ;;  %v2377_v42 = vshrl.u32 %v12298_v5, 16  ;;  %v2379_v45 = vshll.u32 %v12298_v5, 16  ;;  %v3180_v55 = vshll.u32 %v12300_v47, 16  ;;  %11912 = vmatpush3.bf16.msra.mxu0 %v12320_v15 }
 0x154   : > { %v3194_v31 = vrot.slane %v3192_v27, 1 }
 0x155   : > { %v3171_v19 = vor.u32 %v3170_v12, %v3166_v32  ;;  %v2381_v53 = vrot.slane %v2379_v45, 1  ;;  %v12312_v45 = vld [vmem:[#allocation2 + $0x98] ss:$0 sps:$4 sm:$0x11]  }
 0x156   : > { %v3195_v39 = vor.u32 %v3194_v31, %v3190_v24  ;;  %v12317_v31 = vld [vmem:[#allocation2 + $0x9c] sm:$0xff]  }
 0x157   : > { %v2382_v58 = vor.u32 %v2381_v53, %v2377_v42  ;;  %v2401_v53 = vshrl.u32 %v12313_v34, 16  ;;  %v12318_v34 = vld [vmem:[#allocation2 + $0x9c] sm:$0xfe]  }
 0x158   : > { %4679 = vmatmul.mubr.bf16.gmra.mrb[88].mxu0 %v2351_v44  ;;  %v3176_v44 = vsel %vm1466_vm10, %v3171_v19, %v3175_v23 }
 0x159   : > { %4686 = vmatprep.mubr.bf16.mxu0 %v2691_v56  ;;  %v2386_v56 = vrot.slane %v2384_v49, 1  ;;  %v12310_v49 = vld [vmem:[#allocation2 + $0x90] sm:$0xff]  }
 0x15a   : > { %4840 = vmatmul.mubr.bf16.gmra.mrb[88].mxu1 %v12280_v59  ;;  %v3182_v59 = vrot.slane %v3180_v55, 1  ;;  %v2702_v55 = vrot.slane %v12312_v45, 1  ;;  %v675_v45 = vrot.slane %v13369_v3, 4 }
 0x15b   : > { %4847 = vmatprep.mubr.bf16.mxu1 %v3164_v18  ;;  %v2387_v0 = vsel %vm1466_vm10, %v2382_v58, %v2386_v56  ;;  %v2391_v18 = vshll.u32 %v12306_v9, 16  ;;  %v12314_v56 = vld [vmem:[#allocation2 + $0x98] ss:$0 sps:$4 sm:$0x11]   ;;  %v3202_v58 = vshrl.u32 %v12315_v38, 16 }
 0x15c   : > { %v3183_v2 = vor.u32 %v3182_v59, %v3178_v54  ;;  %v2703_v60 = vsel %vm1867_vm9, %v2701_v50, %v2702_v55  ;;  %v2408_v62 = vshll.u32 %v12314_v56, 16 }
 0x15e   : > { %v3188_v8 = vsel %vm1466_vm10, %v3183_v2, %v3187_v61  ;;  %v2405_v61 = vrot.slane %v2403_v57, 1 }
 0x160   : > { %4687 = vmatmul.mubr.bf16.gmra.mrb[92].mxu0 %v2363_v10  ;;  %v12307_v10 = vld [vmem:[#allocation2 + $0x8c] ss:$0 sps:$4 sm:$0x11]   ;;  %v2406_v7 = vor.u32 %v2405_v61, %v2401_v53 }
 0x161   : > { %4694 = vmatprep.mubr.bf16.mxu0 %v2694_v22  ;;  %v2396_v20 = vshll.u32 %v12307_v10, 16  ;;  %v2393_v22 = vrot.slane %v2391_v18, 1  ;;  %v3209_v10 = vshll.u32 %v12316_v63, 16  ;;  %v12328_v63 = vld [vmem:[#allocation2 + $0xa8] sm:$0xff]  }
 0x162   : > { %4848 = vmatmul.mubr.bf16.gmra.mrb[92].mxu1 %v12287_v30  ;;  %v13425_v30 = vld [vmem:[%s14523_s2] ss:$0 sm:$0xff] }
 0x163   : > { %4855 = vmatprep.mubr.bf16.mxu1 %v3176_v44  ;;  %v2398_v28 = vrot.slane %v2396_v20, 1  ;;  %v2394_v36 = vor.u32 %v2393_v22, %v2389_v17  ;;  %v3211_v24 = vrot.slane %v3209_v10, 1 }
 0x165   : > { %v2399_v43 = vsel %vm1466_vm10, %v2394_v36, %v2398_v28  ;;  %v12319_v36 = vld [vmem:[#allocation2 + $0xa4] ss:$0 sps:$4 sm:$0x11]  }
 0x168   : > { %4695 = vmatmul.mubr.bf16.gmra.mrb[96].mxu0 %v2375_v40 }
 0x169   : > { %4702 = vmatprep.mubr.bf16.mxu0 %v2697_v48  ;;  %v3200_v48 = vsel %vm1466_vm10, %v3195_v39, %v3199_v1  ;;  %v2705_v39 = vrot.slane %v12319_v36, 1 }
 0x16a   : > { %4856 = vmatmul.mubr.bf16.gmra.mrb[96].mxu1 %v12295_v52 }
 0x16b   : > { %4863 = vmatprep.mubr.bf16.mxu1 %v3188_v8  ;;  %v11083_v33 = vpop.f32.mrb[0].mxu1  ;;  %v2410_v8 = vrot.slane %v2408_v62, 1 }
 0x16c   : > { %v11084_v23 = vpop.f32.mrb[1].mxu1 }
 0x16d   : > { %v11085_v19 = vadd.f32 %v11084_v23, %v11083_v33  ;;  %v11086_v51 = vpop.f32.mrb[2].mxu1  ;;  %v2411_v20 = vsel %vm1466_vm10, %v2406_v7, %v2410_v8 }
 0x16e   : > { %v10971_v16 = vpop.f32.mrb[0].mxu0  ;;  %v11087_v47 = vpop.f32.mrb[3].mxu1 }
 0x16f   : > { %v10972_v32 = vpop.f32.mrb[1].mxu0  ;;  %v11088_v52 = vadd.f32 %v11087_v47, %v11086_v51  ;;  %v2413_v51 = vshrl.u32 %v12321_v29, 16  ;;  %v2417_v47 = vrot.slane %v2415_v37, 1 }
 0x170   : > { %4703 = vmatmul.mubr.bf16.gmra.mrb[100].mxu0 %v2387_v0  ;;  %v10973_v12 = vadd.f32 %v10972_v32, %v10971_v16  ;;  %v10974_v5 = vpop.f32.mrb[2].mxu0  ;;  %v3204_v0 = vshll.u32 %v12315_v38, 16  ;;  %v2704_v38 = vrot.slane %v12318_v34, 1 }
 0x171   : > { %4710 = vmatprep.mubr.bf16.mxu0 %v2700_v14  ;;  %v10975_v40 = vpop.f32.mrb[3].mxu0  ;;  %v2418_v53 = vor.u32 %v2417_v47, %v2413_v51 }
 0x172   : > { %4864 = vmatmul.mubr.bf16.gmra.mrb[100].mxu1 %v12302_v13  ;;  %v4311_v42 = vadd.f32 %v10973_v12, %v13425_v30  ;;  %v10976_v44 = vadd.f32 %v10975_v40, %v10974_v5  ;;  %v3206_v9 = vrot.slane %v3204_v0, 1 }
 0x173   : > { %4871 = vmatprep.mubr.bf16.mxu1 %v3200_v48  ;;  %v11089_v14 = vpop.f32.mrb[4].mxu1 }
 0x174   : > { %v4314_v54 = vadd.f32 %v10976_v44, %v13425_v30  ;;  %v13431_v59 = vadd.f32 %v11085_v19, %v4311_v42  ;;  %v11090_v18 = vpop.f32.mrb[5].mxu1  ;;  %v3207_v21 = vor.u32 %v3206_v9, %v3202_v58  ;;  %v12322_v19 = vld [vmem:[#allocation2 + $0xa4] ss:$0 sps:$4 sm:$0x11]   ;;  %v2706_v42 = vsel %vm1867_vm9, %v2704_v38, %v2705_v39 }
 0x175   : > { %v11091_v22 = vadd.f32 %v11090_v18, %v11089_v14  ;;  %v11092_v28 = vpop.f32.mrb[6].mxu1  ;;  %v2420_v48 = vshll.u32 %v12322_v19, 16 }
 0x176   : > { %v10977_v2 = vpop.f32.mrb[4].mxu0  ;;  %v13434_v4 = vadd.f32 %v11088_v52, %v4314_v54  ;;  %v11093_v1 = vpop.f32.mrb[7].mxu1  ;;  %v3212_v12 = vsel %vm1466_vm10, %v3207_v21, %v3211_v24  ;;  %v2425_v24 = vshrl.u32 %v12328_v63, 16 }
 0x177   : > { %v10978_v13 = vpop.f32.mrb[5].mxu0  ;;  %v11094_v5 = vadd.f32 %v11093_v1, %v11092_v28  ;;  %v2422_v54 = vrot.slane %v2420_v48, 1  ;;  %v12331_v1 = vld [vmem:[#allocation2 + $0xbc] ss:$0 sps:$4 sm:$0x11]  }
 0x178   : > { %4711 = vmatmul.mubr.bf16.gmra.mrb[104].mxu0 %v2399_v43  ;;  %v10979_v16 = vadd.f32 %v10978_v13, %v10977_v2  ;;  %v10980_v17 = vpop.f32.mrb[6].mxu0  ;;  %v12323_v43 = vld [vmem:[#allocation2 + $0xa8] sm:$0xff]   ;;  %v12330_v13 = vld [vmem:[#allocation2 + $0xb4] sm:$0xff]   ;;  %v3233_v19 = vshll.u32 %v12331_v1, 16 }
 0x179   : > { %4718 = vmatprep.mubr.bf16.mxu0 %v2703_v60  ;;  %v10981_v27 = vpop.f32.mrb[7].mxu0  ;;  %v3214_v50 = vshrl.u32 %v12323_v43, 16  ;;  %v3216_v52 = vshll.u32 %v12323_v43, 16  ;;  %v12325_v60 = vld [vmem:[#allocation2 + $0xa8] sm:$0xff]   ;;  %v2423_v0 = vsel %vm1466_vm10, %v2418_v53, %v2422_v54  ;;  %v3228_v38 = vshll.u32 %v12330_v13, 16  ;;  %v12335_v43 = vld [vmem:[#allocation7 + $0x238] sm:$0xff]  }
 0x17a   : > { %4872 = vmatmul.mubr.bf16.gmra.mrb[104].mxu1 %v12310_v49  ;;  %v4319_v32 = vadd.f32 %v10979_v16, %v13425_v30  ;;  %v10982_v33 = vadd.f32 %v10981_v27, %v10980_v17  ;;  %v12324_v49 = vld [vmem:[#allocation2 + $0xb0] ss:$0 sps:$4 sm:$0x11]   ;;  %v12326_v16 = vld [vmem:[#allocation2 + $0xa8] sm:$0xfe]   ;;  %v3235_v53 = vrot.slane %v3233_v19, 1  ;;  %11913 = vmatprep.subr.bf16.mxu0 %v12335_v43 }
 0x17b   : > { %4879 = vmatprep.mubr.bf16.mxu1 %v3212_v12  ;;  %v3221_v55 = vshll.u32 %v12324_v49, 16  ;;  %v11095_v57 = vpop.f32.mrb[8].mxu1  ;;  %v3218_v58 = vrot.slane %v3216_v52, 1  ;;  %v12327_v17 = vld [vmem:[#allocation2 + $0xb0] ss:$0 sps:$4 sm:$0x11]   ;;  %11914 = vmatpush3.bf16.msra.mxu0 %v12335_v43 }
 0x17c   : > { %v4322_v23 = vadd.f32 %v10982_v33, %v13425_v30  ;;  %v13440_v40 = vadd.f32 %v11091_v22, %v4319_v32  ;;  %v11096_v62 = vpop.f32.mrb[9].mxu1  ;;  %v2707_v22 = vrot.slane %v12326_v16, 1  ;;  %v2708_v28 = vrot.slane %v12327_v17, 1  ;;  %v12329_v32 = vld [vmem:[#allocation2 + $0xb0] ss:$0 sps:$4 sm:$0x11]  }
 0x17d   : > { %v3223_v2 = vrot.slane %v3221_v55, 1  ;;  %v11097_v9 = vadd.f32 %v11096_v62, %v11095_v57  ;;  %v11098_v10 = vpop.f32.mrb[10].mxu1  ;;  %v3219_v14 = vor.u32 %v3218_v58, %v3214_v50  ;;  %v2427_v33 = vshll.u32 %v12328_v63, 16  ;;  %v12332_v49 = vld [vmem:[#allocation2 + $0xb4] sm:$0xff]  }
 0x17e   : > { %v13443_v44 = vadd.f32 %v11094_v5, %v4322_v23  ;;  %v10983_v56 = vpop.f32.mrb[8].mxu0  ;;  %v11099_v21 = vpop.f32.mrb[11].mxu1  ;;  %v2709_v36 = vsel %vm1867_vm9, %v2707_v22, %v2708_v28  ;;  %v3226_v12 = vshrl.u32 %v12330_v13, 16  ;;  %v2432_v23 = vshll.u32 %v12329_v32, 16  ;;  %v12336_v58 = vld [vmem:[#allocation2 + $0xb4] sm:$0xff]  }
 0x17f   : > { %v10984_v61 = vpop.f32.mrb[9].mxu0  ;;  %v3224_v27 = vsel %vm1466_vm10, %v3219_v14, %v3223_v2  ;;  %v11100_v29 = vadd.f32 %v11099_v21, %v11098_v10  ;;  %v2429_v5 = vrot.slane %v2427_v33, 1  ;;  %v3230_v48 = vrot.slane %v3228_v38, 1  ;;  %v12333_v63 = vld [vmem:[#allocation2 + $0xb4] sm:$0xfe]  }
 0x180   : > { %4719 = vmatmul.mubr.bf16.gmra.mrb[108].mxu0 %v2411_v20  ;;  %v10985_v7 = vadd.f32 %v10984_v61, %v10983_v56  ;;  %v10986_v8 = vpop.f32.mrb[10].mxu0  ;;  %v2434_v47 = vrot.slane %v2432_v23, 1  ;;  %v2437_v10 = vshrl.u32 %v12336_v58, 16  ;;  %v2710_v14 = vrot.slane %v12333_v63, 1  ;;  %v1017_v32 = vld [vmem:[#allocation2 + $0xc4] sm:$0x8] }
 0x181   : > { %4726 = vmatprep.mubr.bf16.mxu0 %v2706_v42  ;;  %v10987_v15 = vpop.f32.mrb[11].mxu0  ;;  %v2430_v42 = vor.u32 %v2429_v5, %v2425_v24  ;;  %v3231_v61 = vor.u32 %v3230_v48, %v3226_v12  ;;  %v839_v24 = vld [vmem:[#allocation2 + $0xc8] sm:$0x1]  ;;  %v13468_v12 = vld [vmem:[#allocation2 + $0xc0] sm:$0xff]   ;;  %v10188_v43 = vrot.slane %v1017_v32, 11 }
 0x182   : > { %4880 = vmatmul.mubr.bf16.gmra.mrb[108].mxu1 %v12317_v31  ;;  %v4327_v18 = vadd.f32 %v10985_v7, %v13425_v30  ;;  %v10988_v20 = vadd.f32 %v10987_v15, %v10986_v8  ;;  %v12334_v8 = vld [vmem:[#allocation2 + $0xbc] ss:$0 sps:$4 sm:$0x11]   ;;  %v2439_v15 = vshll.u32 %v12336_v58, 16  ;;  %v840_v22 = vsel %vm13096_vm7, %v675_v45, %v839_v24 }
 0x183   : > { %4887 = vmatprep.mubr.bf16.mxu1 %v3224_v27  ;;  %v11101_v37 = vpop.f32.mrb[12].mxu1  ;;  %v3236_v13 = vsel %vm1466_vm10, %v3231_v61, %v3235_v53  ;;  %v2711_v17 = vrot.slane %v12334_v8, 1  ;;  %841 = vst [vmem:[#allocation2 + $0xc8] sm:$0x1] %v840_v22  ;;  %v854_v53 = vld [vmem:[#allocation2 + $0xd4] sm:$0x1] }
 0x184   : > { %v4330_v31 = vadd.f32 %v10988_v20, %v13425_v30  ;;  %v13450_v34 = vadd.f32 %v11097_v9, %v4327_v18  ;;  %v11102_v52 = vpop.f32.mrb[13].mxu1  ;;  %v12337_v20 = vld [vmem:[#allocation2 + $0xbc] ss:$0 sps:$4 sm:$0x11]   ;;  %v2441_v21 = vrot.slane %v2439_v15, 1 }
 0x185   : > { %v11103_v56 = vadd.f32 %v11102_v52, %v11101_v37  ;;  %v11104_v57 = vpop.f32.mrb[14].mxu1  ;;  %v2712_v27 = vsel %vm1867_vm9, %v2710_v14, %v2711_v17  ;;  %v13470_v37 = vld [vmem:[#allocation2 + $0xc0] sm:$0xff]   ;;  %v850_v52 = vld [vmem:[#allocation2 + $0xcc] sm:$0xf] }
 0x186   : > { %v13453_v39 = vadd.f32 %v11100_v29, %v4330_v31  ;;  %v10989_v51 = vpop.f32.mrb[12].mxu0  ;;  %v2442_v29 = vor.u32 %v2441_v21, %v2437_v10  ;;  %v2444_v31 = vshll.u32 %v12337_v20, 16  ;;  %v13484_v61 = vld [vmem:[#allocation2 + $0xc0] sm:$0xfe]   ;;  %v2449_v14 = vshrl.u32 %v13470_v37, 16 }
 0x187   : > { %v10990_v50 = vpop.f32.mrb[13].mxu0 }
 0x188   : > { %4727 = vmatmul.mubr.bf16.gmra.mrb[112].mxu0 %v2423_v0  ;;  %v10991_v54 = vadd.f32 %v10990_v50, %v10989_v51  ;;  %v10992_v55 = vpop.f32.mrb[14].mxu0  ;;  %v11105_v0 = vpop.f32.mrb[15].mxu1  ;;  %v2446_v1 = vrot.slane %v2444_v31, 1 }
 0x189   : > { %4734 = vmatprep.mubr.bf16.mxu0 %v2709_v36  ;;  %v10993_v62 = vpop.f32.mrb[15].mxu0  ;;  %v11106_v9 = vadd.f32 %v11105_v0, %v11104_v57  ;;  %v855_v57 = vsel %vm13096_vm7, %v658_v26, %v854_v53 }
 0x18a   : > { %4888 = vmatmul.mubr.bf16.gmra.mrb[112].mxu1 %v12325_v60  ;;  %v2435_v60 = vsel %vm1466_vm10, %v2430_v42, %v2434_v47  ;;  %v4335_v2 = vadd.f32 %v10991_v54, %v13425_v30  ;;  %v10994_v7 = vadd.f32 %v10993_v62, %v10992_v55  ;;  %v2447_v45 = vsel %vm1466_vm10, %v2442_v29, %v2446_v1  ;;  %v1140_v58 = vld [vmem:[#allocation2 + $0xc8] sm:$0x1]  ;;  %v12349_v29 = vld [vmem:[#allocation2 + $0x20] ss:$0 sps:$4 sm:$0x11]  }
 0x18b   : > { %4895 = vmatprep.mubr.bf16.mxu1 %v3236_v13  ;;  %v3238_v54 = vshrl.u32 %v13468_v12, 16  ;;  %v3240_v55 = vshll.u32 %v13468_v12, 16  ;;  %v2451_v62 = vshll.u32 %v13470_v37, 16  ;;  %856 = vst [vmem:[#allocation2 + $0xd4] sm:$0x1] %v855_v57 }
 0x18c   : > { %v4338_v16 = vadd.f32 %v10994_v7, %v13425_v30  ;;  %v13459_v18 = vadd.f32 %v11103_v56, %v4335_v2  ;;  %v11107_v36 = vpop.f32.mrb[16].mxu1  ;;  %v851_v56 = vsel %vm13089_vm6, %v13343_v11, %v850_v52  ;;  %v1141_v11 = vsel %vm13122_vm8, %v10188_v43, %v1140_v58  ;;  %v1018_v2 = vld [vmem:[#allocation2 + $0xd0] sm:$0x8]  ;;  %v13506_v57 = vld [vmem:[#allocation2 + $0x24] sm:$0xfe]  }
 0x18d   : > { %v11108_v23 = vpop.f32.mrb[17].mxu1  ;;  %852 = vst [vmem:[#allocation2 + $0xcc] sm:$0xf] %v851_v56  ;;  %1142 = vst [vmem:[#allocation2 + $0xc8] sm:$0x1] %v1141_v11  ;;  %v3242_v13 = vrot.slane %v3240_v55, 1 }
 0x18e   : > { %v13466_v28 = vadd.f32 %v11106_v9, %v4338_v16  ;;  %v10995_v33 = vpop.f32.mrb[16].mxu0  ;;  %v11109_v3 = vadd.f32 %v11108_v23, %v11107_v36  ;;  %v11110_v51 = vpop.f32.mrb[18].mxu1  ;;  %v10189_v20 = vrot.slane %v1018_v2, 11  ;;  %v2453_v36 = vrot.slane %v2451_v62, 1  ;;  %v12340_v62 = vld [vmem:[#allocation2 + $0xc0] sm:$0xff]  }
 0x18f   : > { %v10996_v5 = vpop.f32.mrb[17].mxu0  ;;  %v11111_v47 = vpop.f32.mrb[19].mxu1  ;;  %v12351_v11 = vld [vmem:[#allocation2 + $0x2c] ss:$0 sps:$4 sm:$0x11]  }
 0x190   : > { %4735 = vmatmul.mubr.bf16.gmra.mrb[116].mxu0 %v2435_v60  ;;  %v10997_v38 = vadd.f32 %v10996_v5, %v10995_v33  ;;  %v10998_v19 = vpop.f32.mrb[18].mxu0  ;;  %v11112_v50 = vadd.f32 %v11111_v47, %v11110_v51  ;;  %v2713_v33 = vrot.slane %v13484_v61, 1 }
 0x191   : > { %4742 = vmatprep.mubr.bf16.mxu0 %v2712_v27  ;;  %v10999_v42 = vpop.f32.mrb[19].mxu0  ;;  %v12348_v27 = vld [vmem:[#allocation2 + $0x18] sm:$0xfe]  }
 0x192   : > { %4896 = vmatmul.mubr.bf16.gmra.mrb[116].mxu1 %v12332_v49  ;;  %v4343_v48 = vadd.f32 %v10997_v38, %v13425_v30  ;;  %v11000_v49 = vadd.f32 %v10999_v42, %v10998_v19  ;;  %v3469_v43 = vrot.slane %v12348_v27, 1 }
 0x194   : > { %v4346_v60 = vadd.f32 %v11000_v49, %v13425_v30  ;;  %v13487_v0 = vadd.f32 %v11109_v3, %v4343_v48  ;;  %v11113_v7 = vpop.f32.mrb[20].mxu1  ;;  %v874_v38 = vld [vmem:[#allocation2 + $0xcc] sm:$0x2]  ;;  %v998_v19 = vld [vmem:[#allocation2 + $0xcc] sm:$0x1]  ;;  %v3470_v49 = vrot.slane %v12349_v29, 1 }
 0x195   : > { %v11114_v9 = vpop.f32.mrb[21].mxu1  ;;  %v1143_v3 = vld [vmem:[#allocation2 + $0xd4] sm:$0x1]  ;;  %v10171_v37 = vrot.slane %v874_v38, 9 }
 0x196   : > { %v11001_v63 = vpop.f32.mrb[20].mxu0  ;;  %v13491_v10 = vadd.f32 %v11112_v50, %v4346_v60  ;;  %v11115_v16 = vadd.f32 %v11114_v9, %v11113_v7  ;;  %v11116_v17 = vpop.f32.mrb[22].mxu1  ;;  %v12339_v48 = vld [vmem:[#allocation2 + $0xc8] ss:$0 sps:$4 sm:$0x11]   ;;  %v3243_v60 = vor.u32 %v3242_v13, %v3238_v54  ;;  %v2454_v9 = vor.u32 %v2453_v36, %v2449_v14 }
 0x197   : > { %v11002_v6 = vpop.f32.mrb[21].mxu0  ;;  %v11117_v22 = vpop.f32.mrb[23].mxu1  ;;  %v12342_v55 = vld [vmem:[#allocation2 + $0xc8] ss:$0 sps:$4 sm:$0x11]   ;;  %v999_v56 = vsel %vm13096_vm7, %v10171_v37, %v998_v19  ;;  %v3245_v61 = vshll.u32 %v12339_v48, 16  ;;  %v3471_v14 = vsel %vm1867_vm9, %v3469_v43, %v3470_v49 }
 0x198   : > { %4743 = vmatmul.mubr.bf16.gmra.mrb[120].mxu0 %v2447_v45  ;;  %v11003_v26 = vadd.f32 %v11002_v6, %v11001_v63  ;;  %v11004_v8 = vpop.f32.mrb[22].mxu0  ;;  %v11118_v31 = vadd.f32 %v11117_v22, %v11116_v17  ;;  %v1144_v45 = vsel %vm13122_vm8, %v10189_v20, %v1143_v3  ;;  %v12344_v63 = vld [vmem:[#allocation2 + $0xc8] ss:$0 sps:$4 sm:$0x11]   ;;  %1000 = vst [vmem:[#allocation2 + $0xcc] sm:$0x1] %v999_v56 }
 0x199   : > { %v11005_v15 = vpop.f32.mrb[23].mxu0  ;;  %1145 = vst [vmem:[#allocation2 + $0xd4] sm:$0x1] %v1144_v45  ;;  %v2714_v7 = vrot.slane %v12342_v55, 1  ;;  %v12352_v17 = vld [vmem:[#allocation2 + $0x30] sm:$0xfe]  }
 0x19a   : > { %v4351_v21 = vadd.f32 %v11003_v26, %v13425_v30  ;;  %v11006_v24 = vadd.f32 %v11005_v15, %v11004_v8  ;;  %v3247_v8 = vrot.slane %v3245_v61, 1  ;;  %v2456_v15 = vshll.u32 %v12344_v63, 16  ;;  %v12353_v13 = vld [vmem:[#allocation2 + $0x38] ss:$0 sps:$4 sm:$0x11]  }
 0x19b   : > { %v2715_v54 = vsel %vm1867_vm9, %v2713_v33, %v2714_v7  ;;  %v3472_v36 = vrot.slane %v13506_v57, 1  ;;  %v3473_v33 = vrot.slane %v12351_v11, 1  ;;  %v3476_v38 = vrot.slane %v12353_v13, 1  ;;  %v12354_v37 = vld [vmem:[#allocation2 + $0x3c] sm:$0xfe]  }
 0x19c   : > { %v4354_v1 = vadd.f32 %v11006_v24, %v13425_v30  ;;  %v11119_v5 = vpop.f32.mrb[24].mxu1  ;;  %v13497_v23 = vadd.f32 %v11115_v16, %v4351_v21  ;;  %v3248_v22 = vsel %vm1466_vm10, %v3243_v60, %v3247_v8  ;;  %4750 = vmatprep.mubr.bf16.mxu0 %v2715_v54  ;;  %v2458_v29 = vrot.slane %v2456_v15, 1  ;;  %v12355_v45 = vld [vmem:[#allocation2 + $0x44] ss:$0 sps:$4 sm:$0x11]   ;;  %v12380_v48 = vld [vmem:[#allocation9 + $0x40] sm:$0xff]  }
 0x19d   : > { %v11120_v47 = vpop.f32.mrb[25].mxu1  ;;  %4903 = vmatprep.mubr.bf16.mxu1 %v3248_v22  ;;  %11427 = vmatprep.subr.bf16.mxu1 %v12380_v48  ;;  %v12356_v63 = vld [vmem:[#allocation2 + $0x48] sm:$0xfe]   ;;  %v12357_v11 = vld [vmem:[#allocation2 + $0x50] ss:$0 sps:$4 sm:$0x11]  }
 0x19e   : > { %v11007_v32 = vpop.f32.mrb[24].mxu0  ;;  %v11121_v52 = vadd.f32 %v11120_v47, %v11119_v5  ;;  %v13502_v53 = vadd.f32 %v11118_v31, %v4354_v1  ;;  %v11122_v26 = vpop.f32.mrb[26].mxu1  ;;  %4904 = vmatmul.mubr.bf16.gmra.mrb[120].mxu1 %v12340_v62  ;;  %v3475_v5 = vrot.slane %v12352_v17, 1  ;;  %v12361_v48 = vld [vmem:[#allocation2 + $0x68] ss:$0 sps:$4 sm:$0x11]  }
 0x19f   : > { %v11008_v12 = vpop.f32.mrb[25].mxu0  ;;  %v11123_v20 = vpop.f32.mrb[27].mxu1  ;;  %v12345_v3 = vld [vmem:[#allocation2 + $0xcc] sm:$0xff]  }
 0x1a0   : > { %v11009_v51 = vadd.f32 %v11008_v12, %v11007_v32  ;;  %v11010_v42 = vpop.f32.mrb[26].mxu0  ;;  %v11124_v24 = vadd.f32 %v11123_v20, %v11122_v26  ;;  %v12346_v32 = vld [vmem:[#allocation2 + $0xd4] ss:$0 sps:$4 sm:$0x11]   ;;  %v2459_v12 = vsel %vm1466_vm10, %v2454_v9, %v2458_v29  ;;  %v3250_v49 = vshrl.u32 %v12345_v3, 16  ;;  %v12347_v15 = vld [vmem:[#allocation2 + $0xcc] sm:$0xff]  }
 0x1a1   : > { %v11011_v58 = vpop.f32.mrb[27].mxu0  ;;  %4751 = vmatmul.mubr.bf16.gmra.mrb[124].mxu0 %v2459_v12  ;;  %v3478_v20 = vrot.slane %v12354_v37, 1  ;;  %v3481_v29 = vrot.slane %v12356_v63, 1  ;;  %v12360_v37 = vld [vmem:[#allocation2 + $0x60] sm:$0xfe]  }
 0x1a2   : > { %v4359_v50 = vadd.f32 %v11009_v51, %v13425_v30  ;;  %v11012_v2 = vadd.f32 %v11011_v58, %v11010_v42  ;;  %v3257_v51 = vshll.u32 %v12346_v32, 16  ;;  %11915 = vmatprep.mubr.bf16.mxu0 %v3471_v14 }
 0x1a4   : > { %v13508_v6 = vadd.f32 %v11121_v52, %v4359_v50  ;;  %v4362_v16 = vadd.f32 %v11012_v2, %v13425_v30  ;;  %v3252_v50 = vshll.u32 %v12345_v3, 16  ;;  %v3259_v52 = vrot.slane %v3257_v51, 1  ;;  %v12359_v51 = vld [vmem:[#allocation2 + $0x5c] ss:$0 sps:$4 sm:$0x11]  }
 0x1a5   : > { %v3474_v2 = vsel %vm1867_vm9, %v3472_v36, %v3473_v33  ;;  %v12382_v36 = vld [vmem:[#allocation9 + $0x48] sm:$0xff]   ;;  %v3482_v33 = vrot.slane %v12357_v11, 1 }
 0x1a6   : > { %v11013_v21 = vpop.f32.mrb[28].mxu0  ;;  %v13515_v1 = vadd.f32 %v11124_v24, %v4362_v16  ;;  %v3254_v61 = vrot.slane %v3252_v50, 1  ;;  %v3477_v16 = vsel %vm1867_vm9, %v3475_v5, %v3476_v38 }
 0x1a7   : > { %v11014_v27 = vpop.f32.mrb[29].mxu0 }
 0x1a8   : > { %v11015_v31 = vadd.f32 %v11014_v27, %v11013_v21  ;;  %v11016_v19 = vpop.f32.mrb[30].mxu0  ;;  %v11125_v43 = vpop.f32.mrb[28].mxu1  ;;  %v3255_v9 = vor.u32 %v3254_v61, %v3250_v49  ;;  %v3479_v21 = vrot.slane %v12355_v45, 1  ;;  %v12381_v27 = vld [vmem:[#allocation9] sm:$0xff]  }
 0x1a9   : > { %v11017_v47 = vpop.f32.mrb[31].mxu0  ;;  %v11126_v56 = vpop.f32.mrb[29].mxu1  ;;  %11916 = vmatmul.mubr.bf16.vlgmr.msra.gmra.mrb[128].mxu0 %v3474_v2  ;;  %11428 = vmatpush3.bf16.msra.mxu1 %v12381_v27 }
 0x1aa   : > { %v4367_v42 = vadd.f32 %v11015_v31, %v13425_v30  ;;  %v11018_v55 = vadd.f32 %v11017_v47, %v11016_v19  ;;  %v11127_v57 = vadd.f32 %v11126_v56, %v11125_v43  ;;  %v11128_v58 = vpop.f32.mrb[30].mxu1  ;;  %v3260_v22 = vsel %vm1466_vm10, %v3255_v9, %v3259_v52  ;;  %v12358_v31 = vld [vmem:[#allocation2 + $0x54] sm:$0xfe]   ;;  %11919 = vmatprep.mubr.bf16.mxu0 %v3477_v16  ;;  %v12362_v16 = vld [vmem:[#allocation2 + $0x6c] sm:$0xfe]  }
 0x1ab   : > { %v11129_v7 = vpop.f32.mrb[31].mxu1  ;;  %4911 = vmatprep.mubr.bf16.mxu1 %v3260_v22  ;;  %11429 = vmatprep.subr.bf16.mxu1 %v12382_v36  ;;  %v3480_v52 = vsel %vm1867_vm9, %v3478_v20, %v3479_v21  ;;  %v3484_v61 = vrot.slane %v12358_v31, 1  ;;  %v3487_v9 = vrot.slane %v12360_v37, 1  ;;  %v12365_v31 = vld [vmem:[#allocation2 + $0x80] ss:$0 sps:$4 sm:$0x11]  }
 0x1ac   : > { %v4370_v62 = vadd.f32 %v11018_v55, %v13425_v30  ;;  %v13521_v8 = vadd.f32 %v11127_v57, %v4367_v42  ;;  %v11130_v17 = vadd.f32 %v11129_v7, %v11128_v58  ;;  %4912 = vmatmul.mubr.bf16.gmra.mrb[124].mxu1 %v12347_v15  ;;  %v12383_v58 = vld [vmem:[#allocation9 + $0x8] sm:$0xff]   ;;  %v3485_v7 = vrot.slane %v12359_v51, 1  ;;  %v12364_v36 = vld [vmem:[#allocation2 + $0x78] sm:$0xfe]  }
 0x1ad   : > { %11430 = vmatpush3.bf16.msra.mxu1 %v12383_v58  ;;  %v3488_v15 = vrot.slane %v12361_v48, 1  ;;  %v12367_v58 = vld [vmem:[#allocation2 + $0x8c] ss:$0 sps:$4 sm:$0x11]  }
 0x1ae   : > { %v13525_v12 = vadd.f32 %v11130_v17, %v4370_v62 }
 0x1af   : > { %v3489_v51 = vsel %vm1867_vm9, %v3487_v9, %v3488_v15  ;;  %v12384_v9 = vld [vmem:[#allocation9 + $0x50] sm:$0xff]  }
 0x1b0   : > { %v11019_v60 = vpop.f32.mrb[32].mxu0  ;;  %11431 = vmatprep.subr.bf16.mxu1 %v12384_v9 }
 0x1b1   : > { %v11020_v26 = vpop.f32.mrb[33].mxu0  ;;  %11920 = vmatmul.mubr.bf16.gmra.mrb[132].mxu0 %v3480_v52 }
 0x1b2   : > { %v11021_v54 = vadd.f32 %v11020_v26, %v11019_v60  ;;  %v11022_v13 = vpop.f32.mrb[34].mxu0  ;;  %v3483_v60 = vsel %vm1867_vm9, %v3481_v29, %v3482_v33 }
 0x1b3   : > { %v11023_v32 = vpop.f32.mrb[35].mxu0  ;;  %11923 = vmatprep.mubr.bf16.mxu0 %v3483_v60 }
 0x1b4   : > { %v11131_v24 = vpop.f32.mrb[32].mxu1  ;;  %v4375_v5 = vadd.f32 %v11021_v54, %v13425_v30  ;;  %v11024_v38 = vadd.f32 %v11023_v32, %v11022_v13  ;;  %v12363_v13 = vld [vmem:[#allocation2 + $0x74] ss:$0 sps:$4 sm:$0x11]  }
 0x1b5   : > { %v11132_v14 = vpop.f32.mrb[33].mxu1 }
 0x1b6   : > { %v11133_v19 = vadd.f32 %v11132_v14, %v11131_v24  ;;  %v11134_v3 = vpop.f32.mrb[34].mxu1  ;;  %v4378_v42 = vadd.f32 %v11024_v38, %v13425_v30 }
 0x1b7   : > { %v11135_v45 = vpop.f32.mrb[35].mxu1 }
 0x1b8   : > { %v13529_v43 = vadd.f32 %v11133_v19, %v4375_v5  ;;  %v11136_v47 = vadd.f32 %v11135_v45, %v11134_v3  ;;  %v3486_v3 = vsel %vm1867_vm9, %v3484_v61, %v3485_v7 }
 0x1b9   : > { %11924 = vmatmul.mubr.bf16.gmra.mrb[136].mxu0 %v3486_v3 }
 0x1ba   : > { %v13532_v55 = vadd.f32 %v11136_v47, %v4378_v42  ;;  %v3490_v42 = vrot.slane %v12362_v16, 1  ;;  %v3491_v47 = vrot.slane %v12363_v13, 1  ;;  %11927 = vmatprep.mubr.bf16.mxu0 %v3489_v51 }
 0x1bc   : > { %v11025_v49 = vpop.f32.mrb[36].mxu0  ;;  %v11137_v50 = vpop.f32.mrb[36].mxu1 }
 0x1bd   : > { %v11026_v56 = vpop.f32.mrb[37].mxu0  ;;  %v11138_v57 = vpop.f32.mrb[37].mxu1 }
 0x1be   : > { %v11027_v62 = vadd.f32 %v11026_v56, %v11025_v49  ;;  %v11028_v63 = vpop.f32.mrb[38].mxu0  ;;  %v11139_v11 = vadd.f32 %v11138_v57, %v11137_v50  ;;  %v11140_v2 = vpop.f32.mrb[38].mxu1  ;;  %v3493_v56 = vrot.slane %v12364_v36, 1  ;;  %v12366_v57 = vld [vmem:[#allocation2 + $0x84] sm:$0xfe]  }
 0x1bf   : > { %v11029_v26 = vpop.f32.mrb[39].mxu0  ;;  %v11141_v21 = vpop.f32.mrb[39].mxu1 }
 0x1c0   : > { %v4383_v17 = vadd.f32 %v11027_v62, %v13425_v30  ;;  %v11030_v20 = vadd.f32 %v11029_v26, %v11028_v63  ;;  %v11142_v54 = vadd.f32 %v11141_v21, %v11140_v2  ;;  %v12368_v2 = vld [vmem:[#allocation2 + $0x90] sm:$0xfe]   ;;  %v12385_v21 = vld [vmem:[#allocation9 + $0x10] sm:$0xff]  }
 0x1c1   : > { %11432 = vmatpush3.bf16.msra.mxu1 %v12385_v21 }
 0x1c2   : > { %v4386_v24 = vadd.f32 %v11030_v20, %v13425_v30  ;;  %v13537_v27 = vadd.f32 %v11139_v11, %v4383_v17  ;;  %v3494_v11 = vrot.slane %v12365_v31, 1 }
 0x1c4   : > { %v11031_v22 = vpop.f32.mrb[40].mxu0  ;;  %v11143_v29 = vpop.f32.mrb[40].mxu1  ;;  %v13539_v33 = vadd.f32 %v11142_v54, %v4386_v24  ;;  %v13552_v24 = vld [vmem:[%s14523_s2] ss:$0 sm:$0xff] }
 0x1c5   : > { %v11032_v32 = vpop.f32.mrb[41].mxu0  ;;  %v11144_v14 = vpop.f32.mrb[41].mxu1 }
 0x1c6   : > { %v11033_v5 = vadd.f32 %v11032_v32, %v11031_v22  ;;  %v11034_v38 = vpop.f32.mrb[42].mxu0  ;;  %v11146_v19 = vpop.f32.mrb[42].mxu1  ;;  %v11145_v45 = vadd.f32 %v11144_v14, %v11143_v29  ;;  %v3492_v32 = vsel %vm1867_vm9, %v3490_v42, %v3491_v47  ;;  %v3495_v14 = vsel %vm1867_vm9, %v3493_v56, %v3494_v11  ;;  %v12373_v11 = vld [vmem:[#allocation2 + $0xb0] ss:$0 sps:$4 sm:$0x11]  }
 0x1c7   : > { %v11035_v37 = vpop.f32.mrb[43].mxu0  ;;  %v11147_v50 = vpop.f32.mrb[43].mxu1  ;;  %11928 = vmatmul.mubr.bf16.gmra.mrb[140].mxu0 %v3492_v32  ;;  %v12375_v32 = vld [vmem:[#allocation2 + $0xbc] ss:$0 sps:$4 sm:$0x11]  }
 0x1c8   : > { %v4391_v48 = vadd.f32 %v11033_v5, %v13425_v30  ;;  %v11036_v49 = vadd.f32 %v11035_v37, %v11034_v38  ;;  %v11148_v52 = vadd.f32 %v11147_v50, %v11146_v19  ;;  %v3496_v5 = vrot.slane %v12366_v57, 1  ;;  %11931 = vmatprep.mubr.bf16.mxu0 %v3495_v14 }
 0x1c9   : > { %v3497_v38 = vrot.slane %v12367_v58, 1 }
 0x1ca   : > { %v4394_v60 = vadd.f32 %v11036_v49, %v13425_v30  ;;  %v13545_v62 = vadd.f32 %v11145_v45, %v4391_v48  ;;  %v12369_v30 = vld [vmem:[#allocation2 + $0x98] ss:$0 sps:$4 sm:$0x11]   ;;  %v3499_v45 = vrot.slane %v12368_v2, 1 }
 0x1cb   : > { %v12371_v48 = vld [vmem:[#allocation2 + $0xa4] ss:$0 sps:$4 sm:$0x11]   ;;  %v3500_v57 = vrot.slane %v12369_v30, 1 }
 0x1cc   : > { %v11037_v61 = vpop.f32.mrb[44].mxu0  ;;  %v11149_v63 = vpop.f32.mrb[44].mxu1  ;;  %v13547_v15 = vadd.f32 %v11148_v52, %v4394_v60  ;;  %v12370_v52 = vld [vmem:[#allocation2 + $0x9c] sm:$0xfe]  }
 0x1cd   : > { %v11038_v7 = vpop.f32.mrb[45].mxu0  ;;  %v11150_v26 = vpop.f32.mrb[45].mxu1 }
 0x1ce   : > { %v11039_v16 = vadd.f32 %v11038_v7, %v11037_v61  ;;  %v11040_v17 = vpop.f32.mrb[46].mxu0  ;;  %v11152_v20 = vpop.f32.mrb[46].mxu1  ;;  %v11151_v13 = vadd.f32 %v11150_v26, %v11149_v63  ;;  %v12372_v63 = vld [vmem:[#allocation2 + $0xa8] sm:$0xfe]  }
 0x1cf   : > { %v11041_v54 = vpop.f32.mrb[47].mxu0  ;;  %v11153_v31 = vpop.f32.mrb[47].mxu1 }
 0x1d0   : > { %v4399_v22 = vadd.f32 %v13552_v24, %v11039_v16  ;;  %v11042_v29 = vadd.f32 %v11041_v54, %v11040_v17  ;;  %v11154_v36 = vadd.f32 %v11153_v31, %v11152_v20  ;;  %v3502_v16 = vrot.slane %v12370_v52, 1 }
 0x1d1   : > { %v3498_v54 = vsel %vm1867_vm9, %v3496_v5, %v3497_v38  ;;  %v3505_v31 = vrot.slane %v12372_v63, 1  ;;  %v12386_v5 = vld [vmem:[#allocation9 + $0x58] sm:$0xff]  }
 0x1d2   : > { %v4402_v19 = vadd.f32 %v13552_v24, %v11042_v29  ;;  %v13558_v3 = vadd.f32 %v11151_v13, %v4399_v22  ;;  %v3503_v13 = vrot.slane %v12371_v48, 1  ;;  %v12374_v22 = vld [vmem:[#allocation2 + $0xb4] sm:$0xfe]   ;;  %v3501_v29 = vsel %vm1867_vm9, %v3499_v45, %v3500_v57  ;;  %11932 = vmatmul.mubr.bf16.gmra.mrb[144].mxu0 %v3498_v54  ;;  %11433 = vmatprep.subr.bf16.mxu1 %v12386_v5 }
 0x1d3   : > { %11935 = vmatprep.mubr.bf16.mxu0 %v3501_v29  ;;  %v12387_v48 = vld [vmem:[#allocation9 + $0x18] sm:$0xff]  }
 0x1d4   : > { %v11043_v51 = vpop.f32.mrb[48].mxu0  ;;  %v13560_v60 = vadd.f32 %v11154_v36, %v4402_v19  ;;  %11434 = vmatpush3.bf16.msra.mxu1 %v12387_v48 }
 0x1d5   : > { %v11044_v49 = vpop.f32.mrb[49].mxu0 }
 0x1d6   : > { %v11155_v37 = vpop.f32.mrb[48].mxu1  ;;  %v11045_v42 = vadd.f32 %v11044_v49, %v11043_v51  ;;  %v11046_v47 = vpop.f32.mrb[50].mxu0  ;;  %v3506_v51 = vrot.slane %v12373_v11, 1  ;;  %v3504_v11 = vsel %vm1867_vm9, %v3502_v16, %v3503_v13 }
 0x1d7   : > { %v11156_v50 = vpop.f32.mrb[49].mxu1  ;;  %v11047_v58 = vpop.f32.mrb[51].mxu0 }
 0x1d8   : > { %v11158_v56 = vpop.f32.mrb[50].mxu1  ;;  %v11157_v61 = vadd.f32 %v11156_v50, %v11155_v37  ;;  %v4407_v7 = vadd.f32 %v13552_v24, %v11045_v42  ;;  %v11048_v26 = vadd.f32 %v11047_v58, %v11046_v47  ;;  %v3508_v42 = vrot.slane %v12374_v22, 1  ;;  %v12376_v47 = vld [vmem:[#allocation2 + $0xc0] sm:$0xfe]  }
 0x1d9   : > { %v11159_v2 = vpop.f32.mrb[51].mxu1  ;;  %v3509_v58 = vrot.slane %v12375_v32, 1 }
 0x1da   : > { %v11160_v9 = vadd.f32 %v11159_v2, %v11158_v56  ;;  %v4410_v17 = vadd.f32 %v13552_v24, %v11048_v26  ;;  %v13564_v20 = vadd.f32 %v11157_v61, %v4407_v7  ;;  %v12377_v61 = vld [vmem:[#allocation2 + $0xc8] ss:$0 sps:$4 sm:$0x11]   ;;  %v3507_v2 = vsel %vm1867_vm9, %v3505_v31, %v3506_v51  ;;  %11936 = vmatmul.mubr.bf16.gmra.mrb[148].mxu0 %v3504_v11 }
 0x1db   : > { %11939 = vmatprep.mubr.bf16.mxu0 %v3507_v2  ;;  %v3512_v22 = vrot.slane %v12377_v61, 1  ;;  %v3510_v16 = vsel %vm1867_vm9, %v3508_v42, %v3509_v58 }
 0x1dc   : > { %v13568_v14 = vadd.f32 %v11160_v9, %v4410_v17  ;;  %v3511_v17 = vrot.slane %v12376_v47, 1  ;;  %v12388_v47 = vld [vmem:[#allocation9 + $0x60] sm:$0xff]  }
 0x1dd   : > { %11435 = vmatprep.subr.bf16.mxu1 %v12388_v47 }
 0x1de   : > { %v11049_v21 = vpop.f32.mrb[52].mxu0 }
 0x1df   : > { %v11050_v30 = vpop.f32.mrb[53].mxu0 }
 0x1e0   : > { %v11051_v36 = vadd.f32 %v11050_v30, %v11049_v21  ;;  %v11052_v19 = vpop.f32.mrb[54].mxu0  ;;  %v12378_v21 = vld [vmem:[#allocation2 + $0xcc] sm:$0xfe]   ;;  %v12379_v30 = vld [vmem:[#allocation2 + $0xd4] ss:$0 sps:$4 sm:$0x11]  }
 0x1e1   : > { %v11053_v37 = vpop.f32.mrb[55].mxu0 }
 0x1e2   : > { %v11054_v49 = vadd.f32 %v11053_v37, %v11052_v19  ;;  %v4415_v50 = vadd.f32 %v13552_v24, %v11051_v36  ;;  %v3513_v37 = vsel %vm1867_vm9, %v3511_v17, %v3512_v22  ;;  %11940 = vmatmul.mubr.bf16.gmra.mrb[152].mxu0 %v3510_v16 }
 0x1e3   : > { %v11161_v52 = vpop.f32.mrb[52].mxu1  ;;  %11943 = vmatprep.mubr.bf16.mxu0 %v3513_v37 }
 0x1e4   : > { %v11162_v38 = vpop.f32.mrb[53].mxu1  ;;  %v4418_v45 = vadd.f32 %v13552_v24, %v11054_v49  ;;  %v3514_v49 = vrot.slane %v12378_v21, 1 }
 0x1e5   : > { %v11163_v56 = vadd.f32 %v11162_v38, %v11161_v52  ;;  %v11164_v57 = vpop.f32.mrb[54].mxu1 }
 0x1e6   : > { %v11165_v63 = vpop.f32.mrb[55].mxu1 }
 0x1e7   : > { %v13573_v7 = vadd.f32 %v11163_v56, %v4415_v50  ;;  %v11166_v26 = vadd.f32 %v11165_v63, %v11164_v57  ;;  %v3515_v50 = vrot.slane %v12379_v30, 1  ;;  %v12389_v57 = vld [vmem:[#allocation9 + $0x20] sm:$0xff]  }
 0x1e8   : > { %11436 = vmatpush3.bf16.msra.mxu1 %v12389_v57 }
 0x1e9   : > { %v13576_v9 = vadd.f32 %v11166_v26, %v4418_v45  ;;  %v3516_v58 = vsel %vm1867_vm9, %v3514_v49, %v3515_v50 }
 0x1ea   : > { %11944 = vmatmul.mubr.bf16.gmra.mrb[156].mxu0 %v3516_v58 }
 0x1eb   : > { %v11055_v54 = vpop.f32.mrb[56].mxu0  ;;  %v11167_v51 = vpop.f32.mrb[56].mxu1 }
 0x1ec   : > { %v11056_v29 = vpop.f32.mrb[57].mxu0  ;;  %v11168_v52 = vpop.f32.mrb[57].mxu1 }
 0x1ed   : > { %v11057_v32 = vadd.f32 %v11056_v29, %v11055_v54  ;;  %v11058_v36 = vpop.f32.mrb[58].mxu0  ;;  %v11169_v38 = vadd.f32 %v11168_v52, %v11167_v51  ;;  %v11170_v48 = vpop.f32.mrb[58].mxu1 }
 0x1ee   : > { %v11059_v19 = vpop.f32.mrb[59].mxu0  ;;  %v11171_v45 = vpop.f32.mrb[59].mxu1 }
 0x1ef   : > { %v11060_v13 = vadd.f32 %v11059_v19, %v11058_v36  ;;  %v4423_v31 = vadd.f32 %v13552_v24, %v11057_v32  ;;  %v11172_v42 = vadd.f32 %v11171_v45, %v11170_v48 }
 0x1f1   : > { %v4426_v5 = vadd.f32 %v13552_v24, %v11060_v13  ;;  %v13582_v56 = vadd.f32 %v11169_v38, %v4423_v31 }
 0x1f3   : > { %v13585_v61 = vadd.f32 %v11172_v42, %v4426_v5  ;;  %v11061_v63 = vpop.f32.mrb[60].mxu0 }
 0x1f4   : > { %v11062_v11 = vpop.f32.mrb[61].mxu0  ;;  %v11173_v22 = vpop.f32.mrb[60].mxu1 }
 0x1f5   : > { %v11063_v26 = vadd.f32 %v11062_v11, %v11061_v63  ;;  %v11064_v2 = vpop.f32.mrb[62].mxu0  ;;  %v11174_v29 = vpop.f32.mrb[61].mxu1 }
 0x1f6   : > { %v11065_v17 = vpop.f32.mrb[63].mxu0  ;;  %v11175_v19 = vadd.f32 %v11174_v29, %v11173_v22  ;;  %v11176_v16 = vpop.f32.mrb[62].mxu1 }
 0x1f7   : > { %v11066_v21 = vadd.f32 %v11065_v17, %v11064_v2  ;;  %v4431_v54 = vadd.f32 %v13552_v24, %v11063_v26  ;;  %v11177_v49 = vpop.f32.mrb[63].mxu1 }
 0x1f8   : > { %v11178_v50 = vadd.f32 %v11177_v49, %v11176_v16 }
 0x1f9   : > { %v4434_v36 = vadd.f32 %v13552_v24, %v11066_v21  ;;  %v13589_v51 = vadd.f32 %v11175_v19, %v4431_v54 }
 0x1fb   : > { %v11195_v30 = vpop.f32.mrb[64].mxu0  ;;  %v13592_v38 = vadd.f32 %v11178_v50, %v4434_v36 }
 0x1fc   : > { %v11196_v32 = vpop.f32.mrb[65].mxu0 }
 0x1fd   : > { %v11197_v13 = vadd.f32 %v11196_v32, %v11195_v30  ;;  %v11198_v37 = vpop.f32.mrb[66].mxu0  ;;  %v11307_v47 = vpop.f32.mrb[64].mxu1 }
 0x1fe   : > { %v11199_v31 = vpop.f32.mrb[67].mxu0  ;;  %v11308_v42 = vpop.f32.mrb[65].mxu1 }
 0x1ff   : > { %v4633_v52 = vadd.f32 %v11197_v13, %v13431_v59  ;;  %v11200_v5 = vadd.f32 %v11199_v31, %v11198_v37  ;;  %v11309_v57 = vadd.f32 %v11308_v42, %v11307_v47  ;;  %v11310_v58 = vpop.f32.mrb[66].mxu1 }
 0x200   : > { %v11311_v26 = vpop.f32.mrb[67].mxu1 }
 0x201   : > { %v4636_v48 = vadd.f32 %v11200_v5, %v13434_v4  ;;  %v11312_v17 = vadd.f32 %v11311_v26, %v11310_v58  ;;  %v13596_v59 = vadd.f32 %v11309_v57, %v4633_v52 }
 0x203   : > { %v11201_v45 = vpop.f32.mrb[68].mxu0  ;;  %v13599_v30 = vadd.f32 %v11312_v17, %v4636_v48  ;;  %v12390_v48 = vld [vmem:[#allocation9 + $0x68] sm:$0xff]  }
 0x204   : > { %v11202_v24 = vpop.f32.mrb[69].mxu0  ;;  %11437 = vmatprep.subr.bf16.mxu1 %v12390_v48 }
 0x205   : > { %v11203_v63 = vadd.f32 %v11202_v24, %v11201_v45  ;;  %v11204_v11 = vpop.f32.mrb[70].mxu0  ;;  %v11313_v4 = vpop.f32.mrb[68].mxu1  ;;  %v12391_v24 = vld [vmem:[#allocation9 + $0x28] sm:$0xff]  }
 0x206   : > { %v11205_v2 = vpop.f32.mrb[71].mxu0  ;;  %v11314_v32 = vpop.f32.mrb[69].mxu1  ;;  %11438 = vmatpush3.bf16.msra.mxu1 %v12391_v24 }
 0x207   : > { %v4641_v21 = vadd.f32 %v11203_v63, %v13440_v40  ;;  %v11206_v54 = vadd.f32 %v11205_v2, %v11204_v11  ;;  %v11315_v19 = vadd.f32 %v11314_v32, %v11313_v4  ;;  %v11316_v16 = vpop.f32.mrb[70].mxu1 }
 0x208   : > { %v11317_v49 = vpop.f32.mrb[71].mxu1 }
 0x209   : > { %v4644_v22 = vadd.f32 %v11206_v54, %v13443_v44  ;;  %v11318_v50 = vadd.f32 %v11317_v49, %v11316_v16  ;;  %v13602_v52 = vadd.f32 %v11315_v19, %v4641_v21 }
 0x20b   : > { %v11207_v29 = vpop.f32.mrb[72].mxu0  ;;  %v13605_v47 = vadd.f32 %v11318_v50, %v4644_v22 }
 0x20c   : > { %v11208_v36 = vpop.f32.mrb[73].mxu0 }
 0x20d   : > { %v11209_v13 = vadd.f32 %v11208_v36, %v11207_v29  ;;  %v11210_v37 = vpop.f32.mrb[74].mxu0  ;;  %v11319_v45 = vpop.f32.mrb[72].mxu1 }
 0x20e   : > { %v11211_v31 = vpop.f32.mrb[75].mxu0  ;;  %v11320_v57 = vpop.f32.mrb[73].mxu1 }
 0x20f   : > { %v4649_v40 = vadd.f32 %v11209_v13, %v13450_v34  ;;  %v11212_v5 = vadd.f32 %v11211_v31, %v11210_v37  ;;  %v11321_v63 = vadd.f32 %v11320_v57, %v11319_v45  ;;  %v11322_v11 = vpop.f32.mrb[74].mxu1  ;;  %v12392_v13 = vld [vmem:[#allocation9 + $0xc0] sm:$0xff]  }
 0x210   : > { %v11323_v34 = vpop.f32.mrb[75].mxu1  ;;  %11539 = vmatprep.subr.bf16.mxu0 %v12392_v13 }
 0x211   : > { %v4652_v44 = vadd.f32 %v11212_v5, %v13453_v39  ;;  %v11324_v21 = vadd.f32 %v11323_v34, %v11322_v11  ;;  %v13608_v4 = vadd.f32 %v11321_v63, %v4649_v40  ;;  %v12393_v5 = vld [vmem:[#allocation9 + $0x80] sm:$0xff]   ;;  %v12398_v34 = vld [vmem:[#allocation9 + $0xd0] sm:$0xff]  }
 0x212   : > { %11540 = vmatpush3.bf16.msra.mxu0 %v12393_v5  ;;  %v12401_v5 = vld [vmem:[#allocation9 + $0x98] sm:$0xff]  }
 0x213   : > { %v11213_v42 = vpop.f32.mrb[76].mxu0  ;;  %v13611_v29 = vadd.f32 %v11324_v21, %v4652_v44  ;;  %v12396_v44 = vld [vmem:[#allocation9 + $0xc8] sm:$0xff]  }
 0x214   : > { %v11214_v58 = vpop.f32.mrb[77].mxu0  ;;  %11541 = vmatprep.subr.bf16.mxu0 %v12396_v44 }
 0x215   : > { %v11215_v26 = vadd.f32 %v11214_v58, %v11213_v42  ;;  %v11216_v2 = vpop.f32.mrb[78].mxu0  ;;  %v11325_v32 = vpop.f32.mrb[76].mxu1  ;;  %v12397_v58 = vld [vmem:[#allocation9 + $0x88] sm:$0xff]  }
 0x216   : > { %v11217_v17 = vpop.f32.mrb[79].mxu0  ;;  %v11326_v19 = vpop.f32.mrb[77].mxu1  ;;  %11542 = vmatpush3.bf16.msra.mxu0 %v12397_v58 }
 0x217   : > { %v4657_v54 = vadd.f32 %v11215_v26, %v13459_v18  ;;  %v11218_v39 = vadd.f32 %v11217_v17, %v11216_v2  ;;  %v11327_v37 = vadd.f32 %v11326_v19, %v11325_v32  ;;  %v11328_v49 = vpop.f32.mrb[78].mxu1  ;;  %11543 = vmatprep.subr.bf16.mxu0 %v12398_v34 }
 0x218   : > { %v11329_v48 = vpop.f32.mrb[79].mxu1 }
 0x219   : > { %v4660_v22 = vadd.f32 %v11218_v39, %v13466_v28  ;;  %v11330_v18 = vadd.f32 %v11329_v48, %v11328_v49  ;;  %v13614_v28 = vadd.f32 %v11327_v37, %v4657_v54  ;;  %v12400_v49 = vld [vmem:[#allocation9 + $0xd8] sm:$0xff]  }
 0x21b   : > { %v11219_v36 = vpop.f32.mrb[80].mxu0  ;;  %v13617_v57 = vadd.f32 %v11330_v18, %v4660_v22 }
 0x21c   : > { %v11220_v16 = vpop.f32.mrb[81].mxu0 }
 0x21d   : > { %v11221_v31 = vadd.f32 %v11220_v16, %v11219_v36  ;;  %v11222_v50 = vpop.f32.mrb[82].mxu0  ;;  %v11331_v63 = vpop.f32.mrb[80].mxu1  ;;  %v12399_v36 = vld [vmem:[#allocation9 + $0x90] sm:$0xff]  }
 0x21e   : > { %v11223_v45 = vpop.f32.mrb[83].mxu0  ;;  %v11332_v26 = vpop.f32.mrb[81].mxu1  ;;  %11544 = vmatpush3.bf16.msra.mxu0 %v12399_v36 }
 0x21f   : > { %v4665_v40 = vadd.f32 %v11221_v31, %v13487_v0  ;;  %v11224_v42 = vadd.f32 %v11223_v45, %v11222_v50  ;;  %v11333_v17 = vadd.f32 %v11332_v26, %v11331_v63  ;;  %v11334_v21 = vpop.f32.mrb[82].mxu1  ;;  %11545 = vmatprep.subr.bf16.mxu0 %v12400_v49  ;;  %v12402_v63 = vld [vmem:[#allocation9 + $0xe0] sm:$0xff]  }
 0x220   : > { %v11335_v54 = vpop.f32.mrb[83].mxu1 }
 0x221   : > { %v4668_v24 = vadd.f32 %v11224_v42, %v13491_v10  ;;  %v11336_v19 = vadd.f32 %v11335_v54, %v11334_v21  ;;  %v13620_v16 = vadd.f32 %v11333_v17, %v4665_v40  ;;  %v12406_v21 = vld [vmem:[#allocation9 + $0xe8] sm:$0xff]  }
 0x222   : > { %11546 = vmatpush3.bf16.msra.mxu0 %v12401_v5  ;;  %v12407_v54 = vld [vmem:[#allocation9 + $0xa8] sm:$0xff]  }
 0x223   : > { %v11225_v11 = vpop.f32.mrb[84].mxu0  ;;  %v13623_v37 = vadd.f32 %v11336_v19, %v4668_v24  ;;  %11547 = vmatprep.subr.bf16.mxu0 %v12402_v63 }
 0x224   : > { %v11226_v2 = vpop.f32.mrb[85].mxu0 }
 0x225   : > { %v11227_v0 = vadd.f32 %v11226_v2, %v11225_v11  ;;  %v11228_v39 = vpop.f32.mrb[86].mxu0  ;;  %v11337_v31 = vpop.f32.mrb[84].mxu1  ;;  %v12403_v2 = vld [vmem:[#allocation9 + $0xa0] sm:$0xff]  }
 0x226   : > { %v11229_v32 = vpop.f32.mrb[87].mxu0  ;;  %v11338_v48 = vpop.f32.mrb[85].mxu1  ;;  %11548 = vmatpush3.bf16.msra.mxu0 %v12403_v2 }
 0x227   : > { %v4673_v10 = vadd.f32 %v11227_v0, %v13497_v23  ;;  %v11230_v22 = vadd.f32 %v11229_v32, %v11228_v39  ;;  %v11339_v18 = vadd.f32 %v11338_v48, %v11337_v31  ;;  %v11340_v42 = vpop.f32.mrb[86].mxu1  ;;  %11549 = vmatprep.subr.bf16.mxu0 %v12406_v21  ;;  %v12394_v48 = vld [vmem:[#allocation9 + $0x70] sm:$0xff]  }
 0x228   : > { %v11341_v23 = vpop.f32.mrb[87].mxu1  ;;  %11439 = vmatprep.subr.bf16.mxu1 %v12394_v48 }
 0x229   : > { %v4676_v13 = vadd.f32 %v11230_v22, %v13502_v53  ;;  %v11342_v11 = vadd.f32 %v11341_v23, %v11340_v42  ;;  %v13626_v26 = vadd.f32 %v11339_v18, %v4673_v10  ;;  %v12395_v18 = vld [vmem:[#allocation9 + $0x30] sm:$0xff]  }
 0x22a   : > { %11550 = vmatpush3.bf16.msra.mxu0 %v12407_v54  ;;  %v12409_v42 = vld [vmem:[#allocation9 + $0xb0] sm:$0xff]   ;;  %11440 = vmatpush3.bf16.msra.mxu1 %v12395_v18  ;;  %v12405_v54 = vld [vmem:[#allocation9 + $0x38] sm:$0xff]  }
 0x22b   : > { %v11231_v50 = vpop.f32.mrb[88].mxu0  ;;  %v13629_v17 = vadd.f32 %v11342_v11, %v4676_v13 }
 0x22c   : > { %v11232_v45 = vpop.f32.mrb[89].mxu0 }
 0x22d   : > { %v11233_v44 = vadd.f32 %v11232_v45, %v11231_v50  ;;  %v11234_v58 = vpop.f32.mrb[90].mxu0  ;;  %v11343_v0 = vpop.f32.mrb[88].mxu1  ;;  %v12408_v50 = vld [vmem:[#allocation9 + $0xf0] sm:$0xff]  }
 0x22e   : > { %v11235_v40 = vpop.f32.mrb[91].mxu0  ;;  %v11344_v32 = vpop.f32.mrb[89].mxu1  ;;  %11551 = vmatprep.subr.bf16.mxu0 %v12408_v50 }
 0x22f   : > { %v4681_v53 = vadd.f32 %v11233_v44, %v13508_v6  ;;  %v11236_v24 = vadd.f32 %v11235_v40, %v11234_v58  ;;  %v11345_v19 = vadd.f32 %v11344_v32, %v11343_v0  ;;  %v11346_v22 = vpop.f32.mrb[90].mxu1  ;;  %11552 = vmatpush3.bf16.msra.mxu0 %v12409_v42  ;;  %v12410_v32 = vld [vmem:[#allocation9 + $0xf8] sm:$0xff]  }
 0x230   : > { %v11347_v10 = vpop.f32.mrb[91].mxu1  ;;  %11553 = vmatprep.subr.bf16.mxu0 %v12410_v32 }
 0x231   : > { %v4684_v34 = vadd.f32 %v11236_v24, %v13515_v1  ;;  %v11348_v5 = vadd.f32 %v11347_v10, %v11346_v22  ;;  %v13632_v45 = vadd.f32 %v11345_v19, %v4681_v53  ;;  %v12404_v53 = vld [vmem:[#allocation9 + $0x78] sm:$0xff]  }
 0x232   : > { %11441 = vmatprep.subr.bf16.mxu1 %v12404_v53 }
 0x233   : > { %v11237_v39 = vpop.f32.mrb[92].mxu0  ;;  %v13635_v58 = vadd.f32 %v11348_v5, %v4684_v34  ;;  %11442 = vmatpush3.bf16.msra.mxu1 %v12405_v54 }
 0x234   : > { %v11238_v36 = vpop.f32.mrb[93].mxu0 }
 0x235   : > { %v11239_v6 = vadd.f32 %v11238_v36, %v11237_v39  ;;  %v11240_v49 = vpop.f32.mrb[94].mxu0  ;;  %v11349_v23 = vpop.f32.mrb[92].mxu1 }
 0x236   : > { %v11241_v31 = vpop.f32.mrb[95].mxu0  ;;  %v11350_v63 = vpop.f32.mrb[93].mxu1 }
 0x237   : > { %v4689_v1 = vadd.f32 %v11239_v6, %v13521_v8  ;;  %v11242_v13 = vadd.f32 %v11241_v31, %v11240_v49  ;;  %v11351_v24 = vadd.f32 %v11350_v63, %v11349_v23  ;;  %v11352_v8 = vpop.f32.mrb[94].mxu1 }
 0x238   : > { %v11353_v0 = vpop.f32.mrb[95].mxu1 }
 0x239   : > { %v4692_v44 = vadd.f32 %v11242_v13, %v13525_v12  ;;  %v11354_v36 = vadd.f32 %v11353_v0, %v11352_v8  ;;  %v13638_v19 = vadd.f32 %v11351_v24, %v4689_v1 }
 0x23b   : > { %v11243_v40 = vpop.f32.mrb[96].mxu0  ;;  %v13641_v6 = vadd.f32 %v11354_v36, %v4692_v44 }
 0x23c   : > { %v11244_v11 = vpop.f32.mrb[97].mxu0 }
 0x23d   : > { %v11245_v2 = vadd.f32 %v11244_v11, %v11243_v40  ;;  %v11246_v21 = vpop.f32.mrb[98].mxu0  ;;  %v11355_v49 = vpop.f32.mrb[96].mxu1 }
 0x23e   : > { %v11247_v39 = vpop.f32.mrb[99].mxu0  ;;  %v11356_v31 = vpop.f32.mrb[97].mxu1 }
 0x23f   : > { %v4697_v12 = vadd.f32 %v11245_v2, %v13529_v43  ;;  %v11248_v34 = vadd.f32 %v11247_v39, %v11246_v21  ;;  %v11357_v5 = vadd.f32 %v11356_v31, %v11355_v49  ;;  %v11358_v13 = vpop.f32.mrb[98].mxu1  ;;  %v12412_v39 = vld [vmem:[#allocation9 + $0xb8] sm:$0xff]  }
 0x240   : > { %v11359_v42 = vpop.f32.mrb[99].mxu1  ;;  %11554 = vmatpush3.bf16.msra.mxu0 %v12412_v39 }
 0x241   : > { %v4700_v22 = vadd.f32 %v11248_v34, %v13532_v55  ;;  %v11360_v23 = vadd.f32 %v11359_v42, %v11358_v13  ;;  %v13644_v63 = vadd.f32 %v11357_v5, %v4697_v12 }
 0x243   : > { %v11249_v10 = vpop.f32.mrb[100].mxu0  ;;  %v13647_v44 = vadd.f32 %v11360_v23, %v4700_v22 }
 0x244   : > { %v11250_v50 = vpop.f32.mrb[101].mxu0 }
 0x245   : > { %v11251_v48 = vadd.f32 %v11250_v50, %v11249_v10  ;;  %v11252_v18 = vpop.f32.mrb[102].mxu0  ;;  %v11361_v11 = vpop.f32.mrb[100].mxu1 }
 0x246   : > { %v11253_v43 = vpop.f32.mrb[103].mxu0  ;;  %v11362_v24 = vpop.f32.mrb[101].mxu1 }
 0x247   : > { %v4705_v1 = vadd.f32 %v11251_v48, %v13537_v27  ;;  %v11254_v40 = vadd.f32 %v11253_v43, %v11252_v18  ;;  %v11363_v8 = vadd.f32 %v11362_v24, %v11361_v11  ;;  %v11364_v2 = vpop.f32.mrb[102].mxu1 }
 0x248   : > { %v11365_v53 = vpop.f32.mrb[103].mxu1 }
 0x249   : > { %v4708_v55 = vadd.f32 %v11254_v40, %v13539_v33  ;;  %v11366_v54 = vadd.f32 %v11365_v53, %v11364_v2  ;;  %v13649_v34 = vadd.f32 %v11363_v8, %v4705_v1 }
 0x24b   : > { %v11255_v21 = vpop.f32.mrb[104].mxu0  ;;  %v13652_v22 = vadd.f32 %v11366_v54, %v4708_v55 }
 0x24c   : > { %v11256_v0 = vpop.f32.mrb[105].mxu0 }
 0x24d   : > { %v11257_v32 = vadd.f32 %v11256_v0, %v11255_v21  ;;  %v11258_v36 = vpop.f32.mrb[106].mxu0  ;;  %v11367_v49 = vpop.f32.mrb[104].mxu1 }
 0x24e   : > { %v11259_v27 = vpop.f32.mrb[107].mxu0  ;;  %v11368_v31 = vpop.f32.mrb[105].mxu1 }
 0x24f   : > { %v4713_v12 = vadd.f32 %v11257_v32, %v13545_v62  ;;  %v11260_v33 = vadd.f32 %v11259_v27, %v11258_v36  ;;  %v11369_v50 = vadd.f32 %v11368_v31, %v11367_v49  ;;  %v11370_v5 = vpop.f32.mrb[106].mxu1 }
 0x250   : > { %v11371_v48 = vpop.f32.mrb[107].mxu1 }
 0x251   : > { %v4716_v10 = vadd.f32 %v11260_v33, %v13547_v15  ;;  %v11372_v42 = vadd.f32 %v11371_v48, %v11370_v5  ;;  %v13655_v1 = vadd.f32 %v11369_v50, %v4713_v12 }
 0x253   : > { %v11261_v13 = vpop.f32.mrb[108].mxu0  ;;  %v13658_v55 = vadd.f32 %v11372_v42, %v4716_v10 }
 0x254   : > { %v11262_v18 = vpop.f32.mrb[109].mxu0 }
 0x255   : > { %v11263_v43 = vadd.f32 %v11262_v18, %v11261_v13  ;;  %v11264_v23 = vpop.f32.mrb[110].mxu0  ;;  %v11373_v24 = vpop.f32.mrb[108].mxu1  ;;  %v12418_v13 = vld [vmem:[#allocation9 + $0x140] sm:$0xff]  }
 0x256   : > { %v11265_v40 = vpop.f32.mrb[111].mxu0  ;;  %v11374_v8 = vpop.f32.mrb[109].mxu1  ;;  %11651 = vmatprep.subr.bf16.mxu1 %v12418_v13 }
 0x257   : > { %v4721_v62 = vadd.f32 %v11263_v43, %v13558_v3  ;;  %v11266_v11 = vadd.f32 %v11265_v40, %v11264_v23  ;;  %v11375_v2 = vadd.f32 %v11374_v8, %v11373_v24  ;;  %v11376_v21 = vpop.f32.mrb[110].mxu1 }
 0x258   : > { %v11377_v53 = vpop.f32.mrb[111].mxu1 }
 0x259   : > { %v4724_v15 = vadd.f32 %v11266_v11, %v13560_v60  ;;  %v11378_v0 = vadd.f32 %v11377_v53, %v11376_v21  ;;  %v13661_v54 = vadd.f32 %v11375_v2, %v4721_v62 }
 0x25b   : > { %v11267_v39 = vpop.f32.mrb[112].mxu0  ;;  %v13663_v12 = vadd.f32 %v11378_v0, %v4724_v15 }
 0x25c   : > { %v11268_v32 = vpop.f32.mrb[113].mxu0 }
 0x25d   : > { %v11269_v36 = vadd.f32 %v11268_v32, %v11267_v39  ;;  %v11270_v27 = vpop.f32.mrb[114].mxu0  ;;  %v11379_v49 = vpop.f32.mrb[112].mxu1 }
 0x25e   : > { %v11271_v3 = vpop.f32.mrb[115].mxu0  ;;  %v11380_v31 = vpop.f32.mrb[113].mxu1 }
 0x25f   : > { %v4729_v33 = vadd.f32 %v11269_v36, %v13564_v20  ;;  %v11272_v10 = vadd.f32 %v11271_v3, %v11270_v27  ;;  %v11381_v50 = vadd.f32 %v11380_v31, %v11379_v49  ;;  %v11382_v5 = vpop.f32.mrb[114].mxu1 }
 0x260   : > { %v11383_v48 = vpop.f32.mrb[115].mxu1 }
 0x261   : > { %v4732_v60 = vadd.f32 %v11272_v10, %v13568_v14  ;;  %v11384_v18 = vadd.f32 %v11383_v48, %v11382_v5  ;;  %v13667_v42 = vadd.f32 %v11381_v50, %v4729_v33 }
 0x263   : > { %v11273_v43 = vpop.f32.mrb[116].mxu0  ;;  %v13669_v23 = vadd.f32 %v11384_v18, %v4732_v60 }
 0x264   : > { %v11274_v40 = vpop.f32.mrb[117].mxu0 }
 0x265   : > { %v11275_v62 = vadd.f32 %v11274_v40, %v11273_v43  ;;  %v11276_v11 = vpop.f32.mrb[118].mxu0  ;;  %v11385_v20 = vpop.f32.mrb[116].mxu1 }
 0x266   : > { %v11277_v24 = vpop.f32.mrb[119].mxu0  ;;  %v11386_v14 = vpop.f32.mrb[117].mxu1 }
 0x267   : > { %v4737_v15 = vadd.f32 %v11275_v62, %v13573_v7  ;;  %v11278_v8 = vadd.f32 %v11277_v24, %v11276_v11  ;;  %v11387_v2 = vadd.f32 %v11386_v14, %v11385_v20  ;;  %v11388_v21 = vpop.f32.mrb[118].mxu1 }
 0x268   : > { %v11389_v0 = vpop.f32.mrb[119].mxu1 }
 0x269   : > { %v4740_v53 = vadd.f32 %v11278_v8, %v13576_v9  ;;  %v11390_v39 = vadd.f32 %v11389_v0, %v11388_v21  ;;  %v13673_v32 = vadd.f32 %v11387_v2, %v4737_v15 }
 0x26b   : > { %v13675_v36 = vadd.f32 %v11390_v39, %v4740_v53  ;;  %v11279_v27 = vpop.f32.mrb[120].mxu0 }
 0x26c   : > { %v11280_v3 = vpop.f32.mrb[121].mxu0 }
 0x26d   : > { %v11281_v33 = vadd.f32 %v11280_v3, %v11279_v27  ;;  %v11282_v49 = vpop.f32.mrb[122].mxu0 }
 0x26e   : > { %v11283_v10 = vpop.f32.mrb[123].mxu0 }
 0x26f   : > { %v4745_v31 = vadd.f32 %v11281_v33, %v13582_v56  ;;  %v11284_v7 = vadd.f32 %v11283_v10, %v11282_v49 }
 0x271   : > { %v4748_v60 = vadd.f32 %v11284_v7, %v13585_v61  ;;  %v11391_v50 = vpop.f32.mrb[120].mxu1 }
 0x272   : > { %v11392_v5 = vpop.f32.mrb[121].mxu1 }
 0x273   : > { %v11393_v9 = vadd.f32 %v11392_v5, %v11391_v50  ;;  %v11394_v48 = vpop.f32.mrb[122].mxu1 }
 0x274   : > { %v11285_v13 = vpop.f32.mrb[124].mxu0  ;;  %v11395_v43 = vpop.f32.mrb[123].mxu1 }
 0x275   : > { %v11286_v18 = vpop.f32.mrb[125].mxu0  ;;  %v11396_v11 = vadd.f32 %v11395_v43, %v11394_v48  ;;  %v13679_v24 = vadd.f32 %v11393_v9, %v4745_v31  ;;  %v5536_v43 = vld [vmem:[#allocation2 + $0x18] sm:$0xf] }
 0x276   : > { %v11287_v40 = vadd.f32 %v11286_v18, %v11285_v13  ;;  %v11288_v62 = vpop.f32.mrb[126].mxu0 }
 0x277   : > { %v11289_v20 = vpop.f32.mrb[127].mxu0  ;;  %v13682_v56 = vadd.f32 %v11396_v11, %v4748_v60 }
 0x278   : > { %v4753_v15 = vadd.f32 %v11287_v40, %v13589_v51  ;;  %v11290_v8 = vadd.f32 %v11289_v20, %v11288_v62 }
 0x27a   : > { %v4756_v61 = vadd.f32 %v11290_v8, %v13592_v38 }
 0x27c   : > { %v11917_v14 = vpop.f32.mrb[128].mxu0 }
 0x27d   : > { %v4963_v2 = vadd.f32 %v11917_v14, %v13602_v52  ;;  %v4954_v21 = vpop.f32.mrb[129].mxu0 }
 0x27e   : > { %v4955_v0 = vadd.f32 %v4954_v21, %v13596_v59  ;;  %v11918_v39 = vpop.f32.mrb[130].mxu0 }
 0x27f   : > { %v11397_v53 = vpop.f32.mrb[124].mxu1  ;;  %v5083_v3 = vmax.f32 %v4963_v2, 0.0  ;;  %v4966_v33 = vadd.f32 %v11918_v39, %v13605_v47  ;;  %v4957_v49 = vpop.f32.mrb[131].mxu0 }
 0x280   : > { %v11398_v27 = vpop.f32.mrb[125].mxu1  ;;  %v5081_v31 = vmax.f32 %v4955_v0, 0.0  ;;  %v4958_v7 = vadd.f32 %v4957_v49, %v13599_v30  ;;  %v5641_v30 = vld [vmem:[#allocation2] sm:$0xf] }
 0x281   : > { %v11399_v10 = vadd.f32 %v11398_v27, %v11397_v53  ;;  %v11400_v51 = vpop.f32.mrb[126].mxu1  ;;  %v10924_v38 = vpack.c.bf16 %v5083_v3, %v5083_v3  ;;  %v5084_v50 = vmax.f32 %v4966_v33, 0.0 }
 0x282   : > { %v11401_v60 = vpop.f32.mrb[127].mxu1  ;;  %v10922_v52 = vpack.c.bf16 %v5081_v31, %v5081_v31  ;;  %v5082_v13 = vmax.f32 %v4958_v7, 0.0  ;;  %v5540_v31 = vld [vmem:[#allocation2 + $0x20] sm:$0x1] }
 0x283   : > { %v11402_v5 = vadd.f32 %v11401_v60, %v11400_v51  ;;  %v13689_v9 = vadd.f32 %v11399_v10, %v4753_v15  ;;  %v5227_v59 = vshrl.u32 %v10924_v38, 16  ;;  %v5230_v48 = vshll.u32 %v10924_v38, 16  ;;  %v5529_v15 = vld [vmem:[#allocation2 + $0xc] sm:$0xf] }
 0x284   : > { %v10925_v18 = vpack.c.bf16 %v5084_v50, %v5084_v50  ;;  %v5210_v40 = vshrl.u32 %v10922_v52, 16  ;;  %v5213_v47 = vshll.u32 %v10922_v52, 16  ;;  %v10923_v62 = vpack.c.bf16 %v5082_v13, %v5082_v13  ;;  %v11921_v11 = vpop.f32.mrb[132].mxu0  ;;  %v5645_v50 = vld [vmem:[#allocation2 + $0x8] sm:$0x1] }
 0x285   : > { %v13691_v20 = vadd.f32 %v11402_v5, %v4756_v61  ;;  %v5229_v8 = vrot.slane %v5227_v59, 7  ;;  %v4979_v21 = vadd.f32 %v11921_v11, %v13614_v28  ;;  %v4970_v53 = vpop.f32.mrb[133].mxu0 }
 0x286   : > { %v5235_v14 = vshrl.u32 %v10925_v18, 16  ;;  %v5238_v2 = vshll.u32 %v10925_v18, 16  ;;  %v5212_v0 = vrot.slane %v5210_v40, 7  ;;  %v5218_v39 = vshrl.u32 %v10923_v62, 16  ;;  %v11922_v33 = vpop.f32.mrb[134].mxu0 }
 0x287   : > { %v5221_v27 = vshll.u32 %v10923_v62, 16  ;;  %v4971_v3 = vadd.f32 %v4970_v53, %v13608_v4  ;;  %v5232_v49 = vor.u32 %v5230_v48, %v5229_v8  ;;  %v5233_v10 = vrot.slane %v5229_v8, 4  ;;  %v4973_v7 = vpop.f32.mrb[135].mxu0  ;;  %v5533_v18 = vld [vmem:[#allocation2 + $0x14] sm:$0x1]  ;;  %v12471_v48 = vld [vmem:[#allocation9 + $0x1c0] sm:$0xff]  }
 0x288   : > { %v5237_v51 = vrot.slane %v5235_v14, 7  ;;  %v5087_v61 = vmax.f32 %v4979_v21, 0.0  ;;  %v5215_v60 = vor.u32 %v5213_v47, %v5212_v0  ;;  %v5216_v38 = vrot.slane %v5212_v0, 4  ;;  %11763 = vmatprep.subr.bf16.mxu0 %v12471_v48 }
 0x289   : > { %v5220_v5 = vrot.slane %v5218_v39, 7  ;;  %v5085_v52 = vmax.f32 %v4971_v3, 0.0  ;;  %v5537_v28 = vsel %vm13089_vm6, %v5232_v49, %v5536_v43  ;;  %v5642_v13 = vsel %vm13089_vm6, %v5232_v49, %v5641_v30 }
 0x28a   : > { %v5240_v59 = vor.u32 %v5238_v2, %v5237_v51  ;;  %v5242_v4 = vrot.slane %v5237_v51, 4  ;;  %5643 = vst [vmem:[#allocation2] sm:$0xf] %v5642_v13  ;;  %5538 = vst [vmem:[#allocation2 + $0x18] sm:$0xf] %v5537_v28  ;;  %v5530_v40 = vsel %vm13089_vm6, %v5215_v60, %v5529_v15  ;;  %v10928_v11 = vpack.c.bf16 %v5087_v61, %v5087_v61 }
 0x28b   : > { %v5223_v47 = vor.u32 %v5221_v27, %v5220_v5  ;;  %v5225_v62 = vrot.slane %v5220_v5, 4  ;;  %5531 = vst [vmem:[#allocation2 + $0xc] sm:$0xf] %v5530_v40  ;;  %v10926_v14 = vpack.c.bf16 %v5085_v52, %v5085_v52  ;;  %v4982_v27 = vadd.f32 %v11922_v33, %v13617_v57  ;;  %v5543_v33 = vld [vmem:[#allocation2 + $0x24] sm:$0xf] }
 0x28c   : > { %v5241_v8 = vsel %vm13084_vm4, %v5233_v10, %v5240_v59  ;;  %v5541_v43 = vsel %vm13096_vm7, %v5242_v4, %v5540_v31  ;;  %v5646_v30 = vsel %vm13096_vm7, %v5242_v4, %v5645_v50  ;;  %v5261_v53 = vshrl.u32 %v10928_v11, 16  ;;  %v11925_v0 = vpop.f32.mrb[136].mxu0 }
 0x28d   : > { %5539 = vst [vmem:[#allocation2 + $0x1c] sm:$0xf] %v5241_v8  ;;  %5542 = vst [vmem:[#allocation2 + $0x20] sm:$0x1] %v5541_v43  ;;  %v5224_v2 = vsel %vm13084_vm4, %v5216_v38, %v5223_v47  ;;  %v5534_v21 = vsel %vm13096_vm7, %v5225_v62, %v5533_v18  ;;  %v5264_v15 = vshll.u32 %v10928_v11, 16  ;;  %v5244_v39 = vshrl.u32 %v10926_v14, 16 }
 0x28e   : > { %5644 = vst [vmem:[#allocation2 + $0x4] sm:$0xf] %v5241_v8  ;;  %5647 = vst [vmem:[#allocation2 + $0x8] sm:$0x1] %v5646_v30  ;;  %v4974_v3 = vadd.f32 %v4973_v7, %v13611_v29  ;;  %v4986_v49 = vpop.f32.mrb[137].mxu0  ;;  %v13713_v10 = vrot.slane %v5261_v53, 7  ;;  %v4995_v31 = vadd.f32 %v11925_v0, %v13626_v26 }
 0x28f   : > { %5532 = vst [vmem:[#allocation2 + $0x10] sm:$0xf] %v5224_v2  ;;  %5535 = vst [vmem:[#allocation2 + $0x14] sm:$0x1] %v5534_v21  ;;  %v5247_v51 = vshll.u32 %v10926_v14, 16  ;;  %v4987_v61 = vadd.f32 %v4986_v49, %v13620_v16  ;;  %v11926_v60 = vpop.f32.mrb[138].mxu0 }
 0x290   : > { %v5550_v38 = vld [vmem:[#allocation2 + $0x30] sm:$0xf]  ;;  %v13717_v50 = vrot.slane %v5244_v39, 7  ;;  %v5088_v5 = vmax.f32 %v4982_v27, 0.0  ;;  %v5086_v52 = vmax.f32 %v4974_v3, 0.0  ;;  %v13720_v28 = vadd.f32 %v11926_v60, %v13629_v17  ;;  %v4989_v57 = vpop.f32.mrb[139].mxu0 }
 0x291   : > { %v5266_v29 = vor.u32 %v5264_v15, %v13713_v10  ;;  %v5091_v7 = vmax.f32 %v4995_v31, 0.0  ;;  %v5089_v13 = vmax.f32 %v4987_v61, 0.0  ;;  %v5655_v59 = vld [vmem:[#allocation2] sm:$0x2]  ;;  %v5745_v48 = vld [vmem:[#allocation2] sm:$0x1]  ;;  %v4990_v14 = vadd.f32 %v4989_v57, %v13623_v37 }
 0x292   : > { %v5249_v26 = vor.u32 %v5247_v51, %v13717_v50  ;;  %v10929_v4 = vpack.c.bf16 %v5088_v5, %v5088_v5  ;;  %v10927_v16 = vpack.c.bf16 %v5086_v52, %v5086_v52  ;;  %v10535_v18 = vrot.slane %v5655_v59, 9  ;;  %v5554_v31 = vld [vmem:[#allocation2 + $0x38] sm:$0x1]  ;;  %v5547_v60 = vld [vmem:[#allocation2 + $0x2c] sm:$0x1] }
 0x293   : > { %v5267_v40 = vrot.slane %v13713_v10, 4  ;;  %v5551_v47 = vsel %vm13089_vm6, %v5266_v29, %v5550_v38  ;;  %v10932_v17 = vpack.c.bf16 %v5091_v7, %v5091_v7  ;;  %v5250_v8 = vrot.slane %v13717_v50, 4  ;;  %v5564_v29 = vld [vmem:[#allocation2 + $0x48] sm:$0xf] }
 0x294   : > { %v5801_v11 = vld [vmem:[#allocation2 + $0x1c] sm:$0x8]  ;;  %5552 = vst [vmem:[#allocation2 + $0x30] sm:$0xf] %v5551_v47  ;;  %v5544_v43 = vsel %vm13089_vm6, %v5249_v26, %v5543_v33  ;;  %v10930_v30 = vpack.c.bf16 %v5089_v13, %v5089_v13  ;;  %v5746_v2 = vsel %vm13096_vm7, %v10535_v18, %v5745_v48  ;;  %v5895_v39 = vld [vmem:[#allocation2 + $0x20] sm:$0x1] }
 0x295   : > { %v5799_v62 = vld [vmem:[#allocation2 + $0x4] sm:$0x8]  ;;  %v10555_v53 = vrot.slane %v5801_v11, 11  ;;  %v5889_v0 = vld [vmem:[#allocation2 + $0x8] sm:$0x1]  ;;  %v5269_v3 = vshrl.u32 %v10929_v4, 16 }
 0x296   : > { %v10553_v21 = vrot.slane %v5799_v62, 11  ;;  %v13733_v15 = vld [vmem:[#allocation2 + $0x10] sm:$0x8]  ;;  %5545 = vst [vmem:[#allocation2 + $0x24] sm:$0xf] %v5544_v43  ;;  %v5272_v49 = vshll.u32 %v10929_v4, 16 }
 0x297   : > { %5747 = vst [vmem:[#allocation2] sm:$0x1] %v5746_v2  ;;  %v10554_v27 = vrot.slane %v13733_v15, 11  ;;  %v5252_v10 = vshrl.u32 %v10927_v16, 16  ;;  %v5896_v37 = vsel %vm13122_vm8, %v10555_v53, %v5895_v39  ;;  %v5255_v61 = vshll.u32 %v10927_v16, 16 }
 0x298   : > { %v5890_v51 = vsel %vm13122_vm8, %v10553_v21, %v5889_v0  ;;  %v5295_v38 = vshrl.u32 %v10932_v17, 16  ;;  %5897 = vst [vmem:[#allocation2 + $0x20] sm:$0x1] %v5896_v37  ;;  %v5271_v5 = vrot.slane %v5269_v3, 7  ;;  %v5298_v57 = vshll.u32 %v10932_v17, 16 }
 0x299   : > { %5891 = vst [vmem:[#allocation2 + $0x8] sm:$0x1] %v5890_v51  ;;  %v5254_v52 = vrot.slane %v5252_v10, 7  ;;  %v5278_v33 = vshrl.u32 %v10930_v30, 16  ;;  %v5281_v59 = vshll.u32 %v10930_v30, 16  ;;  %v5092_v26 = vmax.f32 %v13720_v28, 0.0 }
 0x29a   : > { %v11929_v50 = vpop.f32.mrb[140].mxu0  ;;  %v5297_v13 = vrot.slane %v5295_v38, 7  ;;  %v5090_v4 = vmax.f32 %v4990_v14, 0.0  ;;  %v5274_v48 = vor.u32 %v5272_v49, %v5271_v5  ;;  %v5276_v47 = vrot.slane %v5271_v5, 4  ;;  %v5557_v0 = vld [vmem:[#allocation2 + $0x3c] sm:$0xf] }
 0x29b   : > { %v5002_v7 = vpop.f32.mrb[141].mxu0  ;;  %v5257_v16 = vor.u32 %v5255_v61, %v5254_v52  ;;  %v5259_v62 = vrot.slane %v5254_v52, 4  ;;  %v13741_v21 = vrot.slane %v5278_v33, 7  ;;  %v10933_v53 = vpack.c.bf16 %v5092_v26, %v5092_v26 }
 0x29c   : > { %v11930_v18 = vpop.f32.mrb[142].mxu0  ;;  %v5300_v43 = vor.u32 %v5298_v57, %v5297_v13  ;;  %v5301_v2 = vrot.slane %v5297_v13, 4  ;;  %v5275_v17 = vsel %vm13084_vm4, %v5267_v40, %v5274_v48  ;;  %v5555_v30 = vsel %vm13096_vm7, %v5276_v47, %v5554_v31 }
 0x29d   : > { %v5005_v11 = vpop.f32.mrb[143].mxu0  ;;  %v5258_v28 = vsel %vm13084_vm4, %v5250_v8, %v5257_v16  ;;  %v5548_v14 = vsel %vm13096_vm7, %v5259_v62, %v5547_v60  ;;  %5553 = vst [vmem:[#allocation2 + $0x34] sm:$0xf] %v5275_v17  ;;  %5556 = vst [vmem:[#allocation2 + $0x38] sm:$0x1] %v5555_v30  ;;  %v5283_v3 = vor.u32 %v5281_v59, %v13741_v21  ;;  %v5284_v40 = vrot.slane %v13741_v21, 4 }
 0x29e   : > { %5546 = vst [vmem:[#allocation2 + $0x28] sm:$0xf] %v5258_v28  ;;  %5549 = vst [vmem:[#allocation2 + $0x2c] sm:$0x1] %v5548_v14  ;;  %v5565_v39 = vsel %vm13089_vm6, %v5300_v43, %v5564_v29  ;;  %v5303_v49 = vshrl.u32 %v10933_v53, 16  ;;  %v5306_v51 = vshll.u32 %v10933_v53, 16  ;;  %v10931_v37 = vpack.c.bf16 %v5090_v4, %v5090_v4 }
 0x29f   : > { %5566 = vst [vmem:[#allocation2 + $0x48] sm:$0xf] %v5565_v39  ;;  %v5568_v8 = vld [vmem:[#allocation2 + $0x50] sm:$0x1]  ;;  %v5011_v31 = vadd.f32 %v11929_v50, %v13638_v19  ;;  %v5003_v61 = vadd.f32 %v5002_v7, %v13632_v45  ;;  %v5558_v38 = vsel %vm13089_vm6, %v5283_v3, %v5557_v0  ;;  %v5014_v52 = vadd.f32 %v11930_v18, %v13641_v6  ;;  %v5561_v17 = vld [vmem:[#allocation2 + $0x44] sm:$0x1] }
 0x2a0   : > { %v5305_v5 = vrot.slane %v5303_v49, 7  ;;  %v5006_v57 = vadd.f32 %v5005_v11, %v13635_v58  ;;  %5559 = vst [vmem:[#allocation2 + $0x3c] sm:$0xf] %v5558_v38  ;;  %v5286_v33 = vshrl.u32 %v10931_v37, 16  ;;  %v5289_v13 = vshll.u32 %v10931_v37, 16 }
 0x2a1   : > { %v5095_v59 = vmax.f32 %v5011_v31, 0.0  ;;  %v5093_v26 = vmax.f32 %v5003_v61, 0.0  ;;  %v5096_v50 = vmax.f32 %v5014_v52, 0.0  ;;  %v5571_v38 = vld [vmem:[#allocation2 + $0x54] sm:$0xf] }
 0x2a2   : > { %v5308_v48 = vor.u32 %v5306_v51, %v5305_v5  ;;  %v5310_v19 = vrot.slane %v5305_v5, 4  ;;  %v5094_v45 = vmax.f32 %v5006_v57, 0.0  ;;  %v5288_v7 = vrot.slane %v5286_v33, 7 }
 0x2a3   : > { %v10936_v47 = vpack.c.bf16 %v5095_v59, %v5095_v59  ;;  %v10934_v16 = vpack.c.bf16 %v5093_v26, %v5093_v26  ;;  %v10937_v18 = vpack.c.bf16 %v5096_v50, %v5096_v50  ;;  %v5582_v26 = vld [vmem:[#allocation2 + $0x68] sm:$0x1] }
 0x2a4   : > { %v5309_v6 = vsel %vm13084_vm4, %v5301_v2, %v5308_v48  ;;  %v5569_v58 = vsel %vm13096_vm7, %v5310_v19, %v5568_v8  ;;  %v10935_v11 = vpack.c.bf16 %v5094_v45, %v5094_v45  ;;  %v5803_v43 = vld [vmem:[#allocation2 + $0x34] sm:$0x8]  ;;  %v5291_v53 = vor.u32 %v5289_v13, %v5288_v7  ;;  %v5901_v14 = vld [vmem:[#allocation2 + $0x38] sm:$0x1] }
 0x2a5   : > { %v11933_v10 = vpop.f32.mrb[144].mxu0  ;;  %v5802_v21 = vld [vmem:[#allocation2 + $0x28] sm:$0x8]  ;;  %5567 = vst [vmem:[#allocation2 + $0x4c] sm:$0xf] %v5309_v6  ;;  %v10557_v2 = vrot.slane %v5803_v43, 11 }
 0x2a6   : > { %v5018_v60 = vpop.f32.mrb[145].mxu0  ;;  %v5027_v62 = vadd.f32 %v11933_v10, %v13649_v34  ;;  %5570 = vst [vmem:[#allocation2 + $0x50] sm:$0x1] %v5569_v58  ;;  %v10556_v0 = vrot.slane %v5802_v21, 11  ;;  %v5293_v39 = vrot.slane %v5288_v7, 4  ;;  %v5329_v3 = vshrl.u32 %v10936_v47, 16 }
 0x2a7   : > { %v11934_v29 = vpop.f32.mrb[146].mxu0  ;;  %v13767_v30 = vadd.f32 %v5018_v60, %v13644_v63  ;;  %v5898_v49 = vld [vmem:[#allocation2 + $0x2c] sm:$0x1]  ;;  %v5292_v10 = vsel %vm13084_vm4, %v5284_v40, %v5291_v53  ;;  %v5332_v51 = vshll.u32 %v10936_v47, 16  ;;  %v5312_v8 = vshrl.u32 %v10934_v16, 16 }
 0x2a8   : > { %v5021_v4 = vpop.f32.mrb[147].mxu0  ;;  %v13770_v28 = vadd.f32 %v11934_v29, %v13652_v22  ;;  %v5315_v37 = vshll.u32 %v10934_v16, 16  ;;  %v5902_v22 = vsel %vm13122_vm8, %v10557_v2, %v5901_v14  ;;  %5560 = vst [vmem:[#allocation2 + $0x40] sm:$0xf] %v5292_v10  ;;  %v5562_v31 = vsel %vm13096_vm7, %v5293_v39, %v5561_v17  ;;  %v5578_v60 = vld [vmem:[#allocation2 + $0x60] sm:$0xf] }
 0x2a9   : > { %v13773_v34 = vadd.f32 %v5021_v4, %v13647_v44  ;;  %v5899_v44 = vsel %vm13122_vm8, %v10556_v0, %v5898_v49  ;;  %v5331_v61 = vrot.slane %v5329_v3, 7  ;;  %5903 = vst [vmem:[#allocation2 + $0x38] sm:$0x1] %v5902_v22  ;;  %5563 = vst [vmem:[#allocation2 + $0x44] sm:$0x1] %v5562_v31  ;;  %v5314_v40 = vrot.slane %v5312_v8, 7 }
 0x2aa   : > { %5900 = vst [vmem:[#allocation2 + $0x2c] sm:$0x1] %v5899_v44  ;;  %v5337_v52 = vshrl.u32 %v10937_v18, 16  ;;  %v5340_v57 = vshll.u32 %v10937_v18, 16  ;;  %v5320_v29 = vshrl.u32 %v10935_v11, 16  ;;  %v5323_v4 = vshll.u32 %v10935_v11, 16 }
 0x2ab   : > { %v5334_v13 = vor.u32 %v5332_v51, %v5331_v61  ;;  %v5335_v59 = vrot.slane %v5331_v61, 4  ;;  %v5099_v48 = vmax.f32 %v5027_v62, 0.0  ;;  %v5317_v50 = vor.u32 %v5315_v37, %v5314_v40  ;;  %v5575_v16 = vld [vmem:[#allocation2 + $0x5c] sm:$0x1]  ;;  %v5656_v14 = vld [vmem:[#allocation2 + $0xc] sm:$0x2] }
 0x2ac   : > { %v5318_v45 = vrot.slane %v5314_v40, 4  ;;  %v5339_v7 = vrot.slane %v5337_v52, 7  ;;  %v5322_v47 = vrot.slane %v5320_v29, 7  ;;  %v5805_v6 = vld [vmem:[#allocation2 + $0x4c] sm:$0x8]  ;;  %v5097_v21 = vmax.f32 %v13767_v30, 0.0 }
 0x2ad   : > { %v13777_v63 = vpop.f32.mrb[148].mxu0  ;;  %v5907_v58 = vld [vmem:[#allocation2 + $0x50] sm:$0x1]  ;;  %v5579_v18 = vsel %vm13089_vm6, %v5334_v13, %v5578_v60  ;;  %v10940_v43 = vpack.c.bf16 %v5099_v48, %v5099_v48  ;;  %v5100_v53 = vmax.f32 %v13770_v28, 0.0  ;;  %v10559_v17 = vrot.slane %v5805_v6, 11 }
 0x2ae   : > { %v13785_v5 = vpop.f32.mrb[149].mxu0  ;;  %5580 = vst [vmem:[#allocation2 + $0x60] sm:$0xf] %v5579_v18  ;;  %v5572_v62 = vsel %vm13089_vm6, %v5317_v50, %v5571_v38  ;;  %v5342_v11 = vor.u32 %v5340_v57, %v5339_v7  ;;  %v5344_v2 = vrot.slane %v5339_v7, 4  ;;  %v5325_v0 = vor.u32 %v5323_v4, %v5322_v47  ;;  %v5592_v37 = vld [vmem:[#allocation2 + $0x78] sm:$0xf] }
 0x2af   : > { %v13787_v33 = vpop.f32.mrb[150].mxu0  ;;  %5573 = vst [vmem:[#allocation2 + $0x54] sm:$0xf] %v5572_v62  ;;  %v5327_v39 = vrot.slane %v5322_v47, 4  ;;  %v5363_v3 = vshrl.u32 %v10940_v43, 16  ;;  %v5366_v49 = vshll.u32 %v10940_v43, 16  ;;  %v5908_v30 = vsel %vm13122_vm8, %v10559_v17, %v5907_v58 }
 0x2b0   : > { %v13789_v19 = vpop.f32.mrb[151].mxu0  ;;  %v5804_v51 = vld [vmem:[#allocation2 + $0x40] sm:$0x8]  ;;  %v5343_v28 = vsel %vm13084_vm4, %v5335_v59, %v5342_v11  ;;  %v5583_v8 = vsel %vm13096_vm7, %v5344_v2, %v5582_v26  ;;  %v10938_v22 = vpack.c.bf16 %v5097_v21, %v5097_v21  ;;  %5909 = vst [vmem:[#allocation2 + $0x50] sm:$0x1] %v5908_v30  ;;  %v5326_v38 = vsel %vm13084_vm4, %v5318_v45, %v5325_v0 }
 0x2b1   : > { %v12413_v44 = vld [vmem:[#allocation2] sm:$0xfe]   ;;  %v10558_v61 = vrot.slane %v5804_v51, 11  ;;  %5581 = vst [vmem:[#allocation2 + $0x64] sm:$0xf] %v5343_v28  ;;  %v5576_v40 = vsel %vm13096_vm7, %v5327_v39, %v5575_v16  ;;  %v5365_v52 = vrot.slane %v5363_v3, 7  ;;  %v10941_v26 = vpack.c.bf16 %v5100_v53, %v5100_v53 }
 0x2b2   : > { %v5904_v60 = vld [vmem:[#allocation2 + $0x44] sm:$0x1]  ;;  %5584 = vst [vmem:[#allocation2 + $0x68] sm:$0x1] %v5583_v8  ;;  %5574 = vst [vmem:[#allocation2 + $0x58] sm:$0xf] %v5326_v38  ;;  %v5043_v62 = vadd.f32 %v13777_v63, %v13661_v54  ;;  %v5035_v51 = vadd.f32 %v13785_v5, %v13655_v1 }
 0x2b3   : > { %v12414_v57 = vld [vmem:[#allocation2 + $0x8] ss:$0 sps:$4 sm:$0x11]   ;;  %5577 = vst [vmem:[#allocation2 + $0x5c] sm:$0x1] %v5576_v40  ;;  %v5346_v13 = vshrl.u32 %v10938_v22, 16  ;;  %v5905_v50 = vsel %vm13122_vm8, %v10558_v61, %v5904_v60  ;;  %v5368_v45 = vor.u32 %v5366_v49, %v5365_v52 }
 0x2b4   : > { %v5349_v59 = vshll.u32 %v10938_v22, 16  ;;  %v5098_v4 = vmax.f32 %v13773_v34, 0.0  ;;  %v5369_v7 = vrot.slane %v5365_v52, 4  ;;  %v10536_v47 = vrot.slane %v5656_v14, 9  ;;  %5906 = vst [vmem:[#allocation2 + $0x44] sm:$0x1] %v5905_v50 }
 0x2b5   : > { %v13797_v10 = vpop.f32.mrb[152].mxu0  ;;  %v5348_v16 = vrot.slane %v5346_v13, 7  ;;  %v5371_v6 = vshrl.u32 %v10941_v26, 16  ;;  %v5374_v58 = vshll.u32 %v10941_v26, 16  ;;  %v5748_v43 = vld [vmem:[#allocation2 + $0xc] sm:$0x1]  ;;  %v5593_v21 = vsel %vm13089_vm6, %v5368_v45, %v5592_v37 }
 0x2b6   : > { %v13805_v31 = vpop.f32.mrb[153].mxu0  ;;  %v10939_v18 = vpack.c.bf16 %v5098_v4, %v5098_v4  ;;  %v5585_v53 = vld [vmem:[#allocation2 + $0x6c] sm:$0xf]  ;;  %v5596_v17 = vld [vmem:[#allocation2 + $0x80] sm:$0x1]  ;;  %v5749_v34 = vsel %vm13096_vm7, %v10536_v47, %v5748_v43  ;;  %v6663_v11 = vrot.slane %v12413_v44, 1 }
 0x2b7   : > { %v13811_v29 = vpop.f32.mrb[154].mxu0  ;;  %5594 = vst [vmem:[#allocation2 + $0x78] sm:$0xf] %v5593_v21  ;;  %v5351_v2 = vor.u32 %v5349_v59, %v5348_v16  ;;  %v5352_v14 = vrot.slane %v5348_v16, 4  ;;  %v5373_v0 = vrot.slane %v5371_v6, 7  ;;  %v5103_v49 = vmax.f32 %v5043_v62, 0.0 }
 0x2b8   : > { %v13814_v48 = vpop.f32.mrb[155].mxu0  ;;  %v5354_v39 = vshrl.u32 %v10939_v18, 16  ;;  %5750 = vst [vmem:[#allocation2 + $0xc] sm:$0x1] %v5749_v34  ;;  %v5357_v3 = vshll.u32 %v10939_v18, 16  ;;  %v6664_v30 = vrot.slane %v12414_v57, 1 }
 0x2b9   : > { %v5657_v28 = vld [vmem:[#allocation2 + $0x18] sm:$0x2]  ;;  %v13826_v8 = vld [vmem:[#allocation2] sm:$0xff]   ;;  %v5913_v54 = vld [vmem:[#allocation2 + $0x68] sm:$0x1]  ;;  %v5586_v63 = vsel %vm13089_vm6, %v5351_v2, %v5585_v53  ;;  %v5376_v44 = vor.u32 %v5374_v58, %v5373_v0  ;;  %v5378_v61 = vrot.slane %v5373_v0, 4  ;;  %v10944_v13 = vpack.c.bf16 %v5103_v49, %v5103_v49 }
 0x2ba   : > { %v5807_v22 = vld [vmem:[#allocation2 + $0x64] sm:$0x8]  ;;  %v5356_v60 = vrot.slane %v5354_v39, 7  ;;  %v5589_v38 = vld [vmem:[#allocation2 + $0x74] sm:$0x1]  ;;  %v6665_v1 = vsel %vm1867_vm9, %v6663_v11, %v6664_v30  ;;  %v5101_v5 = vmax.f32 %v5035_v51, 0.0  ;;  %v5046_v30 = vadd.f32 %v13787_v33, %v13663_v12 }
 0x2bb   : > { %v10561_v40 = vrot.slane %v5807_v22, 11  ;;  %v5806_v52 = vld [vmem:[#allocation2 + $0x58] sm:$0x8]  ;;  %v5910_v57 = vld [vmem:[#allocation2 + $0x5c] sm:$0x1]  ;;  %v5377_v4 = vsel %vm13084_vm4, %v5369_v7, %v5376_v44  ;;  %v5597_v50 = vsel %vm13096_vm7, %v5378_v61, %v5596_v17  ;;  %v5397_v58 = vshrl.u32 %v10944_v13, 16 }
 0x2bc   : > { %5587 = vst [vmem:[#allocation2 + $0x6c] sm:$0xf] %v5586_v63  ;;  %v12417_v59 = vld [vmem:[#allocation2 + $0x8] ss:$0 sps:$4 sm:$0x11]   ;;  %v10560_v26 = vrot.slane %v5806_v52, 11  ;;  %v5359_v45 = vor.u32 %v5357_v3, %v5356_v60  ;;  %v10942_v17 = vpack.c.bf16 %v5101_v5, %v5101_v5  ;;  %v5038_v52 = vadd.f32 %v13789_v19, %v13658_v55 }
 0x2bd   : > { %v13828_v37 = vpop.f32.mrb[156].mxu0  ;;  %v5914_v16 = vsel %vm13122_vm8, %v10561_v40, %v5913_v54  ;;  %5595 = vst [vmem:[#allocation2 + $0x7c] sm:$0xf] %v5377_v4  ;;  %5598 = vst [vmem:[#allocation2 + $0x80] sm:$0x1] %v5597_v50  ;;  %v5361_v6 = vrot.slane %v5356_v60, 4 }
 0x2be   : > { %v13837_v47 = vpop.f32.mrb[157].mxu0  ;;  %v5400_v18 = vshll.u32 %v10944_v13, 16  ;;  %5915 = vst [vmem:[#allocation2 + $0x68] sm:$0x1] %v5914_v16  ;;  %v5911_v7 = vsel %vm13122_vm8, %v10560_v26, %v5910_v57  ;;  %v5360_v21 = vsel %vm13084_vm4, %v5352_v14, %v5359_v45  ;;  %v5606_v53 = vld [vmem:[#allocation2 + $0x90] sm:$0xf] }
 0x2bf   : > { %v13841_v43 = vpop.f32.mrb[158].mxu0  ;;  %v10537_v34 = vrot.slane %v5657_v28, 9  ;;  %v5751_v62 = vld [vmem:[#allocation2 + $0x18] sm:$0x1]  ;;  %v5892_v0 = vld [vmem:[#allocation2 + $0x14] sm:$0x1]  ;;  %v5590_v39 = vsel %vm13096_vm7, %v5361_v6, %v5589_v38 }
 0x2c0   : > { %v13847_v11 = vpop.f32.mrb[159].mxu0  ;;  %v12472_v2 = vld [vmem:[#allocation9 + $0x180] sm:$0xff]   ;;  %5912 = vst [vmem:[#allocation2 + $0x5c] sm:$0x1] %v5911_v7  ;;  %5588 = vst [vmem:[#allocation2 + $0x70] sm:$0xf] %v5360_v21 }
 0x2c1   : > { %v12411_v3 = vld [vmem:[#allocation2 + $0xc] sm:$0xff]   ;;  %v13851_v49 = vrot.slane %v5397_v58, 7  ;;  %v6264_v14 = vshrl.u32 %v13826_v8, 16  ;;  %5591 = vst [vmem:[#allocation2 + $0x74] sm:$0x1] %v5590_v39  ;;  %v5380_v28 = vshrl.u32 %v10942_v17, 16  ;;  %v5752_v54 = vsel %vm13096_vm7, %v10537_v34, %v5751_v62 }
 0x2c2   : > { %v13856_v51 = vld [vmem:[#allocation2 + $0xc] sm:$0xff]   ;;  %v5383_v22 = vshll.u32 %v10942_v17, 16  ;;  %v6266_v63 = vshll.u32 %v13826_v8, 16  ;;  %v12487_v44 = vld [vmem:[#allocation9 + $0x1c8] sm:$0xff]   ;;  %9295 = vmatprep.mubr.bf16.mxu0 %v12411_v3  ;;  %5753 = vst [vmem:[#allocation2 + $0x18] sm:$0x1] %v5752_v54  ;;  %v5893_v8 = vsel %vm13122_vm8, %v10554_v27, %v5892_v0  ;;  %v5059_v3 = vadd.f32 %v13797_v10, %v13673_v32 }
 0x2c3   : > { %v5402_v61 = vor.u32 %v5400_v18, %v13851_v49  ;;  %v5403_v60 = vrot.slane %v13851_v49, 4  ;;  %v5104_v12 = vmax.f32 %v5046_v30, 0.0  ;;  %v6271_v33 = vshll.u32 %v12417_v59, 16  ;;  %9296 = vmatmul.mubr.bf16.vlgmr.msra.gmra.mrb[160].mxu0 %v6665_v1  ;;  %v5599_v13 = vld [vmem:[#allocation2 + $0x84] sm:$0xf]  ;;  %v12420_v4 = vld [vmem:[#allocation9 + $0x100] sm:$0xff]  }
 0x2c4   : > { %v13863_v38 = vrot.slane %v5380_v28, 7  ;;  %v6268_v40 = vrot.slane %v6266_v63, 1  ;;  %5894 = vst [vmem:[#allocation2 + $0x14] sm:$0x1] %v5893_v8  ;;  %v6276_v1 = vshrl.u32 %v13856_v51, 16  ;;  %11764 = vmatpush3.bf16.msra.mxu0 %v12472_v2  ;;  %v12488_v59 = vld [vmem:[#allocation9 + $0x188] sm:$0xff]   ;;  %v5051_v32 = vadd.f32 %v13805_v31, %v13667_v42 }
 0x2c5   : > { %v5607_v57 = vsel %vm13089_vm6, %v5402_v61, %v5606_v53  ;;  %v10945_v5 = vpack.c.bf16 %v5104_v12, %v5104_v12  ;;  %v6273_v26 = vrot.slane %v6271_v33, 1  ;;  %v5809_v50 = vld [vmem:[#allocation2 + $0x7c] sm:$0x8]  ;;  %v5102_v27 = vmax.f32 %v5038_v52, 0.0  ;;  %v12419_v45 = vld [vmem:[#allocation2] sm:$0xff]   ;;  %11765 = vmatprep.subr.bf16.mxu0 %v12487_v44  ;;  %v12503_v6 = vld [vmem:[#allocation9 + $0x1d0] sm:$0xff]  }
 0x2c6   : > { %5608 = vst [vmem:[#allocation2 + $0x90] sm:$0xf] %v5607_v57  ;;  %v5385_v55 = vor.u32 %v5383_v22, %v13863_v38  ;;  %v5386_v15 = vrot.slane %v13863_v38, 4  ;;  %v6269_v19 = vor.u32 %v6268_v40, %v6264_v14  ;;  %v12432_v16 = vld [vmem:[#allocation9 + $0x148] sm:$0xff]   ;;  %v10563_v58 = vrot.slane %v5809_v50, 11  ;;  %v12504_v30 = vld [vmem:[#allocation9 + $0x190] sm:$0xff]  }
 0x2c7   : > { %v5405_v18 = vshrl.u32 %v10945_v5, 16  ;;  %v5408_v7 = vshll.u32 %v10945_v5, 16  ;;  %v6278_v21 = vshll.u32 %v13856_v51, 16  ;;  %v13877_v53 = vld [vmem:[#allocation2 + $0xc] sm:$0xfe]   ;;  %v10943_v39 = vpack.c.bf16 %v5102_v27, %v5102_v27  ;;  %v12434_v63 = vld [vmem:[#allocation9 + $0x108] sm:$0xff]  }
 0x2c8   : > { %v5919_v17 = vld [vmem:[#allocation2 + $0x80] sm:$0x1]  ;;  %v5808_v34 = vld [vmem:[#allocation2 + $0x70] sm:$0x8]  ;;  %v5600_v62 = vsel %vm13089_vm6, %v5385_v55, %v5599_v13  ;;  %v5610_v2 = vld [vmem:[#allocation2 + $0x98] sm:$0x1]  ;;  %v6274_v0 = vsel %vm1466_vm10, %v6269_v19, %v6273_v26  ;;  %11766 = vmatpush3.bf16.msra.mxu0 %v12488_v59  ;;  %v5062_v42 = vadd.f32 %v13811_v29, %v13675_v36  ;;  %v5054_v31 = vadd.f32 %v13814_v48, %v13669_v23 }
 0x2c9   : > { %v5920_v14 = vsel %vm13122_vm8, %v10563_v58, %v5919_v17  ;;  %v10562_v28 = vrot.slane %v5808_v34, 11  ;;  %v5916_v51 = vld [vmem:[#allocation2 + $0x74] sm:$0x1]  ;;  %5601 = vst [vmem:[#allocation2 + $0x84] sm:$0xf] %v5600_v62  ;;  %v5407_v22 = vrot.slane %v5405_v18, 7  ;;  %9134 = vmatprep.mubr.bf16.mxu1 %v6274_v0  ;;  %11767 = vmatprep.subr.bf16.mxu0 %v12503_v6  ;;  %v13903_v6 = vadd.f32 %v13828_v37, %v13689_v9 }
 0x2ca   : > { %v6280_v54 = vrot.slane %v6278_v21, 1  ;;  %v12519_v44 = vld [vmem:[#allocation9 + $0x1d8] sm:$0xff]   ;;  %5921 = vst [vmem:[#allocation2 + $0x80] sm:$0x1] %v5920_v14  ;;  %v12415_v61 = vld [vmem:[#allocation2 + $0x18] sm:$0xff]   ;;  %v5388_v12 = vshrl.u32 %v10943_v39, 16  ;;  %9135 = vmatmul.mubr.bf16.vlgmr.msra.gmra.mrb[128].mxu1 %v12419_v45 }
 0x2cb   : > { %v5391_v33 = vshll.u32 %v10943_v39, 16  ;;  %v5107_v40 = vmax.f32 %v5059_v3, 0.0  ;;  %v5658_v10 = vld [vmem:[#allocation2 + $0x24] sm:$0x2]  ;;  %v12446_v52 = vld [vmem:[#allocation9 + $0x150] sm:$0xff]   ;;  %v5917_v8 = vsel %vm13122_vm8, %v10562_v28, %v5916_v51  ;;  %v5410_v57 = vor.u32 %v5408_v7, %v5407_v22  ;;  %11652 = vmatpush3.bf16.msra.mxu1 %v12420_v4  ;;  %v12520_v59 = vld [vmem:[#allocation9 + $0x198] sm:$0xff]   ;;  %9303 = vmatprep.mubr.bf16.mxu0 %v12415_v61 }
 0x2cc   : > { %v5412_v13 = vrot.slane %v5407_v22, 4  ;;  %v5603_v5 = vld [vmem:[#allocation2 + $0x8c] sm:$0x1]  ;;  %v6281_v26 = vor.u32 %v6280_v54, %v6276_v1  ;;  %5918 = vst [vmem:[#allocation2 + $0x74] sm:$0x1] %v5917_v8  ;;  %v5390_v50 = vrot.slane %v5388_v12, 7  ;;  %11653 = vmatprep.subr.bf16.mxu1 %v12432_v16  ;;  %11768 = vmatpush3.bf16.msra.mxu0 %v12504_v30 }
 0x2cd   : > { %v12422_v55 = vld [vmem:[#allocation2 + $0x14] ss:$0 sps:$4 sm:$0x11]   ;;  %v10948_v19 = vpack.c.bf16 %v5107_v40, %v5107_v40  ;;  %v5411_v27 = vsel %vm13084_vm4, %v5403_v60, %v5410_v57  ;;  %v6666_v45 = vrot.slane %v13877_v53, 1  ;;  %v12448_v36 = vld [vmem:[#allocation9 + $0x110] sm:$0xff]   ;;  %v13905_v60 = vld [vmem:[#allocation2 + $0x18] sm:$0xff]   ;;  %11769 = vmatprep.subr.bf16.mxu0 %v12519_v44 }
 0x2ce   : > { %v5611_v4 = vsel %vm13096_vm7, %v5412_v13, %v5610_v2  ;;  %v12424_v1 = vld [vmem:[#allocation2 + $0x14] ss:$0 sps:$4 sm:$0x11]   ;;  %5609 = vst [vmem:[#allocation2 + $0x94] sm:$0xf] %v5411_v27  ;;  %v5393_v23 = vor.u32 %v5391_v33, %v5390_v50  ;;  %v5395_v29 = vrot.slane %v5390_v50, 4  ;;  %v13934_v50 = vadd.f32 %v13841_v43, %v13691_v20 }
 0x2cf   : > { %5612 = vst [vmem:[#allocation2 + $0x98] sm:$0x1] %v5611_v4  ;;  %v6283_v48 = vshll.u32 %v12422_v55, 16  ;;  %v5431_v49 = vshrl.u32 %v10948_v19, 16  ;;  %v5754_v16 = vld [vmem:[#allocation2 + $0x24] sm:$0x1]  ;;  %11654 = vmatpush3.bf16.msra.mxu1 %v12434_v63 }
 0x2d0   : > { %v13907_v58 = vld [vmem:[#allocation2 + $0x20] ss:$0 sps:$4 sm:$0x11]   ;;  %v12460_v18 = vld [vmem:[#allocation9 + $0x158] sm:$0xff]   ;;  %v5434_v7 = vshll.u32 %v10948_v19, 16  ;;  %v6667_v21 = vrot.slane %v12424_v1, 1  ;;  %v5394_v37 = vsel %vm13084_vm4, %v5386_v15, %v5393_v23  ;;  %v5604_v17 = vsel %vm13096_vm7, %v5395_v29, %v5603_v5  ;;  %11655 = vmatprep.subr.bf16.mxu1 %v12446_v52  ;;  %11770 = vmatpush3.bf16.msra.mxu0 %v12520_v59 }
 0x2d1   : > { %v5105_v53 = vmax.f32 %v5051_v32, 0.0  ;;  %v10538_v9 = vrot.slane %v5658_v10, 9  ;;  %v6285_v34 = vrot.slane %v6283_v48, 1  ;;  %v13915_v62 = vrot.slane %v5431_v49, 7  ;;  %5602 = vst [vmem:[#allocation2 + $0x88] sm:$0xf] %v5394_v37 }
 0x2d2   : > { %5605 = vst [vmem:[#allocation2 + $0x8c] sm:$0x1] %v5604_v17  ;;  %v5620_v2 = vld [vmem:[#allocation2 + $0xa8] sm:$0xf]  ;;  %v6668_v0 = vsel %vm1867_vm9, %v6666_v45, %v6667_v21  ;;  %v5108_v38 = vmax.f32 %v5062_v42, 0.0  ;;  %v12426_v30 = vld [vmem:[#allocation2 + $0xc] sm:$0xff]   ;;  %v13930_v59 = vadd.f32 %v13837_v47, %v13679_v24 }
 0x2d3   : > { %v10946_v39 = vpack.c.bf16 %v5105_v53, %v5105_v53  ;;  %v5755_v3 = vsel %vm13096_vm7, %v10538_v9, %v5754_v16  ;;  %v6286_v15 = vsel %vm1466_vm10, %v6281_v26, %v6285_v34  ;;  %v5436_v14 = vor.u32 %v5434_v7, %v13915_v62  ;;  %9304 = vmatmul.mubr.bf16.gmra.mrb[164].mxu0 %v6668_v0  ;;  %v12462_v61 = vld [vmem:[#allocation9 + $0x118] sm:$0xff]   ;;  %v12523_v12 = vld [vmem:[#allocation9 + $0x1e0] sm:$0xff]   ;;  %v5617_v24 = vld [vmem:[#allocation2 + $0xa4] sm:$0x1] }
 0x2d4   : > { %v5437_v28 = vrot.slane %v13915_v62, 4  ;;  %5756 = vst [vmem:[#allocation2 + $0x24] sm:$0x1] %v5755_v3  ;;  %v5106_v51 = vmax.f32 %v5054_v31, 0.0  ;;  %9142 = vmatprep.mubr.bf16.mxu1 %v6286_v15  ;;  %v10949_v63 = vpack.c.bf16 %v5108_v38, %v5108_v38  ;;  %v6288_v44 = vshrl.u32 %v13905_v60, 16  ;;  %11656 = vmatpush3.bf16.msra.mxu1 %v12448_v36  ;;  %v12476_v8 = vld [vmem:[#allocation9 + $0x160] sm:$0xff]  }
 0x2d5   : > { %v5414_v22 = vshrl.u32 %v10946_v39, 16  ;;  %v5417_v54 = vshll.u32 %v10946_v39, 16  ;;  %v5621_v33 = vsel %vm13089_vm6, %v5436_v14, %v5620_v2  ;;  %v5613_v40 = vld [vmem:[#allocation2 + $0x9c] sm:$0xf]  ;;  %9143 = vmatmul.mubr.bf16.gmra.mrb[132].mxu1 %v12426_v30  ;;  %v6290_v10 = vshll.u32 %v13905_v60, 16  ;;  %11657 = vmatprep.subr.bf16.mxu1 %v12460_v18  ;;  %v12492_v20 = vld [vmem:[#allocation9 + $0x168] sm:$0xff]  }
 0x2d6   : > { %v10947_v32 = vpack.c.bf16 %v5106_v51, %v5106_v51  ;;  %v6295_v52 = vshll.u32 %v13907_v58, 16  ;;  %v12525_v57 = vld [vmem:[#allocation9 + $0x1a0] sm:$0xff]   ;;  %v5811_v13 = vld [vmem:[#allocation2 + $0x94] sm:$0x8]  ;;  %5622 = vst [vmem:[#allocation2 + $0xa8] sm:$0xf] %v5621_v33  ;;  %11771 = vmatprep.subr.bf16.mxu0 %v12523_v12  ;;  %v5070_v7 = vadd.f32 %v13847_v11, %v13682_v56 }
 0x2d7   : > { %v5416_v5 = vrot.slane %v5414_v22, 7  ;;  %v5439_v26 = vshrl.u32 %v10949_v63, 16  ;;  %v12478_v55 = vld [vmem:[#allocation9 + $0x120] sm:$0xff]   ;;  %v10565_v19 = vrot.slane %v5811_v13, 11  ;;  %v5442_v42 = vshll.u32 %v10949_v63, 16  ;;  %11772 = vmatpush3.bf16.msra.mxu0 %v12525_v57  ;;  %v12494_v2 = vld [vmem:[#allocation9 + $0x128] sm:$0xff]  }
 0x2d8   : > { %v5624_v31 = vld [vmem:[#allocation2 + $0xb0] sm:$0x1]  ;;  %v5422_v27 = vshrl.u32 %v10947_v32, 16  ;;  %v5425_v4 = vshll.u32 %v10947_v32, 16  ;;  %v13936_v1 = vld [vmem:[#allocation2 + $0x18] sm:$0xfe]   ;;  %11658 = vmatpush3.bf16.msra.mxu1 %v12462_v61 }
 0x2d9   : > { %v5925_v45 = vld [vmem:[#allocation2 + $0x98] sm:$0x1]  ;;  %v5419_v36 = vor.u32 %v5417_v54, %v5416_v5  ;;  %v5420_v23 = vrot.slane %v5416_v5, 4  ;;  %v5441_v29 = vrot.slane %v5439_v26, 7  ;;  %v6292_v47 = vrot.slane %v6290_v10, 1  ;;  %11659 = vmatprep.subr.bf16.mxu1 %v12476_v8  ;;  %v12508_v56 = vld [vmem:[#allocation9 + $0x170] sm:$0xff]  }
 0x2da   : > { %v12430_v48 = vld [vmem:[#allocation2 + $0x20] ss:$0 sps:$4 sm:$0x11]   ;;  %v5926_v43 = vsel %vm13122_vm8, %v10565_v19, %v5925_v45  ;;  %v5810_v49 = vld [vmem:[#allocation2 + $0x88] sm:$0x8]  ;;  %v5424_v60 = vrot.slane %v5422_v27, 7 }
 0x2db   : > { %v5922_v16 = vld [vmem:[#allocation2 + $0x8c] sm:$0x1]  ;;  %v6297_v58 = vrot.slane %v6295_v52, 1  ;;  %v5659_v18 = vld [vmem:[#allocation2 + $0x30] sm:$0x2]  ;;  %v10564_v21 = vrot.slane %v5810_v49, 11  ;;  %v5614_v53 = vsel %vm13089_vm6, %v5419_v36, %v5613_v40  ;;  %v5444_v37 = vor.u32 %v5442_v42, %v5441_v29 }
 0x2dc   : > { %5927 = vst [vmem:[#allocation2 + $0x98] sm:$0x1] %v5926_v43  ;;  %v12425_v9 = vld [vmem:[#allocation2 + $0x24] sm:$0xff]   ;;  %v5446_v17 = vrot.slane %v5441_v29, 4  ;;  %5615 = vst [vmem:[#allocation2 + $0x9c] sm:$0xf] %v5614_v53  ;;  %v5427_v0 = vor.u32 %v5425_v4, %v5424_v60  ;;  %v6293_v3 = vor.u32 %v6292_v47, %v6288_v44  ;;  %11660 = vmatpush3.bf16.msra.mxu1 %v12478_v55 }
 0x2dd   : > { %v13944_v34 = vld [vmem:[#allocation2 + $0x24] sm:$0xff]   ;;  %v5429_v39 = vrot.slane %v5424_v60, 4  ;;  %v5111_v38 = vmax.f32 %v13903_v6, 0.0  ;;  %v13947_v30 = vld [vmem:[#allocation2 + $0x2c] ss:$0 sps:$4 sm:$0x11]   ;;  %v5923_v11 = vsel %vm13122_vm8, %v10564_v21, %v5922_v16  ;;  %9311 = vmatprep.mubr.bf16.mxu0 %v12425_v9  ;;  %v5445_v15 = vsel %vm13084_vm4, %v5437_v28, %v5444_v37  ;;  %11661 = vmatprep.subr.bf16.mxu1 %v12492_v20 }
 0x2de   : > { %v5625_v14 = vsel %vm13096_vm7, %v5446_v17, %v5624_v31  ;;  %v6669_v51 = vrot.slane %v13936_v1, 1  ;;  %v12433_v22 = vld [vmem:[#allocation2 + $0x18] sm:$0xff]   ;;  %5924 = vst [vmem:[#allocation2 + $0x8c] sm:$0x1] %v5923_v11  ;;  %5623 = vst [vmem:[#allocation2 + $0xac] sm:$0xf] %v5445_v15  ;;  %v5428_v6 = vsel %vm13084_vm4, %v5420_v23, %v5427_v0  ;;  %v6298_v62 = vsel %vm1466_vm10, %v6293_v3, %v6297_v58 }
 0x2df   : > { %5626 = vst [vmem:[#allocation2 + $0xb0] sm:$0x1] %v5625_v14  ;;  %v5618_v54 = vsel %vm13096_vm7, %v5429_v39, %v5617_v24  ;;  %v10952_v63 = vpack.c.bf16 %v5111_v38, %v5111_v38  ;;  %v5757_v28 = vld [vmem:[#allocation2 + $0x30] sm:$0x1]  ;;  %5616 = vst [vmem:[#allocation2 + $0xa0] sm:$0xf] %v5428_v6  ;;  %9150 = vmatprep.mubr.bf16.mxu1 %v6298_v62 }
 0x2e0   : > { %5619 = vst [vmem:[#allocation2 + $0xa4] sm:$0x1] %v5618_v54  ;;  %v6670_v44 = vrot.slane %v12430_v48, 1  ;;  %v5109_v61 = vmax.f32 %v13930_v59, 0.0  ;;  %v10539_v12 = vrot.slane %v5659_v18, 9  ;;  %v5112_v33 = vmax.f32 %v13934_v50, 0.0  ;;  %9151 = vmatmul.mubr.bf16.gmra.mrb[136].mxu1 %v12433_v22 }
 0x2e1   : > { %v5465_v40 = vshrl.u32 %v10952_v63, 16  ;;  %v5468_v32 = vshll.u32 %v10952_v63, 16  ;;  %v5110_v10 = vmax.f32 %v5070_v7, 0.0  ;;  %v6300_v52 = vshrl.u32 %v13944_v34, 16  ;;  %11662 = vmatpush3.bf16.msra.mxu1 %v12494_v2  ;;  %v12510_v26 = vld [vmem:[#allocation9 + $0x130] sm:$0xff]   ;;  %v12526_v42 = vld [vmem:[#allocation9 + $0x178] sm:$0xff]  }
 0x2e2   : > { %v6671_v8 = vsel %vm1867_vm9, %v6669_v51, %v6670_v44  ;;  %v10950_v57 = vpack.c.bf16 %v5109_v61, %v5109_v61  ;;  %v5758_v13 = vsel %vm13096_vm7, %v10539_v12, %v5757_v28  ;;  %v10953_v5 = vpack.c.bf16 %v5112_v33, %v5112_v33  ;;  %11663 = vmatprep.subr.bf16.mxu1 %v12508_v56  ;;  %v5634_v31 = vld [vmem:[#allocation2 + $0xc0] sm:$0xf]  ;;  %v5627_v29 = vld [vmem:[#allocation2 + $0xb4] sm:$0xf]  ;;  %v5648_v24 = vld [vmem:[#allocation2 + $0xcc] sm:$0xf] }
 0x2e3   : > { %v5467_v55 = vrot.slane %v5465_v40, 7  ;;  %9312 = vmatmul.mubr.bf16.gmra.mrb[168].mxu0 %v6671_v8  ;;  %5759 = vst [vmem:[#allocation2 + $0x30] sm:$0x1] %v5758_v13  ;;  %v10951_v59 = vpack.c.bf16 %v5110_v10, %v5110_v10  ;;  %v6302_v50 = vshll.u32 %v13944_v34, 16  ;;  %v6307_v19 = vshll.u32 %v13947_v30, 16  ;;  %v12528_v20 = vld [vmem:[#allocation9 + $0x138] sm:$0xff]  }
 0x2e4   : > { %v5448_v27 = vshrl.u32 %v10950_v57, 16  ;;  %v5451_v4 = vshll.u32 %v10950_v57, 16  ;;  %v5473_v1 = vshrl.u32 %v10953_v5, 16  ;;  %v5476_v45 = vshll.u32 %v10953_v5, 16  ;;  %v12531_v43 = vld [vmem:[#allocation9 + $0x1e8] sm:$0xff]  }
 0x2e5   : > { %v5470_v36 = vor.u32 %v5468_v32, %v5467_v55  ;;  %v5471_v23 = vrot.slane %v5467_v55, 4  ;;  %v5456_v47 = vshrl.u32 %v10951_v59, 16  ;;  %v5459_v48 = vshll.u32 %v10951_v59, 16  ;;  %v5813_v49 = vld [vmem:[#allocation2 + $0xac] sm:$0x8]  ;;  %11664 = vmatpush3.bf16.msra.mxu1 %v12510_v26  ;;  %11773 = vmatprep.subr.bf16.mxu0 %v12531_v43  ;;  %v12440_v34 = vld [vmem:[#allocation2 + $0x24] sm:$0xff]  }
 0x2e6   : > { %v5931_v16 = vld [vmem:[#allocation2 + $0xb0] sm:$0x1]  ;;  %v5450_v60 = vrot.slane %v5448_v27, 7  ;;  %v5475_v58 = vrot.slane %v5473_v1, 7  ;;  %v5638_v18 = vld [vmem:[#allocation2 + $0xc8] sm:$0x1]  ;;  %11665 = vmatprep.subr.bf16.mxu1 %v12526_v42 }
 0x2e7   : > { %v5631_v7 = vld [vmem:[#allocation2 + $0xbc] sm:$0x1]  ;;  %v5652_v21 = vld [vmem:[#allocation2 + $0xd4] sm:$0x1]  ;;  %v12437_v53 = vld [vmem:[#allocation2 + $0x24] sm:$0xfe]   ;;  %v5635_v0 = vsel %vm13089_vm6, %v5470_v36, %v5634_v31 }
 0x2e8   : > { %v12438_v9 = vld [vmem:[#allocation2 + $0x2c] ss:$0 sps:$4 sm:$0x11]   ;;  %v10567_v37 = vrot.slane %v5813_v49, 11  ;;  %v5812_v17 = vld [vmem:[#allocation2 + $0xa0] sm:$0x8]  ;;  %v5453_v56 = vor.u32 %v5451_v4, %v5450_v60  ;;  %v5478_v15 = vor.u32 %v5476_v45, %v5475_v58 }
 0x2e9   : > { %v5928_v2 = vld [vmem:[#allocation2 + $0xa4] sm:$0x1]  ;;  %v5458_v39 = vrot.slane %v5456_v47, 7  ;;  %v12442_v3 = vld [vmem:[#allocation2 + $0x38] ss:$0 sps:$4 sm:$0x11]   ;;  %11666 = vmatpush3.bf16.msra.mxu1 %v12528_v20 }
 0x2ea   : > { %v10566_v38 = vrot.slane %v5812_v17, 11  ;;  %5636 = vst [vmem:[#allocation2 + $0xc0] sm:$0xf] %v5635_v0  ;;  %v5454_v11 = vrot.slane %v5450_v60, 4  ;;  %v5660_v14 = vld [vmem:[#allocation2 + $0x3c] sm:$0x2]  ;;  %v5932_v51 = vsel %vm13122_vm8, %v10567_v37, %v5931_v16  ;;  %v5628_v63 = vsel %vm13089_vm6, %v5453_v56, %v5627_v29 }
 0x2eb   : > { %v5480_v22 = vrot.slane %v5475_v58, 4  ;;  %v5461_v6 = vor.u32 %v5459_v48, %v5458_v39  ;;  %v5463_v54 = vrot.slane %v5458_v39, 4  ;;  %5933 = vst [vmem:[#allocation2 + $0xb0] sm:$0x1] %v5932_v51  ;;  %v5649_v28 = vsel %vm13089_vm6, %v5453_v56, %v5648_v24  ;;  %v12431_v44 = vld [vmem:[#allocation2 + $0x30] sm:$0xff]   ;;  %v12532_v1 = vld [vmem:[#allocation9 + $0x1a8] sm:$0xff]  }
 0x2ec   : > { %v5929_v62 = vsel %vm13122_vm8, %v10566_v38, %v5928_v2  ;;  %v5479_v61 = vsel %vm13084_vm4, %v5471_v23, %v5478_v15  ;;  %5650 = vst [vmem:[#allocation2 + $0xcc] sm:$0xf] %v5649_v28  ;;  %5629 = vst [vmem:[#allocation2 + $0xb4] sm:$0xf] %v5628_v63  ;;  %v12441_v32 = vld [vmem:[#allocation2 + $0x30] sm:$0xff]   ;;  %9319 = vmatprep.mubr.bf16.mxu0 %v12431_v44  ;;  %v6304_v8 = vrot.slane %v6302_v50, 1  ;;  %11774 = vmatpush3.bf16.msra.mxu0 %v12532_v1 }
 0x2ed   : > { %5930 = vst [vmem:[#allocation2 + $0xa4] sm:$0x1] %v5929_v62  ;;  %5637 = vst [vmem:[#allocation2 + $0xc4] sm:$0xf] %v5479_v61  ;;  %v5639_v12 = vsel %vm13096_vm7, %v5480_v22, %v5638_v18  ;;  %v5462_v33 = vsel %vm13084_vm4, %v5454_v11, %v5461_v6  ;;  %v5632_v40 = vsel %vm13096_vm7, %v5463_v54, %v5631_v7  ;;  %v5661_v10 = vld [vmem:[#allocation2 + $0x48] sm:$0x2] }
 0x2ee   : > { %v5653_v41 = vsel %vm13096_vm7, %v5463_v54, %v5652_v21  ;;  %5640 = vst [vmem:[#allocation2 + $0xc8] sm:$0x1] %v5639_v12  ;;  %5630 = vst [vmem:[#allocation2 + $0xb8] sm:$0xf] %v5462_v33  ;;  %v6309_v35 = vrot.slane %v6307_v19, 1  ;;  %v6672_v57 = vrot.slane %v12437_v53, 1  ;;  %v6305_v59 = vor.u32 %v6304_v8, %v6300_v52 }
 0x2ef   : > { %5633 = vst [vmem:[#allocation2 + $0xbc] sm:$0x1] %v5632_v40  ;;  %5651 = vst [vmem:[#allocation2 + $0xd0] sm:$0xf] %v5462_v33  ;;  %v6673_v13 = vrot.slane %v12438_v9, 1  ;;  %v10540_v5 = vrot.slane %v5660_v14, 9 }
 0x2f0   : > { %5654 = vst [vmem:[#allocation2 + $0xd4] sm:$0x1] %v5653_v41  ;;  %v6314_v26 = vshll.u32 %v12441_v32, 16  ;;  %v6319_v55 = vshll.u32 %v12442_v3, 16  ;;  %v5760_v31 = vld [vmem:[#allocation2 + $0x3c] sm:$0x1]  ;;  %v6310_v29 = vsel %vm1466_vm10, %v6305_v59, %v6309_v35 }
 0x2f1   : > { %v6674_v42 = vsel %vm1867_vm9, %v6672_v57, %v6673_v13  ;;  %v6312_v27 = vshrl.u32 %v12441_v32, 16  ;;  %v5662_v4 = vld [vmem:[#allocation2 + $0x54] sm:$0x2]  ;;  %v5761_v50 = vsel %vm13096_vm7, %v10540_v5, %v5760_v31  ;;  %v12444_v45 = vld [vmem:[#allocation2 + $0x38] ss:$0 sps:$4 sm:$0x11]   ;;  %9158 = vmatprep.mubr.bf16.mxu1 %v6310_v29 }
 0x2f2   : > { %9320 = vmatmul.mubr.bf16.gmra.mrb[172].mxu0 %v6674_v42  ;;  %v6316_v30 = vrot.slane %v6314_v26, 1  ;;  %v6321_v19 = vrot.slane %v6319_v55, 1  ;;  %v10541_v36 = vrot.slane %v5661_v10, 9  ;;  %v12535_v23 = vld [vmem:[#allocation9 + $0x1f0] sm:$0xff]   ;;  %5762 = vst [vmem:[#allocation2 + $0x3c] sm:$0x1] %v5761_v50  ;;  %9159 = vmatmul.mubr.bf16.gmra.mrb[140].mxu1 %v12440_v34 }
 0x2f3   : > { %v5763_v52 = vld [vmem:[#allocation2 + $0x48] sm:$0x1]  ;;  %v12450_v24 = vld [vmem:[#allocation2 + $0x44] ss:$0 sps:$4 sm:$0x11]   ;;  %v10542_v43 = vrot.slane %v5662_v4, 9  ;;  %11775 = vmatprep.subr.bf16.mxu0 %v12535_v23 }
 0x2f4   : > { %v6317_v47 = vor.u32 %v6316_v30, %v6312_v27  ;;  %v12443_v48 = vld [vmem:[#allocation2 + $0x30] sm:$0xfe]   ;;  %v5764_v20 = vsel %vm13096_vm7, %v10541_v36, %v5763_v52  ;;  %v12536_v16 = vld [vmem:[#allocation9 + $0x1b0] sm:$0xff]   ;;  %v12456_v58 = vld [vmem:[#allocation2 + $0x50] ss:$0 sps:$4 sm:$0x11]  }
 0x2f5   : > { %v5766_v49 = vld [vmem:[#allocation2 + $0x54] sm:$0x1]  ;;  %v5672_v60 = vld [vmem:[#allocation2 + $0xcc] sm:$0x2]  ;;  %5765 = vst [vmem:[#allocation2 + $0x48] sm:$0x1] %v5764_v20  ;;  %11776 = vmatpush3.bf16.msra.mxu0 %v12536_v16 }
 0x2f6   : > { %v10552_v18 = vrot.slane %v5672_v60, 9  ;;  %v5814_v7 = vld [vmem:[#allocation2 + $0xb8] sm:$0x8]  ;;  %v6322_v21 = vsel %vm1466_vm10, %v6317_v47, %v6321_v19  ;;  %v5663_v53 = vld [vmem:[#allocation2 + $0x60] sm:$0x2]  ;;  %v5767_v0 = vsel %vm13096_vm7, %v10542_v43, %v5766_v49  ;;  %v6676_v11 = vrot.slane %v12444_v45, 1 }
 0x2f7   : > { %v5796_v9 = vld [vmem:[#allocation2 + $0xcc] sm:$0x1]  ;;  %v5816_v37 = vld [vmem:[#allocation2 + $0xd0] sm:$0x8]  ;;  %v10568_v17 = vrot.slane %v5814_v7, 11  ;;  %9166 = vmatprep.mubr.bf16.mxu1 %v6322_v21  ;;  %v6331_v14 = vshll.u32 %v12450_v24, 16 }
 0x2f8   : > { %v12452_v2 = vld [vmem:[#allocation2 + $0x44] ss:$0 sps:$4 sm:$0x11]   ;;  %v5797_v39 = vsel %vm13096_vm7, %v10552_v18, %v5796_v9  ;;  %v10570_v3 = vrot.slane %v5816_v37, 11  ;;  %v5934_v38 = vld [vmem:[#allocation2 + $0xbc] sm:$0x1] }
 0x2f9   : > { %v5940_v56 = vld [vmem:[#allocation2 + $0xd4] sm:$0x1]  ;;  %5768 = vst [vmem:[#allocation2 + $0x54] sm:$0x1] %v5767_v0  ;;  %5798 = vst [vmem:[#allocation2 + $0xcc] sm:$0x1] %v5797_v39  ;;  %v5935_v15 = vsel %vm13122_vm8, %v10568_v17, %v5934_v38 }
 0x2fa   : > { %v10543_v51 = vrot.slane %v5663_v53, 9  ;;  %v5769_v22 = vld [vmem:[#allocation2 + $0x60] sm:$0x1]  ;;  %v5941_v6 = vsel %vm13122_vm8, %v10570_v3, %v5940_v56  ;;  %5936 = vst [vmem:[#allocation2 + $0xbc] sm:$0x1] %v5935_v15  ;;  %v6675_v62 = vrot.slane %v12443_v48, 1 }
 0x2fb   : > { %v12439_v54 = vld [vmem:[#allocation2 + $0x3c] sm:$0xff]   ;;  %5942 = vst [vmem:[#allocation2 + $0xd4] sm:$0x1] %v5941_v6  ;;  %v12447_v63 = vld [vmem:[#allocation2 + $0x30] sm:$0xff]   ;;  %v6343_v44 = vshll.u32 %v12456_v58, 16  ;;  %v6333_v32 = vrot.slane %v6331_v14, 1 }
 0x2fc   : > { %v12449_v28 = vld [vmem:[#allocation2 + $0x3c] sm:$0xff]   ;;  %v5770_v61 = vsel %vm13096_vm7, %v10543_v51, %v5769_v22  ;;  %9327 = vmatprep.mubr.bf16.mxu0 %v12439_v54  ;;  %v6677_v12 = vsel %vm1867_vm9, %v6675_v62, %v6676_v11  ;;  %v12445_v33 = vld [vmem:[#allocation2 + $0x48] sm:$0xff]   ;;  %9167 = vmatmul.mubr.bf16.gmra.mrb[144].mxu1 %v12447_v63  ;;  %v6679_v10 = vrot.slane %v12452_v2, 1  ;;  %v12458_v35 = vld [vmem:[#allocation2 + $0x50] ss:$0 sps:$4 sm:$0x11]  }
 0x2fd   : > { %v12451_v40 = vld [vmem:[#allocation2 + $0x3c] sm:$0xfe]   ;;  %5771 = vst [vmem:[#allocation2 + $0x60] sm:$0x1] %v5770_v61  ;;  %9328 = vmatmul.mubr.bf16.gmra.mrb[176].mxu0 %v6677_v12  ;;  %v6326_v41 = vshll.u32 %v12449_v28, 16  ;;  %v12455_v8 = vld [vmem:[#allocation2 + $0x48] sm:$0xff]  }
 0x2fe   : > { %9335 = vmatprep.mubr.bf16.mxu0 %v12445_v33  ;;  %v6324_v57 = vshrl.u32 %v12449_v28, 16  ;;  %v6338_v5 = vshll.u32 %v12455_v8, 16  ;;  %v6345_v26 = vrot.slane %v6343_v44, 1  ;;  %v12464_v59 = vld [vmem:[#allocation2 + $0x5c] ss:$0 sps:$4 sm:$0x11]  }
 0x2ff   : > { %v6328_v13 = vrot.slane %v6326_v41, 1  ;;  %v6336_v31 = vshrl.u32 %v12455_v8, 16  ;;  %v6678_v4 = vrot.slane %v12451_v40, 1  ;;  %v12454_v30 = vld [vmem:[#allocation2 + $0x3c] sm:$0xff]   ;;  %v12457_v23 = vld [vmem:[#allocation2 + $0x48] sm:$0xfe]  }
 0x300   : > { %v12463_v55 = vld [vmem:[#allocation2 + $0x54] sm:$0xff]   ;;  %v6340_v27 = vrot.slane %v6338_v5, 1  ;;  %v6682_v29 = vrot.slane %v12458_v35, 1  ;;  %v6355_v34 = vshll.u32 %v12464_v59, 16  ;;  %v5664_v47 = vld [vmem:[#allocation2 + $0x6c] sm:$0x2] }
 0x301   : > { %v6329_v42 = vor.u32 %v6328_v13, %v6324_v57  ;;  %v6350_v1 = vshll.u32 %v12463_v55, 16  ;;  %v6680_v45 = vsel %vm1867_vm9, %v6678_v4, %v6679_v10  ;;  %v12453_v36 = vld [vmem:[#allocation2 + $0x54] sm:$0xff]   ;;  %v5772_v48 = vld [vmem:[#allocation2 + $0x6c] sm:$0x1]  ;;  %v6348_v43 = vshrl.u32 %v12463_v55, 16 }
 0x302   : > { %v6341_v19 = vor.u32 %v6340_v27, %v6336_v31  ;;  %v10544_v49 = vrot.slane %v5664_v47, 9  ;;  %v6357_v16 = vrot.slane %v6355_v34, 1  ;;  %v12470_v58 = vld [vmem:[#allocation2 + $0x68] ss:$0 sps:$4 sm:$0x11]   ;;  %v12542_v21 = vld [vmem:[#allocation9 + $0x1f8] sm:$0xff]  }
 0x303   : > { %v6334_v50 = vsel %vm1466_vm10, %v6329_v42, %v6333_v32  ;;  %v6352_v24 = vrot.slane %v6350_v1, 1  ;;  %v6681_v53 = vrot.slane %v12457_v23, 1  ;;  %v12543_v9 = vld [vmem:[#allocation9 + $0x1b8] sm:$0xff]   ;;  %v12461_v17 = vld [vmem:[#allocation2 + $0x48] sm:$0xff]   ;;  %v5665_v2 = vld [vmem:[#allocation2 + $0x78] sm:$0x2]  ;;  %11777 = vmatprep.subr.bf16.mxu0 %v12542_v21 }
 0x304   : > { %9174 = vmatprep.mubr.bf16.mxu1 %v6334_v50  ;;  %v6346_v52 = vsel %vm1466_vm10, %v6341_v19, %v6345_v26  ;;  %v12469_v20 = vld [vmem:[#allocation2 + $0x60] sm:$0xff]   ;;  %v5773_v60 = vsel %vm13096_vm7, %v10544_v49, %v5772_v48  ;;  %v12465_v39 = vld [vmem:[#allocation2 + $0x54] sm:$0xfe]   ;;  %v12466_v3 = vld [vmem:[#allocation2 + $0x5c] ss:$0 sps:$4 sm:$0x11]   ;;  %11778 = vmatpush3.bf16.msra.mxu0 %v12543_v9 }
 0x305   : > { %9336 = vmatmul.mubr.bf16.gmra.mrb[180].mxu0 %v6680_v45  ;;  %9175 = vmatmul.mubr.bf16.gmra.mrb[148].mxu1 %v12454_v30  ;;  %v6353_v18 = vor.u32 %v6352_v24, %v6348_v43  ;;  %5774 = vst [vmem:[#allocation2 + $0x6c] sm:$0x1] %v5773_v60  ;;  %v6362_v7 = vshll.u32 %v12469_v20, 16  ;;  %v12459_v37 = vld [vmem:[#allocation2 + $0x60] sm:$0xff]   ;;  %v6683_v0 = vsel %vm1867_vm9, %v6681_v53, %v6682_v29  ;;  %v6367_v56 = vshll.u32 %v12470_v58, 16  ;;  %v12468_v12 = vld [vmem:[#allocation2 + $0x54] sm:$0xff]  }
 0x306   : > { %9343 = vmatprep.mubr.bf16.mxu0 %v12453_v36  ;;  %9182 = vmatprep.mubr.bf16.mxu1 %v6346_v52  ;;  %v10545_v11 = vrot.slane %v5665_v2, 9  ;;  %v5775_v14 = vld [vmem:[#allocation2 + $0x78] sm:$0x1]  ;;  %v6360_v22 = vshrl.u32 %v12469_v20, 16  ;;  %v6685_v54 = vrot.slane %v12466_v3, 1  ;;  %v6684_v44 = vrot.slane %v12465_v39, 1 }
 0x307   : > { %v6364_v38 = vrot.slane %v6362_v7, 1  ;;  %v6358_v15 = vsel %vm1466_vm10, %v6353_v18, %v6357_v16  ;;  %v12480_v6 = vld [vmem:[#allocation2 + $0x74] ss:$0 sps:$4 sm:$0x11]   ;;  %v6369_v63 = vrot.slane %v6367_v56, 1  ;;  %v14025_v57 = vld [vmem:[#allocation9 + $0x200] sm:$0xff]  }
 0x308   : > { %v5776_v51 = vsel %vm13096_vm7, %v10545_v11, %v5775_v14  ;;  %v12474_v61 = vld [vmem:[#allocation2 + $0x68] ss:$0 sps:$4 sm:$0x11]   ;;  %v5666_v40 = vld [vmem:[#allocation2 + $0x84] sm:$0x2]  ;;  %v6686_v41 = vsel %vm1867_vm9, %v6684_v44, %v6685_v54  ;;  %v6379_v26 = vshll.u32 %v12480_v6, 16  ;;  %11947 = vmatprep.subr.bf16.mxu1 %v14025_v57 }
 0x309   : > { %5777 = vst [vmem:[#allocation2 + $0x78] sm:$0x1] %v5776_v51  ;;  %v6365_v62 = vor.u32 %v6364_v38, %v6360_v22  ;;  %v12473_v10 = vld [vmem:[#allocation2 + $0x60] sm:$0xfe]   ;;  %v10546_v8 = vrot.slane %v5666_v40, 9  ;;  %v6688_v55 = vrot.slane %v12474_v61, 1 }
 0x30a   : > { %v5778_v35 = vld [vmem:[#allocation2 + $0x84] sm:$0x1]  ;;  %v12486_v27 = vld [vmem:[#allocation2 + $0x80] ss:$0 sps:$4 sm:$0x11]   ;;  %v6381_v1 = vrot.slane %v6379_v26, 1 }
 0x30b   : > { %v6370_v13 = vsel %vm1466_vm10, %v6365_v62, %v6369_v63  ;;  %v5779_v42 = vsel %vm13096_vm7, %v10546_v8, %v5778_v35  ;;  %v6687_v50 = vrot.slane %v12473_v10, 1  ;;  %v12482_v30 = vld [vmem:[#allocation2 + $0x74] ss:$0 sps:$4 sm:$0x11]   ;;  %v12477_v36 = vld [vmem:[#allocation2 + $0x60] sm:$0xff]   ;;  %v6391_v23 = vshll.u32 %v12486_v27, 16 }
 0x30c   : > { %v12479_v28 = vld [vmem:[#allocation2 + $0x6c] sm:$0xff]   ;;  %5780 = vst [vmem:[#allocation2 + $0x84] sm:$0x1] %v5779_v42  ;;  %v6691_v43 = vrot.slane %v12482_v30, 1  ;;  %v5784_v11 = vld [vmem:[#allocation2 + $0x9c] sm:$0x1] }
 0x30d   : > { %9344 = vmatmul.mubr.bf16.gmra.mrb[184].mxu0 %v6683_v0  ;;  %9183 = vmatmul.mubr.bf16.gmra.mrb[152].mxu1 %v12461_v17  ;;  %v6374_v33 = vshll.u32 %v12479_v28, 16  ;;  %v12467_v32 = vld [vmem:[#allocation2 + $0x6c] sm:$0xff]   ;;  %v6372_v59 = vshrl.u32 %v12479_v28, 16  ;;  %v6689_v34 = vsel %vm1867_vm9, %v6687_v50, %v6688_v55  ;;  %v6393_v21 = vrot.slane %v6391_v23, 1  ;;  %v5668_v17 = vld [vmem:[#allocation2 + $0x9c] sm:$0x2] }
 0x30e   : > { %9351 = vmatprep.mubr.bf16.mxu0 %v12459_v37  ;;  %9190 = vmatprep.mubr.bf16.mxu1 %v6358_v15  ;;  %v5667_v29 = vld [vmem:[#allocation2 + $0x90] sm:$0x2]  ;;  %v5781_v48 = vld [vmem:[#allocation2 + $0x90] sm:$0x1]  ;;  %v12489_v0 = vld [vmem:[#allocation2 + $0x78] sm:$0xfe]  }
 0x30f   : > { %v6376_v5 = vrot.slane %v6374_v33, 1  ;;  %v12481_v52 = vld [vmem:[#allocation2 + $0x6c] sm:$0xfe]   ;;  %v10547_v47 = vrot.slane %v5667_v29, 9  ;;  %v10548_v38 = vrot.slane %v5668_v17, 9  ;;  %v6693_v6 = vrot.slane %v12489_v0, 1 }
 0x310   : > { %v12485_v31 = vld [vmem:[#allocation2 + $0x78] sm:$0xff]   ;;  %v12496_v58 = vld [vmem:[#allocation2 + $0x8c] ss:$0 sps:$4 sm:$0x11]   ;;  %v6690_v9 = vrot.slane %v12481_v52, 1 }
 0x311   : > { %v6377_v4 = vor.u32 %v6376_v5, %v6372_v59  ;;  %v6386_v19 = vshll.u32 %v12485_v31, 16  ;;  %v12475_v45 = vld [vmem:[#allocation2 + $0x78] sm:$0xff]   ;;  %v6384_v49 = vshrl.u32 %v12485_v31, 16  ;;  %v5782_v16 = vsel %vm13096_vm7, %v10547_v47, %v5781_v48  ;;  %v12484_v18 = vld [vmem:[#allocation2 + $0x6c] sm:$0xff]   ;;  %v5669_v40 = vld [vmem:[#allocation2 + $0xa8] sm:$0x2] }
 0x312   : > { %5783 = vst [vmem:[#allocation2 + $0x90] sm:$0x1] %v5782_v16  ;;  %v12490_v37 = vld [vmem:[#allocation2 + $0x80] ss:$0 sps:$4 sm:$0x11]   ;;  %v6403_v3 = vshll.u32 %v12496_v58, 16  ;;  %v6692_v56 = vsel %vm1867_vm9, %v6690_v9, %v6691_v43  ;;  %v5785_v14 = vsel %vm13096_vm7, %v10548_v38, %v5784_v11 }
 0x313   : > { %v6388_v24 = vrot.slane %v6386_v19, 1  ;;  %v6382_v20 = vsel %vm1466_vm10, %v6377_v4, %v6381_v1  ;;  %v12495_v60 = vld [vmem:[#allocation2 + $0x84] sm:$0xff]   ;;  %5786 = vst [vmem:[#allocation2 + $0x9c] sm:$0x1] %v5785_v14  ;;  %v6694_v54 = vrot.slane %v12490_v37, 1  ;;  %v12493_v62 = vld [vmem:[#allocation2 + $0x78] sm:$0xff]  }
 0x314   : > { %v6398_v53 = vshll.u32 %v12495_v60, 16  ;;  %v12483_v2 = vld [vmem:[#allocation2 + $0x84] sm:$0xff]   ;;  %v6396_v51 = vshrl.u32 %v12495_v60, 16  ;;  %v6405_v28 = vrot.slane %v6403_v3, 1  ;;  %v10549_v10 = vrot.slane %v5669_v40, 9 }
 0x315   : > { %9352 = vmatmul.mubr.bf16.gmra.mrb[188].mxu0 %v6686_v41  ;;  %9191 = vmatmul.mubr.bf16.gmra.mrb[156].mxu1 %v12468_v12  ;;  %v6389_v7 = vor.u32 %v6388_v24, %v6384_v49  ;;  %v12502_v44 = vld [vmem:[#allocation2 + $0x98] ss:$0 sps:$4 sm:$0x11]   ;;  %v12498_v33 = vld [vmem:[#allocation2 + $0x8c] ss:$0 sps:$4 sm:$0x11]   ;;  %v6695_v35 = vsel %vm1867_vm9, %v6693_v6, %v6694_v54 }
 0x316   : > { %9359 = vmatprep.mubr.bf16.mxu0 %v12467_v32  ;;  %9198 = vmatprep.mubr.bf16.mxu1 %v6370_v13  ;;  %v6400_v39 = vrot.slane %v6398_v53, 1  ;;  %v12497_v41 = vld [vmem:[#allocation2 + $0x84] sm:$0xfe]   ;;  %v6415_v26 = vshll.u32 %v12502_v44, 16  ;;  %v6697_v31 = vrot.slane %v12498_v33, 1 }
 0x317   : > { %v6394_v15 = vsel %vm1466_vm10, %v6389_v7, %v6393_v21  ;;  %v5787_v8 = vld [vmem:[#allocation2 + $0xa8] sm:$0x1]  ;;  %v12512_v42 = vld [vmem:[#allocation2 + $0xa4] ss:$0 sps:$4 sm:$0x11]   ;;  %v6696_v27 = vrot.slane %v12497_v41, 1 }
 0x318   : > { %v6401_v63 = vor.u32 %v6400_v39, %v6396_v51  ;;  %v5788_v55 = vsel %vm13096_vm7, %v10549_v10, %v5787_v8  ;;  %v12500_v4 = vld [vmem:[#allocation2 + $0x84] sm:$0xff]   ;;  %v6417_v50 = vrot.slane %v6415_v26, 1  ;;  %v5670_v19 = vld [vmem:[#allocation2 + $0xb4] sm:$0x2]  ;;  %v5790_v24 = vld [vmem:[#allocation2 + $0xb4] sm:$0x1] }
 0x319   : > { %v12501_v22 = vld [vmem:[#allocation2 + $0x90] sm:$0xff]   ;;  %5789 = vst [vmem:[#allocation2 + $0xa8] sm:$0x1] %v5788_v55  ;;  %v12506_v29 = vld [vmem:[#allocation2 + $0x98] ss:$0 sps:$4 sm:$0x11]   ;;  %v6698_v47 = vsel %vm1867_vm9, %v6696_v27, %v6697_v31 }
 0x31a   : > { %v6410_v61 = vshll.u32 %v12501_v22, 16  ;;  %v12491_v12 = vld [vmem:[#allocation2 + $0x90] sm:$0xff]   ;;  %v6408_v32 = vshrl.u32 %v12501_v22, 16  ;;  %v6406_v13 = vsel %vm1466_vm10, %v6401_v63, %v6405_v28  ;;  %v12511_v59 = vld [vmem:[#allocation2 + $0x9c] sm:$0xff]   ;;  %v10550_v52 = vrot.slane %v5670_v19, 9  ;;  %v14056_v40 = vld [vmem:[#allocation2 + $0x24] sm:$0xff]  }
 0x31b   : > { %v6422_v30 = vshll.u32 %v12511_v59, 16  ;;  %v12505_v23 = vld [vmem:[#allocation2 + $0x90] sm:$0xfe]   ;;  %v6420_v60 = vshrl.u32 %v12511_v59, 16  ;;  %v5937_v58 = vld [vmem:[#allocation2 + $0xc8] sm:$0x1] }
 0x31c   : > { %v6412_v5 = vrot.slane %v6410_v61, 1  ;;  %v5791_v48 = vsel %vm13096_vm7, %v10550_v52, %v5790_v24  ;;  %v6700_v7 = vrot.slane %v12506_v29, 1  ;;  %v12518_v9 = vld [vmem:[#allocation2 + $0xb0] ss:$0 sps:$4 sm:$0x11]   ;;  %v12516_v61 = vld [vmem:[#allocation2 + $0x9c] sm:$0xff]  }
 0x31d   : > { %9360 = vmatmul.mubr.bf16.gmra.mrb[192].mxu0 %v6689_v34  ;;  %9199 = vmatmul.mubr.bf16.gmra.mrb[160].mxu1 %v12477_v36  ;;  %v12499_v36 = vld [vmem:[#allocation2 + $0x9c] sm:$0xff]   ;;  %v6427_v34 = vshll.u32 %v12512_v42, 16  ;;  %v6424_v43 = vrot.slane %v6422_v30, 1  ;;  %5792 = vst [vmem:[#allocation2 + $0xb4] sm:$0x1] %v5791_v48  ;;  %v12509_v0 = vld [vmem:[#allocation2 + $0x90] sm:$0xff]  }
 0x31e   : > { %9367 = vmatprep.mubr.bf16.mxu0 %v12475_v45  ;;  %9206 = vmatprep.mubr.bf16.mxu1 %v6382_v20  ;;  %v6413_v1 = vor.u32 %v6412_v5, %v6408_v32  ;;  %v5815_v45 = vld [vmem:[#allocation2 + $0xc4] sm:$0x8]  ;;  %v5671_v17 = vld [vmem:[#allocation2 + $0xc0] sm:$0x2]  ;;  %v5793_v38 = vld [vmem:[#allocation2 + $0xc0] sm:$0x1] }
 0x31f   : > { %v10569_v16 = vrot.slane %v5815_v45, 11  ;;  %v6429_v21 = vrot.slane %v6427_v34, 1  ;;  %v6425_v53 = vor.u32 %v6424_v43, %v6420_v60  ;;  %v12514_v39 = vld [vmem:[#allocation2 + $0xa4] ss:$0 sps:$4 sm:$0x11]   ;;  %v10551_v3 = vrot.slane %v5671_v17, 9 }
 0x320   : > { %v6418_v20 = vsel %vm1466_vm10, %v6413_v1, %v6417_v50  ;;  %v12517_v49 = vld [vmem:[#allocation2 + $0xa8] sm:$0xff]   ;;  %v12513_v14 = vld [vmem:[#allocation2 + $0x9c] sm:$0xfe]   ;;  %v6439_v54 = vshll.u32 %v12518_v9, 16  ;;  %v6703_v28 = vrot.slane %v12514_v39, 1  ;;  %v7878_v42 = vshll.u32 %v14056_v40, 16 }
 0x321   : > { %v6434_v37 = vshll.u32 %v12517_v49, 16  ;;  %v5794_v51 = vsel %vm13096_vm7, %v10551_v3, %v5793_v38  ;;  %v6430_v22 = vsel %vm1466_vm10, %v6425_v53, %v6429_v21  ;;  %v6432_v25 = vshrl.u32 %v12517_v49, 16  ;;  %v12530_v44 = vld [vmem:[#allocation2 + $0xbc] ss:$0 sps:$4 sm:$0x11]   ;;  %v12527_v29 = vld [vmem:[#allocation2 + $0xa8] sm:$0xff]  }
 0x322   : > { %5795 = vst [vmem:[#allocation2 + $0xc0] sm:$0x1] %v5794_v51  ;;  %v6441_v46 = vrot.slane %v6439_v54, 1  ;;  %v6702_v41 = vrot.slane %v12513_v14, 1  ;;  %v12553_v9 = vld [vmem:[#allocation2 + $0x30] sm:$0xff]  }
 0x323   : > { %v6436_v6 = vrot.slane %v6434_v37, 1  ;;  %v12522_v32 = vld [vmem:[#allocation2 + $0xb0] ss:$0 sps:$4 sm:$0x11]   ;;  %v7888_v54 = vshrl.u32 %v12553_v9, 16 }
 0x324   : > { %v6704_v10 = vsel %vm1867_vm9, %v6702_v41, %v6703_v28  ;;  %v12515_v8 = vld [vmem:[#allocation2 + $0xb4] sm:$0xff]   ;;  %v12538_v59 = vld [vmem:[#allocation2 + $0x20] ss:$0 sps:$4 sm:$0x11]   ;;  %v6706_v31 = vrot.slane %v12522_v32, 1 }
 0x325   : > { %9368 = vmatmul.mubr.bf16.gmra.mrb[196].mxu0 %v6692_v56  ;;  %9207 = vmatmul.mubr.bf16.gmra.mrb[164].mxu1 %v12484_v18  ;;  %v6699_v18 = vrot.slane %v12505_v23, 1  ;;  %v5938_v56 = vsel %vm13122_vm8, %v10569_v16, %v5937_v58  ;;  %v12534_v50 = vld [vmem:[#allocation2 + $0xbc] ss:$0 sps:$4 sm:$0x11]   ;;  %v7880_v23 = vrot.slane %v7878_v42, 1  ;;  %v7871_v34 = vshll.u32 %v12538_v59, 16 }
 0x326   : > { %9375 = vmatprep.mubr.bf16.mxu0 %v12483_v2  ;;  %9214 = vmatprep.mubr.bf16.mxu1 %v6394_v15  ;;  %v14047_v2 = vld [vmem:[#allocation2 + $0x18] sm:$0xff]   ;;  %v12507_v15 = vld [vmem:[#allocation2 + $0xa8] sm:$0xff]   ;;  %5939 = vst [vmem:[#allocation2 + $0xc8] sm:$0x1] %v5938_v56  ;;  %v6709_v43 = vrot.slane %v12534_v50, 1 }
 0x327   : > { %v6701_v11 = vsel %vm1867_vm9, %v6699_v18, %v6700_v7  ;;  %v7864_v63 = vshrl.u32 %v14047_v2, 16  ;;  %v7866_v55 = vshll.u32 %v14047_v2, 16  ;;  %v12541_v48 = vld [vmem:[#allocation2 + $0x14] ss:$0 sps:$4 sm:$0x11]   ;;  %v7873_v60 = vrot.slane %v7871_v34, 1 }
 0x328   : > { %v12540_v16 = vld [vmem:[#allocation2 + $0xc] sm:$0xfe]   ;;  %v12549_v58 = vld [vmem:[#allocation2 + $0x14] ss:$0 sps:$4 sm:$0x11]   ;;  %v12555_v18 = vld [vmem:[#allocation2 + $0x18] sm:$0xff]  }
 0x329   : > { %v7868_v45 = vrot.slane %v7866_v55, 1  ;;  %v12524_v24 = vld [vmem:[#allocation2 + $0xc0] sm:$0xff]   ;;  %v7464_v21 = vrot.slane %v12541_v48, 1  ;;  %v12546_v53 = vld [vmem:[#allocation2 + $0x2c] ss:$0 sps:$4 sm:$0x11]  }
 0x32a   : > { %v12539_v17 = vld [vmem:[#allocation2 + $0xb4] sm:$0xff]   ;;  %v7463_v2 = vrot.slane %v12540_v16, 1  ;;  %v12551_v39 = vld [vmem:[#allocation2 + $0x20] ss:$0 sps:$4 sm:$0x11]   ;;  %v7071_v56 = vshll.u32 %v12549_v58, 16 }
 0x32b   : > { %v7869_v7 = vor.u32 %v7868_v45, %v7864_v63  ;;  %v7883_v14 = vshll.u32 %v12546_v53, 16  ;;  %v7078_v51 = vshll.u32 %v12555_v18, 16  ;;  %v12558_v32 = vld [vmem:[#allocation2 + $0x2c] ss:$0 sps:$4 sm:$0x11]   ;;  %v12563_v55 = vld [vmem:[#allocation2 + $0x24] sm:$0xff]  }
 0x32c   : > { %v7073_v28 = vrot.slane %v7071_v56, 1  ;;  %v12552_v34 = vld [vmem:[#allocation2 + $0x24] sm:$0xff]   ;;  %v12569_v16 = vld [vmem:[#allocation2 + $0x50] ss:$0 sps:$4 sm:$0x11]  }
 0x32d   : > { %9376 = vmatmul.mubr.bf16.gmra.mrb[200].mxu0 %v6695_v35  ;;  %9215 = vmatmul.mubr.bf16.gmra.mrb[168].mxu1 %v12493_v62  ;;  %v12529_v62 = vld [vmem:[#allocation2 + $0xb4] sm:$0xff]   ;;  %v12521_v35 = vld [vmem:[#allocation2 + $0xa8] sm:$0xfe]  }
 0x32e   : > { %9383 = vmatprep.mubr.bf16.mxu0 %v12491_v12  ;;  %9222 = vmatprep.mubr.bf16.mxu1 %v6406_v13  ;;  %v6437_v12 = vor.u32 %v6436_v6, %v6432_v25  ;;  %v6446_v33 = vshll.u32 %v12529_v62, 16  ;;  %v6451_v13 = vshll.u32 %v12530_v44, 16  ;;  %v6444_v27 = vshrl.u32 %v12529_v62, 16  ;;  %v12554_v6 = vld [vmem:[#allocation2 + $0x38] ss:$0 sps:$4 sm:$0x11]  }
 0x32f   : > { %v6705_v19 = vrot.slane %v12521_v35, 1  ;;  %v7890_v62 = vshll.u32 %v12553_v9, 16  ;;  %v12556_v44 = vld [vmem:[#allocation2 + $0x20] ss:$0 sps:$4 sm:$0x11]   ;;  %v7895_v41 = vshll.u32 %v12554_v6, 16 }
 0x330   : > { %v6442_v5 = vsel %vm1466_vm10, %v6437_v12, %v6441_v46  ;;  %v6448_v26 = vrot.slane %v6446_v33, 1  ;;  %v6453_v1 = vrot.slane %v6451_v13, 1  ;;  %v7885_v12 = vrot.slane %v7883_v14, 1  ;;  %v12561_v35 = vld [vmem:[#allocation2 + $0x44] ss:$0 sps:$4 sm:$0x11]  }
 0x331   : > { %v6707_v52 = vsel %vm1867_vm9, %v6705_v19, %v6706_v31  ;;  %v7467_v33 = vrot.slane %v12551_v39, 1  ;;  %v12562_v13 = vld [vmem:[#allocation9 + $0x208] sm:$0xff]   ;;  %v7892_v42 = vrot.slane %v7890_v62, 1  ;;  %v7076_v31 = vshrl.u32 %v12555_v18, 16  ;;  %v12570_v18 = vld [vmem:[#allocation2 + $0x30] sm:$0xff]  }
 0x332   : > { %v6449_v30 = vor.u32 %v6448_v26, %v6444_v27  ;;  %v7083_v26 = vshll.u32 %v12556_v44, 16  ;;  %v7897_v50 = vrot.slane %v7895_v41, 1  ;;  %v7907_v19 = vshll.u32 %v12561_v35, 16  ;;  %v12565_v53 = vld [vmem:[#allocation2 + $0x30] sm:$0xfe]  }
 0x333   : > { %v12559_v56 = vld [vmem:[#allocation2 + $0x30] sm:$0xff]   ;;  %v7472_v14 = vrot.slane %v12565_v53, 1  ;;  %v12579_v62 = vld [vmem:[#allocation2 + $0x44] ss:$0 sps:$4 sm:$0x11]  }
 0x334   : > { %v7085_v45 = vrot.slane %v7083_v26, 1  ;;  %v12575_v6 = vld [vmem:[#allocation2 + $0x54] sm:$0xff]   ;;  %v12567_v26 = vld [vmem:[#allocation2 + $0x3c] sm:$0xff]  }
 0x335   : > { %9384 = vmatmul.mubr.bf16.gmra.mrb[204].mxu0 %v6698_v47  ;;  %9223 = vmatmul.mubr.bf16.gmra.mrb[172].mxu1 %v12500_v4  ;;  %v12548_v4 = vld [vmem:[#allocation2 + $0xc] sm:$0xff]   ;;  %v12533_v47 = vld [vmem:[#allocation2 + $0xb4] sm:$0xfe]  }
 0x336   : > { %9391 = vmatprep.mubr.bf16.mxu0 %v12499_v36  ;;  %9230 = vmatprep.mubr.bf16.mxu1 %v6418_v20  ;;  %v7876_v36 = vshrl.u32 %v14056_v40, 16  ;;  %v6454_v20 = vsel %vm1466_vm10, %v6449_v30, %v6453_v1  ;;  %v7066_v49 = vshll.u32 %v12548_v4, 16  ;;  %v6708_v37 = vrot.slane %v12533_v47, 1  ;;  %v12564_v1 = vld [vmem:[#allocation2 + $0x2c] ss:$0 sps:$4 sm:$0x11]  }
 0x337   : > { %v7080_v40 = vrot.slane %v7078_v51, 1  ;;  %v12566_v47 = vld [vmem:[#allocation2 + $0x38] ss:$0 sps:$4 sm:$0x11]  }
 0x338   : > { %v6710_v3 = vsel %vm1867_vm9, %v6708_v37, %v6709_v43  ;;  %v7068_v38 = vrot.slane %v7066_v49, 1  ;;  %v7881_v25 = vor.u32 %v7880_v23, %v7876_v36  ;;  %v7470_v23 = vrot.slane %v12558_v32, 1  ;;  %v12568_v49 = vld [vmem:[#allocation2 + $0x48] sm:$0xff]   ;;  %v12571_v37 = vld [vmem:[#allocation2 + $0x38] ss:$0 sps:$4 sm:$0x11]  }
 0x339   : > { %v7081_v30 = vor.u32 %v7080_v40, %v7076_v31  ;;  %v7088_v43 = vshrl.u32 %v12563_v55, 16  ;;  %v12576_v51 = vld [vmem:[#allocation2 + $0x5c] ss:$0 sps:$4 sm:$0x11]   ;;  %v12572_v40 = vld [vmem:[#allocation2 + $0x3c] sm:$0xfe]  }
 0x33a   : > { %v7886_v59 = vsel %vm1466_vm10, %v7881_v25, %v7885_v12  ;;  %v12580_v31 = vld [vmem:[#allocation2 + $0x48] sm:$0xfe]   ;;  %v12593_v53 = vld [vmem:[#allocation2 + $0x54] sm:$0xff]  }
 0x33d   : > { %9392 = vmatmul.mubr.bf16.gmra.mrb[208].mxu0 %v6701_v11  ;;  %9231 = vmatmul.mubr.bf16.gmra.mrb[176].mxu1 %v12509_v0  ;;  %v12550_v0 = vld [vmem:[#allocation2 + $0x18] sm:$0xfe]   ;;  %v7874_v11 = vsel %vm1466_vm10, %v7869_v7, %v7873_v60  ;;  %v7086_v60 = vsel %vm1466_vm10, %v7081_v30, %v7085_v45  ;;  %v12584_v45 = vld [vmem:[#allocation2 + $0x68] ss:$0 sps:$4 sm:$0x11]  }
 0x33e   : > { %9399 = vmatprep.mubr.bf16.mxu0 %v12507_v15  ;;  %9238 = vmatprep.mubr.bf16.mxu1 %v6430_v22  ;;  %v7465_v15 = vsel %vm1867_vm9, %v7463_v2, %v7464_v21  ;;  %v7064_v22 = vshrl.u32 %v12548_v4, 16  ;;  %v7466_v46 = vrot.slane %v12550_v0, 1  ;;  %v12577_v2 = vld [vmem:[#allocation9 + $0x210] sm:$0xff]  }
 0x340   : > { %v7069_v63 = vor.u32 %v7068_v38, %v7064_v22  ;;  %v7468_v27 = vsel %vm1867_vm9, %v7466_v46, %v7467_v33  ;;  %v7102_v38 = vshll.u32 %v12570_v18, 16  ;;  %v7107_v22 = vshll.u32 %v12571_v37, 16 }
 0x341   : > { %v7100_v33 = vshrl.u32 %v12570_v18, 16  ;;  %v7943_v18 = vshll.u32 %v12584_v45, 16 }
 0x342   : > { %v7104_v44 = vrot.slane %v7102_v38, 1  ;;  %v7109_v41 = vrot.slane %v7107_v22, 1 }
 0x344   : > { %v7105_v35 = vor.u32 %v7104_v44, %v7100_v33  ;;  %v12599_v33 = vld [vmem:[#allocation2 + $0x80] ss:$0 sps:$4 sm:$0x11]  }
 0x345   : > { %9400 = vmatmul.mubr.bf16.gmra.mrb[212].mxu0 %v6704_v10  ;;  %9239 = vmatmul.mubr.bf16.gmra.mrb[180].mxu1 %v12516_v61  ;;  %v12544_v61 = vld [vmem:[#allocation2 + $0x18] sm:$0xff]  }
 0x346   : > { %9407 = vmatprep.mubr.bf16.mxu0 %v12515_v8  ;;  %9246 = vmatprep.mubr.bf16.mxu1 %v6442_v5  ;;  %v12560_v10 = vld [vmem:[#allocation2 + $0x3c] sm:$0xff]   ;;  %v12557_v8 = vld [vmem:[#allocation2 + $0x24] sm:$0xfe]   ;;  %v7074_v5 = vsel %vm1466_vm10, %v7069_v63, %v7073_v28  ;;  %v7912_v28 = vshrl.u32 %v12568_v49, 16  ;;  %v7110_v30 = vsel %vm1466_vm10, %v7105_v35, %v7109_v41 }
 0x347   : > { %v7902_v4 = vshll.u32 %v12560_v10, 16  ;;  %v7469_v36 = vrot.slane %v12557_v8, 1  ;;  %v12596_v41 = vld [vmem:[#allocation2 + $0x68] ss:$0 sps:$4 sm:$0x11]   ;;  %v12607_v35 = vld [vmem:[#allocation9 + $0x220] sm:$0xff]  }
 0x349   : > { %v7904_v48 = vrot.slane %v7902_v4, 1  ;;  %v7471_v21 = vsel %vm1867_vm9, %v7469_v36, %v7470_v23  ;;  %v7924_v4 = vshrl.u32 %v12575_v6, 16 }
 0x34d   : > { %9408 = vmatmul.mubr.bf16.gmra.mrb[216].mxu0 %v6707_v52  ;;  %9247 = vmatmul.mubr.bf16.gmra.mrb[184].mxu1 %v12527_v29  ;;  %v7090_v29 = vshll.u32 %v12563_v55, 16  ;;  %v7893_v52 = vor.u32 %v7892_v42, %v7888_v54  ;;  %v12578_v54 = vld [vmem:[#allocation2 + $0x3c] sm:$0xff]   ;;  %v12585_v42 = vld [vmem:[#allocation2 + $0x48] sm:$0xff]  }
 0x34e   : > { %9415 = vmatprep.mubr.bf16.mxu0 %v12524_v24  ;;  %9254 = vmatprep.mubr.bf16.mxu1 %v6454_v20  ;;  %v7900_v24 = vshrl.u32 %v12560_v10, 16  ;;  %v7095_v20 = vshll.u32 %v12564_v1, 16  ;;  %v7926_v10 = vshll.u32 %v12575_v6, 16  ;;  %v7114_v8 = vshll.u32 %v12578_v54, 16 }
 0x34f   : > { %v7092_v58 = vrot.slane %v7090_v29, 1  ;;  %v7898_v7 = vsel %vm1466_vm10, %v7893_v52, %v7897_v50  ;;  %v7112_v52 = vshrl.u32 %v12578_v54, 16 }
 0x350   : > { %v7097_v9 = vrot.slane %v7095_v20, 1  ;;  %v7905_v0 = vor.u32 %v7904_v48, %v7900_v24  ;;  %v7928_v1 = vrot.slane %v7926_v10, 1  ;;  %v7116_v50 = vrot.slane %v7114_v8, 1  ;;  %v12586_v20 = vld [vmem:[#allocation2 + $0x50] ss:$0 sps:$4 sm:$0x11]  }
 0x351   : > { %v7093_v39 = vor.u32 %v7092_v58, %v7088_v43  ;;  %v7131_v37 = vshll.u32 %v12586_v20, 16  ;;  %v12601_v8 = vld [vmem:[#allocation2 + $0x68] ss:$0 sps:$4 sm:$0x11]   ;;  %v12602_v20 = vld [vmem:[#allocation2 + $0x6c] sm:$0xfe]  }
 0x352   : > { %v7117_v43 = vor.u32 %v7116_v50, %v7112_v52  ;;  %v7929_v58 = vor.u32 %v7928_v1, %v7924_v4  ;;  %v12608_v52 = vld [vmem:[#allocation2 + $0x6c] sm:$0xff]  }
 0x353   : > { %v7098_v63 = vsel %vm1466_vm10, %v7093_v39, %v7097_v9  ;;  %v12587_v9 = vld [vmem:[#allocation2 + $0x54] sm:$0xfe]   ;;  %v12594_v39 = vld [vmem:[#allocation2 + $0x5c] ss:$0 sps:$4 sm:$0x11]   ;;  %v7133_v22 = vrot.slane %v7131_v37, 1 }
 0x354   : > { %v7481_v6 = vrot.slane %v12587_v9, 1 }
 0x355   : > { %9416 = vmatmul.mubr.bf16.gmra.mrb[220].mxu0 %v6710_v3  ;;  %9255 = vmatmul.mubr.bf16.gmra.mrb[188].mxu1 %v12539_v17  ;;  %v7473_v17 = vrot.slane %v12566_v47, 1  ;;  %v7914_v3 = vshll.u32 %v12568_v49, 16  ;;  %v7478_v47 = vrot.slane %v12580_v31, 1 }
 0x356   : > { %9617 = vmatprep.mubr.bf16.mxu0 %v7874_v11  ;;  %9456 = vmatprep.mubr.bf16.mxu1 %v7465_v15  ;;  %v7919_v11 = vshll.u32 %v12569_v16, 16  ;;  %v12573_v15 = vld [vmem:[#allocation2 + $0x44] ss:$0 sps:$4 sm:$0x11]   ;;  %v12590_v16 = vld [vmem:[#allocation2 + $0x6c] sm:$0xff]  }
 0x357   : > { %v7916_v12 = vrot.slane %v7914_v3, 1  ;;  %v7476_v32 = vrot.slane %v12573_v15, 1 }
 0x358   : > { %v7921_v46 = vrot.slane %v7919_v11, 1  ;;  %v7138_v11 = vshll.u32 %v12593_v53, 16 }
 0x359   : > { %v7917_v55 = vor.u32 %v7916_v12, %v7912_v28  ;;  %v12582_v28 = vld [vmem:[#allocation2 + $0x54] sm:$0xff]   ;;  %v7143_v12 = vshll.u32 %v12594_v39, 16 }
 0x35a   : > { %v12613_v39 = vld [vmem:[#allocation2 + $0x90] sm:$0xff]  }
 0x35b   : > { %v7922_v36 = vsel %vm1466_vm10, %v7917_v55, %v7921_v46  ;;  %v12598_v46 = vld [vmem:[#allocation2 + $0x78] sm:$0xff]   ;;  %v7145_v50 = vrot.slane %v7143_v12, 1  ;;  %v12622_v12 = vld [vmem:[#allocation9 + $0x228] sm:$0xff]  }
 0x35c   : > { %v7962_v55 = vshll.u32 %v12598_v46, 16 }
 0x35d   : > { %9618 = vmatmul.mubr.bf16.vlgmr.msra.gmra.mrb[224].mxu0 %v12544_v61  ;;  %9457 = vmatmul.mubr.bf16.vlgmr.msra.gmra.mrb[192].mxu1 %v7074_v5  ;;  %v7474_v61 = vsel %vm1867_vm9, %v7472_v14, %v7473_v17  ;;  %v7119_v5 = vshll.u32 %v12579_v62, 16  ;;  %v12591_v17 = vld [vmem:[#allocation2 + $0x74] ss:$0 sps:$4 sm:$0x11]   ;;  %v7124_v14 = vshrl.u32 %v12585_v42, 16 }
 0x35e   : > { %9625 = vmatprep.mubr.bf16.mxu0 %v7886_v59  ;;  %11948 = vmatpush3.bf16.msra.mxu1 %v14025_v57  ;;  %v7909_v57 = vrot.slane %v7907_v19, 1  ;;  %v12581_v59 = vld [vmem:[#allocation2 + $0x50] ss:$0 sps:$4 sm:$0x11]   ;;  %v12583_v19 = vld [vmem:[#allocation2 + $0x60] sm:$0xff]  }
 0x35f   : > { %9464 = vmatprep.mubr.bf16.mxu1 %v7468_v27  ;;  %11949 = vmatprep.subr.bf16.mxu1 %v12562_v13  ;;  %v7475_v27 = vrot.slane %v12572_v40, 1  ;;  %v7121_v24 = vrot.slane %v7119_v5, 1  ;;  %v7479_v48 = vrot.slane %v12581_v59, 1  ;;  %v7938_v49 = vshll.u32 %v12583_v19, 16  ;;  %v12595_v40 = vld [vmem:[#allocation2 + $0x60] sm:$0xfe]  }
 0x360   : > { %v7910_v25 = vsel %vm1466_vm10, %v7905_v0, %v7909_v57  ;;  %v12592_v57 = vld [vmem:[#allocation9 + $0x218] sm:$0xff]   ;;  %v7950_v0 = vshll.u32 %v12590_v16, 16  ;;  %v7936_v15 = vshrl.u32 %v12583_v19, 16  ;;  %v7136_v59 = vshrl.u32 %v12593_v53, 16  ;;  %v12589_v19 = vld [vmem:[#allocation2 + $0x60] sm:$0xff]  }
 0x361   : > { %v7477_v23 = vsel %vm1867_vm9, %v7475_v27, %v7476_v32  ;;  %v7480_v38 = vsel %vm1867_vm9, %v7478_v47, %v7479_v48  ;;  %v12600_v32 = vld [vmem:[#allocation2 + $0x60] sm:$0xff]   ;;  %v7484_v45 = vrot.slane %v12595_v40, 1  ;;  %v12610_v53 = vld [vmem:[#allocation2 + $0x78] sm:$0xfe]  }
 0x362   : > { %11950 = vmatpush3.bf16.msra.mxu1 %v12562_v13  ;;  %v7931_v13 = vshll.u32 %v12576_v51, 16  ;;  %v7945_v51 = vrot.slane %v7943_v18, 1  ;;  %v7150_v27 = vshll.u32 %v12600_v32, 16  ;;  %v7148_v47 = vshrl.u32 %v12600_v32, 16 }
 0x363   : > { %11951 = vmatprep.subr.bf16.mxu1 %v12577_v2 }
 0x364   : > { %v7933_v29 = vrot.slane %v7931_v13, 1  ;;  %v7152_v48 = vrot.slane %v7150_v27, 1 }
 0x365   : > { %9626 = vmatmul.mubr.bf16.gmra.mrb[228].mxu0 %v12552_v34  ;;  %9465 = vmatmul.mubr.bf16.gmra.mrb[196].mxu1 %v7086_v60  ;;  %v7126_v34 = vshll.u32 %v12585_v42, 16  ;;  %v12574_v60 = vld [vmem:[#allocation2 + $0x48] sm:$0xff]   ;;  %v7967_v42 = vshll.u32 %v12599_v33, 16 }
 0x366   : > { %9633 = vmatprep.mubr.bf16.mxu0 %v7898_v7  ;;  %9472 = vmatprep.mubr.bf16.mxu1 %v7471_v21  ;;  %v12588_v21 = vld [vmem:[#allocation2 + $0x5c] ss:$0 sps:$4 sm:$0x11]   ;;  %v7934_v3 = vsel %vm1466_vm10, %v7929_v58, %v7933_v29  ;;  %v7964_v29 = vrot.slane %v7962_v55, 1  ;;  %v7153_v9 = vor.u32 %v7152_v48, %v7148_v47 }
 0x367   : > { %11952 = vmatpush3.bf16.msra.mxu1 %v12577_v2  ;;  %v7128_v7 = vrot.slane %v7126_v34, 1  ;;  %v7122_v2 = vsel %vm1466_vm10, %v7117_v43, %v7121_v24  ;;  %v7482_v54 = vrot.slane %v12588_v21, 1  ;;  %v12605_v34 = vld [vmem:[#allocation2 + $0x84] sm:$0xff]   ;;  %v7969_v24 = vrot.slane %v7967_v42, 1 }
 0x368   : > { %11953 = vmatprep.subr.bf16.mxu1 %v12592_v57  ;;  %v12606_v43 = vld [vmem:[#allocation2 + $0x8c] ss:$0 sps:$4 sm:$0x11]   ;;  %v7162_v21 = vshll.u32 %v12608_v52, 16 }
 0x369   : > { %v7129_v62 = vor.u32 %v7128_v7, %v7124_v14  ;;  %v7483_v5 = vsel %vm1867_vm9, %v7481_v6, %v7482_v54  ;;  %v7974_v7 = vshll.u32 %v12605_v34, 16  ;;  %v7979_v37 = vshll.u32 %v12606_v43, 16  ;;  %v12615_v14 = vld [vmem:[#allocation2 + $0x78] sm:$0xff]   ;;  %v12618_v55 = vld [vmem:[#allocation2 + $0x8c] ss:$0 sps:$4 sm:$0x11]  }
 0x36a   : > { %v7174_v40 = vshll.u32 %v12615_v14, 16  ;;  %v7494_v47 = vrot.slane %v12618_v55, 1  ;;  %v12633_v55 = vld [vmem:[#allocation2 + $0xa4] ss:$0 sps:$4 sm:$0x11]  }
 0x36b   : > { %11954 = vmatpush3.bf16.msra.mxu1 %v12592_v57  ;;  %v7134_v10 = vsel %vm1466_vm10, %v7129_v62, %v7133_v22  ;;  %v12603_v57 = vld [vmem:[#allocation2 + $0x74] ss:$0 sps:$4 sm:$0x11]   ;;  %v7164_v22 = vrot.slane %v7162_v21, 1  ;;  %v7981_v54 = vrot.slane %v7979_v37, 1 }
 0x36c   : > { %11955 = vmatprep.subr.bf16.mxu1 %v12607_v35  ;;  %v12611_v62 = vld [vmem:[#allocation2 + $0x80] ss:$0 sps:$4 sm:$0x11]  }
 0x36d   : > { %9634 = vmatmul.mubr.bf16.gmra.mrb[232].mxu0 %v12559_v56  ;;  %9473 = vmatmul.mubr.bf16.gmra.mrb[200].mxu1 %v7098_v63  ;;  %v7940_v56 = vrot.slane %v7938_v49, 1  ;;  %v7955_v63 = vshll.u32 %v12591_v17, 16  ;;  %v12614_v17 = vld [vmem:[#allocation2 + $0x98] ss:$0 sps:$4 sm:$0x11]  }
 0x36e   : > { %9641 = vmatprep.mubr.bf16.mxu0 %v7910_v25  ;;  %9480 = vmatprep.mubr.bf16.mxu1 %v7474_v61  ;;  %v7952_v25 = vrot.slane %v7950_v0, 1  ;;  %v7140_v61 = vrot.slane %v7138_v11, 1  ;;  %v7972_v11 = vshrl.u32 %v12605_v34, 16 }
 0x36f   : > { %v7941_v44 = vor.u32 %v7940_v56, %v7936_v15  ;;  %v7957_v31 = vrot.slane %v7955_v63, 1  ;;  %11956 = vmatpush3.bf16.msra.mxu1 %v12607_v35  ;;  %v7488_v56 = vrot.slane %v12603_v57, 1  ;;  %v7976_v15 = vrot.slane %v7974_v7, 1  ;;  %v12621_v35 = vld [vmem:[#allocation2 + $0xa4] ss:$0 sps:$4 sm:$0x11]  }
 0x370   : > { %v7141_v1 = vor.u32 %v7140_v61, %v7136_v59  ;;  %v7991_v61 = vshll.u32 %v12614_v17, 16  ;;  %11957 = vmatprep.subr.bf16.mxu1 %v12622_v12  ;;  %v14100_v57 = vld [vmem:[#allocation2 + $0xa8] sm:$0xff]   ;;  %v12625_v7 = vld [vmem:[#allocation2 + $0x90] sm:$0xfe]  }
 0x371   : > { %v7946_v13 = vsel %vm1466_vm10, %v7941_v44, %v7945_v51  ;;  %v7160_v51 = vshrl.u32 %v12608_v52, 16  ;;  %v7986_v44 = vshll.u32 %v12613_v39, 16 }
 0x372   : > { %v7146_v49 = vsel %vm1466_vm10, %v7141_v1, %v7145_v50  ;;  %v7172_v1 = vshrl.u32 %v12615_v14, 16  ;;  %v7176_v50 = vrot.slane %v7174_v40, 1  ;;  %v14115_v40 = vld [vmem:[#allocation2 + $0xb4] sm:$0xff]  }
 0x373   : > { %v7165_v32 = vor.u32 %v7164_v22, %v7160_v51  ;;  %11958 = vmatpush3.bf16.msra.mxu1 %v12622_v12  ;;  %v7988_v27 = vrot.slane %v7986_v44, 1 }
 0x375   : > { %9642 = vmatmul.mubr.bf16.gmra.mrb[236].mxu0 %v12567_v26  ;;  %9481 = vmatmul.mubr.bf16.gmra.mrb[204].mxu1 %v7110_v30  ;;  %v7948_v26 = vshrl.u32 %v12590_v16, 16  ;;  %v7155_v30 = vshll.u32 %v12601_v8, 16 }
 0x376   : > { %9649 = vmatprep.mubr.bf16.mxu0 %v7922_v36  ;;  %9488 = vmatprep.mubr.bf16.mxu1 %v7477_v23  ;;  %v7485_v36 = vrot.slane %v12596_v41, 1  ;;  %v7960_v23 = vshrl.u32 %v12598_v46, 16  ;;  %v14093_v41 = vld [vmem:[#allocation2 + $0x9c] sm:$0xff]  }
 0x377   : > { %v7953_v4 = vor.u32 %v7952_v25, %v7948_v26  ;;  %v7157_v16 = vrot.slane %v7155_v30, 1  ;;  %v12616_v25 = vld [vmem:[#allocation2 + $0x80] ss:$0 sps:$4 sm:$0x11]   ;;  %v7984_v26 = vshrl.u32 %v12613_v39, 16  ;;  %v7998_v59 = vshll.u32 %v14093_v41, 16 }
 0x378   : > { %v7486_v18 = vsel %vm1867_vm9, %v7484_v45, %v7485_v36  ;;  %v7179_v8 = vshll.u32 %v12616_v25, 16  ;;  %v12623_v30 = vld [vmem:[#allocation2 + $0x84] sm:$0xff]   ;;  %v7996_v36 = vshrl.u32 %v14093_v41, 16  ;;  %v8010_v39 = vshll.u32 %v14100_v57, 16 }
 0x379   : > { %v7958_v58 = vsel %vm1466_vm10, %v7953_v4, %v7957_v31  ;;  %v7158_v6 = vsel %vm1466_vm10, %v7153_v9, %v7157_v16  ;;  %v12604_v31 = vld [vmem:[#allocation2 + $0x78] sm:$0xff]   ;;  %v7993_v4 = vrot.slane %v7991_v61, 1  ;;  %v8000_v48 = vrot.slane %v7998_v59, 1  ;;  %v12612_v9 = vld [vmem:[#allocation2 + $0x84] sm:$0xff]  }
 0x37a   : > { %v7989_v43 = vor.u32 %v7988_v27, %v7984_v26  ;;  %v7186_v16 = vshll.u32 %v12623_v30, 16  ;;  %v7184_v14 = vshrl.u32 %v12623_v30, 16  ;;  %v8008_v61 = vshrl.u32 %v14100_v57, 16  ;;  %v12632_v26 = vld [vmem:[#allocation2 + $0x9c] sm:$0xfe]   ;;  %v12637_v59 = vld [vmem:[#allocation9 + $0x230] sm:$0xff]  }
 0x37b   : > { %v8012_v12 = vrot.slane %v8010_v39, 1  ;;  %v8022_v27 = vshll.u32 %v14115_v40, 16  ;;  %11959 = vmatprep.subr.bf16.mxu1 %v12637_v59  ;;  %v8020_v57 = vshrl.u32 %v14115_v40, 16 }
 0x37c   : > { %v7188_v51 = vrot.slane %v7186_v16, 1  ;;  %11960 = vmatpush3.bf16.msra.mxu1 %v12637_v59 }
 0x37d   : > { %9650 = vmatmul.mubr.bf16.gmra.mrb[240].mxu0 %v12574_v60  ;;  %9489 = vmatmul.mubr.bf16.gmra.mrb[208].mxu1 %v7122_v2  ;;  %v12609_v60 = vld [vmem:[#allocation2 + $0x74] ss:$0 sps:$4 sm:$0x11]   ;;  %v7965_v2 = vor.u32 %v7964_v29, %v7960_v23  ;;  %v8003_v23 = vshll.u32 %v12621_v35, 16  ;;  %v8013_v39 = vor.u32 %v8012_v12, %v8008_v61 }
 0x37e   : > { %9657 = vmatprep.mubr.bf16.mxu0 %v7934_v3  ;;  %9496 = vmatprep.mubr.bf16.mxu1 %v7480_v38  ;;  %v7167_v0 = vshll.u32 %v12609_v60, 16  ;;  %v12597_v3 = vld [vmem:[#allocation2 + $0x6c] sm:$0xff]   ;;  %v7487_v38 = vrot.slane %v12602_v20, 1 }
 0x37f   : > { %v7970_v46 = vsel %vm1466_vm10, %v7965_v2, %v7969_v24  ;;  %v12624_v24 = vld [vmem:[#allocation2 + $0x8c] ss:$0 sps:$4 sm:$0x11]   ;;  %v8005_v37 = vrot.slane %v8003_v23, 1 }
 0x380   : > { %v7169_v63 = vrot.slane %v7167_v0, 1  ;;  %v7489_v33 = vsel %vm1867_vm9, %v7487_v38, %v7488_v56  ;;  %v7191_v17 = vshll.u32 %v12624_v24, 16  ;;  %v12629_v0 = vld [vmem:[#allocation2 + $0xb0] ss:$0 sps:$4 sm:$0x11]  }
 0x382   : > { %v7170_v42 = vsel %vm1466_vm10, %v7165_v32, %v7169_v63  ;;  %v8001_v32 = vor.u32 %v8000_v48, %v7996_v36 }
 0x385   : > { %9658 = vmatmul.mubr.bf16.gmra.mrb[244].mxu0 %v12582_v28  ;;  %9497 = vmatmul.mubr.bf16.gmra.mrb[212].mxu1 %v7134_v10  ;;  %v7490_v28 = vrot.slane %v12610_v53, 1  ;;  %v12617_v10 = vld [vmem:[#allocation2 + $0x84] sm:$0xfe]   ;;  %v14104_v53 = vld [vmem:[#allocation2 + $0x90] sm:$0xff]  }
 0x386   : > { %9665 = vmatprep.mubr.bf16.mxu0 %v7946_v13  ;;  %9504 = vmatprep.mubr.bf16.mxu1 %v7483_v5  ;;  %v7977_v13 = vor.u32 %v7976_v15, %v7972_v11  ;;  %v7491_v5 = vrot.slane %v12611_v62, 1  ;;  %v7493_v45 = vrot.slane %v12617_v10, 1  ;;  %v12631_v11 = vld [vmem:[#allocation2 + $0x98] ss:$0 sps:$4 sm:$0x11]   ;;  %v7496_v62 = vrot.slane %v12625_v7, 1 }
 0x387   : > { %v7189_v10 = vor.u32 %v7188_v51, %v7184_v14  ;;  %v7203_v35 = vshll.u32 %v12631_v11, 16  ;;  %v12641_v11 = vld [vmem:[#allocation2 + $0xb0] ss:$0 sps:$4 sm:$0x11]   ;;  %v14135_v14 = vld [vmem:[#allocation2 + $0xa8] sm:$0xff]  }
 0x388   : > { %v7982_v29 = vsel %vm1466_vm10, %v7977_v13, %v7981_v54  ;;  %v7492_v34 = vsel %vm1867_vm9, %v7490_v28, %v7491_v5  ;;  %v7495_v15 = vsel %vm1867_vm9, %v7493_v45, %v7494_v47  ;;  %v7193_v54 = vrot.slane %v7191_v17, 1  ;;  %v12619_v13 = vld [vmem:[#allocation2 + $0x90] sm:$0xff]   ;;  %v14120_v5 = vld [vmem:[%s14525_s4] ss:$0 sm:$0xff] }
 0x389   : > { %v7205_v23 = vrot.slane %v7203_v35, 1  ;;  %v7499_v47 = vrot.slane %v12632_v26, 1  ;;  %v14133_v17 = vld [vmem:[#allocation2 + $0xc0] sm:$0xff]   ;;  %v7222_v12 = vshll.u32 %v14135_v14, 16 }
 0x38d   : > { %9666 = vmatmul.mubr.bf16.gmra.mrb[248].mxu0 %v12589_v19  ;;  %9505 = vmatmul.mubr.bf16.gmra.mrb[216].mxu1 %v7146_v49  ;;  %v7181_v19 = vrot.slane %v7179_v8, 1  ;;  %v7177_v49 = vor.u32 %v7176_v50, %v7172_v1  ;;  %v8006_v1 = vsel %vm1466_vm10, %v8001_v32, %v8005_v37  ;;  %v7194_v50 = vsel %vm1466_vm10, %v7189_v10, %v7193_v54 }
 0x38e   : > { %9673 = vmatprep.mubr.bf16.mxu0 %v7958_v58  ;;  %9512 = vmatprep.mubr.bf16.mxu1 %v7486_v18  ;;  %v12626_v58 = vld [vmem:[#allocation2 + $0x98] ss:$0 sps:$4 sm:$0x11]   ;;  %v7503_v32 = vrot.slane %v12641_v11, 1 }
 0x38f   : > { %v7182_v38 = vsel %vm1466_vm10, %v7177_v49, %v7181_v19  ;;  %v7497_v25 = vrot.slane %v12626_v58, 1  ;;  %v12639_v19 = vld [vmem:[#allocation2 + $0xa4] ss:$0 sps:$4 sm:$0x11]  }
 0x391   : > { %v7498_v45 = vsel %vm1867_vm9, %v7496_v62, %v7497_v25 }
 0x395   : > { %9674 = vmatmul.mubr.bf16.gmra.mrb[252].mxu0 %v12597_v3  ;;  %9513 = vmatmul.mubr.bf16.gmra.mrb[220].mxu1 %v7158_v6  ;;  %v7994_v3 = vsel %vm1466_vm10, %v7989_v43, %v7993_v4  ;;  %v7198_v6 = vshll.u32 %v14104_v53, 16  ;;  %v12638_v4 = vld [vmem:[#allocation2 + $0x9c] sm:$0xff]   ;;  %v7500_v43 = vrot.slane %v12633_v55, 1 }
 0x396   : > { %9681 = vmatprep.mubr.bf16.mxu0 %v7970_v46  ;;  %9520 = vmatprep.mubr.bf16.mxu1 %v7489_v33  ;;  %v11555_v52 = vpop.f32.mrb[160].mxu0  ;;  %v8015_v46 = vshll.u32 %v12629_v0, 16  ;;  %v7196_v33 = vshrl.u32 %v14104_v53, 16  ;;  %v12627_v0 = vld [vmem:[#allocation2 + $0x9c] sm:$0xff]  }
 0x397   : > { %v11556_v20 = vpop.f32.mrb[161].mxu0  ;;  %v7200_v8 = vrot.slane %v7198_v6, 1  ;;  %v8034_v6 = vshll.u32 %v14133_v17, 16 }
 0x398   : > { %v14102_v60 = vadd.f32 %v11556_v20, %v11555_v52  ;;  %v11558_v18 = vpop.f32.mrb[162].mxu0  ;;  %v8017_v36 = vrot.slane %v8015_v46, 1 }
 0x399   : > { %v11559_v21 = vpop.f32.mrb[163].mxu0 }
 0x39a   : > { %v14106_v2 = vadd.f32 %v11559_v21, %v11558_v18  ;;  %v7210_v18 = vshll.u32 %v12638_v4, 16  ;;  %v7201_v21 = vor.u32 %v7200_v8, %v7196_v33  ;;  %v8018_v25 = vsel %vm1466_vm10, %v8013_v39, %v8017_v36  ;;  %v12642_v39 = vld [vmem:[#allocation2 + $0xb4] sm:$0xff]  }
 0x39b   : > { %v8036_v8 = vrot.slane %v8034_v6, 1 }
 0x39c   : > { %v7206_v51 = vsel %vm1466_vm10, %v7201_v21, %v7205_v23  ;;  %v12653_v23 = vld [vmem:[#allocation2 + $0xb4] sm:$0xff]   ;;  %v12654_v21 = vld [vmem:[#allocation2 + $0xbc] ss:$0 sps:$4 sm:$0x11]  }
 0x39d   : > { %9682 = vmatmul.mubr.bf16.gmra.mrb[0].mxu0 %v12604_v31  ;;  %9521 = vmatmul.mubr.bf16.gmra.mrb[224].mxu1 %v7170_v42  ;;  %v11443_v56 = vpop.f32.mrb[128].mxu1  ;;  %v12636_v31 = vld [vmem:[#allocation2 + $0xbc] ss:$0 sps:$4 sm:$0x11]  }
 0x39e   : > { %9689 = vmatprep.mubr.bf16.mxu0 %v7982_v29  ;;  %9528 = vmatprep.mubr.bf16.mxu1 %v7492_v34  ;;  %v11444_v22 = vpop.f32.mrb[129].mxu1  ;;  %v8027_v37 = vshll.u32 %v12636_v31, 16 }
 0x39f   : > { %v11445_v63 = vadd.f32 %v11444_v22, %v11443_v56  ;;  %v11446_v28 = vpop.f32.mrb[130].mxu1  ;;  %v7215_v56 = vshll.u32 %v12639_v19, 16  ;;  %v14138_v22 = vld [vmem:[#allocation2 + $0xc8] ss:$0 sps:$4 sm:$0x11]  }
 0x3a0   : > { %v11447_v44 = vpop.f32.mrb[131].mxu1  ;;  %v8029_v61 = vrot.slane %v8027_v37, 1  ;;  %v8039_v35 = vshll.u32 %v14138_v22, 16 }
 0x3a1   : > { %v11448_v41 = vadd.f32 %v11447_v44, %v11446_v28  ;;  %v9137_v24 = vadd.f32 %v11445_v63, %v14120_v5  ;;  %v7501_v63 = vsel %vm1867_vm9, %v7499_v47, %v7500_v43  ;;  %v7208_v28 = vshrl.u32 %v12638_v4, 16  ;;  %v12646_v44 = vld [vmem:[#allocation2 + $0xb0] ss:$0 sps:$4 sm:$0x11]  }
 0x3a2   : > { %v7217_v33 = vrot.slane %v7215_v56, 1  ;;  %v7227_v31 = vshll.u32 %v12646_v44, 16  ;;  %v12648_v47 = vld [vmem:[#allocation2 + $0xbc] ss:$0 sps:$4 sm:$0x11]  }
 0x3a3   : > { %v9140_v7 = vadd.f32 %v11448_v41, %v14120_v5  ;;  %v14142_v54 = vadd.f32 %v14102_v60, %v9137_v24  ;;  %v12647_v24 = vld [vmem:[#allocation2 + $0xb4] sm:$0xfe]   ;;  %v7506_v11 = vrot.slane %v12648_v47, 1 }
 0x3a4   : > { %v7505_v56 = vrot.slane %v12647_v24, 1  ;;  %v12661_v24 = vld [vmem:[#allocation2 + $0x20] ss:$0 sps:$4 sm:$0x11]  }
 0x3a5   : > { %9690 = vmatmul.mubr.bf16.gmra.mrb[4].mxu0 %v12612_v9  ;;  %9529 = vmatmul.mubr.bf16.gmra.mrb[228].mxu1 %v7182_v38  ;;  %v8024_v9 = vrot.slane %v8022_v27, 1  ;;  %v12640_v38 = vld [vmem:[#allocation2 + $0xa8] sm:$0xfe]   ;;  %v14145_v62 = vadd.f32 %v14106_v2, %v9140_v7  ;;  %v12652_v27 = vld [vmem:[#allocation9 + $0x238] sm:$0xff]  }
 0x3a6   : > { %9697 = vmatprep.mubr.bf16.mxu0 %v7994_v3  ;;  %9536 = vmatprep.mubr.bf16.mxu1 %v7495_v15  ;;  %v11561_v42 = vpop.f32.mrb[164].mxu0  ;;  %v7212_v15 = vrot.slane %v7210_v18, 1  ;;  %v7502_v40 = vrot.slane %v12640_v38, 1  ;;  %v7220_v18 = vshrl.u32 %v14135_v14, 16  ;;  %v8041_v38 = vrot.slane %v8039_v35, 1 }
 0x3a7   : > { %v11562_v30 = vpop.f32.mrb[165].mxu0  ;;  %v8025_v26 = vor.u32 %v8024_v9, %v8020_v57  ;;  %11961 = vmatprep.subr.bf16.mxu1 %v12652_v27 }
 0x3a8   : > { %v14126_v29 = vadd.f32 %v11562_v30, %v11561_v42  ;;  %v11564_v34 = vpop.f32.mrb[166].mxu0  ;;  %v11449_v52 = vpop.f32.mrb[132].mxu1  ;;  %v7213_v60 = vor.u32 %v7212_v15, %v7208_v28  ;;  %v14153_v30 = vld [vmem:[#allocation2 + $0xcc] sm:$0xff]   ;;  %11962 = vmatpush3.bf16.msra.mxu1 %v12652_v27  ;;  %v7504_v43 = vsel %vm1867_vm9, %v7502_v40, %v7503_v32 }
 0x3a9   : > { %v11565_v48 = vpop.f32.mrb[167].mxu0  ;;  %v11450_v20 = vpop.f32.mrb[133].mxu1  ;;  %v8030_v57 = vsel %vm1466_vm10, %v8025_v26, %v8029_v61  ;;  %v8046_v7 = vshll.u32 %v14153_v30, 16 }
 0x3aa   : > { %v14130_v49 = vadd.f32 %v11565_v48, %v11564_v34  ;;  %v11451_v16 = vadd.f32 %v11450_v20, %v11449_v52  ;;  %v11452_v58 = vpop.f32.mrb[134].mxu1  ;;  %v7218_v34 = vsel %vm1466_vm10, %v7213_v60, %v7217_v33  ;;  %v8044_v33 = vshrl.u32 %v14153_v30, 16 }
 0x3ab   : > { %v11453_v53 = vpop.f32.mrb[135].mxu1  ;;  %v8048_v15 = vrot.slane %v8046_v7, 1 }
 0x3ac   : > { %v11454_v3 = vadd.f32 %v11453_v53, %v11452_v58  ;;  %v9145_v46 = vadd.f32 %v11451_v16, %v14120_v5  ;;  %v12651_v58 = vld [vmem:[#allocation2 + $0xd4] ss:$0 sps:$4 sm:$0x11]   ;;  %v7234_v53 = vshll.u32 %v12653_v23, 16 }
 0x3ad   : > { %9698 = vmatmul.mubr.bf16.gmra.mrb[8].mxu0 %v12619_v13  ;;  %9537 = vmatmul.mubr.bf16.gmra.mrb[232].mxu1 %v7194_v50  ;;  %v12634_v13 = vld [vmem:[#allocation2 + $0xa8] sm:$0xff]   ;;  %v7224_v50 = vrot.slane %v7222_v12, 1  ;;  %v8051_v14 = vshll.u32 %v12651_v58, 16  ;;  %v7507_v12 = vsel %vm1867_vm9, %v7505_v56, %v7506_v11  ;;  %v12660_v58 = vld [vmem:[#allocation2 + $0x18] sm:$0xfe]  }
 0x3ae   : > { %9705 = vmatprep.mubr.bf16.mxu0 %v8006_v1  ;;  %9544 = vmatprep.mubr.bf16.mxu1 %v7498_v45  ;;  %v9148_v41 = vadd.f32 %v11454_v3, %v14120_v5  ;;  %v14157_v48 = vadd.f32 %v14126_v29, %v9145_v46  ;;  %v8032_v29 = vshrl.u32 %v14133_v17, 16  ;;  %v7236_v22 = vrot.slane %v7234_v53, 1  ;;  %v12658_v17 = vld [vmem:[#allocation2 + $0xc0] sm:$0xff]   ;;  %v12663_v11 = vld [vmem:[#allocation2 + $0x2c] ss:$0 sps:$4 sm:$0x11]  }
 0x3af   : > { %v7225_v37 = vor.u32 %v7224_v50, %v7220_v18  ;;  %v7232_v46 = vshrl.u32 %v12653_v23, 16  ;;  %v7246_v26 = vshll.u32 %v12658_v17, 16  ;;  %v12649_v50 = vld [vmem:[#allocation2 + $0xc0] sm:$0xff]  }
 0x3b0   : > { %v14160_v20 = vadd.f32 %v14130_v49, %v9148_v41  ;;  %v8037_v3 = vor.u32 %v8036_v8, %v8032_v29  ;;  %v12659_v8 = vld [vmem:[#allocation2 + $0xc8] ss:$0 sps:$4 sm:$0x11]  }
 0x3b2   : > { %v8042_v44 = vsel %vm1466_vm10, %v8037_v3, %v8041_v38 }
 0x3b3   : > { %v11455_v2 = vpop.f32.mrb[136].mxu1 }
 0x3b4   : > { %v11456_v10 = vpop.f32.mrb[137].mxu1 }
 0x3b5   : > { %9706 = vmatmul.mubr.bf16.gmra.mrb[12].mxu0 %v12627_v0  ;;  %9545 = vmatmul.mubr.bf16.gmra.mrb[236].mxu1 %v7206_v51  ;;  %v11457_v59 = vadd.f32 %v11456_v10, %v11455_v2  ;;  %v11458_v42 = vpop.f32.mrb[138].mxu1  ;;  %v7229_v0 = vrot.slane %v7227_v31, 1  ;;  %v7239_v51 = vshll.u32 %v12654_v21, 16  ;;  %v12655_v2 = vld [vmem:[#allocation2 + $0xc0] sm:$0xfe]   ;;  %v7237_v10 = vor.u32 %v7236_v22, %v7232_v46 }
 0x3b6   : > { %9713 = vmatprep.mubr.bf16.mxu0 %v8018_v25  ;;  %9552 = vmatprep.mubr.bf16.mxu1 %v7501_v63  ;;  %v11567_v55 = vpop.f32.mrb[168].mxu0  ;;  %v11459_v1 = vpop.f32.mrb[139].mxu1  ;;  %v12656_v25 = vld [vmem:[#allocation2 + $0xc8] ss:$0 sps:$4 sm:$0x11]   ;;  %v8053_v31 = vrot.slane %v8051_v14, 1 }
 0x3b7   : > { %v11568_v4 = vpop.f32.mrb[169].mxu0  ;;  %v11460_v36 = vadd.f32 %v11459_v1, %v11458_v42  ;;  %v9153_v49 = vadd.f32 %v11457_v59, %v14120_v5  ;;  %v7230_v6 = vsel %vm1466_vm10, %v7225_v37, %v7229_v0  ;;  %v7241_v40 = vrot.slane %v7239_v51, 1  ;;  %v12657_v51 = vld [vmem:[#allocation2 + $0xcc] sm:$0xff]   ;;  %v12665_v46 = vld [vmem:[#allocation2 + $0x38] ss:$0 sps:$4 sm:$0x11]  }
 0x3b8   : > { %v11569_v19 = vadd.f32 %v11568_v4, %v11567_v55  ;;  %v11570_v45 = vpop.f32.mrb[170].mxu0  ;;  %v8049_v42 = vor.u32 %v8048_v15, %v8044_v33  ;;  %v7509_v27 = vrot.slane %v12656_v25, 1  ;;  %v8264_v0 = vrot.slane %v12661_v24, 1  ;;  %v12666_v24 = vld [vmem:[#allocation2 + $0x3c] sm:$0xfe]  }
 0x3b9   : > { %v11571_v52 = vpop.f32.mrb[171].mxu0  ;;  %v9156_v9 = vadd.f32 %v11460_v36, %v14120_v5  ;;  %v7242_v30 = vsel %vm1466_vm10, %v7237_v10, %v7241_v40  ;;  %v8263_v22 = vrot.slane %v12660_v58, 1  ;;  %v12664_v40 = vld [vmem:[#allocation2 + $0x30] sm:$0xfe]  }
 0x3ba   : > { %v11572_v16 = vadd.f32 %v11571_v52, %v11570_v45  ;;  %v14170_v63 = vadd.f32 %v11569_v19, %v9153_v49  ;;  %v7508_v45 = vrot.slane %v12655_v2, 1  ;;  %v7251_v52 = vshll.u32 %v12659_v8, 16 }
 0x3bb   : > { %v8054_v47 = vsel %vm1466_vm10, %v8049_v42, %v8053_v31 }
 0x3bc   : > { %v14172_v28 = vadd.f32 %v11572_v16, %v9156_v9  ;;  %v7244_v16 = vshrl.u32 %v12658_v17, 16  ;;  %v7253_v53 = vrot.slane %v7251_v52, 1 }
 0x3bd   : > { %9714 = vmatmul.mubr.bf16.gmra.mrb[16].mxu0 %v12634_v13  ;;  %9553 = vmatmul.mubr.bf16.gmra.mrb[240].mxu1 %v7218_v34  ;;  %v7248_v34 = vrot.slane %v7246_v26, 1 }
 0x3be   : > { %9721 = vmatprep.mubr.bf16.mxu0 %v8030_v57  ;;  %9560 = vmatprep.mubr.bf16.mxu1 %v7504_v43  ;;  %v7510_v57 = vsel %vm1867_vm9, %v7508_v45, %v7509_v27 }
 0x3bf   : > { %v7249_v29 = vor.u32 %v7248_v34, %v7244_v16  ;;  %v12669_v34 = vld [vmem:[#allocation2 + $0x50] ss:$0 sps:$4 sm:$0x11]  }
 0x3c5   : > { %9722 = vmatmul.mubr.bf16.gmra.mrb[20].mxu0 %v12642_v39  ;;  %v11573_v61 = vpop.f32.mrb[172].mxu0  ;;  %9561 = vmatmul.mubr.bf16.gmra.mrb[244].mxu1 %v7230_v6  ;;  %v11461_v35 = vpop.f32.mrb[140].mxu1 }
 0x3c6   : > { %9729 = vmatprep.mubr.bf16.mxu0 %v8042_v44  ;;  %v11574_v60 = vpop.f32.mrb[173].mxu0  ;;  %9568 = vmatprep.mubr.bf16.mxu1 %v7507_v12  ;;  %v11462_v59 = vpop.f32.mrb[141].mxu1  ;;  %v7254_v44 = vsel %vm1466_vm10, %v7249_v29, %v7253_v53  ;;  %v12662_v12 = vld [vmem:[#allocation2 + $0x24] sm:$0xfe]   ;;  %v8276_v53 = vrot.slane %v12669_v34, 1 }
 0x3c7   : > { %v11575_v41 = vadd.f32 %v11574_v60, %v11573_v61  ;;  %v11576_v32 = vpop.f32.mrb[174].mxu0  ;;  %v11463_v4 = vadd.f32 %v11462_v59, %v11461_v35  ;;  %v11464_v1 = vpop.f32.mrb[142].mxu1  ;;  %v8265_v61 = vsel %vm1867_vm9, %v8263_v22, %v8264_v0  ;;  %v8266_v31 = vrot.slane %v12662_v12, 1  ;;  %v12677_v34 = vld [vmem:[#allocation2 + $0x80] ss:$0 sps:$4 sm:$0x11]  }
 0x3c8   : > { %v11577_v13 = vpop.f32.mrb[175].mxu0  ;;  %v11465_v19 = vpop.f32.mrb[143].mxu1 }
 0x3c9   : > { %v11578_v55 = vadd.f32 %v11577_v13, %v11576_v32  ;;  %v9161_v36 = vadd.f32 %v11463_v4, %v14120_v5  ;;  %v11466_v23 = vadd.f32 %v11465_v19, %v11464_v1  ;;  %v8267_v32 = vrot.slane %v12663_v11, 1 }
 0x3ca   : > { %v8270_v13 = vrot.slane %v12665_v46, 1  ;;  %v8269_v1 = vrot.slane %v12664_v40, 1  ;;  %v12672_v46 = vld [vmem:[#allocation2 + $0x60] sm:$0xfe]  }
 0x3cb   : > { %v9164_v43 = vadd.f32 %v11466_v23, %v14120_v5  ;;  %v14182_v18 = vadd.f32 %v11575_v41, %v9161_v36  ;;  %v8268_v45 = vsel %vm1867_vm9, %v8266_v31, %v8267_v32  ;;  %v12667_v36 = vld [vmem:[#allocation2 + $0x44] ss:$0 sps:$4 sm:$0x11]  }
 0x3cc   : > { %v8271_v23 = vsel %vm1867_vm9, %v8269_v1, %v8270_v13  ;;  %v8273_v58 = vrot.slane %v12667_v36, 1  ;;  %v12675_v1 = vld [vmem:[#allocation2 + $0x74] ss:$0 sps:$4 sm:$0x11]  }
 0x3cd   : > { %9730 = vmatmul.mubr.bf16.gmra.mrb[24].mxu0 %v12649_v50  ;;  %9569 = vmatmul.mubr.bf16.gmra.mrb[248].mxu1 %v7242_v30  ;;  %v14184_v49 = vadd.f32 %v11578_v55, %v9164_v43 }
 0x3ce   : > { %9737 = vmatprep.mubr.bf16.mxu0 %v8054_v47  ;;  %9576 = vmatprep.mubr.bf16.mxu1 %v7510_v57  ;;  %v12668_v57 = vld [vmem:[#allocation2 + $0x48] sm:$0xfe]  }
 0x3cf   : > { %v11467_v21 = vpop.f32.mrb[144].mxu1 }
 0x3d0   : > { %v11579_v7 = vpop.f32.mrb[176].mxu0  ;;  %v11468_v37 = vpop.f32.mrb[145].mxu1 }
 0x3d1   : > { %v11580_v9 = vpop.f32.mrb[177].mxu0  ;;  %v11469_v38 = vadd.f32 %v11468_v37, %v11467_v21  ;;  %v11470_v56 = vpop.f32.mrb[146].mxu1 }
 0x3d2   : > { %v11581_v39 = vadd.f32 %v11580_v9, %v11579_v7  ;;  %v11582_v3 = vpop.f32.mrb[178].mxu0  ;;  %v11471_v14 = vpop.f32.mrb[147].mxu1 }
 0x3d3   : > { %v11583_v15 = vpop.f32.mrb[179].mxu0  ;;  %v9169_v25 = vadd.f32 %v11469_v38, %v14120_v5  ;;  %v11472_v17 = vadd.f32 %v11471_v14, %v11470_v56  ;;  %v12671_v38 = vld [vmem:[#allocation2 + $0x5c] ss:$0 sps:$4 sm:$0x11]  }
 0x3d4   : > { %v11584_v6 = vadd.f32 %v11583_v15, %v11582_v3  ;;  %v8272_v3 = vrot.slane %v12666_v24, 1  ;;  %v8275_v15 = vrot.slane %v12668_v57, 1  ;;  %v12676_v57 = vld [vmem:[#allocation2 + $0x78] sm:$0xfe]  }
 0x3d5   : > { %9738 = vmatmul.mubr.bf16.gmra.mrb[28].mxu0 %v12657_v51  ;;  %9577 = vmatmul.mubr.bf16.gmra.mrb[252].mxu1 %v7254_v44  ;;  %v9172_v60 = vadd.f32 %v11472_v17, %v14120_v5  ;;  %v14190_v33 = vadd.f32 %v11581_v39, %v9169_v25  ;;  %v12673_v17 = vld [vmem:[#allocation2 + $0x68] ss:$0 sps:$4 sm:$0x11]  }
 0x3d6   : > { %11963 = vmatprep.mubr.bf16.mxu1 %v8265_v61  ;;  %v8277_v25 = vsel %vm1867_vm9, %v8275_v15, %v8276_v53  ;;  %v12670_v61 = vld [vmem:[#allocation2 + $0x54] sm:$0xfe]   ;;  %v8287_v15 = vrot.slane %v12676_v57, 1  ;;  %v12685_v57 = vld [vmem:[#allocation2 + $0xb0] ss:$0 sps:$4 sm:$0x11]  }
 0x3d7   : > { %v14192_v10 = vadd.f32 %v11584_v6, %v9172_v60  ;;  %v8274_v6 = vsel %vm1867_vm9, %v8272_v3, %v8273_v58  ;;  %v8285_v58 = vrot.slane %v12675_v1, 1 }
 0x3d8   : > { %v11585_v2 = vpop.f32.mrb[180].mxu0  ;;  %v11473_v41 = vpop.f32.mrb[148].mxu1 }
 0x3d9   : > { %v11586_v8 = vpop.f32.mrb[181].mxu0  ;;  %v11474_v35 = vpop.f32.mrb[149].mxu1 }
 0x3da   : > { %v11587_v26 = vadd.f32 %v11586_v8, %v11585_v2  ;;  %v11588_v55 = vpop.f32.mrb[182].mxu0  ;;  %v11475_v59 = vadd.f32 %v11474_v35, %v11473_v41  ;;  %v11476_v42 = vpop.f32.mrb[150].mxu1  ;;  %v8279_v2 = vrot.slane %v12671_v38, 1  ;;  %v8282_v35 = vrot.slane %v12673_v17, 1 }
 0x3db   : > { %v11589_v27 = vpop.f32.mrb[183].mxu0  ;;  %v11477_v4 = vpop.f32.mrb[151].mxu1 }
 0x3dc   : > { %v11590_v50 = vadd.f32 %v11589_v27, %v11588_v55  ;;  %v9177_v19 = vadd.f32 %v11475_v59, %v14120_v5  ;;  %v11478_v30 = vadd.f32 %v11477_v4, %v11476_v42  ;;  %v8278_v42 = vrot.slane %v12670_v61, 1 }
 0x3dd   : > { %11964 = vmatmul.mubr.bf16.vlgmr.msra.gmra.mrb[0].mxu1 %v8268_v45  ;;  %v8281_v4 = vrot.slane %v12672_v46, 1  ;;  %v12678_v46 = vld [vmem:[#allocation2 + $0x84] sm:$0xfe]  }
 0x3de   : > { %v9180_v52 = vadd.f32 %v11478_v30, %v14120_v5  ;;  %11967 = vmatprep.mubr.bf16.mxu1 %v8271_v23  ;;  %v14198_v47 = vadd.f32 %v11587_v26, %v9177_v19  ;;  %v8280_v45 = vsel %vm1867_vm9, %v8278_v42, %v8279_v2  ;;  %v12674_v23 = vld [vmem:[#allocation2 + $0x6c] sm:$0xfe]  }
 0x3df   : > { %v8283_v36 = vsel %vm1867_vm9, %v8281_v4, %v8282_v35  ;;  %v8284_v38 = vrot.slane %v12674_v23, 1  ;;  %v8290_v4 = vrot.slane %v12678_v46, 1 }
 0x3e0   : > { %v11591_v43 = vpop.f32.mrb[184].mxu0  ;;  %v11479_v16 = vpop.f32.mrb[152].mxu1  ;;  %v14200_v7 = vadd.f32 %v11590_v50, %v9180_v52 }
 0x3e1   : > { %v11592_v21 = vpop.f32.mrb[185].mxu0  ;;  %v11480_v29 = vpop.f32.mrb[153].mxu1 }
 0x3e2   : > { %v11593_v9 = vadd.f32 %v11592_v21, %v11591_v43  ;;  %v11594_v37 = vpop.f32.mrb[186].mxu0  ;;  %v11481_v0 = vadd.f32 %v11480_v29, %v11479_v16  ;;  %v11482_v39 = vpop.f32.mrb[154].mxu1 }
 0x3e3   : > { %v11595_v56 = vpop.f32.mrb[187].mxu0  ;;  %v11483_v11 = vpop.f32.mrb[155].mxu1 }
 0x3e4   : > { %v11596_v51 = vadd.f32 %v11595_v56, %v11594_v37  ;;  %v9185_v14 = vadd.f32 %v11481_v0, %v14120_v5  ;;  %v11484_v22 = vadd.f32 %v11483_v11, %v11482_v39 }
 0x3e5   : > { %11968 = vmatmul.mubr.bf16.gmra.mrb[4].mxu1 %v8274_v6  ;;  %v8286_v6 = vsel %vm1867_vm9, %v8284_v38, %v8285_v58  ;;  %v8300_v38 = vrot.slane %v12685_v57, 1 }
 0x3e6   : > { %v9188_v44 = vadd.f32 %v11484_v22, %v14120_v5  ;;  %11971 = vmatprep.mubr.bf16.mxu1 %v8277_v25  ;;  %v14206_v12 = vadd.f32 %v11593_v9, %v9185_v14  ;;  %v8288_v9 = vrot.slane %v12677_v34, 1  ;;  %v12679_v25 = vld [vmem:[#allocation2 + $0x8c] ss:$0 sps:$4 sm:$0x11]  }
 0x3e7   : > { %v12683_v34 = vld [vmem:[#allocation2 + $0xa4] ss:$0 sps:$4 sm:$0x11]  }
 0x3e8   : > { %v11597_v60 = vpop.f32.mrb[188].mxu0  ;;  %v11485_v40 = vpop.f32.mrb[156].mxu1  ;;  %v14208_v41 = vadd.f32 %v11596_v51, %v9188_v44  ;;  %v8289_v17 = vsel %vm1867_vm9, %v8287_v15, %v8288_v9  ;;  %v12681_v44 = vld [vmem:[#allocation2 + $0x98] ss:$0 sps:$4 sm:$0x11]  }
 0x3e9   : > { %v11598_v32 = vpop.f32.mrb[189].mxu0  ;;  %v11486_v8 = vpop.f32.mrb[157].mxu1 }
 0x3ea   : > { %v11599_v13 = vadd.f32 %v11598_v32, %v11597_v60  ;;  %v11600_v26 = vpop.f32.mrb[190].mxu0  ;;  %v11487_v55 = vadd.f32 %v11486_v8, %v11485_v40  ;;  %v11488_v59 = vpop.f32.mrb[158].mxu1  ;;  %v12680_v40 = vld [vmem:[#allocation2 + $0x90] sm:$0xfe]   ;;  %v8291_v8 = vrot.slane %v12679_v25, 1 }
 0x3eb   : > { %v11601_v31 = vpop.f32.mrb[191].mxu0  ;;  %v11489_v27 = vpop.f32.mrb[159].mxu1 }
 0x3ec   : > { %v11602_v50 = vadd.f32 %v11601_v31, %v11600_v26  ;;  %v9193_v19 = vadd.f32 %v11487_v55, %v14120_v5  ;;  %v11490_v30 = vadd.f32 %v11489_v27, %v11488_v59  ;;  %v8294_v55 = vrot.slane %v12681_v44, 1 }
 0x3ed   : > { %11972 = vmatmul.mubr.bf16.gmra.mrb[8].mxu1 %v8280_v45  ;;  %v8292_v23 = vsel %vm1867_vm9, %v8290_v4, %v8291_v8 }
 0x3ee   : > { %v9196_v52 = vadd.f32 %v11490_v30, %v14120_v5  ;;  %11975 = vmatprep.mubr.bf16.mxu1 %v8283_v36  ;;  %v14214_v24 = vadd.f32 %v11599_v13, %v9193_v19  ;;  %v8293_v19 = vrot.slane %v12680_v40, 1  ;;  %v12687_v40 = vld [vmem:[#allocation2 + $0xbc] ss:$0 sps:$4 sm:$0x11]  }
 0x3f0   : > { %v11603_v43 = vpop.f32.mrb[192].mxu0  ;;  %v11491_v16 = vpop.f32.mrb[160].mxu1  ;;  %v14216_v21 = vadd.f32 %v11602_v50, %v9196_v52  ;;  %v8295_v52 = vsel %vm1867_vm9, %v8293_v19, %v8294_v55  ;;  %v12688_v55 = vld [vmem:[#allocation2 + $0xc0] sm:$0xfe]  }
 0x3f1   : > { %v11604_v29 = vpop.f32.mrb[193].mxu0  ;;  %v11492_v53 = vpop.f32.mrb[161].mxu1  ;;  %v8305_v57 = vrot.slane %v12688_v55, 1 }
 0x3f2   : > { %v11605_v37 = vadd.f32 %v11604_v29, %v11603_v43  ;;  %v11606_v0 = vpop.f32.mrb[194].mxu0  ;;  %v11493_v39 = vadd.f32 %v11492_v53, %v11491_v16  ;;  %v11494_v3 = vpop.f32.mrb[162].mxu1  ;;  %v12682_v16 = vld [vmem:[#allocation2 + $0x9c] sm:$0xfe]   ;;  %v12684_v29 = vld [vmem:[#allocation2 + $0xa8] sm:$0xfe]  }
 0x3f3   : > { %v11607_v56 = vpop.f32.mrb[195].mxu0  ;;  %v11495_v11 = vpop.f32.mrb[163].mxu1  ;;  %v8299_v25 = vrot.slane %v12684_v29, 1 }
 0x3f4   : > { %v11608_v51 = vadd.f32 %v11607_v56, %v11606_v0  ;;  %v9201_v14 = vadd.f32 %v11493_v39, %v14120_v5  ;;  %v11496_v22 = vadd.f32 %v11495_v11, %v11494_v3 }
 0x3f5   : > { %11976 = vmatmul.mubr.bf16.gmra.mrb[12].mxu1 %v8286_v6 }
 0x3f6   : > { %v9204_v61 = vadd.f32 %v11496_v22, %v14120_v5  ;;  %11979 = vmatprep.mubr.bf16.mxu1 %v8289_v17  ;;  %v14222_v60 = vadd.f32 %v11605_v37, %v9201_v14  ;;  %v8297_v37 = vrot.slane %v12683_v34, 1  ;;  %v8296_v14 = vrot.slane %v12682_v16, 1 }
 0x3f8   : > { %v11609_v2 = vpop.f32.mrb[196].mxu0  ;;  %v11497_v32 = vpop.f32.mrb[164].mxu1  ;;  %v14224_v35 = vadd.f32 %v11608_v51, %v9204_v61  ;;  %v8298_v46 = vsel %vm1867_vm9, %v8296_v14, %v8297_v37 }
 0x3f9   : > { %v11610_v13 = vpop.f32.mrb[197].mxu0  ;;  %v11498_v26 = vpop.f32.mrb[165].mxu1 }
 0x3fa   : > { %v11611_v59 = vadd.f32 %v11610_v13, %v11609_v2  ;;  %v11612_v42 = vpop.f32.mrb[198].mxu0  ;;  %v11499_v31 = vadd.f32 %v11498_v26, %v11497_v32  ;;  %v11500_v27 = vpop.f32.mrb[166].mxu1  ;;  %v8301_v2 = vsel %vm1867_vm9, %v8299_v25, %v8300_v38  ;;  %v12689_v32 = vld [vmem:[#allocation2 + $0xc8] ss:$0 sps:$4 sm:$0x11]  }
 0x3fb   : > { %v11613_v1 = vpop.f32.mrb[199].mxu0  ;;  %v11501_v50 = vpop.f32.mrb[167].mxu1  ;;  %v12686_v13 = vld [vmem:[#allocation2 + $0xb4] sm:$0xfe]  }
 0x3fc   : > { %v11614_v30 = vadd.f32 %v11613_v1, %v11612_v42  ;;  %v9209_v45 = vadd.f32 %v11499_v31, %v14120_v5  ;;  %v11502_v36 = vadd.f32 %v11501_v50, %v11500_v27  ;;  %v8303_v31 = vrot.slane %v12687_v40, 1 }
 0x3fd   : > { %11980 = vmatmul.mubr.bf16.gmra.mrb[16].mxu1 %v8292_v23  ;;  %v8306_v50 = vrot.slane %v12689_v32, 1  ;;  %v8302_v23 = vrot.slane %v12686_v13, 1 }
 0x3fe   : > { %v9212_v43 = vadd.f32 %v11502_v36, %v14120_v5  ;;  %11983 = vmatprep.mubr.bf16.mxu1 %v8295_v52  ;;  %v14230_v58 = vadd.f32 %v11611_v59, %v9209_v45 }
 0x3ff   : > { %v8307_v37 = vsel %vm1867_vm9, %v8305_v57, %v8306_v50 }
 0x400   : > { %v11615_v53 = vpop.f32.mrb[200].mxu0  ;;  %v11503_v9 = vpop.f32.mrb[168].mxu1  ;;  %v14232_v0 = vadd.f32 %v11614_v30, %v9212_v43 }
 0x401   : > { %v11616_v39 = vpop.f32.mrb[201].mxu0  ;;  %v11504_v3 = vpop.f32.mrb[169].mxu1 }
 0x402   : > { %v11617_v56 = vadd.f32 %v11616_v39, %v11615_v53  ;;  %v11618_v11 = vpop.f32.mrb[202].mxu0  ;;  %v11505_v15 = vadd.f32 %v11504_v3, %v11503_v9  ;;  %v11506_v51 = vpop.f32.mrb[170].mxu1  ;;  %v8304_v53 = vsel %vm1867_vm9, %v8302_v23, %v8303_v31  ;;  %v12691_v9 = vld [vmem:[#allocation2 + $0xd4] ss:$0 sps:$4 sm:$0x11]  }
 0x403   : > { %v11619_v22 = vpop.f32.mrb[203].mxu0  ;;  %v11507_v6 = vpop.f32.mrb[171].mxu1  ;;  %v12690_v3 = vld [vmem:[#allocation2 + $0xcc] sm:$0xfe]  }
 0x404   : > { %v11620_v17 = vadd.f32 %v11619_v22, %v11618_v11  ;;  %v9217_v44 = vadd.f32 %v11505_v15, %v14120_v5  ;;  %v11508_v61 = vadd.f32 %v11507_v6, %v11506_v51  ;;  %v8309_v15 = vrot.slane %v12691_v9, 1 }
 0x405   : > { %11984 = vmatmul.mubr.bf16.gmra.mrb[20].mxu1 %v8298_v46 }
 0x406   : > { %v9220_v8 = vadd.f32 %v11508_v61, %v14120_v5  ;;  %11987 = vmatprep.mubr.bf16.mxu1 %v8301_v2  ;;  %v14238_v26 = vadd.f32 %v11617_v56, %v9217_v44  ;;  %v8308_v61 = vrot.slane %v12690_v3, 1 }
 0x408   : > { %v11621_v59 = vpop.f32.mrb[204].mxu0  ;;  %v11509_v42 = vpop.f32.mrb[172].mxu1  ;;  %v14240_v27 = vadd.f32 %v11620_v17, %v9220_v8  ;;  %v8310_v13 = vsel %vm1867_vm9, %v8308_v61, %v8309_v15 }
 0x409   : > { %v11622_v4 = vpop.f32.mrb[205].mxu0  ;;  %v11510_v1 = vpop.f32.mrb[173].mxu1 }
 0x40a   : > { %v11623_v19 = vadd.f32 %v11622_v4, %v11621_v59  ;;  %v11624_v30 = vpop.f32.mrb[206].mxu0  ;;  %v11511_v45 = vadd.f32 %v11510_v1, %v11509_v42  ;;  %v11512_v36 = vpop.f32.mrb[174].mxu1 }
 0x40b   : > { %v11625_v34 = vpop.f32.mrb[207].mxu0  ;;  %v11513_v52 = vpop.f32.mrb[175].mxu1 }
 0x40c   : > { %v11626_v43 = vadd.f32 %v11625_v34, %v11624_v30  ;;  %v9225_v16 = vadd.f32 %v11511_v45, %v14120_v5  ;;  %v11514_v29 = vadd.f32 %v11513_v52, %v11512_v36 }
 0x40d   : > { %11988 = vmatmul.mubr.bf16.gmra.mrb[24].mxu1 %v8304_v53 }
 0x40e   : > { %v9228_v39 = vadd.f32 %v11514_v29, %v14120_v5  ;;  %11991 = vmatprep.mubr.bf16.mxu1 %v8307_v37  ;;  %v14246_v38 = vadd.f32 %v11623_v19, %v9225_v16 }
 0x410   : > { %v11627_v56 = vpop.f32.mrb[208].mxu0  ;;  %v11515_v11 = vpop.f32.mrb[176].mxu1  ;;  %v14248_v51 = vadd.f32 %v11626_v43, %v9228_v39 }
 0x411   : > { %v11628_v14 = vpop.f32.mrb[209].mxu0  ;;  %v11516_v22 = vpop.f32.mrb[177].mxu1 }
 0x412   : > { %v11629_v6 = vadd.f32 %v11628_v14, %v11627_v56  ;;  %v11630_v25 = vpop.f32.mrb[210].mxu0  ;;  %v11517_v17 = vadd.f32 %v11516_v22, %v11515_v11  ;;  %v11518_v44 = vpop.f32.mrb[178].mxu1 }
 0x413   : > { %v11631_v46 = vpop.f32.mrb[211].mxu0  ;;  %v11519_v40 = vpop.f32.mrb[179].mxu1 }
 0x414   : > { %v11632_v2 = vadd.f32 %v11631_v46, %v11630_v25  ;;  %v9233_v32 = vadd.f32 %v11517_v17, %v14120_v5  ;;  %v11520_v8 = vadd.f32 %v11519_v40, %v11518_v44  ;;  %v12693_v17 = vld [vmem:[%s14525_s4] ss:$0 sm:$0xff] }
 0x415   : > { %11992 = vmatmul.mubr.bf16.gmra.mrb[28].mxu1 %v8310_v13 }
 0x416   : > { %v9236_v55 = vadd.f32 %v11520_v8, %v14120_v5  ;;  %v14253_v59 = vadd.f32 %v11629_v6, %v9233_v32 }
 0x418   : > { %v11633_v42 = vpop.f32.mrb[212].mxu0  ;;  %v11521_v31 = vpop.f32.mrb[180].mxu1  ;;  %v14255_v4 = vadd.f32 %v11632_v2, %v9236_v55 }
 0x419   : > { %v11634_v1 = vpop.f32.mrb[213].mxu0  ;;  %v11522_v50 = vpop.f32.mrb[181].mxu1 }
 0x41a   : > { %v11635_v19 = vadd.f32 %v11634_v1, %v11633_v42  ;;  %v11636_v30 = vpop.f32.mrb[214].mxu0  ;;  %v11523_v45 = vadd.f32 %v11522_v50, %v11521_v31  ;;  %v11524_v36 = vpop.f32.mrb[182].mxu1 }
 0x41b   : > { %v11637_v23 = vpop.f32.mrb[215].mxu0  ;;  %v11525_v34 = vpop.f32.mrb[183].mxu1 }
 0x41c   : > { %v11638_v52 = vadd.f32 %v11637_v23, %v11636_v30  ;;  %v9241_v57 = vadd.f32 %v11523_v45, %v14120_v5  ;;  %v11526_v43 = vadd.f32 %v11525_v34, %v11524_v36 }
 0x41e   : > { %v9244_v16 = vadd.f32 %v11526_v43, %v14120_v5  ;;  %v14259_v29 = vadd.f32 %v11635_v19, %v9241_v57 }
 0x420   : > { %v11639_v53 = vpop.f32.mrb[216].mxu0  ;;  %v11527_v9 = vpop.f32.mrb[184].mxu1  ;;  %v14261_v37 = vadd.f32 %v11638_v52, %v9244_v16 }
 0x421   : > { %v11640_v39 = vpop.f32.mrb[217].mxu0  ;;  %v11528_v3 = vpop.f32.mrb[185].mxu1 }
 0x422   : > { %v11641_v56 = vadd.f32 %v11640_v39, %v11639_v53  ;;  %v11642_v11 = vpop.f32.mrb[218].mxu0  ;;  %v11529_v15 = vadd.f32 %v11528_v3, %v11527_v9  ;;  %v11530_v14 = vpop.f32.mrb[186].mxu1 }
 0x423   : > { %v11643_v22 = vpop.f32.mrb[219].mxu0  ;;  %v11531_v6 = vpop.f32.mrb[187].mxu1 }
 0x424   : > { %v11644_v25 = vadd.f32 %v11643_v22, %v11642_v11  ;;  %v9249_v5 = vadd.f32 %v12693_v17, %v11529_v15  ;;  %v11532_v44 = vadd.f32 %v11531_v6, %v11530_v14 }
 0x426   : > { %v9252_v61 = vadd.f32 %v12693_v17, %v11532_v44  ;;  %v14266_v46 = vadd.f32 %v11641_v56, %v9249_v5 }
 0x428   : > { %v11645_v40 = vpop.f32.mrb[220].mxu0  ;;  %v11533_v2 = vpop.f32.mrb[188].mxu1  ;;  %v14268_v32 = vadd.f32 %v11644_v25, %v9252_v61 }
 0x429   : > { %v11646_v8 = vpop.f32.mrb[221].mxu0  ;;  %v11534_v13 = vpop.f32.mrb[189].mxu1 }
 0x42a   : > { %v11647_v55 = vadd.f32 %v11646_v8, %v11645_v40  ;;  %v11648_v42 = vpop.f32.mrb[222].mxu0  ;;  %v11535_v31 = vadd.f32 %v11534_v13, %v11533_v2  ;;  %v11536_v1 = vpop.f32.mrb[190].mxu1 }
 0x42b   : > { %v11649_v50 = vpop.f32.mrb[223].mxu0  ;;  %v11537_v19 = vpop.f32.mrb[191].mxu1 }
 0x42c   : > { %v11650_v30 = vadd.f32 %v11649_v50, %v11648_v42  ;;  %v9257_v45 = vadd.f32 %v12693_v17, %v11535_v31  ;;  %v11538_v36 = vadd.f32 %v11537_v19, %v11536_v1 }
 0x42e   : > { %v9260_v23 = vadd.f32 %v12693_v17, %v11538_v36  ;;  %v14270_v34 = vadd.f32 %v11647_v55, %v9257_v45 }
 0x430   : > { %v11779_v52 = vpop.f32.mrb[224].mxu0  ;;  %v11667_v57 = vpop.f32.mrb[192].mxu1  ;;  %v14272_v43 = vadd.f32 %v11650_v30, %v9260_v23 }
 0x431   : > { %v11780_v16 = vpop.f32.mrb[225].mxu0  ;;  %v11668_v53 = vpop.f32.mrb[193].mxu1 }
 0x432   : > { %v11781_v9 = vadd.f32 %v11780_v16, %v11779_v52  ;;  %v11782_v39 = vpop.f32.mrb[226].mxu0  ;;  %v11669_v3 = vadd.f32 %v11668_v53, %v11667_v57  ;;  %v11670_v56 = vpop.f32.mrb[194].mxu1 }
 0x433   : > { %v11783_v11 = vpop.f32.mrb[227].mxu0  ;;  %v11671_v15 = vpop.f32.mrb[195].mxu1 }
 0x434   : > { %v11784_v14 = vadd.f32 %v11783_v11, %v11782_v39  ;;  %v9459_v22 = vadd.f32 %v11669_v3, %v14142_v54  ;;  %v11672_v6 = vadd.f32 %v11671_v15, %v11670_v56 }
 0x436   : > { %v9462_v25 = vadd.f32 %v11672_v6, %v14145_v62  ;;  %v14276_v17 = vadd.f32 %v11781_v9, %v9459_v22 }
 0x438   : > { %v11785_v5 = vpop.f32.mrb[228].mxu0  ;;  %v11673_v44 = vpop.f32.mrb[196].mxu1  ;;  %v14278_v2 = vadd.f32 %v11784_v14, %v9462_v25 }
 0x439   : > { %v11786_v61 = vpop.f32.mrb[229].mxu0  ;;  %v11674_v40 = vpop.f32.mrb[197].mxu1 }
 0x43a   : > { %v11787_v8 = vadd.f32 %v11786_v61, %v11785_v5  ;;  %v11788_v13 = vpop.f32.mrb[230].mxu0  ;;  %v11675_v55 = vadd.f32 %v11674_v40, %v11673_v44  ;;  %v11676_v42 = vpop.f32.mrb[198].mxu1 }
 0x43b   : > { %v11789_v31 = vpop.f32.mrb[231].mxu0  ;;  %v11677_v1 = vpop.f32.mrb[199].mxu1 }
 0x43c   : > { %v11790_v50 = vadd.f32 %v11789_v31, %v11788_v13  ;;  %v9467_v54 = vadd.f32 %v11675_v55, %v14157_v48  ;;  %v11678_v19 = vadd.f32 %v11677_v1, %v11676_v42 }
 0x43e   : > { %v9470_v62 = vadd.f32 %v11678_v19, %v14160_v20  ;;  %v14282_v30 = vadd.f32 %v11787_v8, %v9467_v54 }
 0x440   : > { %v11791_v45 = vpop.f32.mrb[232].mxu0  ;;  %v11679_v36 = vpop.f32.mrb[200].mxu1  ;;  %v14284_v23 = vadd.f32 %v11790_v50, %v9470_v62 }
 0x441   : > { %v11792_v52 = vpop.f32.mrb[233].mxu0  ;;  %v11680_v57 = vpop.f32.mrb[201].mxu1 }
 0x442   : > { %v11793_v16 = vadd.f32 %v11792_v52, %v11791_v45  ;;  %v11794_v53 = vpop.f32.mrb[234].mxu0  ;;  %v11681_v9 = vadd.f32 %v11680_v57, %v11679_v36  ;;  %v11682_v39 = vpop.f32.mrb[202].mxu1 }
 0x443   : > { %v11795_v3 = vpop.f32.mrb[235].mxu0  ;;  %v11683_v56 = vpop.f32.mrb[203].mxu1 }
 0x444   : > { %v11796_v11 = vadd.f32 %v11795_v3, %v11794_v53  ;;  %v9475_v48 = vadd.f32 %v11681_v9, %v14170_v63  ;;  %v11684_v15 = vadd.f32 %v11683_v56, %v11682_v39 }
 0x446   : > { %v9478_v20 = vadd.f32 %v11684_v15, %v14172_v28  ;;  %v14288_v14 = vadd.f32 %v11793_v16, %v9475_v48 }
 0x448   : > { %v11797_v22 = vpop.f32.mrb[236].mxu0  ;;  %v11685_v6 = vpop.f32.mrb[204].mxu1  ;;  %v14290_v25 = vadd.f32 %v11796_v11, %v9478_v20 }
 0x449   : > { %v11798_v5 = vpop.f32.mrb[237].mxu0  ;;  %v11686_v44 = vpop.f32.mrb[205].mxu1 }
 0x44a   : > { %v11799_v61 = vadd.f32 %v11798_v5, %v11797_v22  ;;  %v11800_v40 = vpop.f32.mrb[238].mxu0  ;;  %v11687_v8 = vadd.f32 %v11686_v44, %v11685_v6  ;;  %v11688_v13 = vpop.f32.mrb[206].mxu1 }
 0x44b   : > { %v11801_v55 = vpop.f32.mrb[239].mxu0  ;;  %v11689_v42 = vpop.f32.mrb[207].mxu1 }
 0x44c   : > { %v11802_v31 = vadd.f32 %v11801_v55, %v11800_v40  ;;  %v9483_v63 = vadd.f32 %v11687_v8, %v14182_v18  ;;  %v11690_v1 = vadd.f32 %v11689_v42, %v11688_v13 }
 0x44e   : > { %v9486_v28 = vadd.f32 %v11690_v1, %v14184_v49  ;;  %v14294_v50 = vadd.f32 %v11799_v61, %v9483_v63 }
 0x450   : > { %v11803_v54 = vpop.f32.mrb[240].mxu0  ;;  %v11691_v19 = vpop.f32.mrb[208].mxu1  ;;  %v14296_v62 = vadd.f32 %v11802_v31, %v9486_v28 }
 0x451   : > { %v11804_v45 = vpop.f32.mrb[241].mxu0  ;;  %v11692_v36 = vpop.f32.mrb[209].mxu1 }
 0x452   : > { %v11805_v52 = vadd.f32 %v11804_v45, %v11803_v54  ;;  %v11806_v57 = vpop.f32.mrb[242].mxu0  ;;  %v11693_v16 = vadd.f32 %v11692_v36, %v11691_v19  ;;  %v11694_v53 = vpop.f32.mrb[210].mxu1 }
 0x453   : > { %v11807_v9 = vpop.f32.mrb[243].mxu0  ;;  %v11695_v39 = vpop.f32.mrb[211].mxu1 }
 0x454   : > { %v11808_v3 = vadd.f32 %v11807_v9, %v11806_v57  ;;  %v9491_v18 = vadd.f32 %v11693_v16, %v14190_v33  ;;  %v11696_v56 = vadd.f32 %v11695_v39, %v11694_v53 }
 0x456   : > { %v9494_v49 = vadd.f32 %v11696_v56, %v14192_v10  ;;  %v14300_v11 = vadd.f32 %v11805_v52, %v9491_v18 }
 0x458   : > { %v11809_v48 = vpop.f32.mrb[244].mxu0  ;;  %v11697_v15 = vpop.f32.mrb[212].mxu1  ;;  %v14302_v20 = vadd.f32 %v11808_v3, %v9494_v49 }
 0x459   : > { %v11810_v22 = vpop.f32.mrb[245].mxu0  ;;  %v11698_v6 = vpop.f32.mrb[213].mxu1 }
 0x45a   : > { %v11811_v5 = vadd.f32 %v11810_v22, %v11809_v48  ;;  %v11812_v44 = vpop.f32.mrb[246].mxu0  ;;  %v11699_v61 = vadd.f32 %v11698_v6, %v11697_v15  ;;  %v11700_v40 = vpop.f32.mrb[214].mxu1 }
 0x45b   : > { %v11813_v8 = vpop.f32.mrb[247].mxu0  ;;  %v11701_v13 = vpop.f32.mrb[215].mxu1 }
 0x45c   : > { %v11814_v55 = vadd.f32 %v11813_v8, %v11812_v44  ;;  %v9499_v33 = vadd.f32 %v11699_v61, %v14198_v47  ;;  %v11702_v42 = vadd.f32 %v11701_v13, %v11700_v40 }
 0x45e   : > { %v9502_v10 = vadd.f32 %v11702_v42, %v14200_v7  ;;  %v14306_v31 = vadd.f32 %v11811_v5, %v9499_v33 }
 0x460   : > { %v11815_v63 = vpop.f32.mrb[248].mxu0  ;;  %v11703_v1 = vpop.f32.mrb[216].mxu1  ;;  %v14308_v28 = vadd.f32 %v11814_v55, %v9502_v10 }
 0x461   : > { %v11816_v54 = vpop.f32.mrb[249].mxu0  ;;  %v11704_v19 = vpop.f32.mrb[217].mxu1 }
 0x462   : > { %v11817_v45 = vadd.f32 %v11816_v54, %v11815_v63  ;;  %v11818_v36 = vpop.f32.mrb[250].mxu0  ;;  %v11705_v52 = vadd.f32 %v11704_v19, %v11703_v1  ;;  %v11706_v57 = vpop.f32.mrb[218].mxu1 }
 0x463   : > { %v11819_v16 = vpop.f32.mrb[251].mxu0  ;;  %v11707_v53 = vpop.f32.mrb[219].mxu1 }
 0x464   : > { %v11820_v9 = vadd.f32 %v11819_v16, %v11818_v36  ;;  %v9507_v47 = vadd.f32 %v11705_v52, %v14206_v12  ;;  %v11708_v39 = vadd.f32 %v11707_v53, %v11706_v57 }
 0x466   : > { %v9510_v7 = vadd.f32 %v11708_v39, %v14208_v41  ;;  %v14312_v3 = vadd.f32 %v11817_v45, %v9507_v47 }
 0x468   : > { %v11821_v18 = vpop.f32.mrb[252].mxu0  ;;  %v11709_v56 = vpop.f32.mrb[220].mxu1  ;;  %v14314_v49 = vadd.f32 %v11820_v9, %v9510_v7 }
 0x469   : > { %v11822_v48 = vpop.f32.mrb[253].mxu0  ;;  %v11710_v15 = vpop.f32.mrb[221].mxu1 }
 0x46a   : > { %v11823_v22 = vadd.f32 %v11822_v48, %v11821_v18  ;;  %v11824_v6 = vpop.f32.mrb[254].mxu0  ;;  %v11711_v5 = vadd.f32 %v11710_v15, %v11709_v56  ;;  %v11712_v44 = vpop.f32.mrb[222].mxu1 }
 0x46b   : > { %v11825_v61 = vpop.f32.mrb[255].mxu0  ;;  %v11713_v40 = vpop.f32.mrb[223].mxu1 }
 0x46c   : > { %v11826_v8 = vadd.f32 %v11825_v61, %v11824_v6  ;;  %v9515_v12 = vadd.f32 %v11711_v5, %v14214_v24  ;;  %v11714_v13 = vadd.f32 %v11713_v40, %v11712_v44 }
 0x46e   : > { %v9518_v41 = vadd.f32 %v11714_v13, %v14216_v21  ;;  %v14318_v55 = vadd.f32 %v11823_v22, %v9515_v12 }
 0x470   : > { %v11827_v33 = vpop.f32.mrb[0].mxu0  ;;  %v11715_v42 = vpop.f32.mrb[224].mxu1  ;;  %v14320_v10 = vadd.f32 %v11826_v8, %v9518_v41 }
 0x471   : > { %v11828_v63 = vpop.f32.mrb[1].mxu0  ;;  %v11716_v1 = vpop.f32.mrb[225].mxu1 }
 0x472   : > { %v11829_v54 = vadd.f32 %v11828_v63, %v11827_v33  ;;  %v11830_v19 = vpop.f32.mrb[2].mxu0  ;;  %v11717_v45 = vadd.f32 %v11716_v1, %v11715_v42  ;;  %v11718_v36 = vpop.f32.mrb[226].mxu1 }
 0x473   : > { %v11831_v52 = vpop.f32.mrb[3].mxu0  ;;  %v11719_v57 = vpop.f32.mrb[227].mxu1 }
 0x474   : > { %v11832_v16 = vadd.f32 %v11831_v52, %v11830_v19  ;;  %v9523_v24 = vadd.f32 %v11717_v45, %v14222_v60  ;;  %v11720_v53 = vadd.f32 %v11719_v57, %v11718_v36 }
 0x476   : > { %v9526_v21 = vadd.f32 %v11720_v53, %v14224_v35  ;;  %v14324_v9 = vadd.f32 %v11829_v54, %v9523_v24 }
 0x478   : > { %v11833_v47 = vpop.f32.mrb[4].mxu0  ;;  %v11721_v39 = vpop.f32.mrb[228].mxu1  ;;  %v14326_v7 = vadd.f32 %v11832_v16, %v9526_v21 }
 0x479   : > { %v11834_v18 = vpop.f32.mrb[5].mxu0  ;;  %v11722_v56 = vpop.f32.mrb[229].mxu1 }
 0x47a   : > { %v11835_v48 = vadd.f32 %v11834_v18, %v11833_v47  ;;  %v11836_v15 = vpop.f32.mrb[6].mxu0  ;;  %v11723_v22 = vadd.f32 %v11722_v56, %v11721_v39  ;;  %v11724_v6 = vpop.f32.mrb[230].mxu1 }
 0x47b   : > { %v11837_v5 = vpop.f32.mrb[7].mxu0  ;;  %v11725_v44 = vpop.f32.mrb[231].mxu1 }
 0x47c   : > { %v11838_v61 = vadd.f32 %v11837_v5, %v11836_v15  ;;  %v9531_v60 = vadd.f32 %v11723_v22, %v14230_v58  ;;  %v11726_v40 = vadd.f32 %v11725_v44, %v11724_v6 }
 0x47e   : > { %v9534_v35 = vadd.f32 %v11726_v40, %v14232_v0  ;;  %v14330_v8 = vadd.f32 %v11835_v48, %v9531_v60 }
 0x480   : > { %v11839_v12 = vpop.f32.mrb[8].mxu0  ;;  %v11727_v13 = vpop.f32.mrb[232].mxu1  ;;  %v14332_v41 = vadd.f32 %v11838_v61, %v9534_v35 }
 0x481   : > { %v11840_v33 = vpop.f32.mrb[9].mxu0  ;;  %v11728_v42 = vpop.f32.mrb[233].mxu1 }
 0x482   : > { %v11841_v63 = vadd.f32 %v11840_v33, %v11839_v12  ;;  %v11842_v1 = vpop.f32.mrb[10].mxu0  ;;  %v11729_v54 = vadd.f32 %v11728_v42, %v11727_v13  ;;  %v11730_v19 = vpop.f32.mrb[234].mxu1 }
 0x483   : > { %v11843_v45 = vpop.f32.mrb[11].mxu0  ;;  %v11731_v36 = vpop.f32.mrb[235].mxu1 }
 0x484   : > { %v11844_v52 = vadd.f32 %v11843_v45, %v11842_v1  ;;  %v9539_v58 = vadd.f32 %v11729_v54, %v14238_v26  ;;  %v11732_v57 = vadd.f32 %v11731_v36, %v11730_v19 }
 0x486   : > { %v9542_v0 = vadd.f32 %v11732_v57, %v14240_v27  ;;  %v14336_v16 = vadd.f32 %v11841_v63, %v9539_v58 }
 0x488   : > { %v11845_v24 = vpop.f32.mrb[12].mxu0  ;;  %v11733_v53 = vpop.f32.mrb[236].mxu1  ;;  %v14338_v21 = vadd.f32 %v11844_v52, %v9542_v0 }
 0x489   : > { %v11846_v47 = vpop.f32.mrb[13].mxu0  ;;  %v11734_v39 = vpop.f32.mrb[237].mxu1 }
 0x48a   : > { %v11847_v18 = vadd.f32 %v11846_v47, %v11845_v24  ;;  %v11848_v56 = vpop.f32.mrb[14].mxu0  ;;  %v11735_v48 = vadd.f32 %v11734_v39, %v11733_v53  ;;  %v11736_v15 = vpop.f32.mrb[238].mxu1 }
 0x48b   : > { %v11849_v22 = vpop.f32.mrb[15].mxu0  ;;  %v11737_v6 = vpop.f32.mrb[239].mxu1 }
 0x48c   : > { %v11850_v5 = vadd.f32 %v11849_v22, %v11848_v56  ;;  %v9547_v26 = vadd.f32 %v11735_v48, %v14246_v38  ;;  %v11738_v44 = vadd.f32 %v11737_v6, %v11736_v15 }
 0x48e   : > { %v9550_v27 = vadd.f32 %v11738_v44, %v14248_v51  ;;  %v14342_v61 = vadd.f32 %v11847_v18, %v9547_v26 }
 0x490   : > { %v11851_v60 = vpop.f32.mrb[16].mxu0  ;;  %v11739_v40 = vpop.f32.mrb[240].mxu1  ;;  %v14344_v35 = vadd.f32 %v11850_v5, %v9550_v27 }
 0x491   : > { %v11852_v12 = vpop.f32.mrb[17].mxu0  ;;  %v11740_v13 = vpop.f32.mrb[241].mxu1 }
 0x492   : > { %v11853_v33 = vadd.f32 %v11852_v12, %v11851_v60  ;;  %v11854_v42 = vpop.f32.mrb[18].mxu0  ;;  %v11741_v63 = vadd.f32 %v11740_v13, %v11739_v40  ;;  %v11742_v1 = vpop.f32.mrb[242].mxu1 }
 0x493   : > { %v11855_v54 = vpop.f32.mrb[19].mxu0  ;;  %v11743_v19 = vpop.f32.mrb[243].mxu1 }
 0x494   : > { %v11856_v45 = vadd.f32 %v11855_v54, %v11854_v42  ;;  %v9555_v38 = vadd.f32 %v11741_v63, %v14253_v59  ;;  %v11744_v36 = vadd.f32 %v11743_v19, %v11742_v1 }
 0x496   : > { %v9558_v51 = vadd.f32 %v11744_v36, %v14255_v4  ;;  %v14348_v52 = vadd.f32 %v11853_v33, %v9555_v38 }
 0x498   : > { %v11857_v58 = vpop.f32.mrb[20].mxu0  ;;  %v11745_v57 = vpop.f32.mrb[244].mxu1  ;;  %v14350_v0 = vadd.f32 %v11856_v45, %v9558_v51 }
 0x499   : > { %v11858_v24 = vpop.f32.mrb[21].mxu0  ;;  %v11746_v53 = vpop.f32.mrb[245].mxu1 }
 0x49a   : > { %v11859_v47 = vadd.f32 %v11858_v24, %v11857_v58  ;;  %v11860_v39 = vpop.f32.mrb[22].mxu0  ;;  %v11747_v18 = vadd.f32 %v11746_v53, %v11745_v57  ;;  %v11748_v56 = vpop.f32.mrb[246].mxu1 }
 0x49b   : > { %v11861_v48 = vpop.f32.mrb[23].mxu0  ;;  %v11749_v15 = vpop.f32.mrb[247].mxu1 }
 0x49c   : > { %v11862_v22 = vadd.f32 %v11861_v48, %v11860_v39  ;;  %v9563_v59 = vadd.f32 %v11747_v18, %v14259_v29  ;;  %v11750_v6 = vadd.f32 %v11749_v15, %v11748_v56 }
 0x49e   : > { %v9566_v4 = vadd.f32 %v11750_v6, %v14261_v37  ;;  %v14354_v5 = vadd.f32 %v11859_v47, %v9563_v59  ;;  %v8633_v59 = vld [vmem:[%s13070_s6 + $0x10] sm:$0xff] }
 0x4a0   : > { %v11863_v26 = vpop.f32.mrb[24].mxu0  ;;  %v11751_v44 = vpop.f32.mrb[248].mxu1  ;;  %v14356_v27 = vadd.f32 %v11862_v22, %v9566_v4 }
 0x4a1   : > { %v11864_v60 = vpop.f32.mrb[25].mxu0  ;;  %v11752_v40 = vpop.f32.mrb[249].mxu1 }
 0x4a2   : > { %v11865_v12 = vadd.f32 %v11864_v60, %v11863_v26  ;;  %v11866_v13 = vpop.f32.mrb[26].mxu0  ;;  %v11753_v33 = vadd.f32 %v11752_v40, %v11751_v44  ;;  %v11754_v42 = vpop.f32.mrb[250].mxu1  ;;  %v8631_v44 = vld [vmem:[%s13070_s6] sm:$0xff] }
 0x4a3   : > { %v11867_v63 = vpop.f32.mrb[27].mxu0  ;;  %v11755_v1 = vpop.f32.mrb[251].mxu1 }
 0x4a4   : > { %v11868_v54 = vadd.f32 %v11867_v63, %v11866_v13  ;;  %v9571_v29 = vadd.f32 %v11753_v33, %v14266_v46  ;;  %v11756_v19 = vadd.f32 %v11755_v1, %v11754_v42 }
 0x4a6   : > { %v9574_v37 = vadd.f32 %v11756_v19, %v14268_v32  ;;  %v14360_v45 = vadd.f32 %v11865_v12, %v9571_v29  ;;  %v8634_v12 = vld [vmem:[%s13070_s6 + $0x18] sm:$0xff] }
 0x4a8   : > { %v11869_v38 = vpop.f32.mrb[28].mxu0  ;;  %v11757_v36 = vpop.f32.mrb[252].mxu1  ;;  %v14362_v51 = vadd.f32 %v11868_v54, %v9574_v37  ;;  %v8637_v37 = vld [vmem:[%s13070_s6 + $0x30] sm:$0xff] }
 0x4a9   : > { %v11870_v58 = vpop.f32.mrb[29].mxu0  ;;  %v11758_v57 = vpop.f32.mrb[253].mxu1 }
 0x4aa   : > { %v11871_v24 = vadd.f32 %v11870_v58, %v11869_v38  ;;  %v11872_v53 = vpop.f32.mrb[30].mxu0  ;;  %v11759_v47 = vadd.f32 %v11758_v57, %v11757_v36  ;;  %v11760_v39 = vpop.f32.mrb[254].mxu1  ;;  %v8635_v36 = vld [vmem:[%s13070_s6 + $0x20] sm:$0xff] }
 0x4ab   : > { %v11873_v18 = vpop.f32.mrb[31].mxu0  ;;  %v11761_v46 = vpop.f32.mrb[255].mxu1 }
 0x4ac   : > { %v11874_v56 = vadd.f32 %v11873_v18, %v11872_v53  ;;  %v9579_v32 = vadd.f32 %v11759_v47, %v14270_v34  ;;  %v11762_v48 = vadd.f32 %v11761_v46, %v11760_v39  ;;  %v8636_v18 = vld [vmem:[%s13070_s6 + $0x28] sm:$0xff] }
 0x4ae   : > { %v9582_v15 = vadd.f32 %v11762_v48, %v14272_v43  ;;  %v14366_v22 = vadd.f32 %v11871_v24, %v9579_v32  ;;  %v8632_v43 = vld [vmem:[%s13070_s6 + $0x8] sm:$0xff]  ;;  %v8638_v24 = vld [vmem:[%s13070_s6 + $0x38] sm:$0xff] }
 0x4b0   : > { %v11965_v6 = vpop.f32.mrb[0].mxu1  ;;  %v14369_v4 = vadd.f32 %v11874_v56, %v9582_v15 }
 0x4b1   : > { %v9789_v26 = vadd.f32 %v11965_v6, %v14282_v30  ;;  %v9780_v60 = vpop.f32.mrb[1].mxu1 }
 0x4b2   : > { %v9781_v40 = vadd.f32 %v9780_v60, %v14276_v17  ;;  %v11966_v13 = vpop.f32.mrb[2].mxu1  ;;  %v8639_v60 = vld [vmem:[%s13070_s6 + $0x40] sm:$0xff] }
 0x4b3   : > { %v9909_v34 = vadd.f32 %v9789_v26, %v8633_v59  ;;  %v9792_v33 = vadd.f32 %v11966_v13, %v14284_v23  ;;  %v9783_v42 = vpop.f32.mrb[3].mxu1  ;;  %v8641_v26 = vld [vmem:[%s13070_s6 + $0x50] sm:$0xff] }
 0x4b4   : > { %v9907_v63 = vadd.f32 %v9781_v40, %v8631_v44  ;;  %v9784_v1 = vadd.f32 %v9783_v42, %v14278_v2 }
 0x4b5   : > { %v9941_v54 = vmax.f32 %v9909_v34, 0.0  ;;  %v9910_v29 = vadd.f32 %v9792_v33, %v8634_v12  ;;  %v8642_v12 = vld [vmem:[%s13070_s6 + $0x58] sm:$0xff] }
 0x4b6   : > { %v9939_v30 = vmax.f32 %v9907_v63, 0.0  ;;  %v9908_v19 = vadd.f32 %v9784_v1, %v8632_v43  ;;  %v8640_v43 = vld [vmem:[%s13070_s6 + $0x48] sm:$0xff] }
 0x4b7   : > { %9973 = vst [vmem:[%s14380_s16 + $0x10] sm:$0xff] %v9941_v54  ;;  %v9942_v17 = vmax.f32 %v9910_v29, 0.0 }
 0x4b8   : > { %9971 = vst [vmem:[%s14380_s16] sm:$0xff] %v9939_v30  ;;  %v9940_v23 = vmax.f32 %v9908_v19, 0.0  ;;  %v11969_v38 = vpop.f32.mrb[4].mxu1 }
 0x4b9   : > { %9974 = vst [vmem:[%s14380_s16 + $0x18] sm:$0xff] %v9942_v17  ;;  %v9805_v2 = vadd.f32 %v11969_v38, %v14294_v50  ;;  %v9796_v58 = vpop.f32.mrb[5].mxu1  ;;  %v8645_v17 = vld [vmem:[%s13070_s6 + $0x70] sm:$0xff] }
 0x4ba   : > { %9972 = vst [vmem:[%s14380_s16 + $0x8] sm:$0xff] %v9940_v23  ;;  %v9797_v57 = vadd.f32 %v9796_v58, %v14288_v14  ;;  %v11970_v53 = vpop.f32.mrb[6].mxu1 }
 0x4bb   : > { %v9913_v47 = vadd.f32 %v9805_v2, %v8637_v37  ;;  %v9808_v39 = vadd.f32 %v11970_v53, %v14296_v62  ;;  %v9799_v46 = vpop.f32.mrb[7].mxu1  ;;  %v8643_v37 = vld [vmem:[%s13070_s6 + $0x60] sm:$0xff]  ;;  %v8646_v2 = vld [vmem:[%s13070_s6 + $0x78] sm:$0xff] }
 0x4bc   : > { %v9911_v56 = vadd.f32 %v9797_v57, %v8635_v36  ;;  %v9800_v50 = vadd.f32 %v9799_v46, %v14290_v25 }
 0x4bd   : > { %v9945_v32 = vmax.f32 %v9913_v47, 0.0  ;;  %v9914_v48 = vadd.f32 %v9808_v39, %v8638_v24  ;;  %v8644_v24 = vld [vmem:[%s13070_s6 + $0x68] sm:$0xff] }
 0x4be   : > { %v9943_v15 = vmax.f32 %v9911_v56, 0.0  ;;  %v9912_v59 = vadd.f32 %v9800_v50, %v8636_v18 }
 0x4bf   : > { %9977 = vst [vmem:[%s14380_s16 + $0x30] sm:$0xff] %v9945_v32  ;;  %v9946_v14 = vmax.f32 %v9914_v48, 0.0  ;;  %v8649_v32 = vld [vmem:[%s13070_s6 + $0x90] sm:$0xff] }
 0x4c0   : > { %9975 = vst [vmem:[%s14380_s16 + $0x20] sm:$0xff] %v9943_v15  ;;  %v9944_v6 = vmax.f32 %v9912_v59, 0.0  ;;  %v11973_v44 = vpop.f32.mrb[8].mxu1  ;;  %v8647_v15 = vld [vmem:[%s13070_s6 + $0x80] sm:$0xff] }
 0x4c1   : > { %9978 = vst [vmem:[%s14380_s16 + $0x38] sm:$0xff] %v9946_v14  ;;  %v9821_v62 = vadd.f32 %v11973_v44, %v14306_v31  ;;  %v9812_v40 = vpop.f32.mrb[9].mxu1  ;;  %v8650_v14 = vld [vmem:[%s13070_s6 + $0x98] sm:$0xff] }
 0x4c2   : > { %9976 = vst [vmem:[%s14380_s16 + $0x28] sm:$0xff] %v9944_v6  ;;  %v9813_v25 = vadd.f32 %v9812_v40, %v14300_v11  ;;  %v11974_v13 = vpop.f32.mrb[10].mxu1 }
 0x4c3   : > { %v9917_v34 = vadd.f32 %v9821_v62, %v8641_v26  ;;  %v9824_v33 = vadd.f32 %v11974_v13, %v14308_v28  ;;  %v9815_v42 = vpop.f32.mrb[11].mxu1  ;;  %v8648_v62 = vld [vmem:[%s13070_s6 + $0x88] sm:$0xff] }
 0x4c4   : > { %v9915_v63 = vadd.f32 %v9813_v25, %v8639_v60  ;;  %v9816_v31 = vadd.f32 %v9815_v42, %v14302_v20 }
 0x4c5   : > { %v9949_v1 = vmax.f32 %v9917_v34, 0.0  ;;  %v9918_v54 = vadd.f32 %v9824_v33, %v8642_v12 }
 0x4c6   : > { %v9947_v29 = vmax.f32 %v9915_v63, 0.0  ;;  %v9916_v30 = vadd.f32 %v9816_v31, %v8640_v43  ;;  %v8653_v43 = vld [vmem:[%s13070_s6 + $0xb0] sm:$0xff]  ;;  %v8651_v63 = vld [vmem:[%s13070_s6 + $0xa0] sm:$0xff] }
 0x4c7   : > { %9981 = vst [vmem:[%s14380_s16 + $0x50] sm:$0xff] %v9949_v1  ;;  %v9950_v11 = vmax.f32 %v9918_v54, 0.0  ;;  %v8654_v1 = vld [vmem:[%s13070_s6 + $0xb8] sm:$0xff] }
 0x4c8   : > { %9979 = vst [vmem:[%s14380_s16 + $0x40] sm:$0xff] %v9947_v29  ;;  %v9948_v19 = vmax.f32 %v9916_v30, 0.0  ;;  %v11977_v23 = vpop.f32.mrb[12].mxu1 }
 0x4c9   : > { %9982 = vst [vmem:[%s14380_s16 + $0x58] sm:$0xff] %v9950_v11  ;;  %v9837_v28 = vadd.f32 %v11977_v23, %v14318_v55  ;;  %v9828_v38 = vpop.f32.mrb[13].mxu1  ;;  %v8652_v11 = vld [vmem:[%s13070_s6 + $0xa8] sm:$0xff] }
 0x4ca   : > { %9980 = vst [vmem:[%s14380_s16 + $0x48] sm:$0xff] %v9948_v19  ;;  %v9829_v20 = vadd.f32 %v9828_v38, %v14312_v3  ;;  %v11978_v36 = vpop.f32.mrb[14].mxu1 }
 0x4cb   : > { %v9921_v58 = vadd.f32 %v9837_v28, %v8645_v17  ;;  %v9840_v57 = vadd.f32 %v11978_v36, %v14320_v10  ;;  %v9831_v53 = vpop.f32.mrb[15].mxu1 }
 0x4cc   : > { %v9919_v47 = vadd.f32 %v9829_v20, %v8643_v37  ;;  %v9832_v55 = vadd.f32 %v9831_v53, %v14314_v49 }
 0x4cd   : > { %v9953_v39 = vmax.f32 %v9921_v58, 0.0  ;;  %v9922_v18 = vadd.f32 %v9840_v57, %v8646_v2  ;;  %v8657_v2 = vld [vmem:[%s13070_s6 + $0xd0] sm:$0xff]  ;;  %v8655_v58 = vld [vmem:[%s13070_s6 + $0xc0] sm:$0xff] }
 0x4ce   : > { %v9951_v46 = vmax.f32 %v9919_v47, 0.0  ;;  %v9920_v56 = vadd.f32 %v9832_v55, %v8644_v24  ;;  %v8658_v24 = vld [vmem:[%s13070_s6 + $0xd8] sm:$0xff] }
 0x4cf   : > { %9985 = vst [vmem:[%s14380_s16 + $0x70] sm:$0xff] %v9953_v39  ;;  %v9954_v3 = vmax.f32 %v9922_v18, 0.0  ;;  %v8656_v39 = vld [vmem:[%s13070_s6 + $0xc8] sm:$0xff] }
 0x4d0   : > { %9983 = vst [vmem:[%s14380_s16 + $0x60] sm:$0xff] %v9951_v46  ;;  %v9952_v50 = vmax.f32 %v9920_v56, 0.0  ;;  %v11981_v48 = vpop.f32.mrb[16].mxu1 }
 0x4d1   : > { %9986 = vst [vmem:[%s14380_s16 + $0x78] sm:$0xff] %v9954_v3  ;;  %v9853_v10 = vadd.f32 %v11981_v48, %v14330_v8  ;;  %v9844_v59 = vpop.f32.mrb[17].mxu1 }
 0x4d2   : > { %9984 = vst [vmem:[%s14380_s16 + $0x68] sm:$0xff] %v9952_v50  ;;  %v9845_v49 = vadd.f32 %v9844_v59, %v14324_v9  ;;  %v11982_v6 = vpop.f32.mrb[18].mxu1  ;;  %v8659_v59 = vld [vmem:[%s13070_s6 + $0xe0] sm:$0xff] }
 0x4d3   : > { %v9925_v26 = vadd.f32 %v9853_v10, %v8649_v32  ;;  %v9856_v44 = vadd.f32 %v11982_v6, %v14332_v41  ;;  %v9847_v60 = vpop.f32.mrb[19].mxu1  ;;  %v8661_v10 = vld [vmem:[%s13070_s6 + $0xf0] sm:$0xff] }
 0x4d4   : > { %v9923_v40 = vadd.f32 %v9845_v49, %v8647_v15  ;;  %v9848_v8 = vadd.f32 %v9847_v60, %v14326_v7 }
 0x4d5   : > { %v9957_v25 = vmax.f32 %v9925_v26, 0.0  ;;  %v9926_v12 = vadd.f32 %v9856_v44, %v8650_v14  ;;  %v8662_v14 = vld [vmem:[%s13070_s6 + $0xf8] sm:$0xff] }
 0x4d6   : > { %v9955_v13 = vmax.f32 %v9923_v40, 0.0  ;;  %v9924_v34 = vadd.f32 %v9848_v8, %v8648_v62  ;;  %v8660_v62 = vld [vmem:[%s13070_s6 + $0xe8] sm:$0xff]  ;;  %s12780_s6 = scalar_lea.vmem %s14474_s12, 4096 }
 0x4d7   : > { %9989 = vst [vmem:[%s14380_s16 + $0x90] sm:$0xff] %v9957_v25  ;;  %v9958_v9 = vmax.f32 %v9926_v12, 0.0  ;;  %p12781_p11 = scmp.ne.s32.totalorder %s14474_s12, %s12780_s6  ;;  %p12788_p9 = scmp.lt.s32.totalorder %s12786_s8, %s12780_s6 }
 0x4d8   : > { %9987 = vst [vmem:[%s14380_s16 + $0x80] sm:$0xff] %v9955_v13  ;;  %v9956_v33 = vmax.f32 %v9924_v34, 0.0  ;;  %v11985_v42 = vpop.f32.mrb[20].mxu1 }
 0x4d9   : > { %9990 = vst [vmem:[%s14380_s16 + $0x98] sm:$0xff] %v9958_v9  ;;  %v9869_v41 = vadd.f32 %v11985_v42, %v14342_v61  ;;  %v9860_v31 = vpop.f32.mrb[21].mxu1  ;;  %p12782_p1 = pnand %p12781_p11, %p14548_p0  ;;  %p12789_p12 = por %p12788_p9, %p12787_p7 }
 0x4da   : > { %9988 = vst [vmem:[%s14380_s16 + $0x88] sm:$0xff] %v9956_v33  ;;  %v9861_v7 = vadd.f32 %v9860_v31, %v14336_v16  ;;  %v11986_v54 = vpop.f32.mrb[22].mxu1 }
 0x4db   : > { %v9929_v29 = vadd.f32 %v9869_v41, %v8653_v43  ;;  %v9872_v30 = vadd.f32 %v11986_v54, %v14344_v35  ;;  %v9863_v19 = vpop.f32.mrb[23].mxu1  ;;  %p12783_p3 = pneg %p12782_p1 }
 0x4dc   : > { %v9927_v17 = vadd.f32 %v9861_v7, %v8651_v63  ;;  %v9864_v61 = vadd.f32 %v9863_v19, %v14338_v21 }
 0x4dd   : > { %v9961_v23 = vmax.f32 %v9929_v29, 0.0  ;;  %v9930_v28 = vadd.f32 %v9872_v30, %v8654_v1  ;;  %p12790_p2 = pnand %p12789_p12, %p12783_p3 }
 0x4de   : > { %v9959_v37 = vmax.f32 %v9927_v17, 0.0  ;;  %v9928_v38 = vadd.f32 %v9864_v61, %v8652_v11 }
 0x4df   : > { %9993 = vst [vmem:[%s14380_s16 + $0xb0] sm:$0xff] %v9961_v23  ;;  %v9962_v16 = vmax.f32 %v9930_v28, 0.0 }
 0x4e0   : > { %9991 = vst [vmem:[%s14380_s16 + $0xa0] sm:$0xff] %v9959_v37  ;;  %v9960_v20 = vmax.f32 %v9928_v38, 0.0  ;;  %v11989_v36 = vpop.f32.mrb[24].mxu1 }
 0x4e1   : > { %9994 = vst [vmem:[%s14380_s16 + $0xb8] sm:$0xff] %v9962_v16  ;;  %v9885_v35 = vadd.f32 %v11989_v36, %v14354_v5  ;;  %v9876_v57 = vpop.f32.mrb[25].mxu1 }
 0x4e2   : > { %9992 = vst [vmem:[%s14380_s16 + $0xa8] sm:$0xff] %v9960_v20  ;;  %v9877_v21 = vadd.f32 %v9876_v57, %v14348_v52  ;;  %v11990_v53 = vpop.f32.mrb[26].mxu1 }
 0x4e3   : > { %v9933_v47 = vadd.f32 %v9885_v35, %v8657_v2  ;;  %v9888_v55 = vadd.f32 %v11990_v53, %v14356_v27  ;;  %v9879_v18 = vpop.f32.mrb[27].mxu1 }
 0x4e4   : > { %v9931_v46 = vadd.f32 %v9877_v21, %v8655_v58  ;;  %v9880_v5 = vadd.f32 %v9879_v18, %v14350_v0 }
 0x4e5   : > { %v9965_v56 = vmax.f32 %v9933_v47, 0.0  ;;  %v9934_v3 = vadd.f32 %v9888_v55, %v8658_v24 }
 0x4e6   : > { %v9963_v50 = vmax.f32 %v9931_v46, 0.0  ;;  %v9932_v32 = vadd.f32 %v9880_v5, %v8656_v39 }
 0x4e7   : > { %9997 = vst [vmem:[%s14380_s16 + $0xd0] sm:$0xff] %v9965_v56  ;;  %v9966_v52 = vmax.f32 %v9934_v3, 0.0 }
 0x4e8   : > { %9995 = vst [vmem:[%s14380_s16 + $0xc0] sm:$0xff] %v9963_v50  ;;  %v9964_v48 = vmax.f32 %v9932_v32, 0.0  ;;  %v11993_v27 = vpop.f32.mrb[28].mxu1 }
 0x4e9   : > { %9998 = vst [vmem:[%s14380_s16 + $0xd8] sm:$0xff] %v9966_v52  ;;  %v9901_v15 = vadd.f32 %v11993_v27, %v14366_v22  ;;  %v9892_v49 = vpop.f32.mrb[29].mxu1 }
 0x4ea   : > { %9996 = vst [vmem:[%s14380_s16 + $0xc8] sm:$0xff] %v9964_v48  ;;  %v9893_v0 = vadd.f32 %v9892_v49, %v14360_v45  ;;  %v11994_v6 = vpop.f32.mrb[30].mxu1 }
 0x4eb   : > { %v9937_v26 = vadd.f32 %v9901_v15, %v8661_v10  ;;  %v9904_v44 = vadd.f32 %v11994_v6, %v14369_v4  ;;  %v9895_v60 = vpop.f32.mrb[31].mxu1 }
 0x4ec   : > { %v9935_v40 = vadd.f32 %v9893_v0, %v8659_v59  ;;  %v9896_v22 = vadd.f32 %v9895_v60, %v14362_v51 }
 0x4ed   : > { %v9969_v8 = vmax.f32 %v9937_v26, 0.0  ;;  %v9938_v25 = vadd.f32 %v9904_v44, %v8662_v14 }
 0x4ee   : > { %v9967_v45 = vmax.f32 %v9935_v40, 0.0  ;;  %v9936_v12 = vadd.f32 %v9896_v22, %v8660_v62 }
 0x4ef   : > { %10001 = vst [vmem:[%s14380_s16 + $0xf0] sm:$0xff] %v9969_v8  ;;  %v9970_v13 = vmax.f32 %v9938_v25, 0.0 }
 0x4f0   : > { %9999 = vst [vmem:[%s14380_s16 + $0xe0] sm:$0xff] %v9967_v45  ;;  %v9968_v51 = vmax.f32 %v9936_v12, 0.0 }
 0x4f1   : > { %10002 = vst [vmem:[%s14380_s16 + $0xf8] sm:$0xff] %v9970_v13 }
 0x4f2   : > { %10000 = vst [vmem:[%s14380_s16 + $0xe8] sm:$0xff] %v9968_v51 }
 0x4f3   : > { %12793 = shalt.err (!%p12790_p2)
}
 0x4f4   : > { %s12794_s10 = scalar_lea.hbm %s14472_s7, 4096  ;;  %s12798_s30 = scalar_lea.hbm %s14526_s5, 8192 }
 0x4f5   : > { %p12795_p13 = scmp.ne.s32.totalorder %s14472_s7, %s12794_s10  ;;  %p12799_p4 = scmp.lt.u32.totalorder %s14472_s7, %s14526_s5 }
 0x4f6   : > { %p12800_p5 = scmp.lt.u32.totalorder %s12798_s30, %s12794_s10  ;;  %p12802_p11 = scmp.lt.u32.totalorder %s12794_s10, %s14472_s7 }
 0x4f7   : > { %p12796_p6 = pnand %p12795_p13, %p14548_p0 }
 0x4f8   : > { %p12801_p8 = por %p12800_p5, %p12799_p4 }
 0x4f9   : > { %p12797_p10 = pneg %p12796_p6 }
 0x4fa   : > { %p12803_p1 = por %p12802_p11, %p12801_p8 }
 0x4fc   : > { %p12804_p3 = pnand %p12803_p1, %p12797_p10 }
 0x4fe   : > { %12807 = shalt.err (!%p12804_p3)
}
 0x4ff   : > { %s12860_s9 = smov 128   ;;  %s12861_s13 = smov 8  }
 0x500   : > { %12005 = dma.vmem_to_hbm [thread:$0]  (%p14548_p0), %s14474_s12, 4096, %s14472_s7, %s10004_s22, %s12860_s9, %s12860_s9, %s12861_s13  }
 0x501 PF: > { %s10032_s17 = sand.u32 1, %s12838_s18   ;;  %p14549_p7 = scmp.ne.s32.totalorder %s14531_s25, 0 }
 0x502   : > { %p14550_p9 = scmp.ge.s32.totalorder %s12850_s21, 2  ;;  %s10033_s6 = scalar_lea.sflag [#allocation6], %s10032_s17 }
 0x504   : > { %p12019_p12 = pnand %p14550_p9, %p14549_p7 }
 0x506   : > { %12833 = dma.done.wait (!%p12019_p12), %s10033_s6, 4096  }
 0x507   : > { %12835 = vsyncadd (!%p12019_p12), %s10033_s6, 4294963200  ;;  %p19_p2 = scmp.ge.s32.totalorder %s13002_s14, 4   ;;  %s14551_s18 = smov %s12842_s19 }
 0x508   : > { %s14552_s19 = smov %s12846_s20  ;;  %s14553_s20 = smov %s13018_s27 }
 0x509   : > { %s14554_s21 = smov %s13002_s14  ;;  %21 = sbr.rel (!%p19_p2) target bundleno = 6 (0x6), region = 96 }
 0x510   :  { %10038 = vsyncpa [#allocation5], 1 }
 0x511   :  { %10040 = vsyncpa [#allocation5 + $0x1], 1 }
 0x512   :  { %10041 = vsyncpa [#allocation8], 1 }
 0x513   :  { %10042 = vsyncpa [#allocation6], 1 }
 0x514   :  { %10044 = vsyncpa [#allocation6 + $0x1], 1 }

</bundles_post_ra>
